<compile_context>
chip_gen: v6e
topology: v6e:2x2x1
jax: 0.10.0
libtpu: 0.0.40
codegen_flags: <defaults>
</compile_context>

<pallas_src>
import jax
import jax.numpy as jnp
import numpy as np
from jax.experimental import pallas as pl
from jax.experimental.pallas import tpu as pltpu

VOCAB = 100      # vocablen
D = 32           # embedding_dim
L = 4            # num_layers
N_MAX = 16       # padded node count per graph


def ggnn_clone_kernel(x_ref, adj_ref, segt_ref,
                      wx_ref, brz_ref, bin_ref, bhn_ref,
                      gw_ref, gb_ref, cw_ref, cb_ref,
                      y_ref):
    """One grid step = PB pairs = 2*PB graphs; all nodes stacked on the sublane axis."""
    x = x_ref[0]            # [M, D]   f32 node embeddings (padded nodes are zero rows)
    adj = adj_ref[0]        # [M, M]   bf16 block-diagonal weighted adjacency A[dst, src]
    segt = segt_ref[0]      # [S, M]   bf16 transposed one-hot: graph segment -> its valid nodes
    d = x.shape[-1]
    num_layers = wx_ref.shape[0]

    # ---- GatedGraphConv, static unroll; per layer only TWO serial MXU matmuls ----
    # wx_ref[l] = [ W[l] @ Wih^T  (lanes 0..3d-1, zero-padded to 128) | Whh^T (lanes 128..128+3d-1) ]
    for layer in range(num_layers):
        xb = x.astype(jnp.bfloat16)
        fused = jnp.dot(xb, wx_ref[layer], preferred_element_type=jnp.float32)     # [M, 256]
        gh = fused[:, 128:]                                                        # x @ Whh^T (padded)
        gi = jnp.dot(adj, fused[:, :128].astype(jnp.bfloat16),
                     preferred_element_type=jnp.float32)                           # (A @ x @ W) @ Wih^T
        # GRUCell (PyTorch gate order r, z, n); r/z biases pre-summed on host.
        rz = jax.nn.sigmoid(gi[:, :2 * d] + gh[:, :2 * d] + brz_ref[...])
        r = rz[:, :d]
        z = rz[:, d:]
        n = jnp.tanh(gi[:, 2 * d:3 * d] + bin_ref[...]
                     + r * (gh[:, 2 * d:3 * d] + bhn_ref[...]))
        x = n + z * (x - n)

    # ---- GlobalAttention pooling as one lane-dense segT matmul ----
    # gate = sigmoid(.) in (0,1) => exp(gate) is bounded, no max-subtraction needed;
    # padded / foreign rows are zeroed by segt in both numerator and denominator.
    gate = jax.nn.sigmoid(jnp.sum(x * gw_ref[...], axis=-1, keepdims=True) + gb_ref[0, 0])
    e = jnp.exp(gate)                                                              # [M, 1]
    exd = jnp.concatenate([e * x, jnp.broadcast_to(e, x.shape)], axis=-1)          # [M, 2D]
    pooled = jnp.dot(segt, exd.astype(jnp.bfloat16),
                     preferred_element_type=jnp.float32)                           # [S, 2D]
    # lanes 0..d-1 = unnormalized sum(attn*h); lanes d..2d-1 all hold the softmax denominator.
    # NOTE: a segment with zero valid nodes would give denom==0 -> inf; host packing guarantees >=1 node.
    hg = pooled[:, :d] * pl.reciprocal(pooled[:, d:], approx=True)                 # [S, D]

    # ---- |lvec - rvec| -> Linear(D,1) -> sigmoid ; full (8,128) output tile ----
    pb = segt.shape[0] // 2                     # segments 0..pb-1 = lefts, pb..2pb-1 = rights
    dist = jnp.abs(hg[:pb] - hg[pb:])                                              # [PB, D]
    logit = jnp.sum(dist * cw_ref[...], axis=-1, keepdims=True) + cb_ref[0, 0]     # [PB, 1]
    y_ref[0] = jnp.broadcast_to(jax.nn.sigmoid(logit), (pb, y_ref.shape[-1]))


def ggnn_clone_detector(x_all, adj_all, segt_all, params):
    """Batched forward. Returns [B, 1] sigmoid clone scores (module semantics per pair)."""
    nb, m, d = x_all.shape
    s = segt_all.shape[1]
    pb = s // 2
    nl, _, wxd = params["WX"].shape
    smem = pltpu.MemorySpace.SMEM

    in_specs = [
        pl.BlockSpec((1, m, d), lambda i: (i, 0, 0)),      # node features (f32)
        pl.BlockSpec((1, m, m), lambda i: (i, 0, 0)),      # block-diag adjacency (bf16)
        pl.BlockSpec((1, s, m), lambda i: (i, 0, 0)),      # transposed segment one-hots (bf16)
        pl.BlockSpec((nl, d, wxd), lambda i: (0, 0, 0)),   # fused [W@Wih^T | Whh^T] per layer (bf16)
        pl.BlockSpec((1, 2 * d), lambda i: (0, 0)),        # fused r/z bias (f32)
        pl.BlockSpec((1, d), lambda i: (0, 0)),            # b_ih (n gate)
        pl.BlockSpec((1, d), lambda i: (0, 0)),            # b_hh (n gate)
        pl.BlockSpec((1, d), lambda i: (0, 0)),            # attention gate weight
        pl.BlockSpec(memory_space=smem),                   # attention gate bias (1,1)
        pl.BlockSpec((1, d), lambda i: (0, 0)),            # hidden2label weight
        pl.BlockSpec(memory_space=smem),                   # hidden2label bias (1,1)
    ]
    out = pl.pallas_call(
        ggnn_clone_kernel,
        grid=(nb,),
        in_specs=in_specs,
        out_specs=pl.BlockSpec((1, pb, 128), lambda i: (i, 0, 0)),
        out_shape=jax.ShapeDtypeStruct((nb, pb, 128), jnp.float32),
        compiler_params=pltpu.CompilerParams(
            dimension_semantics=("parallel",)),            # v7x: 2 TCs split the batch blocks
    )(x_all, adj_all, segt_all,
      params["WX"], params["b_rz"], params["b_in"], params["b_hn"],
      params["gate_w"], params["gate_b"], params["cls_w"], params["cls_b"])
    return out[:, :, 0].reshape(nb * pb, 1)


if __name__ == "__main__":
    B = 64           # graph pairs -> nb = 8 grid steps (4 per TC on v7x)
    PB = 8           # pairs per grid block -> M = PB*2*N_MAX = 256 node rows per matmul
    assert B % PB == 0

    key = jax.random.PRNGKey(0)
    keys = jax.random.split(key, 12)

    # ---- deterministic parameter init (shapes from the PyTorch module) ----
    embed_w      = 0.1 * jax.random.normal(keys[0], (VOCAB, D), jnp.float32)   # nn.Embedding
    edge_embed_w = 0.1 * jax.random.normal(keys[1], (7, D), jnp.float32)       # nn.Embedding(7, D)
    W            = 0.1 * jax.random.normal(keys[2], (L, D, D), jnp.float32)    # GatedGraphConv.weight
    weight_ih    = 0.1 * jax.random.normal(keys[3], (3 * D, D), jnp.float32)   # GRUCell.weight_ih
    weight_hh    = 0.1 * jax.random.normal(keys[4], (3 * D, D), jnp.float32)   # GRUCell.weight_hh
    bias_ih      = 0.1 * jax.random.normal(keys[5], (3 * D,), jnp.float32)
    bias_hh      = 0.1 * jax.random.normal(keys[6], (3 * D,), jnp.float32)
    gate_w       = 0.1 * jax.random.normal(keys[7], (1, D), jnp.float32)       # mlp_gate Linear(D,1)
    gate_b       = 0.1 * jax.random.normal(keys[8], (1,), jnp.float32)
    cls_w        = 0.1 * jax.random.normal(keys[9], (1, D), jnp.float32)       # hidden2label
    cls_b        = 0.1 * jax.random.normal(keys[10], (1,), jnp.float32)

    # ---- host-side weight fusion: WX[l] = [ pad128(W[l] @ Wih^T) | pad128(Whh^T) ] ----
    W_np   = np.asarray(W)
    wih_np = np.asarray(weight_ih)
    whh_np = np.asarray(weight_hh)
    WX_np = np.zeros((L, D, 256), np.float32)
    WX_np[:, :, :3 * D] = np.matmul(W_np, wih_np.T)          # [L, D, 3D]
    WX_np[:, :, 128:128 + 3 * D] = whh_np.T[None]            # broadcast over layers

    params = {
        "WX": jnp.asarray(WX_np, jnp.bfloat16),
        "b_rz": (bias_ih[:2 * D] + bias_hh[:2 * D]).reshape(1, 2 * D),
        "b_in": bias_ih[2 * D:].reshape(1, D),
        "b_hn": bias_hh[2 * D:].reshape(1, D),
        "gate_w": gate_w,
        "gate_b": gate_b.reshape(1, 1),
        "cls_w": cls_w,
        "cls_b": cls_b.reshape(1, 1),
    }

    # ---- build synthetic graph pairs; embedding gather + scatter stay in host glue ----
    # TODO(synk): embedding gathers and edge-list -> dense weighted adjacency scatter are
    # data-dependent gather/scatter done on the host, not inside the Pallas kernel.
    embed_np = np.asarray(embed_w)
    edge_embed_np = np.asarray(edge_embed_w)
    rng = np.random.default_rng(0)

    def make_graph(n_nodes, n_edges):
        node_ids = rng.integers(0, VOCAB, size=n_nodes)
        edges = rng.integers(0, n_nodes, size=(2, n_edges))    # [src; dst]
        edge_types = rng.integers(1, 8, size=n_edges)          # 1..7
        return node_ids, edges, edge_types

    def prep_graph(node_ids, edges, edge_types):
        n = node_ids.shape[0]
        x0 = np.zeros((N_MAX, D), np.float32)
        x0[:n] = embed_np[node_ids]
        ew = edge_embed_np[edge_types - 1].mean(axis=1)         # scalar edge weight
        adj = np.zeros((N_MAX, N_MAX), np.float32)
        np.add.at(adj, (edges[1], edges[0]), ew)                # A[dst, src] += ew
        mask = np.zeros((N_MAX, 1), np.float32)
        mask[:n] = 1.0
        return x0, adj, mask

    pairs = []
    for _ in range(B):
        n1 = int(rng.integers(8, N_MAX + 1)); n2 = int(rng.integers(8, N_MAX + 1))
        e1 = int(rng.integers(n1, 2 * n1));   e2 = int(rng.integers(n2, 2 * n2))
        g1 = make_graph(n1, e1)
        g2 = make_graph(n2, e2)
        pairs.append((prep_graph(*g1), prep_graph(*g2)))

    # ---- pack B pairs into NB blocks: left graphs (segments 0..PB-1) then rights (PB..2PB-1) ----
    NB = B // PB
    M = PB * 2 * N_MAX
    S = 2 * PB
    x_all = np.zeros((NB, M, D), np.float32)
    adj_all = np.zeros((NB, M, M), np.float32)
    segt_all = np.zeros((NB, S, M), np.float32)
    for b, (gl, gr) in enumerate(pairs):
        blk, p = divmod(b, PB)
        for side, (x0, adj, mask) in enumerate((gl, gr)):
            seg_id = p if side == 0 else PB + p
            r0 = seg_id * N_MAX
            x_all[blk, r0:r0 + N_MAX] = x0
            adj_all[blk, r0:r0 + N_MAX, r0:r0 + N_MAX] = adj
            segt_all[blk, seg_id, r0:r0 + N_MAX] = mask[:, 0]

    y = jax.block_until_ready(
        ggnn_clone_detector(jnp.asarray(x_all),
                            jnp.asarray(adj_all, jnp.bfloat16),
                            jnp.asarray(segt_all, jnp.bfloat16),
                            params))

    # ---- pure-numpy f32 reference (GatedGraphConv + GRUCell + GlobalAttention) ----
    def np_sigmoid(v):
        return 1.0 / (1.0 + np.exp(-v))

    bih_np = np.asarray(bias_ih); bhh_np = np.asarray(bias_hh)
    gw_np = np.asarray(gate_w); gb_np = np.asarray(gate_b)
    cw_np = np.asarray(cls_w); cb_np = np.asarray(cls_b)

    def encode_ref(x0, adj, mask):
        h = x0.copy()
        for layer in range(L):
            m = adj @ (h @ W_np[layer])
            gi = m @ wih_np.T + bih_np
            gh = h @ whh_np.T + bhh_np
            r = np_sigmoid(gi[:, :D] + gh[:, :D])
            z = np_sigmoid(gi[:, D:2 * D] + gh[:, D:2 * D])
            n = np.tanh(gi[:, 2 * D:] + r * gh[:, 2 * D:])
            h = n + z * (h - n)
        gate = np_sigmoid(h @ gw_np.T + gb_np)
        gate = np.where(mask > 0.0, gate, -1e30)
        e = np.exp(gate - gate.max(axis=0, keepdims=True)) * mask
        attn = e / e.sum(axis=0, keepdims=True)
        return (attn * h).sum(axis=0, keepdims=True)

    y_ref = []
    for gl, gr in pairs:
        lv, rv = encode_ref(*gl), encode_ref(*gr)
        y_ref.append(np_sigmoid(np.abs(lv - rv) @ cw_np.T + cb_np))
    y_ref = np.concatenate(y_ref, axis=0)

    np.testing.assert_allclose(np.asarray(y), y_ref, atol=2e-2, rtol=0)
    print("KERNEL_OK")
</pallas_src>

<mosaic_0001>
module attributes {stable_mosaic.version = 11 : i64} {
  func.func @ggnn_clone_kernel(%arg0: i32, %arg1: memref<1x256x32xf32, #tpu.memory_space<vmem>>, %arg2: memref<1x256x256xbf16, #tpu.memory_space<vmem>>, %arg3: memref<1x16x256xbf16, #tpu.memory_space<vmem>>, %arg4: memref<4x32x256xbf16, #tpu.memory_space<vmem>>, %arg5: memref<1x64xf32, #tpu.memory_space<vmem>>, %arg6: memref<1x32xf32, #tpu.memory_space<vmem>>, %arg7: memref<1x32xf32, #tpu.memory_space<vmem>>, %arg8: memref<1x32xf32, #tpu.memory_space<vmem>>, %arg9: memref<1x1xf32, #tpu.memory_space<smem>>, %arg10: memref<1x32xf32, #tpu.memory_space<vmem>>, %arg11: memref<1x1xf32, #tpu.memory_space<smem>>, %arg12: memref<1x8x128xf32, #tpu.memory_space<vmem>>) attributes {dimension_semantics = [#tpu.dimension_semantics<parallel>], iteration_bounds = array<i64: 8>, scalar_prefetch = 0 : i64, scratch_operands = 0 : i64, tpu.core_type = #tpu.core_type<tc>, window_params = [{transform_indices = @transform_0, window_bounds = array<i64: 1, 256, 32>}, {transform_indices = @transform_1, window_bounds = array<i64: 1, 256, 256>}, {transform_indices = @transform_2, window_bounds = array<i64: 1, 16, 256>}, {pipeline_mode = #tpu.pipeline_mode<synchronous>, transform_indices = @transform_3, window_bounds = array<i64: 4, 32, 256>}, {pipeline_mode = #tpu.pipeline_mode<synchronous>, transform_indices = @transform_4, window_bounds = array<i64: 1, 64>}, {pipeline_mode = #tpu.pipeline_mode<synchronous>, transform_indices = @transform_5, window_bounds = array<i64: 1, 32>}, {pipeline_mode = #tpu.pipeline_mode<synchronous>, transform_indices = @transform_6, window_bounds = array<i64: 1, 32>}, {pipeline_mode = #tpu.pipeline_mode<synchronous>, transform_indices = @transform_7, window_bounds = array<i64: 1, 32>}, {transform_indices = @transform_8, window_bounds = array<i64: 1, 1>}, {pipeline_mode = #tpu.pipeline_mode<synchronous>, transform_indices = @transform_9, window_bounds = array<i64: 1, 32>}, {transform_indices = @transform_10, window_bounds = array<i64: 1, 1>}, {transform_indices = @transform_11, window_bounds = array<i64: 1, 8, 128>}]} {
    %c0 = arith.constant 0 : index
    %c0_0 = arith.constant 0 : index
    %c0_1 = arith.constant 0 : index
    %0 = vector.load %arg1[%c0, %c0_0, %c0_1] : memref<1x256x32xf32, #tpu.memory_space<vmem>>, vector<1x256x32xf32>
    %1 = vector.shape_cast %0 : vector<1x256x32xf32> to vector<256x32xf32>
    %c0_2 = arith.constant 0 : index
    %c0_3 = arith.constant 0 : index
    %c0_4 = arith.constant 0 : index
    %2 = vector.load %arg2[%c0_2, %c0_3, %c0_4] : memref<1x256x256xbf16, #tpu.memory_space<vmem>>, vector<1x256x256xbf16>
    %3 = vector.shape_cast %2 : vector<1x256x256xbf16> to vector<256x256xbf16>
    %c0_5 = arith.constant 0 : index
    %c0_6 = arith.constant 0 : index
    %c0_7 = arith.constant 0 : index
    %4 = vector.load %arg3[%c0_5, %c0_6, %c0_7] : memref<1x16x256xbf16, #tpu.memory_space<vmem>>, vector<1x16x256xbf16>
    %5 = vector.shape_cast %4 : vector<1x16x256xbf16> to vector<16x256xbf16>
    %6 = arith.truncf %1 : vector<256x32xf32> to vector<256x32xbf16>
    %c0_8 = arith.constant 0 : index
    %c0_9 = arith.constant 0 : index
    %c0_10 = arith.constant 0 : index
    %7 = vector.load %arg4[%c0_8, %c0_9, %c0_10] : memref<4x32x256xbf16, #tpu.memory_space<vmem>>, vector<1x32x256xbf16>
    %8 = vector.shape_cast %7 : vector<1x32x256xbf16> to vector<32x256xbf16>
    %cst = arith.constant dense<0.000000e+00> : vector<256x256xf32>
    %9 = tpu.matmul %6, %8, %cst {dimension_numbers = #tpu.dot_dimension_numbers<[1], [0], [0], [1], [0, 0, 1, 1], [], []>} : vector<256x32xbf16>, vector<32x256xbf16>, vector<256x256xf32> -> vector<256x256xf32>
    %10 = vector.extract_strided_slice %9 {offsets = [0, 128], sizes = [256, 128], strides = [1, 1]} : vector<256x256xf32> to vector<256x128xf32>
    %11 = vector.extract_strided_slice %9 {offsets = [0, 0], sizes = [256, 128], strides = [1, 1]} : vector<256x256xf32> to vector<256x128xf32>
    %12 = arith.truncf %11 : vector<256x128xf32> to vector<256x128xbf16>
    %cst_11 = arith.constant dense<0.000000e+00> : vector<256x128xf32>
    %13 = tpu.matmul %3, %12, %cst_11 {dimension_numbers = #tpu.dot_dimension_numbers<[1], [0], [0], [1], [0, 0, 1, 1], [], []>} : vector<256x256xbf16>, vector<256x128xbf16>, vector<256x128xf32> -> vector<256x128xf32>
    %14 = vector.extract_strided_slice %13 {offsets = [0, 0], sizes = [256, 64], strides = [1, 1]} : vector<256x128xf32> to vector<256x64xf32>
    %15 = vector.extract_strided_slice %10 {offsets = [0, 0], sizes = [256, 64], strides = [1, 1]} : vector<256x128xf32> to vector<256x64xf32>
    %16 = arith.addf %14, %15 : vector<256x64xf32>
    %c0_12 = arith.constant 0 : index
    %c0_13 = arith.constant 0 : index
    %17 = vector.load %arg5[%c0_12, %c0_13] : memref<1x64xf32, #tpu.memory_space<vmem>>, vector<1x64xf32>
    %18 = vector.broadcast %17 : vector<1x64xf32> to vector<256x64xf32>
    %19 = arith.addf %16, %18 : vector<256x64xf32>
    %20 = arith.negf %19 : vector<256x64xf32>
    %21 = math.exp %20 : vector<256x64xf32>
    %cst_14 = arith.constant 1.000000e+00 : f32
    %22 = vector.broadcast %cst_14 : f32 to vector<256x64xf32>
    %23 = arith.addf %22, %21 : vector<256x64xf32>
    %24 = arith.divf %22, %23 : vector<256x64xf32>
    %25 = vector.extract_strided_slice %24 {offsets = [0, 0], sizes = [256, 32], strides = [1, 1]} : vector<256x64xf32> to vector<256x32xf32>
    %26 = vector.extract_strided_slice %24 {offsets = [0, 32], sizes = [256, 32], strides = [1, 1]} : vector<256x64xf32> to vector<256x32xf32>
    %27 = vector.extract_strided_slice %13 {offsets = [0, 64], sizes = [256, 32], strides = [1, 1]} : vector<256x128xf32> to vector<256x32xf32>
    %c0_15 = arith.constant 0 : index
    %c0_16 = arith.constant 0 : index
    %28 = vector.load %arg6[%c0_15, %c0_16] : memref<1x32xf32, #tpu.memory_space<vmem>>, vector<1x32xf32>
    %29 = vector.broadcast %28 : vector<1x32xf32> to vector<256x32xf32>
    %30 = arith.addf %27, %29 : vector<256x32xf32>
    %31 = vector.extract_strided_slice %10 {offsets = [0, 64], sizes = [256, 32], strides = [1, 1]} : vector<256x128xf32> to vector<256x32xf32>
    %c0_17 = arith.constant 0 : index
    %c0_18 = arith.constant 0 : index
    %32 = vector.load %arg7[%c0_17, %c0_18] : memref<1x32xf32, #tpu.memory_space<vmem>>, vector<1x32xf32>
    %33 = vector.broadcast %32 : vector<1x32xf32> to vector<256x32xf32>
    %34 = arith.addf %31, %33 : vector<256x32xf32>
    %35 = arith.mulf %25, %34 : vector<256x32xf32>
    %36 = arith.addf %30, %35 : vector<256x32xf32>
    %37 = math.tanh %36 : vector<256x32xf32>
    %38 = arith.subf %1, %37 : vector<256x32xf32>
    %39 = arith.mulf %26, %38 : vector<256x32xf32>
    %40 = arith.addf %37, %39 : vector<256x32xf32>
    %41 = arith.truncf %40 : vector<256x32xf32> to vector<256x32xbf16>
    %c1 = arith.constant 1 : index
    %c0_19 = arith.constant 0 : index
    %c0_20 = arith.constant 0 : index
    %42 = vector.load %arg4[%c1, %c0_19, %c0_20] : memref<4x32x256xbf16, #tpu.memory_space<vmem>>, vector<1x32x256xbf16>
    %43 = vector.shape_cast %42 : vector<1x32x256xbf16> to vector<32x256xbf16>
    %cst_21 = arith.constant dense<0.000000e+00> : vector<256x256xf32>
    %44 = tpu.matmul %41, %43, %cst_21 {dimension_numbers = #tpu.dot_dimension_numbers<[1], [0], [0], [1], [0, 0, 1, 1], [], []>} : vector<256x32xbf16>, vector<32x256xbf16>, vector<256x256xf32> -> vector<256x256xf32>
    %45 = vector.extract_strided_slice %44 {offsets = [0, 128], sizes = [256, 128], strides = [1, 1]} : vector<256x256xf32> to vector<256x128xf32>
    %46 = vector.extract_strided_slice %44 {offsets = [0, 0], sizes = [256, 128], strides = [1, 1]} : vector<256x256xf32> to vector<256x128xf32>
    %47 = arith.truncf %46 : vector<256x128xf32> to vector<256x128xbf16>
    %cst_22 = arith.constant dense<0.000000e+00> : vector<256x128xf32>
    %48 = tpu.matmul %3, %47, %cst_22 {dimension_numbers = #tpu.dot_dimension_numbers<[1], [0], [0], [1], [0, 0, 1, 1], [], []>} : vector<256x256xbf16>, vector<256x128xbf16>, vector<256x128xf32> -> vector<256x128xf32>
    %49 = vector.extract_strided_slice %48 {offsets = [0, 0], sizes = [256, 64], strides = [1, 1]} : vector<256x128xf32> to vector<256x64xf32>
    %50 = vector.extract_strided_slice %45 {offsets = [0, 0], sizes = [256, 64], strides = [1, 1]} : vector<256x128xf32> to vector<256x64xf32>
    %51 = arith.addf %49, %50 : vector<256x64xf32>
    %c0_23 = arith.constant 0 : index
    %c0_24 = arith.constant 0 : index
    %52 = vector.load %arg5[%c0_23, %c0_24] : memref<1x64xf32, #tpu.memory_space<vmem>>, vector<1x64xf32>
    %53 = vector.broadcast %52 : vector<1x64xf32> to vector<256x64xf32>
    %54 = arith.addf %51, %53 : vector<256x64xf32>
    %55 = arith.negf %54 : vector<256x64xf32>
    %56 = math.exp %55 : vector<256x64xf32>
    %cst_25 = arith.constant 1.000000e+00 : f32
    %57 = vector.broadcast %cst_25 : f32 to vector<256x64xf32>
    %58 = arith.addf %57, %56 : vector<256x64xf32>
    %59 = arith.divf %57, %58 : vector<256x64xf32>
    %60 = vector.extract_strided_slice %59 {offsets = [0, 0], sizes = [256, 32], strides = [1, 1]} : vector<256x64xf32> to vector<256x32xf32>
    %61 = vector.extract_strided_slice %59 {offsets = [0, 32], sizes = [256, 32], strides = [1, 1]} : vector<256x64xf32> to vector<256x32xf32>
    %62 = vector.extract_strided_slice %48 {offsets = [0, 64], sizes = [256, 32], strides = [1, 1]} : vector<256x128xf32> to vector<256x32xf32>
    %c0_26 = arith.constant 0 : index
    %c0_27 = arith.constant 0 : index
    %63 = vector.load %arg6[%c0_26, %c0_27] : memref<1x32xf32, #tpu.memory_space<vmem>>, vector<1x32xf32>
    %64 = vector.broadcast %63 : vector<1x32xf32> to vector<256x32xf32>
    %65 = arith.addf %62, %64 : vector<256x32xf32>
    %66 = vector.extract_strided_slice %45 {offsets = [0, 64], sizes = [256, 32], strides = [1, 1]} : vector<256x128xf32> to vector<256x32xf32>
    %c0_28 = arith.constant 0 : index
    %c0_29 = arith.constant 0 : index
    %67 = vector.load %arg7[%c0_28, %c0_29] : memref<1x32xf32, #tpu.memory_space<vmem>>, vector<1x32xf32>
    %68 = vector.broadcast %67 : vector<1x32xf32> to vector<256x32xf32>
    %69 = arith.addf %66, %68 : vector<256x32xf32>
    %70 = arith.mulf %60, %69 : vector<256x32xf32>
    %71 = arith.addf %65, %70 : vector<256x32xf32>
    %72 = math.tanh %71 : vector<256x32xf32>
    %73 = arith.subf %40, %72 : vector<256x32xf32>
    %74 = arith.mulf %61, %73 : vector<256x32xf32>
    %75 = arith.addf %72, %74 : vector<256x32xf32>
    %76 = arith.truncf %75 : vector<256x32xf32> to vector<256x32xbf16>
    %c2 = arith.constant 2 : index
    %c0_30 = arith.constant 0 : index
    %c0_31 = arith.constant 0 : index
    %77 = vector.load %arg4[%c2, %c0_30, %c0_31] : memref<4x32x256xbf16, #tpu.memory_space<vmem>>, vector<1x32x256xbf16>
    %78 = vector.shape_cast %77 : vector<1x32x256xbf16> to vector<32x256xbf16>
    %cst_32 = arith.constant dense<0.000000e+00> : vector<256x256xf32>
    %79 = tpu.matmul %76, %78, %cst_32 {dimension_numbers = #tpu.dot_dimension_numbers<[1], [0], [0], [1], [0, 0, 1, 1], [], []>} : vector<256x32xbf16>, vector<32x256xbf16>, vector<256x256xf32> -> vector<256x256xf32>
    %80 = vector.extract_strided_slice %79 {offsets = [0, 128], sizes = [256, 128], strides = [1, 1]} : vector<256x256xf32> to vector<256x128xf32>
    %81 = vector.extract_strided_slice %79 {offsets = [0, 0], sizes = [256, 128], strides = [1, 1]} : vector<256x256xf32> to vector<256x128xf32>
    %82 = arith.truncf %81 : vector<256x128xf32> to vector<256x128xbf16>
    %cst_33 = arith.constant dense<0.000000e+00> : vector<256x128xf32>
    %83 = tpu.matmul %3, %82, %cst_33 {dimension_numbers = #tpu.dot_dimension_numbers<[1], [0], [0], [1], [0, 0, 1, 1], [], []>} : vector<256x256xbf16>, vector<256x128xbf16>, vector<256x128xf32> -> vector<256x128xf32>
    %84 = vector.extract_strided_slice %83 {offsets = [0, 0], sizes = [256, 64], strides = [1, 1]} : vector<256x128xf32> to vector<256x64xf32>
    %85 = vector.extract_strided_slice %80 {offsets = [0, 0], sizes = [256, 64], strides = [1, 1]} : vector<256x128xf32> to vector<256x64xf32>
    %86 = arith.addf %84, %85 : vector<256x64xf32>
    %c0_34 = arith.constant 0 : index
    %c0_35 = arith.constant 0 : index
    %87 = vector.load %arg5[%c0_34, %c0_35] : memref<1x64xf32, #tpu.memory_space<vmem>>, vector<1x64xf32>
    %88 = vector.broadcast %87 : vector<1x64xf32> to vector<256x64xf32>
    %89 = arith.addf %86, %88 : vector<256x64xf32>
    %90 = arith.negf %89 : vector<256x64xf32>
    %91 = math.exp %90 : vector<256x64xf32>
    %cst_36 = arith.constant 1.000000e+00 : f32
    %92 = vector.broadcast %cst_36 : f32 to vector<256x64xf32>
    %93 = arith.addf %92, %91 : vector<256x64xf32>
    %94 = arith.divf %92, %93 : vector<256x64xf32>
    %95 = vector.extract_strided_slice %94 {offsets = [0, 0], sizes = [256, 32], strides = [1, 1]} : vector<256x64xf32> to vector<256x32xf32>
    %96 = vector.extract_strided_slice %94 {offsets = [0, 32], sizes = [256, 32], strides = [1, 1]} : vector<256x64xf32> to vector<256x32xf32>
    %97 = vector.extract_strided_slice %83 {offsets = [0, 64], sizes = [256, 32], strides = [1, 1]} : vector<256x128xf32> to vector<256x32xf32>
    %c0_37 = arith.constant 0 : index
    %c0_38 = arith.constant 0 : index
    %98 = vector.load %arg6[%c0_37, %c0_38] : memref<1x32xf32, #tpu.memory_space<vmem>>, vector<1x32xf32>
    %99 = vector.broadcast %98 : vector<1x32xf32> to vector<256x32xf32>
    %100 = arith.addf %97, %99 : vector<256x32xf32>
    %101 = vector.extract_strided_slice %80 {offsets = [0, 64], sizes = [256, 32], strides = [1, 1]} : vector<256x128xf32> to vector<256x32xf32>
    %c0_39 = arith.constant 0 : index
    %c0_40 = arith.constant 0 : index
    %102 = vector.load %arg7[%c0_39, %c0_40] : memref<1x32xf32, #tpu.memory_space<vmem>>, vector<1x32xf32>
    %103 = vector.broadcast %102 : vector<1x32xf32> to vector<256x32xf32>
    %104 = arith.addf %101, %103 : vector<256x32xf32>
    %105 = arith.mulf %95, %104 : vector<256x32xf32>
    %106 = arith.addf %100, %105 : vector<256x32xf32>
    %107 = math.tanh %106 : vector<256x32xf32>
    %108 = arith.subf %75, %107 : vector<256x32xf32>
    %109 = arith.mulf %96, %108 : vector<256x32xf32>
    %110 = arith.addf %107, %109 : vector<256x32xf32>
    %111 = arith.truncf %110 : vector<256x32xf32> to vector<256x32xbf16>
    %c3 = arith.constant 3 : index
    %c0_41 = arith.constant 0 : index
    %c0_42 = arith.constant 0 : index
    %112 = vector.load %arg4[%c3, %c0_41, %c0_42] : memref<4x32x256xbf16, #tpu.memory_space<vmem>>, vector<1x32x256xbf16>
    %113 = vector.shape_cast %112 : vector<1x32x256xbf16> to vector<32x256xbf16>
    %cst_43 = arith.constant dense<0.000000e+00> : vector<256x256xf32>
    %114 = tpu.matmul %111, %113, %cst_43 {dimension_numbers = #tpu.dot_dimension_numbers<[1], [0], [0], [1], [0, 0, 1, 1], [], []>} : vector<256x32xbf16>, vector<32x256xbf16>, vector<256x256xf32> -> vector<256x256xf32>
    %115 = vector.extract_strided_slice %114 {offsets = [0, 128], sizes = [256, 128], strides = [1, 1]} : vector<256x256xf32> to vector<256x128xf32>
    %116 = vector.extract_strided_slice %114 {offsets = [0, 0], sizes = [256, 128], strides = [1, 1]} : vector<256x256xf32> to vector<256x128xf32>
    %117 = arith.truncf %116 : vector<256x128xf32> to vector<256x128xbf16>
    %cst_44 = arith.constant dense<0.000000e+00> : vector<256x128xf32>
    %118 = tpu.matmul %3, %117, %cst_44 {dimension_numbers = #tpu.dot_dimension_numbers<[1], [0], [0], [1], [0, 0, 1, 1], [], []>} : vector<256x256xbf16>, vector<256x128xbf16>, vector<256x128xf32> -> vector<256x128xf32>
    %119 = vector.extract_strided_slice %118 {offsets = [0, 0], sizes = [256, 64], strides = [1, 1]} : vector<256x128xf32> to vector<256x64xf32>
    %120 = vector.extract_strided_slice %115 {offsets = [0, 0], sizes = [256, 64], strides = [1, 1]} : vector<256x128xf32> to vector<256x64xf32>
    %121 = arith.addf %119, %120 : vector<256x64xf32>
    %c0_45 = arith.constant 0 : index
    %c0_46 = arith.constant 0 : index
    %122 = vector.load %arg5[%c0_45, %c0_46] : memref<1x64xf32, #tpu.memory_space<vmem>>, vector<1x64xf32>
    %123 = vector.broadcast %122 : vector<1x64xf32> to vector<256x64xf32>
    %124 = arith.addf %121, %123 : vector<256x64xf32>
    %125 = arith.negf %124 : vector<256x64xf32>
    %126 = math.exp %125 : vector<256x64xf32>
    %cst_47 = arith.constant 1.000000e+00 : f32
    %127 = vector.broadcast %cst_47 : f32 to vector<256x64xf32>
    %128 = arith.addf %127, %126 : vector<256x64xf32>
    %129 = arith.divf %127, %128 : vector<256x64xf32>
    %130 = vector.extract_strided_slice %129 {offsets = [0, 0], sizes = [256, 32], strides = [1, 1]} : vector<256x64xf32> to vector<256x32xf32>
    %131 = vector.extract_strided_slice %129 {offsets = [0, 32], sizes = [256, 32], strides = [1, 1]} : vector<256x64xf32> to vector<256x32xf32>
    %132 = vector.extract_strided_slice %118 {offsets = [0, 64], sizes = [256, 32], strides = [1, 1]} : vector<256x128xf32> to vector<256x32xf32>
    %c0_48 = arith.constant 0 : index
    %c0_49 = arith.constant 0 : index
    %133 = vector.load %arg6[%c0_48, %c0_49] : memref<1x32xf32, #tpu.memory_space<vmem>>, vector<1x32xf32>
    %134 = vector.broadcast %133 : vector<1x32xf32> to vector<256x32xf32>
    %135 = arith.addf %132, %134 : vector<256x32xf32>
    %136 = vector.extract_strided_slice %115 {offsets = [0, 64], sizes = [256, 32], strides = [1, 1]} : vector<256x128xf32> to vector<256x32xf32>
    %c0_50 = arith.constant 0 : index
    %c0_51 = arith.constant 0 : index
    %137 = vector.load %arg7[%c0_50, %c0_51] : memref<1x32xf32, #tpu.memory_space<vmem>>, vector<1x32xf32>
    %138 = vector.broadcast %137 : vector<1x32xf32> to vector<256x32xf32>
    %139 = arith.addf %136, %138 : vector<256x32xf32>
    %140 = arith.mulf %130, %139 : vector<256x32xf32>
    %141 = arith.addf %135, %140 : vector<256x32xf32>
    %142 = math.tanh %141 : vector<256x32xf32>
    %143 = arith.subf %110, %142 : vector<256x32xf32>
    %144 = arith.mulf %131, %143 : vector<256x32xf32>
    %145 = arith.addf %142, %144 : vector<256x32xf32>
    %c0_52 = arith.constant 0 : index
    %c0_53 = arith.constant 0 : index
    %146 = vector.load %arg8[%c0_52, %c0_53] : memref<1x32xf32, #tpu.memory_space<vmem>>, vector<1x32xf32>
    %147 = vector.broadcast %146 : vector<1x32xf32> to vector<256x32xf32>
    %148 = arith.mulf %145, %147 : vector<256x32xf32>
    %cst_54 = arith.constant dense<0.000000e+00> : vector<256xf32>
    %149 = vector.multi_reduction <add>, %148, %cst_54 [1] : vector<256x32xf32> to vector<256xf32>
    %150 = vector.shape_cast %149 : vector<256xf32> to vector<256x1xf32>
    %c0_55 = arith.constant 0 : index
    %c0_56 = arith.constant 0 : index
    %151 = memref.load %arg9[%c0_55, %c0_56] : memref<1x1xf32, #tpu.memory_space<smem>>
    %152 = vector.broadcast %151 : f32 to vector<256x1xf32>
    %153 = arith.addf %150, %152 : vector<256x1xf32>
    %154 = arith.negf %153 : vector<256x1xf32>
    %155 = math.exp %154 : vector<256x1xf32>
    %cst_57 = arith.constant 1.000000e+00 : f32
    %156 = vector.broadcast %cst_57 : f32 to vector<256x1xf32>
    %157 = arith.addf %156, %155 : vector<256x1xf32>
    %158 = arith.divf %156, %157 : vector<256x1xf32>
    %159 = math.exp %158 : vector<256x1xf32>
    %160 = vector.broadcast %159 : vector<256x1xf32> to vector<256x32xf32>
    %161 = arith.mulf %160, %145 : vector<256x32xf32>
    %162 = vector.shape_cast %159 : vector<256x1xf32> to vector<256x1xf32>
    %163 = vector.broadcast %162 : vector<256x1xf32> to vector<256x32xf32>
    %164 = tpu.concatenate %161, %163 in 1 : vector<256x32xf32>, vector<256x32xf32> -> vector<256x64xf32>
    %165 = arith.truncf %164 : vector<256x64xf32> to vector<256x64xbf16>
    %cst_58 = arith.constant dense<0.000000e+00> : vector<16x64xf32>
    %166 = tpu.matmul %5, %165, %cst_58 {dimension_numbers = #tpu.dot_dimension_numbers<[1], [0], [0], [1], [0, 0, 1, 1], [], []>} : vector<16x256xbf16>, vector<256x64xbf16>, vector<16x64xf32> -> vector<16x64xf32>
    %167 = vector.extract_strided_slice %166 {offsets = [0, 0], sizes = [16, 32], strides = [1, 1]} : vector<16x64xf32> to vector<16x32xf32>
    %168 = vector.extract_strided_slice %166 {offsets = [0, 32], sizes = [16, 32], strides = [1, 1]} : vector<16x64xf32> to vector<16x32xf32>
    %169 = tpu.reciprocal %168 {approx = true} : vector<16x32xf32> -> vector<16x32xf32>
    %170 = arith.mulf %167, %169 : vector<16x32xf32>
    %171 = vector.extract_strided_slice %170 {offsets = [0, 0], sizes = [8, 32], strides = [1, 1]} : vector<16x32xf32> to vector<8x32xf32>
    %172 = vector.extract_strided_slice %170 {offsets = [8, 0], sizes = [8, 32], strides = [1, 1]} : vector<16x32xf32> to vector<8x32xf32>
    %173 = arith.subf %171, %172 : vector<8x32xf32>
    %174 = math.absf %173 : vector<8x32xf32>
    %c0_59 = arith.constant 0 : index
    %c0_60 = arith.constant 0 : index
    %175 = vector.load %arg10[%c0_59, %c0_60] : memref<1x32xf32, #tpu.memory_space<vmem>>, vector<1x32xf32>
    %176 = vector.broadcast %175 : vector<1x32xf32> to vector<8x32xf32>
    %177 = arith.mulf %174, %176 : vector<8x32xf32>
    %cst_61 = arith.constant dense<0.000000e+00> : vector<8xf32>
    %178 = vector.multi_reduction <add>, %177, %cst_61 [1] : vector<8x32xf32> to vector<8xf32>
    %179 = vector.shape_cast %178 : vector<8xf32> to vector<8x1xf32>
    %c0_62 = arith.constant 0 : index
    %c0_63 = arith.constant 0 : index
    %180 = memref.load %arg11[%c0_62, %c0_63] : memref<1x1xf32, #tpu.memory_space<smem>>
    %181 = vector.broadcast %180 : f32 to vector<8x1xf32>
    %182 = arith.addf %179, %181 : vector<8x1xf32>
    %183 = arith.negf %182 : vector<8x1xf32>
    %184 = math.exp %183 : vector<8x1xf32>
    %cst_64 = arith.constant 1.000000e+00 : f32
    %185 = vector.broadcast %cst_64 : f32 to vector<8x1xf32>
    %186 = arith.addf %185, %184 : vector<8x1xf32>
    %187 = arith.divf %185, %186 : vector<8x1xf32>
    %188 = vector.shape_cast %187 : vector<8x1xf32> to vector<8x1xf32>
    %189 = vector.broadcast %188 : vector<8x1xf32> to vector<8x128xf32>
    %c0_65 = arith.constant 0 : index
    %c0_66 = arith.constant 0 : index
    %c0_67 = arith.constant 0 : index
    %190 = vector.load %arg12[%c0_65, %c0_66, %c0_67] : memref<1x8x128xf32, #tpu.memory_space<vmem>>, vector<1x8x128xf32>
    %191 = vector.shape_cast %190 : vector<1x8x128xf32> to vector<8x128xf32>
    %192 = vector.shape_cast %189 : vector<8x128xf32> to vector<1x8x128xf32>
    tpu.vector_store %arg12[%c0_65, %c0_66, %c0_67], %192 {strides = array<i32>} : memref<1x8x128xf32, #tpu.memory_space<vmem>>, vector<1x8x128xf32>,
    return
  }
  func.func @transform_0(%arg0: i32) -> (i32, i32, i32) {
    %c0_i32 = arith.constant 0 : i32
    %c0_i32_0 = arith.constant 0 : i32
    %c0_i32_1 = arith.constant 0 : i32
    return %arg0, %c0_i32, %c0_i32_0 : i32, i32, i32
  }
  func.func @transform_1(%arg0: i32) -> (i32, i32, i32) {
    %c0_i32 = arith.constant 0 : i32
    %c0_i32_0 = arith.constant 0 : i32
    %c0_i32_1 = arith.constant 0 : i32
    return %arg0, %c0_i32, %c0_i32_0 : i32, i32, i32
  }
  func.func @transform_2(%arg0: i32) -> (i32, i32, i32) {
    %c0_i32 = arith.constant 0 : i32
    %c0_i32_0 = arith.constant 0 : i32
    %c0_i32_1 = arith.constant 0 : i32
    return %arg0, %c0_i32, %c0_i32_0 : i32, i32, i32
  }
  func.func @transform_3(%arg0: i32) -> (i32, i32, i32) {
    %c0_i32 = arith.constant 0 : i32
    %c0_i32_0 = arith.constant 0 : i32
    %c0_i32_1 = arith.constant 0 : i32
    %c0_i32_2 = arith.constant 0 : i32
    return %c0_i32, %c0_i32_0, %c0_i32_1 : i32, i32, i32
  }
  func.func @transform_4(%arg0: i32) -> (i32, i32) {
    %c0_i32 = arith.constant 0 : i32
    %c0_i32_0 = arith.constant 0 : i32
    %c0_i32_1 = arith.constant 0 : i32
    return %c0_i32, %c0_i32_0 : i32, i32
  }
  func.func @transform_5(%arg0: i32) -> (i32, i32) {
    %c0_i32 = arith.constant 0 : i32
    %c0_i32_0 = arith.constant 0 : i32
    %c0_i32_1 = arith.constant 0 : i32
    return %c0_i32, %c0_i32_0 : i32, i32
  }
  func.func @transform_6(%arg0: i32) -> (i32, i32) {
    %c0_i32 = arith.constant 0 : i32
    %c0_i32_0 = arith.constant 0 : i32
    %c0_i32_1 = arith.constant 0 : i32
    return %c0_i32, %c0_i32_0 : i32, i32
  }
  func.func @transform_7(%arg0: i32) -> (i32, i32) {
    %c0_i32 = arith.constant 0 : i32
    %c0_i32_0 = arith.constant 0 : i32
    %c0_i32_1 = arith.constant 0 : i32
    return %c0_i32, %c0_i32_0 : i32, i32
  }
  func.func @transform_8(%arg0: i32) -> (i32, i32) {
    %c0_i32 = arith.constant 0 : i32
    %c0_i32_0 = arith.constant 0 : i32
    %c0_i32_1 = arith.constant 0 : i32
    return %c0_i32, %c0_i32_0 : i32, i32
  }
  func.func @transform_9(%arg0: i32) -> (i32, i32) {
    %c0_i32 = arith.constant 0 : i32
    %c0_i32_0 = arith.constant 0 : i32
    %c0_i32_1 = arith.constant 0 : i32
    return %c0_i32, %c0_i32_0 : i32, i32
  }
  func.func @transform_10(%arg0: i32) -> (i32, i32) {
    %c0_i32 = arith.constant 0 : i32
    %c0_i32_0 = arith.constant 0 : i32
    %c0_i32_1 = arith.constant 0 : i32
    return %c0_i32, %c0_i32_0 : i32, i32
  }
  func.func @transform_11(%arg0: i32) -> (i32, i32, i32) {
    %c0_i32 = arith.constant 0 : i32
    %c0_i32_0 = arith.constant 0 : i32
    %c0_i32_1 = arith.constant 0 : i32
    return %arg0, %c0_i32, %c0_i32_0 : i32, i32, i32
  }
}

</mosaic_0001>

<bundles_post_ra>
// kernel: tpu_custom_call.1
= control target key start
LH: loop header
LB: loop body
LE: loop exit
PB: predicated region body
PF: predicated region fallthrough
CT: control target
= control target key end

     0   :  { %s14838_s0 = inlined_call_operand.vmem [shape: f32[8,256,32], index: 0, kind: input, shape index: {}]   ;;  %s14839_s1 = inlined_call_operand.vmem [shape: bf16[8,256,256], index: 1, kind: input, shape index: {}]   ;;  %s14840_s2 = inlined_call_operand.vmem [shape: bf16[8,16,256], index: 2, kind: input, shape index: {}]   ;;  %s14841_s3 = inlined_call_operand.vmem [shape: bf16[4,32,256], index: 3, kind: input, shape index: {}]   ;;  %s14842_s4 = inlined_call_operand.vmem [shape: f32[1,64], index: 4, kind: input, shape index: {}]   ;;  %s14843_s5 = inlined_call_operand.vmem [shape: f32[1,32], index: 5, kind: input, shape index: {}]   ;;  %s14844_s6 = inlined_call_operand.vmem [shape: f32[1,32], index: 6, kind: input, shape index: {}]   ;;  %s14845_s7 = inlined_call_operand.vmem [shape: f32[1,32], index: 7, kind: input, shape index: {}]   ;;  %s14846_s8 = inlined_call_operand.<no memory space> [shape: f32[1,1], index: 8, kind: input, shape index: {}]   ;;  %s14847_s9 = inlined_call_operand.vmem [shape: f32[1,32], index: 9, kind: input, shape index: {}]   ;;  %s14848_s10 = inlined_call_operand.<no memory space> [shape: f32[1,1], index: 10, kind: input, shape index: {}]   ;;  %s14849_s11 = inlined_call_operand.hbm [shape: f32[8,8,128], index: 11, kind: output, shape index: {}]  }
   0x1   :  { %16 = sst [smem:[#allocation2]] %s14846_s8 }
   0x2   :  { %17 = sst [smem:[#allocation3]] %s14848_s10 }
   0x3   :  { %18 = vsyncpa [#allocation5], 0 }
   0x4   :  { %20 = vsyncpa [#allocation5 + $0x1], 0  ;;  %s10054_s21 = smov 0   ;;  %s10056_s22 = smov 0  }
   0x5   :  { %s10058_s23 = smov 0   ;;  %s10060_s24 = smov 0  }
   0x6 LB: > { %s10075_s8 = sadd.s32 4294967295, %s9981_s24   ;;  %s7829_s10 = sadd.s32 4294967294, %s9981_s24   ;;  %s9981_s24 = sphi %s10060_s24, %s15448_s24   ;;  %s9977_s23 = sphi %s10058_s23, %s15447_s23   ;;  %s9973_s22 = sphi %s10056_s22, %s15446_s22   ;;  %s9969_s21 = sphi %s10054_s21, %s15445_s21  }
   0x7   : > { %s10079_s25 = sadd.s32 1, %s9981_s24   ;;  %s279_s26 = sadd.s32 1, %s9977_s23 }
   0x8   : > { %s276_s27 = ssub.s32 %s9981_s24, %s10079_s25  ;;  %p289_p0 = scmp.ne.s32.totalorder %s9977_s23, %s9973_s22 }
   0x9   : > { %p277_p1 = scmp.eq.s32.totalorder %s276_s27, 0  ;;  %p290_p2 = scmp.eq.s32.totalorder %s10075_s8, 7 }
   0xa   : > { %p295_p3 = scmp.ne.s32.totalorder %s9973_s22, %s9969_s21  ;;  %p296_p4 = scmp.eq.s32.totalorder %s7829_s10, 7 }
   0xb   : > { %s10090_s28 = scalar_select %p277_p1, %s9977_s23, %s279_s26  }
   0xc   : > { %p10092_p5 = por %p290_p2, %p289_p0  ;;  %p10096_p6 = por %p296_p4, %p295_p3 }
   0xd   : > { %p7832_p7 = scmp.ge.s32.totalorder %s9981_s24, 1  ;;  %p362_p8 = scmp.lt.s32.totalorder %s9981_s24, 9 }
   0xf   : > { %p363_p9 = pnand %p7832_p7, %p362_p8 }
  0x11   : > { %366 = sbr.rel (%p363_p9) target bundleno = 5725 (0x165d), region = 64 }
  0x16   : > { %v8748_v0 = vld [vmem:[%s14841_s3 + $0x14] ss:$8 sps:$4 sm:$0xff]   ;;  %p412_p10 = scmp.lt.s32.totalorder %s10075_s8, 7  ;;  %v8750_v1 = vld [vmem:[%s14841_s3 + $0x10] ss:$8 sps:$4 sm:$0xff]   ;;  %v14850_v2 = vmov 0  }
  0x17   : > { %615 = vmatprep.mubr.bf16.mxu0 %v14850_v2  ;;  %595 = vmatprep.subr.bf16.mxu0 %v8748_v0  ;;  %v8751_v3 = vld [vmem:[%s14841_s3 + $0x4] ss:$8 sps:$4 sm:$0xff]   ;;  %v8753_v4 = vld [vmem:[%s14841_s3] ss:$8 sps:$4 sm:$0xff]   ;;  %s9984_s12 = smov 64   ;;  %vm534_vm0 = vcmask 261120  }
  0x18   : > { %s10117_s20 = scalar_select %p412_p10, %s10075_s8, 7  ;;  %596 = vmatpush1.bf16.msra.mxu0 %v8750_v1  ;;  %v7926_v5 = vld [vmem:[%s14844_s6] ss:$0 sm:$0xff] }
  0x19   : > { %597 = vmatprep.subr.bf16.mxu0 %v8751_v3  ;;  %1423 = vrot.lane.b32.xlu0 %v7926_v5, %s9984_s12  ;;  %s9985_s13 = smov 32   ;;  %s9986_s17 = smov 96  }
  0x1a   : > { %s8136_s27 = sshll.u32 %s10117_s20, 8  ;;  %s8138_s19 = sshll.u32 %s10117_s20, 4 }
  0x1b   : > { %s10129_s15 = scalar_lea.vmem %s14838_s0, %s8136_s27  ;;  %s10241_s18 = scalar_lea.vmem %s14839_s1, %s8136_s27 }
  0x1c   : > { %v428_v6 = vld [vmem:[%s10129_s15] sm:$0xff]  ;;  %v429_v7 = vld [vmem:[%s10129_s15 + $0x8] sm:$0xff]  ;;  %598 = vmatpush1.bf16.msra.mxu0 %v8753_v4  ;;  %v430_v9 = vld [vmem:[%s10129_s15 + $0x10] sm:$0xff]  ;;  %s14715_s26 = scalar_lea.vmem %s14840_s2, %s8138_s19  ;;  %s8133_s14 = sshll.u32 %s10075_s8, 7 }
  0x1d   : > { %v494_v8 = vpack.c.bf16 %v429_v7, %v428_v6  ;;  %v431_v10 = vld [vmem:[%s10129_s15 + $0x18] sm:$0xff]  ;;  %v432_v12 = vld [vmem:[%s10129_s15 + $0x20] sm:$0xff]  ;;  %v433_v13 = vld [vmem:[%s10129_s15 + $0x28] sm:$0xff] }
  0x1e   : > { %v495_v11 = vpack.c.bf16 %v431_v10, %v430_v9  ;;  %v496_v14 = vpack.c.bf16 %v433_v13, %v432_v12  ;;  %v434_v15 = vld [vmem:[%s10129_s15 + $0x30] sm:$0xff]  ;;  %v435_v16 = vld [vmem:[%s10129_s15 + $0x38] sm:$0xff]  ;;  %v436_v18 = vld [vmem:[%s10129_s15 + $0x40] sm:$0xff] }
  0x1f   : > { %7844 = vmatmul.mubr.msk.bf16.vlgmr.msra.gmra.mxu0 %vm534_vm0, %v494_v8  ;;  %v497_v17 = vpack.c.bf16 %v435_v16, %v434_v15  ;;  %v437_v19 = vld [vmem:[%s10129_s15 + $0x48] sm:$0xff]  ;;  %v438_v21 = vld [vmem:[%s10129_s15 + $0x50] sm:$0xff]  ;;  %v439_v22 = vld [vmem:[%s10129_s15 + $0x58] sm:$0xff] }
  0x20   : > { %625 = vmatprep.mubr.bf16.mxu0 %v14850_v2  ;;  %v498_v20 = vpack.c.bf16 %v437_v19, %v436_v18  ;;  %v499_v23 = vpack.c.bf16 %v439_v22, %v438_v21  ;;  %v440_v24 = vld [vmem:[%s10129_s15 + $0x60] sm:$0xff]  ;;  %v441_v25 = vld [vmem:[%s10129_s15 + $0x68] sm:$0xff]  ;;  %v442_v27 = vld [vmem:[%s10129_s15 + $0x70] sm:$0xff] }
  0x21   : > { %v500_v26 = vpack.c.bf16 %v441_v25, %v440_v24  ;;  %v443_v28 = vld [vmem:[%s10129_s15 + $0x78] sm:$0xff]  ;;  %v444_v30 = vld [vmem:[%s10129_s15 + $0x80] sm:$0xff]  ;;  %v445_v31 = vld [vmem:[%s10129_s15 + $0x88] sm:$0xff] }
  0x22   : > { %v501_v29 = vpack.c.bf16 %v443_v28, %v442_v27  ;;  %v502_v32 = vpack.c.bf16 %v445_v31, %v444_v30  ;;  %v446_v33 = vld [vmem:[%s10129_s15 + $0x90] sm:$0xff]  ;;  %v447_v34 = vld [vmem:[%s10129_s15 + $0x98] sm:$0xff]  ;;  %v448_v36 = vld [vmem:[%s10129_s15 + $0xa0] sm:$0xff] }
  0x23   : > { %v503_v35 = vpack.c.bf16 %v447_v34, %v446_v33  ;;  %v449_v37 = vld [vmem:[%s10129_s15 + $0xa8] sm:$0xff]  ;;  %v450_v39 = vld [vmem:[%s10129_s15 + $0xb0] sm:$0xff]  ;;  %v451_v40 = vld [vmem:[%s10129_s15 + $0xb8] sm:$0xff] }
  0x24   : > { %v504_v38 = vpack.c.bf16 %v449_v37, %v448_v36  ;;  %v505_v41 = vpack.c.bf16 %v451_v40, %v450_v39  ;;  %v452_v42 = vld [vmem:[%s10129_s15 + $0xc0] sm:$0xff]  ;;  %v453_v43 = vld [vmem:[%s10129_s15 + $0xc8] sm:$0xff]  ;;  %v454_v45 = vld [vmem:[%s10129_s15 + $0xd0] sm:$0xff] }
  0x25   : > { %v506_v44 = vpack.c.bf16 %v453_v43, %v452_v42  ;;  %v455_v46 = vld [vmem:[%s10129_s15 + $0xd8] sm:$0xff]  ;;  %v456_v48 = vld [vmem:[%s10129_s15 + $0xe0] sm:$0xff]  ;;  %v457_v49 = vld [vmem:[%s10129_s15 + $0xe8] sm:$0xff] }
  0x26   : > { %v507_v47 = vpack.c.bf16 %v455_v46, %v454_v45  ;;  %v508_v50 = vpack.c.bf16 %v457_v49, %v456_v48  ;;  %v458_v51 = vld [vmem:[%s10129_s15 + $0xf0] sm:$0xff]  ;;  %v459_v52 = vld [vmem:[%s10129_s15 + $0xf8] sm:$0xff]  ;;  %v10247_v18 = vld [vmem:[%s10241_s18 + $0x4] ss:$8 sps:$4 sm:$0xff]  }
  0x27   : > { %7845 = vmatmul.mubr.msk.bf16.gmra.mxu0 %vm534_vm0, %v495_v11  ;;  %v509_v53 = vpack.c.bf16 %v459_v52, %v458_v51  ;;  %v7925_v42 = vld [vmem:[%s14843_s5] ss:$0 sm:$0xff] }
  0x28   : > { %635 = vmatprep.mubr.bf16.mxu0 %v14850_v2 }
  0x2f   : > { %7846 = vmatmul.mubr.msk.bf16.gmra.mxu0 %vm534_vm0, %v496_v14 }
  0x30   : > { %645 = vmatprep.mubr.bf16.mxu0 %v14850_v2 }
  0x37   : > { %7847 = vmatmul.mubr.msk.bf16.gmra.mxu0 %vm534_vm0, %v497_v17 }
  0x38   : > { %655 = vmatprep.mubr.bf16.mxu0 %v14850_v2 }
  0x3f   : > { %7848 = vmatmul.mubr.msk.bf16.gmra.mxu0 %vm534_vm0, %v498_v20  ;;  %v8757_v20 = vld [vmem:[%s10241_s18 + $0x14] ss:$8 sps:$4 sm:$0xff]  }
  0x40   : > { %665 = vmatprep.mubr.bf16.mxu0 %v14850_v2  ;;  %992 = vmatprep.mubr.bf16.mxu1 %v8757_v20 }
  0x47   : > { %7849 = vmatmul.mubr.msk.bf16.gmra.mxu0 %vm534_vm0, %v499_v23 }
  0x48   : > { %675 = vmatprep.mubr.bf16.mxu0 %v14850_v2 }
  0x4f   : > { %7850 = vmatmul.mubr.msk.bf16.gmra.mxu0 %vm534_vm0, %v500_v26 }
  0x50   : > { %685 = vmatprep.mubr.bf16.mxu0 %v14850_v2 }
  0x57   : > { %7851 = vmatmul.mubr.msk.bf16.gmra.mxu0 %vm534_vm0, %v501_v29 }
  0x58   : > { %695 = vmatprep.mubr.bf16.mxu0 %v14850_v2 }
  0x5f   : > { %7852 = vmatmul.mubr.msk.bf16.gmra.mxu0 %vm534_vm0, %v502_v32 }
  0x60   : > { %705 = vmatprep.mubr.bf16.mxu0 %v14850_v2 }
  0x67   : > { %7853 = vmatmul.mubr.msk.bf16.gmra.mxu0 %vm534_vm0, %v503_v35 }
  0x68   : > { %715 = vmatprep.mubr.bf16.mxu0 %v14850_v2 }
  0x6f   : > { %7854 = vmatmul.mubr.msk.bf16.gmra.mxu0 %vm534_vm0, %v504_v38 }
  0x70   : > { %725 = vmatprep.mubr.bf16.mxu0 %v14850_v2 }
  0x77   : > { %7855 = vmatmul.mubr.msk.bf16.gmra.mxu0 %vm534_vm0, %v505_v41 }
  0x78   : > { %735 = vmatprep.mubr.bf16.mxu0 %v14850_v2 }
  0x7f   : > { %7856 = vmatmul.mubr.msk.bf16.gmra.mxu0 %vm534_vm0, %v506_v44 }
  0x80   : > { %745 = vmatprep.mubr.bf16.mxu0 %v14850_v2 }
  0x87   : > { %7857 = vmatmul.mubr.msk.bf16.gmra.mxu0 %vm534_vm0, %v507_v47 }
  0x88   : > { %755 = vmatprep.mubr.bf16.mxu0 %v14850_v2 }
  0x8b   : > { %v10194_v55 = vpop.permute.xlu0 %1423 }
  0x8c   : > { %15046 = vst [vmem:[#allocation7_spill] sm:$0xff] %v10194_v55 }
  0x8f   : > { %7858 = vmatmul.mubr.msk.bf16.gmra.mxu0 %vm534_vm0, %v508_v50 }
  0x90   : > { %765 = vmatprep.mubr.bf16.mxu0 %v14850_v2 }
  0x97   : > { %7859 = vmatmul.mubr.msk.bf16.gmra.mxu0 %vm534_vm0, %v509_v53 }
  0x98   : > { %984 = vmatprep.mubr.bf16.mxu0 %v10247_v18 }
  0xdf   : > { %v617_v54 = vpop.f32.mrf.mxu0 }
  0xe1   : > { %v10196_v56 = vpop.f32.mrf.mxu0 }
  0xe2   : > { %v1426_v57 = vadd.f32 %v10194_v55, %v10196_v56 }
  0xe3   : > { %v621_v58 = vpop.f32.mrf.mxu0 }
  0xe4   : > { %v10200_v59 = vpack.c.bf16 %v621_v58, %v617_v54  ;;  %1490 = vrot.lane.b32.xlu0 %v1426_v57, %s9984_s12 }
  0xe5   : > { %v10203_v60 = vpop.f32.mrf.mxu0 }
  0xe6   : > { %v1427_v61 = vadd.f32 %v10194_v55, %v10203_v60 }
  0xe7   : > { %v627_v62 = vpop.f32.mrf.mxu0 }
  0xe8   : > { %1492 = vrot.lane.b32.xlu1 %v1427_v61, %s9984_s12 }
  0xe9   : > { %v10208_v63 = vpop.f32.mrf.mxu0 }
  0xea   : > { %v1428_v0 = vadd.f32 %v10194_v55, %v10208_v63 }
  0xeb   : > { %v631_v1 = vpop.f32.mrf.mxu0 }
  0xec   : > { %v10212_v3 = vpack.c.bf16 %v631_v1, %v627_v62  ;;  %1494 = vrot.lane.b32.xlu1 %v1428_v0, %s9984_s12 }
  0xed   : > { %v10215_v4 = vpop.f32.mrf.mxu0 }
  0xee   : > { %v1429_v5 = vadd.f32 %v10194_v55, %v10215_v4 }
  0xef   : > { %v637_v6 = vpop.f32.mrf.mxu0 }
  0xf0   : > { %1496 = vrot.lane.b32.xlu0 %v1429_v5, %s9984_s12 }
  0xf1   : > { %v10220_v7 = vpop.f32.mrf.mxu0 }
  0xf2   : > { %v1430_v8 = vadd.f32 %v10194_v55, %v10220_v7 }
  0xf3   : > { %v641_v9 = vpop.f32.mrf.mxu0 }
  0xf4   : > { %v10224_v10 = vpack.c.bf16 %v641_v9, %v637_v6  ;;  %1498 = vrot.lane.b32.xlu1 %v1430_v8, %s9984_s12 }
  0xf5   : > { %v10227_v11 = vpop.f32.mrf.mxu0 }
  0xf6   : > { %v1431_v12 = vadd.f32 %v10194_v55, %v10227_v11 }
  0xf7   : > { %v647_v13 = vpop.f32.mrf.mxu0 }
  0xf8   : > { %1500 = vrot.lane.b32.xlu0 %v1431_v12, %s9984_s12 }
  0xf9   : > { %v10232_v14 = vpop.f32.mrf.mxu0 }
  0xfa   : > { %v1432_v15 = vadd.f32 %v10194_v55, %v10232_v14 }
  0xfb   : > { %v651_v16 = vpop.f32.mrf.mxu0 }
  0xfc   : > { %v10243_v17 = vpack.c.bf16 %v651_v16, %v647_v13  ;;  %1502 = vrot.lane.b32.xlu1 %v1432_v15, %s9984_s12 }
  0xfd   : > { %v10249_v19 = vpop.f32.mrf.mxu0 }
  0xfe   : > { %v1433_v21 = vadd.f32 %v10194_v55, %v10249_v19 }
  0xff   : > { %v657_v22 = vpop.f32.mrf.mxu0 }
 0x100   : > { %1504 = vrot.lane.b32.xlu0 %v1433_v21, %s9984_s12 }
 0x101   : > { %v10256_v23 = vpop.f32.mrf.mxu0 }
 0x102   : > { %v1434_v24 = vadd.f32 %v10194_v55, %v10256_v23 }
 0x103   : > { %v661_v25 = vpop.f32.mrf.mxu0 }
 0x104   : > { %v10260_v26 = vpack.c.bf16 %v661_v25, %v657_v22  ;;  %1506 = vrot.lane.b32.xlu1 %v1434_v24, %s9984_s12 }
 0x105   : > { %v10263_v27 = vpop.f32.mrf.mxu0 }
 0x106   : > { %v1435_v28 = vadd.f32 %v10194_v55, %v10263_v27 }
 0x107   : > { %v667_v29 = vpop.f32.mrf.mxu0 }
 0x108   : > { %1508 = vrot.lane.b32.xlu0 %v1435_v28, %s9984_s12 }
 0x109   : > { %v10268_v30 = vpop.f32.mrf.mxu0 }
 0x10a   : > { %v1436_v31 = vadd.f32 %v10194_v55, %v10268_v30 }
 0x10b   : > { %v671_v32 = vpop.f32.mrf.mxu0 }
 0x10c   : > { %v10272_v33 = vpack.c.bf16 %v671_v32, %v667_v29  ;;  %1510 = vrot.lane.b32.xlu1 %v1436_v31, %s9984_s12 }
 0x10d   : > { %v10275_v34 = vpop.f32.mrf.mxu0 }
 0x10e   : > { %v1437_v35 = vadd.f32 %v10194_v55, %v10275_v34 }
 0x10f   : > { %v677_v36 = vpop.f32.mrf.mxu0 }
 0x110   : > { %1512 = vrot.lane.b32.xlu0 %v1437_v35, %s9984_s12 }
 0x111   : > { %v10280_v37 = vpop.f32.mrf.mxu0 }
 0x112   : > { %v1438_v38 = vadd.f32 %v10194_v55, %v10280_v37 }
 0x113   : > { %v681_v39 = vpop.f32.mrf.mxu0 }
 0x114   : > { %v782_v40 = vpack.c.bf16 %v681_v39, %v677_v36  ;;  %1514 = vrot.lane.b32.xlu1 %v1438_v38, %s9984_s12 }
 0x115   : > { %v10285_v41 = vpop.f32.mrf.mxu0 }
 0x116   : > { %v1439_v43 = vadd.f32 %v10194_v55, %v10285_v41 }
 0x117   : > { %v687_v44 = vpop.f32.mrf.mxu0 }
 0x118   : > { %1382 = vrot.lane.b32.xlu1 %v7925_v42, %s9984_s12  ;;  %1516 = vrot.lane.b32.xlu0 %v1439_v43, %s9984_s12 }
 0x119   : > { %v10294_v45 = vpop.f32.mrf.mxu0 }
 0x11a   : > { %v1440_v46 = vadd.f32 %v10194_v55, %v10294_v45 }
 0x11b   : > { %v691_v47 = vpop.f32.mrf.mxu0 }
 0x11c   : > { %v783_v48 = vpack.c.bf16 %v691_v47, %v687_v44  ;;  %1518 = vrot.lane.b32.xlu1 %v1440_v46, %s9984_s12 }
 0x11d   : > { %v10299_v49 = vpop.f32.mrf.mxu0 }
 0x11e   : > { %v1441_v50 = vadd.f32 %v10194_v55, %v10299_v49 }
 0x11f   : > { %v697_v51 = vpop.f32.mrf.mxu0 }
 0x120   : > { %1520 = vrot.lane.b32.xlu0 %v1441_v50, %s9984_s12 }
 0x121   : > { %v10304_v52 = vpop.f32.mrf.mxu0 }
 0x123   : > { %v701_v53 = vpop.f32.mrf.mxu0 }
 0x124   : > { %v10306_v54 = vpack.c.bf16 %v701_v53, %v697_v51  ;;  %v8766_v53 = vld [vmem:[%s10241_s18 + $0x44] ss:$8 sps:$4 sm:$0xff]  }
 0x125   : > { %v10308_v57 = vpop.f32.mrf.mxu0 }
 0x127   : > { %v707_v58 = vpop.f32.mrf.mxu0 }
 0x129   : > { %v10310_v61 = vpop.f32.mrf.mxu0 }
 0x12b   : > { %v711_v62 = vpop.f32.mrf.mxu0 }
 0x12c   : > { %v785_v0 = vpack.c.bf16 %v711_v62, %v707_v58  ;;  %v8771_v58 = vld [vmem:[%s10241_s18 + $0x50] ss:$8 sps:$4 sm:$0xff]   ;;  %v8772_v62 = vld [vmem:[%s10241_s18 + $0x64] ss:$8 sps:$4 sm:$0xff]  }
 0x12d   : > { %v10312_v1 = vpop.f32.mrf.mxu0 }
 0x12f   : > { %v717_v5 = vpop.f32.mrf.mxu0 }
 0x131   : > { %v10314_v6 = vpop.f32.mrf.mxu0 }
 0x133   : > { %v721_v8 = vpop.f32.mrf.mxu0 }
 0x135   : > { %v10316_v9 = vpop.f32.mrf.mxu0 }
 0x137   : > { %v727_v12 = vpop.f32.mrf.mxu0 }
 0x139   : > { %v10318_v13 = vpop.f32.mrf.mxu0 }
 0x13b   : > { %v731_v15 = vpop.f32.mrf.mxu0 }
 0x13c   : > { %v787_v51 = vpack.c.bf16 %v731_v15, %v727_v12  ;;  %v8778_v12 = vld [vmem:[%s10241_s18 + $0x84] ss:$8 sps:$4 sm:$0xff]   ;;  %v8780_v15 = vld [vmem:[%s10241_s18 + $0x80] ss:$8 sps:$4 sm:$0xff]  }
 0x13d   : > { %v10320_v16 = vpop.f32.mrf.mxu0 }
 0x13f   : > { %v737_v20 = vpop.f32.mrf.mxu0 }
 0x141   : > { %v10322_v21 = vpop.f32.mrf.mxu0 }
 0x143   : > { %v741_v22 = vpop.f32.mrf.mxu0 }
 0x144   : > { %v788_v50 = vpack.c.bf16 %v741_v22, %v737_v20  ;;  %v8781_v20 = vld [vmem:[%s10241_s18 + $0x94] ss:$8 sps:$4 sm:$0xff]   ;;  %v8783_v22 = vld [vmem:[%s10241_s18 + $0x90] ss:$8 sps:$4 sm:$0xff]  }
 0x145   : > { %v10324_v24 = vpop.f32.mrf.mxu0 }
 0x147   : > { %v747_v25 = vpop.f32.mrf.mxu0 }
 0x149   : > { %v10326_v28 = vpop.f32.mrf.mxu0 }
 0x14b   : > { %v751_v29 = vpop.f32.mrf.mxu0 }
 0x14c   : > { %v789_v47 = vpack.c.bf16 %v751_v29, %v747_v25  ;;  %v8784_v25 = vld [vmem:[%s10241_s18 + $0xa4] ss:$8 sps:$4 sm:$0xff]   ;;  %v8786_v29 = vld [vmem:[%s10241_s18 + $0xa0] ss:$8 sps:$4 sm:$0xff]  }
 0x14d   : > { %v10328_v31 = vpop.f32.mrf.mxu0 }
 0x14f   : > { %v757_v32 = vpop.f32.mrf.mxu0 }
 0x151   : > { %v10330_v35 = vpop.f32.mrf.mxu0 }
 0x153   : > { %v761_v36 = vpop.f32.mrf.mxu0 }
 0x154   : > { %v790_v46 = vpack.c.bf16 %v761_v36, %v757_v32  ;;  %v8787_v32 = vld [vmem:[%s10241_s18 + $0xb4] ss:$8 sps:$4 sm:$0xff]   ;;  %v8789_v36 = vld [vmem:[%s10241_s18 + $0xb0] ss:$8 sps:$4 sm:$0xff]  }
 0x155   : > { %v10332_v38 = vpop.f32.mrf.mxu0 }
 0x157   : > { %v767_v39 = vpop.f32.mrf.mxu0 }
 0x159   : > { %v10334_v42 = vpop.f32.mrf.mxu0 }
 0x15b   : > { %v771_v43 = vpop.f32.mrf.mxu0 }
 0x15c   : > { %v791_v44 = vpack.c.bf16 %v771_v43, %v767_v39  ;;  %v8790_v39 = vld [vmem:[%s10241_s18 + $0xc4] ss:$8 sps:$4 sm:$0xff]   ;;  %v8792_v43 = vld [vmem:[%s10241_s18 + $0xc0] ss:$8 sps:$4 sm:$0xff]  }
 0x15e   : > { %8139 = vmatprep.subr.bf16.mxu0 %v791_v44  ;;  %8609 = vmatprep.subr.bf16.mxu1 %v791_v44  ;;  %v8793_v44 = vld [vmem:[%s10241_s18 + $0xd4] ss:$8 sps:$4 sm:$0xff]  }
 0x15f   : > { %8140 = vmatpush3.bf16.msra.mxu0 %v783_v48  ;;  %8617 = vmatpush3.bf16.msra.mxu1 %v783_v48  ;;  %v786_v48 = vpack.c.bf16 %v721_v8, %v717_v5  ;;  %v8775_v5 = vld [vmem:[%s10241_s18 + $0x74] ss:$8 sps:$4 sm:$0xff]   ;;  %v8777_v8 = vld [vmem:[%s10241_s18 + $0x70] ss:$8 sps:$4 sm:$0xff]  }
 0x160   : > { %8141 = vmatprep.subr.bf16.mxu0 %v790_v46  ;;  %8610 = vmatprep.subr.bf16.mxu1 %v790_v46  ;;  %v8795_v46 = vld [vmem:[%s10241_s18 + $0xd0] ss:$8 sps:$4 sm:$0xff]  }
 0x163   : > { %8142 = vmatpush3.bf16.msra.mxu0 %v782_v40  ;;  %8618 = vmatpush3.bf16.msra.mxu1 %v782_v40  ;;  %v8765_v40 = vld [vmem:[%s10241_s18 + $0x30] ss:$8 sps:$4 sm:$0xff]  }
 0x164   : > { %8143 = vmatprep.subr.bf16.mxu0 %v789_v47  ;;  %8611 = vmatprep.subr.bf16.mxu1 %v789_v47  ;;  %v8796_v47 = vld [vmem:[%s10241_s18 + $0xe4] ss:$8 sps:$4 sm:$0xff]  }
 0x167   : > { %8144 = vmatpush3.bf16.msra.mxu0 %v10272_v33  ;;  %8619 = vmatpush3.bf16.msra.mxu1 %v10272_v33  ;;  %v8763_v33 = vld [vmem:[%s10241_s18 + $0x34] ss:$8 sps:$4 sm:$0xff]  }
 0x168   : > { %8145 = vmatprep.subr.bf16.mxu0 %v788_v50  ;;  %8612 = vmatprep.subr.bf16.mxu1 %v788_v50  ;;  %v8798_v50 = vld [vmem:[%s10241_s18 + $0xe0] ss:$8 sps:$4 sm:$0xff]  }
 0x16b   : > { %8146 = vmatpush3.bf16.msra.mxu0 %v10260_v26  ;;  %8620 = vmatpush3.bf16.msra.mxu1 %v10260_v26  ;;  %v8759_v26 = vld [vmem:[%s10241_s18 + $0x10] ss:$8 sps:$4 sm:$0xff]  }
 0x16c   : > { %8147 = vmatprep.subr.bf16.mxu0 %v787_v51  ;;  %8613 = vmatprep.subr.bf16.mxu1 %v787_v51  ;;  %v8799_v51 = vld [vmem:[%s10241_s18 + $0xf4] ss:$8 sps:$4 sm:$0xff]  }
 0x16f   : > { %8148 = vmatpush3.bf16.msra.mxu0 %v10243_v17  ;;  %8621 = vmatpush3.bf16.msra.mxu1 %v10243_v17  ;;  %v8754_v17 = vld [vmem:[%s10241_s18] ss:$8 sps:$4 sm:$0xff]  }
 0x170   : > { %8149 = vmatprep.subr.bf16.mxu0 %v786_v48  ;;  %8614 = vmatprep.subr.bf16.mxu1 %v786_v48  ;;  %v8801_v48 = vld [vmem:[%s10241_s18 + $0xf0] ss:$8 sps:$4 sm:$0xff]  }
 0x173   : > { %8150 = vmatpush3.bf16.msra.mxu0 %v10224_v10  ;;  %8622 = vmatpush3.bf16.msra.mxu1 %v10224_v10  ;;  %v8760_v10 = vld [vmem:[%s10241_s18 + $0x24] ss:$8 sps:$4 sm:$0xff]  }
 0x174   : > { %8151 = vmatprep.subr.bf16.mxu0 %v785_v0  ;;  %8615 = vmatprep.subr.bf16.mxu1 %v785_v0  ;;  %v8774_v0 = vld [vmem:[%s10241_s18 + $0x60] ss:$8 sps:$4 sm:$0xff]  }
 0x177   : > { %8152 = vmatpush3.bf16.msra.mxu0 %v10212_v3  ;;  %8623 = vmatpush3.bf16.msra.mxu1 %v10212_v3  ;;  %v8762_v3 = vld [vmem:[%s10241_s18 + $0x20] ss:$8 sps:$4 sm:$0xff]  }
 0x178   : > { %8153 = vmatprep.subr.bf16.mxu0 %v10306_v54  ;;  %8616 = vmatprep.subr.bf16.mxu1 %v10306_v54  ;;  %v8769_v54 = vld [vmem:[%s10241_s18 + $0x54] ss:$8 sps:$4 sm:$0xff]  }
 0x17b   : > { %8154 = vmatpush3.bf16.msra.mxu0 %v10200_v59  ;;  %8624 = vmatpush3.bf16.msra.mxu1 %v10200_v59  ;;  %v8768_v59 = vld [vmem:[%s10241_s18 + $0x40] ss:$8 sps:$4 sm:$0xff]  }
 0x17e   : > { %985 = vmatmul.mubr.bf16.vlgmr.msra.gmra.mxu0 %v8754_v17  ;;  %993 = vmatmul.mubr.bf16.vlgmr.msra.gmra.mxu1 %v8759_v26  ;;  %v10382_v17 = vpop.f32.mrf.mxu0 }
 0x17f   : > { %1000 = vmatprep.mubr.bf16.mxu1 %v8760_v10  ;;  %2459 = vmatprep.mubr.bf16.mxu0 %v14850_v2 }
 0x186   : > { %1001 = vmatmul.mubr.bf16.gmra.mxu1 %v8762_v3 }
 0x187   : > { %1008 = vmatprep.mubr.bf16.mxu1 %v8763_v33 }
 0x18e   : > { %1009 = vmatmul.mubr.bf16.gmra.mxu1 %v8765_v40 }
 0x18f   : > { %1016 = vmatprep.mubr.bf16.mxu1 %v8766_v53 }
 0x196   : > { %1017 = vmatmul.mubr.bf16.gmra.mxu1 %v8768_v59  ;;  %v10391_v59 = vld [vmem:[%s14842_s4] ss:$0 sm:$0xff] }
 0x197   : > { %1024 = vmatprep.mubr.bf16.mxu1 %v8769_v54 }
 0x19e   : > { %1025 = vmatmul.mubr.bf16.gmra.mxu1 %v8771_v58 }
 0x19f   : > { %1032 = vmatprep.mubr.bf16.mxu1 %v8772_v62 }
 0x1a6   : > { %1033 = vmatmul.mubr.bf16.gmra.mxu1 %v8774_v0 }
 0x1a7   : > { %1040 = vmatprep.mubr.bf16.mxu1 %v8775_v5 }
 0x1ae   : > { %1041 = vmatmul.mubr.bf16.gmra.mxu1 %v8777_v8 }
 0x1af   : > { %1048 = vmatprep.mubr.bf16.mxu1 %v8778_v12 }
 0x1b6   : > { %1049 = vmatmul.mubr.bf16.gmra.mxu1 %v8780_v15 }
 0x1b7   : > { %1056 = vmatprep.mubr.bf16.mxu1 %v8781_v20 }
 0x1be   : > { %1057 = vmatmul.mubr.bf16.gmra.mxu1 %v8783_v22 }
 0x1bf   : > { %1064 = vmatprep.mubr.bf16.mxu1 %v8784_v25 }
 0x1c6   : > { %1065 = vmatmul.mubr.bf16.gmra.mxu1 %v8786_v29 }
 0x1c7   : > { %1072 = vmatprep.mubr.bf16.mxu1 %v8787_v32 }
 0x1ce   : > { %1073 = vmatmul.mubr.bf16.gmra.mxu1 %v8789_v36 }
 0x1cf   : > { %1080 = vmatprep.mubr.bf16.mxu1 %v8790_v39 }
 0x1d6   : > { %1081 = vmatmul.mubr.bf16.gmra.mxu1 %v8792_v43 }
 0x1d7   : > { %1088 = vmatprep.mubr.bf16.mxu1 %v8793_v44 }
 0x1de   : > { %1089 = vmatmul.mubr.bf16.gmra.mxu1 %v8795_v46 }
 0x1df   : > { %1096 = vmatprep.mubr.bf16.mxu1 %v8796_v47 }
 0x1e6   : > { %1097 = vmatmul.mubr.bf16.gmra.mxu1 %v8798_v50 }
 0x1e7   : > { %1104 = vmatprep.mubr.bf16.mxu1 %v8799_v51 }
 0x1ee   : > { %1105 = vmatmul.mubr.bf16.gmra.mxu1 %v8801_v48 }
 0x1ef   : > { %2668 = vmatprep.mubr.bf16.mxu1 %v10247_v18 }
 0x23e   : > { %v8155_v26 = vpop.f32.mrf.mxu0  ;;  %v8161_v10 = vpop.f32.mrf.mxu1 }
 0x240   : > { %v8156_v3 = vpop.f32.mrf.mxu0  ;;  %v8162_v33 = vpop.f32.mrf.mxu1 }
 0x241   : > { %v10384_v40 = vadd.f32 %v8156_v3, %v8155_v26  ;;  %v10386_v53 = vadd.f32 %v8162_v33, %v8161_v10 }
 0x242   : > { %v8158_v54 = vpop.f32.mrf.mxu0  ;;  %v8164_v58 = vpop.f32.mrf.mxu1 }
 0x243   : > { %v1113_v18 = vadd.f32 %v10384_v40, %v10196_v56  ;;  %v1115_v62 = vadd.f32 %v10386_v53, %v10208_v63 }
 0x244   : > { %v8159_v0 = vpop.f32.mrf.mxu0  ;;  %v8165_v5 = vpop.f32.mrf.mxu1 }
 0x245   : > { %v1152_v8 = vadd.f32 %v10391_v59, %v1113_v18  ;;  %v1154_v12 = vadd.f32 %v10391_v59, %v1115_v62  ;;  %v10399_v15 = vadd.f32 %v8159_v0, %v8158_v54  ;;  %v10401_v20 = vadd.f32 %v8165_v5, %v8164_v58 }
 0x246   : > { %v8167_v22 = vpop.f32.mrf.mxu1 }
 0x247   : > { %v7893_v25 = vmul.f32 -1.442695, %v1152_v8  ;;  %v7895_v29 = vmul.f32 -1.442695, %v1154_v12  ;;  %v1114_v32 = vadd.f32 %v10399_v15, %v10203_v60  ;;  %v1116_v56 = vadd.f32 %v10401_v20, %v10215_v4 }
 0x248   : > { %v8168_v63 = vpop.f32.mrf.mxu1 }
 0x249   : > { %8823 = vpow2.f32 %v7893_v25  ;;  %v1153_v36 = vadd.f32 %v10391_v59, %v1114_v32  ;;  %v1155_v39 = vadd.f32 %v10391_v59, %v1116_v56  ;;  %v10409_v43 = vadd.f32 %v8168_v63, %v8167_v22 }
 0x24a   : > { %v8170_v44 = vpop.f32.mrf.mxu1  ;;  %8825 = vpow2.f32 %v7895_v29 }
 0x24b   : > { %v7894_v46 = vmul.f32 -1.442695, %v1153_v36  ;;  %v1117_v47 = vadd.f32 %v10409_v43, %v10220_v7  ;;  %v7896_v50 = vmul.f32 -1.442695, %v1155_v39 }
 0x24c   : > { %v8171_v51 = vpop.f32.mrf.mxu1 }
 0x24d   : > { %8827 = vpow2.f32 %v7894_v46  ;;  %v1156_v60 = vadd.f32 %v10391_v59, %v1117_v47  ;;  %v10414_v4 = vadd.f32 %v8171_v51, %v8170_v44 }
 0x24e   : > { %v8173_v48 = vpop.f32.mrf.mxu1  ;;  %8829 = vpow2.f32 %v7896_v50 }
 0x24f   : > { %v7897_v26 = vmul.f32 -1.442695, %v1156_v60  ;;  %v1118_v10 = vadd.f32 %v10414_v4, %v10227_v11 }
 0x250   : > { %v8174_v3 = vpop.f32.mrf.mxu1 }
 0x251   : > { %v1157_v33 = vadd.f32 %v10391_v59, %v1118_v10  ;;  %v10419_v54 = vadd.f32 %v8174_v3, %v8173_v48  ;;  %8831 = vpow2.f32 %v7897_v26 }
 0x252   : > { %v8176_v58 = vpop.f32.mrf.mxu1 }
 0x253   : > { %v1119_v7 = vadd.f32 %v10419_v54, %v10232_v14  ;;  %v7898_v18 = vmul.f32 -1.442695, %v1157_v33 }
 0x254   : > { %v8177_v62 = vpop.f32.mrf.mxu1 }
 0x255   : > { %v1158_v0 = vadd.f32 %v10391_v59, %v1119_v7  ;;  %v10424_v5 = vadd.f32 %v8177_v62, %v8176_v58  ;;  %8833 = vpow2.f32 %v7898_v18 }
 0x256   : > { %v8824_v8 = vpop.eup %8823  ;;  %v8179_v12 = vpop.f32.mrf.mxu1 }
 0x257   : > { %v1280_v11 = vadd.f32 1.0, %v8824_v8  ;;  %v7899_v22 = vmul.f32 -1.442695, %v1158_v0  ;;  %v1120_v25 = vadd.f32 %v10424_v5, %v10249_v19  ;;  %v8826_v29 = vpop.eup %8825 }
 0x258   : > { %v8180_v32 = vpop.f32.mrf.mxu1  ;;  %v1282_v39 = vadd.f32 1.0, %v8826_v29  ;;  %v1491_v29 = vpop.permute.xlu0 %1490 }
 0x259   : > { %8835 = vrcp.f32 %v1280_v11  ;;  %v1159_v56 = vadd.f32 %v10391_v59, %v1120_v25  ;;  %v10429_v14 = vadd.f32 %v8180_v32, %v8179_v12 }
 0x25a   : > { %v8828_v63 = vpop.eup %8827  ;;  %v8182_v36 = vpop.f32.mrf.mxu1  ;;  %8837 = vpow2.f32 %v7899_v22 }
 0x25b   : > { %v1281_v44 = vadd.f32 1.0, %v8828_v63  ;;  %v1121_v46 = vadd.f32 %v10429_v14, %v10256_v23  ;;  %v7900_v47 = vmul.f32 -1.442695, %v1159_v56  ;;  %v8830_v51 = vpop.eup %8829 }
 0x25c   : > { %v8183_v50 = vpop.f32.mrf.mxu1  ;;  %v1283_v33 = vadd.f32 1.0, %v8830_v51 }
 0x25d   : > { %8839 = vrcp.f32 %v1281_v44  ;;  %v1160_v19 = vadd.f32 %v10391_v59, %v1121_v46  ;;  %v10434_v60 = vadd.f32 %v8183_v50, %v8182_v36 }
 0x25e   : > { %v8185_v48 = vpop.f32.mrf.mxu1  ;;  %8841 = vrcp.f32 %v1282_v39  ;;  %v8832_v3 = vpop.eup %8831 }
 0x25f   : > { %v7901_v26 = vmul.f32 -1.442695, %v1160_v19  ;;  %v1122_v10 = vadd.f32 %v10434_v60, %v10263_v27  ;;  %8843 = vpow2.f32 %v7900_v47  ;;  %v1284_v62 = vadd.f32 1.0, %v8832_v3  ;;  %v1493_v39 = vpop.permute.xlu1 %1492 }
 0x260   : > { %v8186_v58 = vpop.f32.mrf.mxu1 }
 0x261   : > { %v1161_v23 = vadd.f32 %v10391_v59, %v1122_v10  ;;  %v10439_v7 = vadd.f32 %v8186_v58, %v8185_v48  ;;  %8845 = vpow2.f32 %v7901_v26  ;;  %v1442_v48 = vadd.f32 %v10194_v55, %v10304_v52 }
 0x262   : > { %v8188_v18 = vpop.f32.mrf.mxu1  ;;  %8847 = vrcp.f32 %v1283_v33  ;;  %v8834_v11 = vpop.eup %8833 }
 0x263   : > { %v1123_v0 = vadd.f32 %v10439_v7, %v10268_v30  ;;  %v7902_v8 = vmul.f32 -1.442695, %v1161_v23  ;;  %8849 = vrcp.f32 %v1284_v62  ;;  %v1285_v44 = vadd.f32 1.0, %v8834_v11 }
 0x264   : > { %v8189_v12 = vpop.f32.mrf.mxu1 }
 0x265   : > { %v1162_v27 = vadd.f32 %v10391_v59, %v1123_v0  ;;  %v10444_v22 = vadd.f32 %v8189_v12, %v8188_v18  ;;  %8851 = vpow2.f32 %v7902_v8  ;;  %v1495_v0 = vpop.permute.xlu1 %1494 }
 0x266   : > { %v10446_v25 = vpop.eup %8835  ;;  %v8191_v32 = vpop.f32.mrf.mxu1 }
 0x267   : > { %v7903_v56 = vmul.f32 -1.442695, %v1162_v27  ;;  %v1124_v63 = vadd.f32 %v10444_v22, %v10275_v34  ;;  %v1586_v36 = vmul.f32 %v10446_v25, %v1491_v29  ;;  %v8838_v30 = vpop.eup %8837  ;;  %v1443_v29 = vadd.f32 %v10194_v55, %v10308_v57 }
 0x268   : > { %v8192_v46 = vpop.f32.mrf.mxu1  ;;  %v1286_v34 = vadd.f32 1.0, %v8838_v30 }
 0x269   : > { %v1163_v47 = vadd.f32 %v10391_v59, %v1124_v63  ;;  %v10452_v50 = vadd.f32 %v8192_v46, %v8191_v32  ;;  %1650 = vrot.lane.b32.xlu0 %v1586_v36, %s9984_s12  ;;  %8853 = vpow2.f32 %v7903_v56 }
 0x26a   : > { %v10455_v51 = vpop.eup %8839  ;;  %v8194_v19 = vpop.f32.mrf.mxu1  ;;  %8855 = vrcp.f32 %v1285_v44 }
 0x26b   : > { %v1125_v26 = vadd.f32 %v10452_v50, %v10280_v37  ;;  %v10461_v10 = vpop.eup %8841  ;;  %v7904_v3 = vmul.f32 -1.442695, %v1163_v47  ;;  %v1587_v58 = vmul.f32 %v10455_v51, %v1493_v39  ;;  %8857 = vrcp.f32 %v1286_v34  ;;  %v1497_v44 = vpop.permute.xlu0 %1496 }
 0x26c   : > { %v8195_v33 = vpop.f32.mrf.mxu1  ;;  %v8844_v23 = vpop.eup %8843  ;;  %v1588_v11 = vmul.f32 %v10461_v10, %v1495_v0  ;;  %v1444_v39 = vadd.f32 %v10194_v55, %v10310_v61 }
 0x26d   : > { %v1164_v18 = vadd.f32 %v10391_v59, %v1125_v26  ;;  %v10465_v62 = vadd.f32 %v8195_v33, %v8194_v19  ;;  %1522 = vrot.lane.b32.xlu0 %v1442_v48, %s9984_s12  ;;  %1652 = vrot.lane.b32.xlu1 %v1587_v58, %s9984_s12  ;;  %v1287_v32 = vadd.f32 1.0, %v8844_v23  ;;  %8859 = vpow2.f32 %v7904_v3  ;;  %v1499_v23 = vpop.permute.xlu1 %1498 }
 0x26e   : > { %v8197_v8 = vpop.f32.mrf.mxu1  ;;  %v8846_v27 = vpop.eup %8845 }
 0x26f   : > { %v7905_v37 = vmul.f32 -1.442695, %v1164_v18  ;;  %v1126_v12 = vadd.f32 %v10465_v62, %v10285_v41  ;;  %v10474_v63 = vpop.eup %8847  ;;  %v1288_v46 = vadd.f32 1.0, %v8846_v27 }
 0x270   : > { %v8198_v56 = vpop.f32.mrf.mxu1  ;;  %15047 = vst [vmem:[#allocation8_spill] sm:$0xff] %v10474_v63  ;;  %v10485_v19 = vpop.eup %8849  ;;  %v1589_v26 = vmul.f32 %v10474_v63, %v1497_v44 }
 0x271   : > { %v1165_v36 = vadd.f32 %v10391_v59, %v1126_v12  ;;  %v10477_v30 = vadd.f32 %v8198_v56, %v8197_v8  ;;  %1654 = vrot.lane.b32.xlu0 %v1588_v11, %s9984_s12  ;;  %1524 = vrot.lane.b32.xlu1 %v1443_v29, %s9984_s12  ;;  %8861 = vpow2.f32 %v7905_v37  ;;  %15048 = vst [vmem:[#allocation9_spill] sm:$0xff] %v10485_v19 }
 0x272   : > { %v8200_v41 = vpop.f32.mrf.mxu1  ;;  %8863 = vrcp.f32 %v1287_v32  ;;  %v8852_v3 = vpop.eup %8851  ;;  %v1590_v8 = vmul.f32 %v10485_v19, %v1499_v23  ;;  %v1445_v12 = vadd.f32 %v10194_v55, %v10312_v1  ;;  %v1447_v23 = vadd.f32 %v10194_v55, %v10316_v9 }
 0x273   : > { %v1127_v47 = vadd.f32 %v10477_v30, %v10294_v45  ;;  %v7906_v48 = vmul.f32 -1.442695, %v1165_v36  ;;  %8865 = vrcp.f32 %v1288_v46  ;;  %v1289_v11 = vadd.f32 1.0, %v8852_v3  ;;  %v1501_v36 = vpop.permute.xlu0 %1500 }
 0x274   : > { %v8201_v34 = vpop.f32.mrf.mxu1 }
 0x275   : > { %v1166_v33 = vadd.f32 %v10391_v59, %v1127_v47  ;;  %v10489_v58 = vadd.f32 %v8201_v34, %v8200_v41  ;;  %1526 = vrot.lane.b32.xlu0 %v1444_v39, %s9984_s12  ;;  %1656 = vrot.lane.b32.xlu1 %v1589_v26, %s9984_s12  ;;  %8867 = vpow2.f32 %v7906_v48  ;;  %v1503_v34 = vpop.permute.xlu1 %1502 }
 0x276   : > { %v10493_v18 = vpop.f32.mrf.mxu1  ;;  %v8854_v37 = vpop.eup %8853 }
 0x277   : > { %v7907_v45 = vmul.f32 -1.442695, %v1166_v33  ;;  %v1128_v0 = vadd.f32 %v10489_v58, %v10299_v49  ;;  %v10502_v29 = vpop.eup %8855  ;;  %v1446_v49 = vadd.f32 %v10194_v55, %v10314_v6  ;;  %v1290_v41 = vadd.f32 1.0, %v8854_v37 }
 0x278   : > { %v10500_v27 = vpop.f32.mrf.mxu1  ;;  %15049 = vst [vmem:[#allocation10_spill] sm:$0xff] %v10502_v29  ;;  %v10511_v39 = vpop.eup %8857  ;;  %v1591_v47 = vmul.f32 %v10502_v29, %v1501_v36  ;;  %v1448_v37 = vadd.f32 %v10194_v55, %v10318_v13 }
 0x279   : > { %v1167_v32 = vadd.f32 %v10391_v59, %v1128_v0  ;;  %1658 = vrot.lane.b32.xlu0 %v1590_v8, %s9984_s12  ;;  %1528 = vrot.lane.b32.xlu1 %v1445_v12, %s9984_s12  ;;  %8869 = vpow2.f32 %v7907_v45  ;;  %15050 = vst [vmem:[#allocation11_spill] sm:$0xff] %v10511_v39  ;;  %v1592_v3 = vmul.f32 %v10511_v39, %v1503_v34  ;;  %v1505_v12 = vpop.permute.xlu0 %1504 }
 0x27a   : > { %v10507_v56 = vpop.f32.mrf.mxu1  ;;  %8871 = vrcp.f32 %v1289_v11  ;;  %v8860_v48 = vpop.eup %8859  ;;  %v1449_v34 = vadd.f32 %v10194_v55, %v10320_v16 }
 0x27b   : > { %v7908_v44 = vmul.f32 -1.442695, %v1167_v32  ;;  %8873 = vrcp.f32 %v1290_v41  ;;  %v1291_v45 = vadd.f32 1.0, %v8860_v48 }
 0x27c   : > { %v10513_v46 = vpop.f32.mrf.mxu1 }
 0x27d   : > { %1530 = vrot.lane.b32.xlu0 %v1446_v49, %s9984_s12  ;;  %1660 = vrot.lane.b32.xlu1 %v1591_v47, %s9984_s12  ;;  %8875 = vpow2.f32 %v7908_v44  ;;  %v1507_v44 = vpop.permute.xlu1 %1506 }
 0x27e   : > { %v10518_v26 = vpop.f32.mrf.mxu1  ;;  %v8862_v33 = vpop.eup %8861  ;;  %8877 = vrcp.f32 %v1291_v45  ;;  %v1450_v45 = vadd.f32 %v10194_v55, %v10322_v21 }
 0x27f   : > { %v10525_v8 = vpop.eup %8863  ;;  %v1292_v11 = vadd.f32 1.0, %v8862_v33 }
 0x280   : > { %v10523_v0 = vpop.f32.mrf.mxu1  ;;  %15051 = vst [vmem:[#allocation12_spill] sm:$0xff] %v10525_v8  ;;  %v10531_v32 = vpop.eup %8865  ;;  %v1593_v36 = vmul.f32 %v10525_v8, %v1505_v12 }
 0x281   : > { %1662 = vrot.lane.b32.xlu0 %v1592_v3, %s9984_s12  ;;  %1532 = vrot.lane.b32.xlu1 %v1447_v23, %s9984_s12  ;;  %15052 = vst [vmem:[#allocation13_spill] sm:$0xff] %v10531_v32  ;;  %8879 = vrcp.f32 %v1292_v11  ;;  %v1594_v47 = vmul.f32 %v10531_v32, %v1507_v44  ;;  %v1511_v2 = vpop.permute.xlu1 %1510 }
 0x282   : > { %v10533_v49 = vpop.f32.mrf.mxu1  ;;  %v8868_v41 = vpop.eup %8867 }
 0x283   : > { %v1293_v3 = vadd.f32 1.0, %v8868_v41 }
 0x284   : > { %v10541_v33 = vpop.f32.mrf.mxu1 }
 0x285   : > { %1534 = vrot.lane.b32.xlu0 %v1448_v37, %s9984_s12  ;;  %1664 = vrot.lane.b32.xlu1 %v1593_v36, %s9984_s12  ;;  %v1509_v37 = vpop.permute.xlu0 %1508  ;;  %8881 = vrcp.f32 %v1293_v3  ;;  %v1515_v3 = vpop.permute.xlu1 %1514 }
 0x286   : > { %v8870_v48 = vpop.eup %8869  ;;  %v10551_v36 = vpop.f32.mrf.mxu1 }
 0x287   : > { %v10543_v23 = vpop.eup %8871  ;;  %v1294_v12 = vadd.f32 1.0, %v8870_v48 }
 0x288   : > { %15053 = vst [vmem:[#allocation14_spill] sm:$0xff] %v10543_v23  ;;  %v10549_v11 = vpop.eup %8873  ;;  %v1595_v41 = vmul.f32 %v10543_v23, %v1509_v37  ;;  %v8216_v32 = vpop.f32.mrf.mxu1 }
 0x289   : > { %1666 = vrot.lane.b32.xlu0 %v1594_v47, %s9984_s12  ;;  %1536 = vrot.lane.b32.xlu1 %v1449_v34, %s9984_s12  ;;  %15054 = vst [vmem:[#allocation15_spill] sm:$0xff] %v10549_v11  ;;  %8883 = vrcp.f32 %v1294_v12  ;;  %v1596_v47 = vmul.f32 %v10549_v11, %v1511_v2  ;;  %v1451_v34 = vadd.f32 %v10194_v55, %v10324_v24  ;;  %v1513_v37 = vpop.permute.xlu0 %1512 }
 0x28a   : > { %v8876_v44 = vpop.eup %8875  ;;  %v8218_v2 = vpop.f32.mrf.mxu1 }
 0x28b   : > { %v1295_v48 = vadd.f32 1.0, %v8876_v44  ;;  %v10559_v39 = vpop.eup %8877 }
 0x28c   : > { %15055 = vst [vmem:[#allocation16_spill] sm:$0xff] %v10559_v39  ;;  %v1597_v12 = vmul.f32 %v10559_v39, %v1513_v37  ;;  %v8219_v11 = vpop.f32.mrf.mxu1 }
 0x28d   : > { %1538 = vrot.lane.b32.xlu0 %v1450_v45, %s9984_s12  ;;  %1668 = vrot.lane.b32.xlu1 %v1595_v41, %s9984_s12  ;;  %v1452_v45 = vadd.f32 %v10194_v55, %v10326_v28  ;;  %8885 = vrcp.f32 %v1295_v48  ;;  %v1454_v48 = vadd.f32 %v10194_v55, %v10330_v35 }
 0x28e   : > { %v10565_v41 = vpop.eup %8879 }
 0x28f   : > { %15056 = vst [vmem:[#allocation17_spill] sm:$0xff] %v10565_v41  ;;  %v1598_v44 = vmul.f32 %v10565_v41, %v1515_v3 }
 0x291   : > { %1670 = vrot.lane.b32.xlu0 %v1596_v47, %s9984_s12  ;;  %1540 = vrot.lane.b32.xlu1 %v1451_v34, %s9984_s12  ;;  %v1453_v47 = vadd.f32 %v10194_v55, %v10328_v31  ;;  %v10573_v34 = vpop.permute.xlu1 %1382 }
 0x292   : > { %15057 = vst [vmem:[#allocation18_spill] sm:$0xff] %v10573_v34  ;;  %v10575_v23 = vpop.eup %8881 }
 0x293   : > { %15058 = vst [vmem:[#allocation19_spill] sm:$0xff] %v10575_v23 }
 0x295   : > { %1542 = vrot.lane.b32.xlu0 %v1452_v45, %s9984_s12  ;;  %1672 = vrot.lane.b32.xlu1 %v1597_v12, %s9984_s12  ;;  %v1517_v45 = vpop.permute.xlu0 %1516  ;;  %v8221_v12 = vpop.f32.mrf.mxu1 }
 0x296   : > { %v10581_v37 = vpop.eup %8883  ;;  %v1599_v3 = vmul.f32 %v10575_v23, %v1517_v45  ;;  %v1519_v41 = vpop.permute.xlu1 %1518  ;;  %v1456_v45 = vadd.f32 %v10194_v55, %v10334_v42 }
 0x297   : > { %15059 = vst [vmem:[#allocation20_spill] sm:$0xff] %v10581_v37  ;;  %v1600_v39 = vmul.f32 %v10581_v37, %v1519_v41  ;;  %v1457_v41 = vadd.f32 %v10194_v55, %v10382_v17 }
 0x299   : > { %1674 = vrot.lane.b32.xlu0 %v1598_v44, %s9984_s12  ;;  %1544 = vrot.lane.b32.xlu1 %v1453_v47, %s9984_s12  ;;  %v1455_v44 = vadd.f32 %v10194_v55, %v10332_v38  ;;  %v8222_v47 = vpop.f32.mrf.mxu1  ;;  %v1521_v23 = vpop.permute.xlu0 %1520  ;;  %v10614_v55 = vadd.f32 %v10523_v0, %v10518_v26  ;;  %v10627_v26 = vadd.f32 %v8216_v32, %v10551_v36 }
 0x29a   : > { %v10589_v8 = vpop.eup %8885  ;;  %v10637_v32 = vadd.f32 %v8222_v47, %v8221_v12 }
 0x29b   : > { %15060 = vst [vmem:[#allocation21_spill] sm:$0xff] %v10589_v8  ;;  %v1601_v19 = vmul.f32 %v10589_v8, %v1521_v23  ;;  %v10609_v23 = vadd.f32 %v10513_v46, %v10507_v56  ;;  %v1131_v8 = vadd.f32 %v10614_v55, %v10310_v61  ;;  %v10623_v56 = vadd.f32 %v10541_v33, %v10533_v49 }
 0x29c   : > { %v1133_v61 = vadd.f32 %v10627_v26, %v10314_v6  ;;  %v10634_v33 = vadd.f32 %v8219_v11, %v8218_v2  ;;  %v1135_v6 = vadd.f32 %v10637_v32, %v10318_v13 }
 0x29d   : > { %1546 = vrot.lane.b32.xlu0 %v1454_v48, %s9984_s12  ;;  %1676 = vrot.lane.b32.xlu1 %v1599_v3, %s9984_s12  ;;  %v8224_v48 = vpop.f32.mrf.mxu1 }
 0x29e   : > { %v1174_v12 = vadd.f32 %v10391_v59, %v1135_v6 }
 0x29f   : > { %v8225_v3 = vpop.f32.mrf.mxu1 }
 0x2a0   : > { %v10644_v2 = vadd.f32 %v8225_v3, %v8224_v48  ;;  %v7915_v13 = vmul.f32 -1.442695, %v1174_v12 }
 0x2a1   : > { %1678 = vrot.lane.b32.xlu0 %v1600_v39, %s9984_s12  ;;  %1548 = vrot.lane.b32.xlu1 %v1455_v44, %s9984_s12  ;;  %v8227_v39 = vpop.f32.mrf.mxu1  ;;  %v10603_v44 = vadd.f32 %v10500_v27, %v10493_v18 }
 0x2a3   : > { %v8228_v37 = vpop.f32.mrf.mxu1  ;;  %v1129_v29 = vadd.f32 %v10603_v44, %v10304_v52 }
 0x2a4   : > { %v10647_v47 = vadd.f32 %v8228_v37, %v8227_v39 }
 0x2a5   : > { %1550 = vrot.lane.b32.xlu0 %v1456_v45, %s9984_s12  ;;  %1680 = vrot.lane.b32.xlu1 %v1601_v19, %s9984_s12  ;;  %v8230_v19 = vpop.f32.mrf.mxu1  ;;  %v1168_v45 = vadd.f32 %v10391_v59, %v1129_v29  ;;  %v1170_v29 = vadd.f32 %v10391_v59, %v1131_v8  ;;  %v1172_v8 = vadd.f32 %v10391_v59, %v1133_v61 }
 0x2a7   : > { %v8231_v18 = vpop.f32.mrf.mxu1  ;;  %v7909_v27 = vmul.f32 -1.442695, %v1168_v45  ;;  %v7911_v63 = vmul.f32 -1.442695, %v1170_v29 }
 0x2a9   : > { %1552 = vrot.lane.b32.xlu1 %v1457_v41, %s9984_s12  ;;  %v1130_v41 = vadd.f32 %v10609_v23, %v10308_v57  ;;  %v8233_v46 = vpop.f32.mrf.mxu1  ;;  %8887 = vpow2.f32 %v7909_v27  ;;  %v1132_v57 = vadd.f32 %v10623_v56, %v10312_v1  ;;  %v1134_v1 = vadd.f32 %v10634_v33, %v10316_v9 }
 0x2aa   : > { %v1136_v9 = vadd.f32 %v10644_v2, %v10320_v16 }
 0x2ab   : > { %v1169_v52 = vadd.f32 %v10391_v59, %v1130_v41  ;;  %v8234_v45 = vpop.f32.mrf.mxu1  ;;  %v1171_v49 = vadd.f32 %v10391_v59, %v1132_v57  ;;  %v1173_v11 = vadd.f32 %v10391_v59, %v1134_v1  ;;  %v10654_v1 = vadd.f32 %v8231_v18, %v8230_v19 }
 0x2ac   : > { %v10657_v16 = vadd.f32 %v8234_v45, %v8233_v46 }
 0x2ad   : > { %v7910_v0 = vmul.f32 -1.442695, %v1169_v52  ;;  %v8236_v41 = vpop.f32.mrf.mxu1  ;;  %v7912_v36 = vmul.f32 -1.442695, %v1171_v49  ;;  %v7913_v52 = vmul.f32 -1.442695, %v1172_v8  ;;  %v1137_v8 = vadd.f32 %v10647_v47, %v10322_v21 }
 0x2ae   : > { %v7914_v57 = vmul.f32 -1.442695, %v1173_v11  ;;  %v1139_v19 = vadd.f32 %v10657_v16, %v10326_v28 }
 0x2af   : > { %8889 = vpow2.f32 %v7910_v0  ;;  %v8237_v27 = vpop.f32.mrf.mxu1 }
 0x2b0   : > { %8891 = vpow2.f32 %v7911_v63 }
 0x2b1   : > { %8893 = vpow2.f32 %v7912_v36  ;;  %v8239_v63 = vpop.f32.mrf.mxu1  ;;  %v1175_v36 = vadd.f32 %v10391_v59, %v1136_v9  ;;  %v10664_v9 = vadd.f32 %v8237_v27, %v8236_v41 }
 0x2b2   : > { %8895 = vpow2.f32 %v7913_v52  ;;  %v1176_v52 = vadd.f32 %v10391_v59, %v1137_v8 }
 0x2b3   : > { %v8240_v49 = vpop.f32.mrf.mxu1  ;;  %v7916_v6 = vmul.f32 -1.442695, %v1175_v36  ;;  %v1140_v28 = vadd.f32 %v10664_v9, %v10328_v31 }
 0x2b5   : > { %v8242_v37 = vpop.f32.mrf.mxu1 }
 0x2b6   : > { %v8888_v29 = vpop.eup %8887 }
 0x2b7   : > { %v1296_v0 = vadd.f32 1.0, %v8888_v29  ;;  %v1138_v29 = vadd.f32 %v10654_v1, %v10324_v24  ;;  %v8243_v11 = vpop.f32.mrf.mxu1  ;;  %v1178_v24 = vadd.f32 %v10391_v59, %v1139_v19 }
 0x2b9   : > { %8897 = vrcp.f32 %v1296_v0  ;;  %v7917_v0 = vmul.f32 -1.442695, %v1176_v52  ;;  %v8245_v45 = vpop.f32.mrf.mxu1 }
 0x2ba   : > { %8899 = vpow2.f32 %v7914_v57  ;;  %v1177_v57 = vadd.f32 %v10391_v59, %v1138_v29 }
 0x2bb   : > { %8901 = vpow2.f32 %v7915_v13  ;;  %v10667_v13 = vadd.f32 %v8240_v49, %v8239_v63  ;;  %v8246_v36 = vpop.f32.mrf.mxu1  ;;  %v1385_v63 = vadd.f32 %v10384_v40, %v10573_v34  ;;  %v7919_v49 = vmul.f32 -1.442695, %v1178_v24 }
 0x2bc   : > { %v8890_v61 = vpop.eup %8889 }
 0x2bd   : > { %v8892_v48 = vpop.eup %8891  ;;  %v1297_v3 = vadd.f32 1.0, %v8890_v61  ;;  %v1141_v29 = vadd.f32 %v10667_v13, %v10330_v35 }
 0x2be   : > { %v1298_v39 = vadd.f32 1.0, %v8892_v48  ;;  %v8894_v21 = vpop.eup %8893  ;;  %v7918_v48 = vmul.f32 -1.442695, %v1177_v57 }
 0x2bf   : > { %8903 = vrcp.f32 %v1297_v3  ;;  %v8896_v18 = vpop.eup %8895  ;;  %v1299_v12 = vadd.f32 1.0, %v8894_v21  ;;  %v1386_v3 = vadd.f32 %v10399_v15, %v10573_v34  ;;  %v1179_v15 = vadd.f32 %v10391_v59, %v1140_v28 }
 0x2c0   : > { %8905 = vrcp.f32 %v1298_v39  ;;  %v1300_v61 = vadd.f32 1.0, %v8896_v18 }
 0x2c1   : > { %8907 = vpow2.f32 %v7916_v6 }
 0x2c2   : > { %8909 = vpow2.f32 %v7917_v0  ;;  %v10682_v0 = vadd.f32 %v8243_v11, %v8242_v37  ;;  %v7920_v11 = vmul.f32 -1.442695, %v1179_v15 }
 0x2c3   : > { %8911 = vrcp.f32 %v1299_v12  ;;  %v8248_v12 = vpop.f32.mrf.mxu1 }
 0x2c4   : > { %8913 = vrcp.f32 %v1300_v61  ;;  %v1387_v61 = vadd.f32 %v10386_v53, %v10573_v34  ;;  %v1388_v53 = vadd.f32 %v10401_v20, %v10573_v34 }
 0x2c5   : > { %8915 = vpow2.f32 %v7918_v48  ;;  %v1180_v48 = vadd.f32 %v10391_v59, %v1141_v29 }
 0x2c6   : > { %v10669_v8 = vpop.eup %8897 }
 0x2c7   : > { %v8900_v27 = vpop.eup %8899 }
 0x2c8   : > { %v8902_v31 = vpop.eup %8901  ;;  %v1301_v21 = vadd.f32 1.0, %v8900_v27  ;;  %v8249_v27 = vpop.f32.mrf.mxu1 }
 0x2c9   : > { %v1302_v24 = vadd.f32 1.0, %v8902_v31  ;;  %v10704_v29 = vadd.f32 %v8249_v27, %v8248_v12 }
 0x2cb   : > { %v1144_v12 = vadd.f32 %v10704_v29, %v10382_v17 }
 0x2cc   : > { %v10684_v18 = vpop.eup %8903 }
 0x2cd   : > { %v10692_v37 = vpop.eup %8905 }
 0x2db   : > { %v1651_v46 = vpop.permute.xlu0 %1650 }
 0x2dc   : > { %v1746_v57 = vadd.f32 %v1651_v46, %v1385_v63  ;;  %v1142_v46 = vadd.f32 %v10682_v0, %v10332_v38 }
 0x2de   : > { %v1181_v20 = vadd.f32 %v10391_v59, %v1142_v46 }
 0x2df   : > { %v1523_v41 = vpop.permute.xlu0 %1522  ;;  %v1653_v39 = vpop.permute.xlu1 %1652 }
 0x2e0   : > { %v1602_v52 = vmul.f32 %v10669_v8, %v1523_v41  ;;  %v1747_v6 = vadd.f32 %v1653_v39, %v1386_v3  ;;  %v10690_v3 = vadd.f32 %v8246_v36, %v8245_v45  ;;  %v8908_v41 = vpop.eup %8907 }
 0x2e1   : > { %v8910_v38 = vpop.eup %8909 }
 0x2e2   : > { %1682 = vrot.lane.b32.xlu0 %v1602_v52, %s9984_s12  ;;  %8917 = vtanh.f32 %v1747_v6  ;;  %v7921_v6 = vmul.f32 -1.442695, %v1180_v48  ;;  %v1143_v63 = vadd.f32 %v10690_v3, %v10334_v42 }
 0x2e3   : > { %v1655_v19 = vpop.permute.xlu0 %1654  ;;  %v1525_v40 = vpop.permute.xlu1 %1524  ;;  %8919 = vpow2.f32 %v7919_v49  ;;  %v1303_v49 = vadd.f32 1.0, %v8908_v41  ;;  %v1389_v41 = vadd.f32 %v10409_v43, %v10573_v34 }
 0x2e4   : > { %v1603_v35 = vmul.f32 %v10684_v18, %v1525_v40  ;;  %8921 = vrcp.f32 %v1301_v21  ;;  %v1748_v39 = vadd.f32 %v1655_v19, %v1387_v61  ;;  %v10706_v21 = vpop.eup %8911  ;;  %v1182_v42 = vadd.f32 %v10391_v59, %v1143_v63 }
 0x2e5   : > { %8923 = vtanh.f32 %v1746_v57  ;;  %v1304_v57 = vadd.f32 1.0, %v8910_v38  ;;  %v10710_v40 = vpop.eup %8913  ;;  %v7922_v61 = vmul.f32 -1.442695, %v1181_v20  ;;  %v1392_v20 = vadd.f32 %v10424_v5, %v10573_v34 }
 0x2e6   : > { %1684 = vrot.lane.b32.xlu1 %v1603_v35, %s9984_s12  ;;  %8925 = vrcp.f32 %v1302_v24  ;;  %v1390_v35 = vadd.f32 %v10414_v4, %v10573_v34  ;;  %v8916_v48 = vpop.eup %8915  ;;  %v7923_v27 = vmul.f32 -1.442695, %v1182_v42  ;;  %v1183_v4 = vadd.f32 %v10391_v59, %v1144_v12 }
 0x2e7   : > { %v1527_v28 = vpop.permute.xlu0 %1526  ;;  %v1657_v52 = vpop.permute.xlu1 %1656  ;;  %8927 = vpow2.f32 %v7920_v11  ;;  %v1391_v12 = vadd.f32 %v10419_v54, %v10573_v34 }
 0x2e8   : > { %v1604_v45 = vmul.f32 %v10692_v37, %v1527_v28  ;;  %v1749_v36 = vadd.f32 %v1657_v52, %v1388_v53  ;;  %8929 = vtanh.f32 %v1748_v39  ;;  %v1305_v39 = vadd.f32 1.0, %v8916_v48 }
 0x2e9   : > { %v7924_v59 = vmul.f32 -1.442695, %v1183_v4 }
 0x2ea   : > { %1686 = vrot.lane.b32.xlu0 %v1604_v45, %s9984_s12  ;;  %8931 = vtanh.f32 %v1749_v36 }
 0x2eb   : > { %v1659_v31 = vpop.permute.xlu0 %1658  ;;  %v1529_v15 = vpop.permute.xlu1 %1528  ;;  %8933 = vpow2.f32 %v7921_v6 }
 0x2ec   : > { %v1605_v19 = vmul.f32 %v10706_v21, %v1529_v15  ;;  %8935 = vrcp.f32 %v1303_v49  ;;  %v1750_v36 = vadd.f32 %v1659_v31, %v1389_v41 }
 0x2ed   : > { %8937 = vrcp.f32 %v1304_v57 }
 0x2ee   : > { %1688 = vrot.lane.b32.xlu1 %v1605_v19, %s9984_s12  ;;  %8939 = vpow2.f32 %v7922_v61 }
 0x2ef   : > { %v1531_v24 = vpop.permute.xlu0 %1530  ;;  %v1661_v11 = vpop.permute.xlu1 %1660 }
 0x2f0   : > { %v1606_v46 = vmul.f32 %v10710_v40, %v1531_v24  ;;  %v1751_v53 = vadd.f32 %v1661_v11, %v1390_v35  ;;  %v10718_v28 = vpop.eup %8917 }
 0x2f1   : > { %v8920_v17 = vpop.eup %8919 }
 0x2f2   : > { %1690 = vrot.lane.b32.xlu0 %v1606_v46, %s9984_s12  ;;  %1844 = vrot.lane.b32.xlu1 %v10718_v28, %s9984_s12  ;;  %v10726_v45 = vpop.eup %8921  ;;  %8941 = vtanh.f32 %v1751_v53  ;;  %v1306_v38 = vadd.f32 1.0, %v8920_v17  ;;  %v1394_v17 = vadd.f32 %v10434_v60, %v10573_v34 }
 0x2f3   : > { %v1663_v52 = vpop.permute.xlu0 %1662  ;;  %v1533_v6 = vpop.permute.xlu1 %1532  ;;  %8943 = vpow2.f32 %v7923_v27 }
 0x2f4   : > { %v10728_v63 = vpop.eup %8923  ;;  %v1607_v43 = vmul.f32 %v10726_v45, %v1533_v6  ;;  %8945 = vrcp.f32 %v1305_v39  ;;  %v1752_v11 = vadd.f32 %v1663_v52, %v1391_v12 }
 0x2f5   : > { %v10733_v49 = vpop.eup %8925  ;;  %8947 = vtanh.f32 %v1750_v36 }
 0x2f6   : > { %1842 = vrot.lane.b32.xlu0 %v10728_v63, %s9984_s12  ;;  %1692 = vrot.lane.b32.xlu1 %v1607_v43, %s9984_s12  ;;  %v8928_v15 = vpop.eup %8927  ;;  %8949 = vrcp.f32 %v1306_v38  ;;  %v1393_v38 = vadd.f32 %v10429_v14, %v10573_v34 }
 0x2f7   : > { %v1535_v31 = vpop.permute.xlu0 %1534  ;;  %v1665_v19 = vpop.permute.xlu1 %1664  ;;  %v1307_v24 = vadd.f32 1.0, %v8928_v15  ;;  %8951 = vpow2.f32 %v7924_v59 }
 0x2f8   : > { %v10738_v57 = vpop.eup %8929  ;;  %v1753_v42 = vadd.f32 %v1665_v19, %v1392_v20  ;;  %v1608_v46 = vmul.f32 %v10733_v49, %v1535_v31 }
 0x2f9   : > { %v10740_v61 = vpop.eup %8931 }
 0x2fa   : > { %1846 = vrot.lane.b32.xlu0 %v10738_v57, %s9984_s12  ;;  %v8934_v35 = vpop.eup %8933  ;;  %1848 = vrot.lane.b32.xlu1 %v10740_v61, %s9984_s12  ;;  %8953 = vtanh.f32 %v1753_v42 }
 0x2fb   : > { %v1667_v5 = vpop.permute.xlu0 %1666  ;;  %v10748_v48 = vpop.eup %8935  ;;  %v1308_v41 = vadd.f32 1.0, %v8934_v35  ;;  %8955 = vrcp.f32 %v1307_v24  ;;  %v1396_v24 = vadd.f32 %v10444_v22, %v10573_v34 }
 0x2fc   : > { %v1537_v53 = vpop.permute.xlu1 %1536  ;;  %v10753_v27 = vpop.eup %8937  ;;  %8957 = vtanh.f32 %v1752_v11  ;;  %v1754_v15 = vadd.f32 %v1667_v5, %v1393_v38 }
 0x2fd   : > { %v1609_v54 = vmul.f32 %v10748_v48, %v1537_v53  ;;  %v8940_v4 = vpop.eup %8939  ;;  %8959 = vrcp.f32 %v1308_v41 }
 0x2fe   : > { %1694 = vrot.lane.b32.xlu0 %v1608_v46, %s9984_s12  ;;  %v1309_v20 = vadd.f32 1.0, %v8940_v4 }
 0x2ff   : > { %1696 = vrot.lane.b32.xlu1 %v1609_v54, %s9984_s12  ;;  %v1539_v39 = vpop.permute.xlu0 %1538  ;;  %v10759_v43 = vpop.eup %8941 }
 0x300   : > { %v1669_v52 = vpop.permute.xlu1 %1668  ;;  %v1610_v36 = vmul.f32 %v10753_v27, %v1539_v39  ;;  %v8944_v59 = vpop.eup %8943 }
 0x301   : > { %v1755_v6 = vadd.f32 %v1669_v52, %v1394_v17  ;;  %v10766_v31 = vpop.eup %8945  ;;  %v1310_v35 = vadd.f32 1.0, %v8944_v59  ;;  %v1395_v17 = vadd.f32 %v10439_v7, %v10573_v34  ;;  %v1397_v7 = vadd.f32 %v10452_v50, %v10573_v34 }
 0x302   : > { %1698 = vrot.lane.b32.xlu0 %v1610_v36, %s9984_s12  ;;  %v10768_v42 = vpop.eup %8947  ;;  %v1399_v50 = vadd.f32 %v10477_v30, %v10573_v34 }
 0x303   : > { %1852 = vrot.lane.b32.xlu1 %v10759_v43, %s9984_s12  ;;  %v1671_v60 = vpop.permute.xlu0 %1670  ;;  %8961 = vtanh.f32 %v1755_v6  ;;  %v10773_v14 = vpop.eup %8949 }
 0x304   : > { %v1541_v19 = vpop.permute.xlu1 %1540  ;;  %8963 = vrcp.f32 %v1309_v20  ;;  %v8952_v5 = vpop.eup %8951  ;;  %v1756_v52 = vadd.f32 %v1671_v60, %v1395_v17  ;;  %v1398_v20 = vadd.f32 %v10465_v62, %v10573_v34  ;;  %v1400_v17 = vadd.f32 %v10489_v58, %v10573_v34 }
 0x305   : > { %v1611_v12 = vmul.f32 %v10766_v31, %v1541_v19  ;;  %8965 = vtanh.f32 %v1754_v15  ;;  %v1311_v39 = vadd.f32 1.0, %v8952_v5 }
 0x306   : > { %1850 = vrot.lane.b32.xlu0 %v10768_v42, %s9984_s12  ;;  %8967 = vrcp.f32 %v1310_v35 }
 0x307   : > { %1700 = vrot.lane.b32.xlu1 %v1611_v12, %s9984_s12  ;;  %v1543_v11 = vpop.permute.xlu0 %1542  ;;  %v10779_v41 = vpop.eup %8953 }
 0x308   : > { %v1673_v46 = vpop.permute.xlu1 %1672  ;;  %v1612_v53 = vmul.f32 %v10773_v14, %v1543_v11  ;;  %v10786_v4 = vpop.eup %8955 }
 0x309   : > { %v1757_v54 = vadd.f32 %v1673_v46, %v1396_v24  ;;  %v10788_v6 = vpop.eup %8957 }
 0x30a   : > { %1702 = vrot.lane.b32.xlu0 %v1612_v53, %s9984_s12  ;;  %v10795_v59 = vpop.eup %8959 }
 0x30b   : > { %1856 = vrot.lane.b32.xlu1 %v10779_v41, %s9984_s12  ;;  %v1675_v22 = vpop.permute.xlu0 %1674  ;;  %8969 = vtanh.f32 %v1757_v54 }
 0x30c   : > { %v1545_v36 = vpop.permute.xlu1 %1544  ;;  %8971 = vrcp.f32 %v1311_v39  ;;  %v1758_v15 = vadd.f32 %v1675_v22, %v1397_v7 }
 0x30d   : > { %v1613_v38 = vmul.f32 %v10786_v4, %v1545_v36  ;;  %8973 = vtanh.f32 %v1756_v52 }
 0x30e   : > { %1854 = vrot.lane.b32.xlu0 %v10788_v6, %s9984_s12  ;;  %8975 = vtanh.f32 %v1758_v15 }
 0x30f   : > { %1704 = vrot.lane.b32.xlu1 %v1613_v38, %s9984_s12  ;;  %v1547_v60 = vpop.permute.xlu0 %1546 }
 0x310   : > { %v1677_v19 = vpop.permute.xlu1 %1676  ;;  %v1614_v12 = vmul.f32 %v10795_v59, %v1547_v60  ;;  %v10801_v24 = vpop.eup %8961 }
 0x311   : > { %v1759_v35 = vadd.f32 %v1677_v19, %v1398_v20  ;;  %v10808_v5 = vpop.eup %8963 }
 0x312   : > { %1706 = vrot.lane.b32.xlu0 %v1614_v12, %s9984_s12  ;;  %v10810_v53 = vpop.eup %8965 }
 0x313   : > { %1860 = vrot.lane.b32.xlu1 %v10801_v24, %s9984_s12  ;;  %v1679_v11 = vpop.permute.xlu0 %1678  ;;  %8977 = vtanh.f32 %v1759_v35  ;;  %v10815_v30 = vpop.eup %8967 }
 0x314   : > { %v1549_v62 = vpop.permute.xlu1 %1548  ;;  %v1760_v46 = vadd.f32 %v1679_v11, %v1399_v50  ;;  %v1401_v50 = vadd.f32 %v10603_v44, %v10573_v34 }
 0x315   : > { %v1615_v54 = vmul.f32 %v10808_v5, %v1549_v62 }
 0x316   : > { %1858 = vrot.lane.b32.xlu0 %v10810_v53, %s9984_s12  ;;  %8979 = vtanh.f32 %v1760_v46  ;;  %v1402_v46 = vadd.f32 %v10609_v23, %v10573_v34  ;;  %v1405_v23 = vadd.f32 %v10627_v26, %v10573_v34  ;;  %v9791_v26 = vld [vmem:[%s10129_s15 + $0x8] sm:$0xff] }
 0x317   : > { %1708 = vrot.lane.b32.xlu1 %v1615_v54, %s9984_s12  ;;  %v1551_v39 = vpop.permute.xlu0 %1550 }
 0x318   : > { %v1681_v22 = vpop.permute.xlu1 %1680  ;;  %v1616_v52 = vmul.f32 %v10815_v30, %v1551_v39  ;;  %v10821_v38 = vpop.eup %8969  ;;  %v1403_v39 = vadd.f32 %v10614_v55, %v10573_v34 }
 0x319   : > { %v1761_v36 = vadd.f32 %v1681_v22, %v1400_v17  ;;  %v10826_v7 = vpop.eup %8971 }
 0x31a   : > { %1710 = vrot.lane.b32.xlu0 %v1616_v52, %s9984_s12  ;;  %v10828_v60 = vpop.eup %8973 }
 0x31b   : > { %8981 = vtanh.f32 %v1761_v36  ;;  %1864 = vrot.lane.b32.xlu1 %v10821_v38, %s9984_s12  ;;  %v10834_v15 = vpop.eup %8975  ;;  %v1404_v36 = vadd.f32 %v10623_v56, %v10573_v34 }
 0x31c   : > { %v1553_v20 = vpop.permute.xlu1 %1552 }
 0x31d   : > { %v1617_v58 = vmul.f32 %v10826_v7, %v1553_v20 }
 0x31e   : > { %1862 = vrot.lane.b32.xlu0 %v10828_v60, %s9984_s12 }
 0x31f   : > { %1712 = vrot.lane.b32.xlu1 %v1617_v58, %s9984_s12 }
 0x320   : > { %v10836_v19 = vpop.eup %8977 }
 0x322   : > { %1866 = vrot.lane.b32.xlu0 %v10834_v15, %s9984_s12 }
 0x323   : > { %1868 = vrot.lane.b32.xlu1 %v10836_v19, %s9984_s12  ;;  %v10842_v12 = vpop.eup %8979 }
 0x326   : > { %1870 = vrot.lane.b32.xlu0 %v10842_v12, %s9984_s12 }
 0x328   : > { %v10846_v35 = vpop.eup %8981 }
 0x329   : > { %1872 = vrot.lane.b32.xlu1 %v10846_v35, %s9984_s12 }
 0x354   : > { %v1683_v11 = vpop.permute.xlu0 %1682 }
 0x355   : > { %v1762_v62 = vadd.f32 %v1683_v11, %v1401_v50 }
 0x357   : > { %8983 = vtanh.f32 %v1762_v62  ;;  %v1406_v62 = vadd.f32 %v10634_v33, %v10573_v34  ;;  %v1407_v33 = vadd.f32 %v10637_v32, %v10573_v34  ;;  %v9794_v32 = vld [vmem:[%s10129_s15 + $0x18] sm:$0xff] }
 0x358   : > { %v1685_v54 = vpop.permute.xlu1 %1684 }
 0x359   : > { %v1763_v17 = vadd.f32 %v1685_v54, %v1402_v46 }
 0x35b   : > { %8985 = vtanh.f32 %v1763_v17 }
 0x35c   : > { %v1687_v22 = vpop.permute.xlu0 %1686 }
 0x35d   : > { %v1764_v52 = vadd.f32 %v1687_v22, %v1403_v39 }
 0x35f   : > { %8987 = vtanh.f32 %v1764_v52 }
 0x360   : > { %v1689_v20 = vpop.permute.xlu1 %1688 }
 0x361   : > { %v1765_v44 = vadd.f32 %v1689_v20, %v1404_v36  ;;  %v9792_v20 = vld [vmem:[%s10129_s15] sm:$0xff] }
 0x363   : > { %8989 = vtanh.f32 %v1765_v44 }
 0x364   : > { %v10858_v58 = vpop.eup %8983  ;;  %v1691_v50 = vpop.permute.xlu0 %1690 }
 0x365   : > { %v1845_v11 = vpop.permute.xlu1 %1844  ;;  %1874 = vrot.lane.b32.xlu0 %v10858_v58, %s9984_s12  ;;  %v1766_v55 = vadd.f32 %v1691_v50, %v1405_v23  ;;  %v1408_v50 = vadd.f32 %v10644_v2, %v10573_v34  ;;  %v1409_v2 = vadd.f32 %v10647_v47, %v10573_v34  ;;  %v9795_v47 = vld [vmem:[%s10129_s15 + $0x28] sm:$0xff] }
 0x366   : > { %v1939_v22 = vsub.f32 %v9791_v26, %v1845_v11 }
 0x367   : > { %8991 = vtanh.f32 %v1766_v55 }
 0x368   : > { %v1843_v46 = vpop.permute.xlu0 %1842  ;;  %v10866_v56 = vpop.eup %8985 }
 0x369   : > { %v1693_v54 = vpop.permute.xlu1 %1692  ;;  %1876 = vrot.lane.b32.xlu1 %v10866_v56, %s9984_s12  ;;  %v1938_v44 = vsub.f32 %v9792_v20, %v1843_v46 }
 0x36a   : > { %v1767_v17 = vadd.f32 %v1693_v54, %v1406_v62 }
 0x36c   : > { %v10870_v39 = vpop.eup %8987  ;;  %8993 = vtanh.f32 %v1767_v17  ;;  %v1847_v52 = vpop.permute.xlu0 %1846  ;;  %v9793_v17 = vld [vmem:[%s10129_s15 + $0x10] sm:$0xff] }
 0x36d   : > { %v1849_v36 = vpop.permute.xlu1 %1848  ;;  %1878 = vrot.lane.b32.xlu0 %v10870_v39, %s9984_s12  ;;  %2004 = vrot.lane.b32.xlu1 %v1939_v22, %s9985_s13  ;;  %v1940_v26 = vsub.f32 %v9793_v17, %v1847_v52  ;;  %v1410_v52 = vadd.f32 %v10654_v1, %v10573_v34  ;;  %v1411_v1 = vadd.f32 %v10657_v16, %v10573_v34  ;;  %v9796_v16 = vld [vmem:[%s10129_s15 + $0x20] sm:$0xff] }
 0x36e   : > { %v1941_v22 = vsub.f32 %v9794_v32, %v1849_v36 }
 0x370   : > { %v1695_v23 = vpop.permute.xlu0 %1694  ;;  %v10881_v11 = vpop.eup %8989 }
 0x371   : > { %v1697_v55 = vpop.permute.xlu1 %1696  ;;  %v1768_v62 = vadd.f32 %v1695_v23, %v1407_v33  ;;  %2002 = vrot.lane.b32.xlu0 %v1938_v44, %s9985_s13  ;;  %1880 = vrot.lane.b32.xlu1 %v10881_v11, %s9984_s12 }
 0x372   : > { %v1769_v54 = vadd.f32 %v1697_v55, %v1408_v50 }
 0x373   : > { %8995 = vtanh.f32 %v1768_v62 }
 0x374   : > { %8997 = vtanh.f32 %v1769_v54  ;;  %v1699_v46 = vpop.permute.xlu0 %1698  ;;  %v10892_v44 = vpop.eup %8991 }
 0x375   : > { %v1853_v20 = vpop.permute.xlu1 %1852  ;;  %2006 = vrot.lane.b32.xlu0 %v1940_v26, %s9985_s13  ;;  %2008 = vrot.lane.b32.xlu1 %v1941_v22, %s9985_s13  ;;  %v1770_v33 = vadd.f32 %v1699_v46, %v1409_v2  ;;  %v1412_v22 = vadd.f32 %v10664_v9, %v10573_v34  ;;  %v1413_v9 = vadd.f32 %v10667_v13, %v10573_v34 }
 0x376   : > { %v1943_v62 = vsub.f32 %v9795_v47, %v1853_v20 }
 0x377   : > { %8999 = vtanh.f32 %v1770_v33 }
 0x378   : > { %v1851_v50 = vpop.permute.xlu0 %1850 }
 0x379   : > { %v10896_v23 = vpop.eup %8993  ;;  %v1701_v36 = vpop.permute.xlu1 %1700  ;;  %1882 = vrot.lane.b32.xlu0 %v10892_v44, %s9984_s12 }
 0x37a   : > { %v1771_v55 = vadd.f32 %v1701_v36, %v1410_v52  ;;  %1884 = vrot.lane.b32.xlu1 %v10896_v23, %s9984_s12  ;;  %v1942_v52 = vsub.f32 %v9796_v16, %v1851_v50  ;;  %v9797_v36 = vld [vmem:[%s10129_s15 + $0x38] sm:$0xff]  ;;  %v1414_v50 = vadd.f32 %v10682_v0, %v10573_v34  ;;  %v9799_v16 = vld [vmem:[%s10129_s15 + $0x48] sm:$0xff]  ;;  %v1415_v0 = vadd.f32 %v10690_v3, %v10573_v34  ;;  %v9800_v3 = vld [vmem:[%s10129_s15 + $0x40] sm:$0xff] }
 0x37c   : > { %9001 = vtanh.f32 %v1771_v55  ;;  %v1703_v54 = vpop.permute.xlu0 %1702 }
 0x37d   : > { %v1857_v17 = vpop.permute.xlu1 %1856  ;;  %v1772_v26 = vadd.f32 %v1703_v54, %v1411_v1 }
 0x37e   : > { %2012 = vrot.lane.b32.xlu1 %v1943_v62, %s9985_s13  ;;  %v1945_v55 = vsub.f32 %v9797_v36, %v1857_v17 }
 0x37f   : > { %9003 = vtanh.f32 %v1772_v26 }
 0x380   : > { %v10906_v32 = vpop.eup %8995  ;;  %v1855_v46 = vpop.permute.xlu0 %1854 }
 0x381   : > { %v10910_v2 = vpop.eup %8997  ;;  %v1705_v33 = vpop.permute.xlu1 %1704  ;;  %1886 = vrot.lane.b32.xlu0 %v10906_v32, %s9984_s12 }
 0x382   : > { %v1773_v20 = vadd.f32 %v1705_v33, %v1412_v22  ;;  %1888 = vrot.lane.b32.xlu1 %v10910_v2, %s9984_s12  ;;  %v9798_v33 = vld [vmem:[%s10129_s15 + $0x30] sm:$0xff] }
 0x384   : > { %9005 = vtanh.f32 %v1773_v20  ;;  %v1707_v47 = vpop.permute.xlu0 %1706  ;;  %v10922_v1 = vpop.eup %8999  ;;  %v1944_v20 = vsub.f32 %v9798_v33, %v1855_v46  ;;  %v1416_v46 = vadd.f32 %v10704_v29, %v10573_v34 }
 0x385   : > { %v1861_v62 = vpop.permute.xlu1 %1860  ;;  %2010 = vrot.lane.b32.xlu0 %v1942_v52, %s9985_s13  ;;  %v1774_v54 = vadd.f32 %v1707_v47, %v1413_v9 }
 0x386   : > { %2016 = vrot.lane.b32.xlu1 %v1945_v55, %s9985_s13  ;;  %v1947_v52 = vsub.f32 %v9799_v16, %v1861_v62 }
 0x387   : > { %9007 = vtanh.f32 %v1774_v54 }
 0x388   : > { %v1859_v26 = vpop.permute.xlu0 %1858 }
 0x389   : > { %v10926_v17 = vpop.eup %9001  ;;  %v1709_v22 = vpop.permute.xlu1 %1708  ;;  %1890 = vrot.lane.b32.xlu0 %v10922_v1, %s9984_s12 }
 0x38a   : > { %v1775_v13 = vadd.f32 %v1709_v22, %v1414_v50  ;;  %1892 = vrot.lane.b32.xlu1 %v10926_v17, %s9984_s12  ;;  %v1946_v22 = vsub.f32 %v9800_v3, %v1859_v26  ;;  %v9802_v26 = vld [vmem:[%s10129_s15 + $0x50] sm:$0xff]  ;;  %v9804_v3 = vld [vmem:[%s10129_s15 + $0x60] sm:$0xff] }
 0x38c   : > { %9009 = vtanh.f32 %v1775_v13  ;;  %v1711_v36 = vpop.permute.xlu0 %1710  ;;  %v10938_v9 = vpop.eup %9003  ;;  %v9801_v13 = vld [vmem:[%s10129_s15 + $0x58] sm:$0xff] }
 0x38d   : > { %v1865_v55 = vpop.permute.xlu1 %1864  ;;  %2014 = vrot.lane.b32.xlu0 %v1944_v20, %s9985_s13  ;;  %v1776_v47 = vadd.f32 %v1711_v36, %v1415_v0  ;;  %v9803_v0 = vld [vmem:[%s10129_s15 + $0x68] sm:$0xff] }
 0x38e   : > { %2020 = vrot.lane.b32.xlu1 %v1947_v52, %s9985_s13  ;;  %v1949_v33 = vsub.f32 %v9801_v13, %v1865_v55 }
 0x38f   : > { %9011 = vtanh.f32 %v1776_v47 }
 0x390   : > { %v1863_v20 = vpop.permute.xlu0 %1862 }
 0x391   : > { %v10942_v54 = vpop.eup %9005  ;;  %v1713_v62 = vpop.permute.xlu1 %1712  ;;  %1894 = vrot.lane.b32.xlu0 %v10938_v9, %s9984_s12  ;;  %v1948_v36 = vsub.f32 %v9802_v26, %v1863_v20 }
 0x392   : > { %v1777_v50 = vadd.f32 %v1713_v62, %v1416_v46  ;;  %1896 = vrot.lane.b32.xlu1 %v10942_v54, %s9984_s12 }
 0x394   : > { %9013 = vtanh.f32 %v1777_v50  ;;  %v10952_v29 = vpop.eup %9007  ;;  %v1867_v47 = vpop.permute.xlu0 %1866 }
 0x395   : > { %2018 = vrot.lane.b32.xlu0 %v1946_v22, %s9985_s13  ;;  %v1869_v52 = vpop.permute.xlu1 %1868  ;;  %v1950_v22 = vsub.f32 %v9804_v3, %v1867_v47 }
 0x396   : > { %2024 = vrot.lane.b32.xlu1 %v1949_v33, %s9985_s13  ;;  %v1951_v55 = vsub.f32 %v9803_v0, %v1869_v52  ;;  %v9805_v33 = vld [vmem:[%s10129_s15 + $0x78] sm:$0xff]  ;;  %v9806_v52 = vld [vmem:[%s10129_s15 + $0x70] sm:$0xff]  ;;  %v9807_v0 = vld [vmem:[%s10129_s15 + $0x80] sm:$0xff] }
 0x398   : > { %v1871_v13 = vpop.permute.xlu0 %1870 }
 0x399   : > { %v10954_v16 = vpop.eup %9009  ;;  %1898 = vrot.lane.b32.xlu0 %v10952_v29, %s9984_s12  ;;  %v1952_v26 = vsub.f32 %v9806_v52, %v1871_v13 }
 0x39a   : > { %1900 = vrot.lane.b32.xlu1 %v10954_v16, %s9984_s12 }
 0x39b   : > { %v1873_v50 = vpop.permute.xlu1 %1872 }
 0x39c   : > { %v10964_v46 = vpop.eup %9011  ;;  %v1953_v20 = vsub.f32 %v9805_v33, %v1873_v50  ;;  %v9808_v33 = vld [vmem:[%s10129_s15 + $0x88] sm:$0xff] }
 0x39d   : > { %2022 = vrot.lane.b32.xlu0 %v1948_v36, %s9985_s13 }
 0x39e   : > { %2028 = vrot.lane.b32.xlu1 %v1951_v55, %s9985_s13 }
 0x3a1   : > { %v10966_v62 = vpop.eup %9013  ;;  %1902 = vrot.lane.b32.xlu0 %v10964_v46, %s9984_s12 }
 0x3a2   : > { %15061 = vst [vmem:[#allocation22_spill] sm:$0xff] %v10966_v62  ;;  %1904 = vrot.lane.b32.xlu1 %v10966_v62, %s9984_s12 }
 0x3a5   : > { %2026 = vrot.lane.b32.xlu0 %v1950_v22, %s9985_s13 }
 0x3a6   : > { %2032 = vrot.lane.b32.xlu1 %v1953_v20, %s9985_s13 }
 0x3a9   : > { %2030 = vrot.lane.b32.xlu0 %v1952_v26, %s9985_s13 }
 0x3d7   : > { %v1875_v36 = vpop.permute.xlu0 %1874 }
 0x3d8   : > { %v1954_v55 = vsub.f32 %v9807_v0, %v1875_v36  ;;  %v15062_v0 = vld [vmem:[#allocation8_spill] sm:$0xff] }
 0x3da   : > { %2034 = vrot.lane.b32.xlu0 %v1954_v55, %s9985_s13  ;;  %v9809_v55 = vld [vmem:[%s10129_s15 + $0x90] sm:$0xff] }
 0x3db   : > { %v1877_v34 = vpop.permute.xlu1 %1876 }
 0x3dc   : > { %v1955_v20 = vsub.f32 %v9808_v33, %v1877_v34  ;;  %v9810_v34 = vld [vmem:[%s10129_s15 + $0x98] sm:$0xff] }
 0x3df   : > { %v1879_v62 = vpop.permute.xlu0 %1878  ;;  %v2005_v47 = vpop.permute.xlu1 %2004 }
 0x3e0   : > { %v2099_v50 = vmul.f32 %v10455_v51, %v2005_v47 }
 0x3e2   : > { %2164 = vrot.lane.b32.xlu1 %v2099_v50, %s9985_s13 }
 0x3e3   : > { %v2003_v3 = vpop.permute.xlu0 %2002  ;;  %v1881_v22 = vpop.permute.xlu1 %1880 }
 0x3e4   : > { %v2098_v13 = vmul.f32 %v10446_v25, %v2003_v3  ;;  %v1956_v25 = vsub.f32 %v9809_v55, %v1879_v62  ;;  %v1957_v50 = vsub.f32 %v9810_v34, %v1881_v22  ;;  %v15064_v55 = vld [vmem:[#allocation9_spill] sm:$0xff]  ;;  %v15065_v34 = vld [vmem:[#allocation12_spill] sm:$0xff] }
 0x3e6   : > { %2162 = vrot.lane.b32.xlu0 %v2098_v13, %s9985_s13  ;;  %2036 = vrot.lane.b32.xlu1 %v1955_v20, %s9985_s13  ;;  %v9811_v13 = vld [vmem:[%s10129_s15 + $0xa0] sm:$0xff]  ;;  %v15063_v20 = vld [vmem:[#allocation10_spill] sm:$0xff] }
 0x3e7   : > { %v2007_v52 = vpop.permute.xlu0 %2006  ;;  %v2009_v26 = vpop.permute.xlu1 %2008 }
 0x3e8   : > { %v2100_v36 = vmul.f32 %v10461_v10, %v2007_v52  ;;  %v2101_v51 = vmul.f32 %v15062_v0, %v2009_v26 }
 0x3ea   : > { %2166 = vrot.lane.b32.xlu0 %v2100_v36, %s9985_s13  ;;  %2168 = vrot.lane.b32.xlu1 %v2101_v51, %s9985_s13  ;;  %v9812_v36 = vld [vmem:[%s10129_s15 + $0xa8] sm:$0xff] }
 0x3eb   : > { %v1883_v3 = vpop.permute.xlu0 %1882 }
 0x3ec   : > { %v1885_v47 = vpop.permute.xlu1 %1884  ;;  %v1958_v33 = vsub.f32 %v9811_v13, %v1883_v3  ;;  %v9813_v13 = vld [vmem:[%s10129_s15 + $0xb0] sm:$0xff] }
 0x3ed   : > { %v1959_v22 = vsub.f32 %v9812_v36, %v1885_v47 }
 0x3ee   : > { %2038 = vrot.lane.b32.xlu0 %v1956_v25, %s9985_s13  ;;  %2040 = vrot.lane.b32.xlu1 %v1957_v50, %s9985_s13 }
 0x3f0   : > { %v2013_v10 = vpop.permute.xlu1 %2012 }
 0x3f1   : > { %v2103_v52 = vmul.f32 %v15063_v20, %v2013_v10  ;;  %v9814_v20 = vld [vmem:[%s10129_s15 + $0xb8] sm:$0xff] }
 0x3f2   : > { %2042 = vrot.lane.b32.xlu0 %v1958_v33, %s9985_s13 }
 0x3f3   : > { %2172 = vrot.lane.b32.xlu1 %v2103_v52, %s9985_s13  ;;  %v1887_v62 = vpop.permute.xlu0 %1886 }
 0x3f4   : > { %v1889_v26 = vpop.permute.xlu1 %1888  ;;  %v1960_v33 = vsub.f32 %v9813_v13, %v1887_v62 }
 0x3f5   : > { %v1961_v47 = vsub.f32 %v9814_v20, %v1889_v26 }
 0x3f7   : > { %2044 = vrot.lane.b32.xlu1 %v1959_v22, %s9985_s13  ;;  %v2011_v0 = vpop.permute.xlu0 %2010  ;;  %v15066_v22 = vld [vmem:[#allocation11_spill] sm:$0xff] }
 0x3f8   : > { %v2017_v51 = vpop.permute.xlu1 %2016  ;;  %v2102_v25 = vmul.f32 %v15064_v55, %v2011_v0 }
 0x3f9   : > { %v2105_v50 = vmul.f32 %v15065_v34, %v2017_v51  ;;  %v15067_v51 = vld [vmem:[#allocation14_spill] sm:$0xff] }
 0x3fa   : > { %2170 = vrot.lane.b32.xlu0 %v2102_v25, %s9985_s13  ;;  %v9815_v25 = vld [vmem:[%s10129_s15 + $0xc0] sm:$0xff] }
 0x3fb   : > { %2176 = vrot.lane.b32.xlu1 %v2105_v50, %s9985_s13  ;;  %v1891_v3 = vpop.permute.xlu0 %1890  ;;  %v9816_v50 = vld [vmem:[%s10129_s15 + $0xc8] sm:$0xff] }
 0x3fc   : > { %v1893_v10 = vpop.permute.xlu1 %1892  ;;  %v1962_v34 = vsub.f32 %v9815_v25, %v1891_v3 }
 0x3fd   : > { %v1963_v13 = vsub.f32 %v9816_v50, %v1893_v10 }
 0x3fe   : > { %2046 = vrot.lane.b32.xlu0 %v1960_v33, %s9985_s13 }
 0x3ff   : > { %2048 = vrot.lane.b32.xlu1 %v1961_v47, %s9985_s13  ;;  %v2015_v52 = vpop.permute.xlu0 %2014  ;;  %v15068_v47 = vld [vmem:[#allocation13_spill] sm:$0xff] }
 0x400   : > { %v2021_v36 = vpop.permute.xlu1 %2020  ;;  %v2104_v0 = vmul.f32 %v15066_v22, %v2015_v52 }
 0x401   : > { %v2107_v55 = vmul.f32 %v15067_v51, %v2021_v36  ;;  %v15069_v36 = vld [vmem:[#allocation16_spill] sm:$0xff] }
 0x402   : > { %2174 = vrot.lane.b32.xlu0 %v2104_v0, %s9985_s13  ;;  %v9817_v0 = vld [vmem:[%s10129_s15 + $0xd0] sm:$0xff] }
 0x403   : > { %2180 = vrot.lane.b32.xlu1 %v2107_v55, %s9985_s13  ;;  %v1895_v62 = vpop.permute.xlu0 %1894  ;;  %v9818_v55 = vld [vmem:[%s10129_s15 + $0xd8] sm:$0xff] }
 0x404   : > { %v1897_v26 = vpop.permute.xlu1 %1896  ;;  %v1964_v51 = vsub.f32 %v9817_v0, %v1895_v62 }
 0x405   : > { %v1965_v25 = vsub.f32 %v9818_v55, %v1897_v26 }
 0x406   : > { %2050 = vrot.lane.b32.xlu0 %v1962_v34, %s9985_s13 }
 0x407   : > { %2052 = vrot.lane.b32.xlu1 %v1963_v13, %s9985_s13  ;;  %v2019_v33 = vpop.permute.xlu0 %2018  ;;  %v15070_v13 = vld [vmem:[#allocation15_spill] sm:$0xff] }
 0x408   : > { %v2025_v20 = vpop.permute.xlu1 %2024  ;;  %v2106_v52 = vmul.f32 %v15068_v47, %v2019_v33 }
 0x409   : > { %v2109_v22 = vmul.f32 %v15069_v36, %v2025_v20  ;;  %v15071_v20 = vld [vmem:[#allocation19_spill] sm:$0xff] }
 0x40a   : > { %2178 = vrot.lane.b32.xlu0 %v2106_v52, %s9985_s13  ;;  %v9819_v52 = vld [vmem:[%s10129_s15 + $0xe0] sm:$0xff] }
 0x40b   : > { %2184 = vrot.lane.b32.xlu1 %v2109_v22, %s9985_s13  ;;  %v1899_v3 = vpop.permute.xlu0 %1898  ;;  %v9820_v22 = vld [vmem:[%s10129_s15 + $0xe8] sm:$0xff] }
 0x40c   : > { %v1901_v10 = vpop.permute.xlu1 %1900  ;;  %v1966_v36 = vsub.f32 %v9819_v52, %v1899_v3  ;;  %v9822_v3 = vld [vmem:[%s10129_s15 + $0xf8] sm:$0xff] }
 0x40d   : > { %v1967_v0 = vsub.f32 %v9820_v22, %v1901_v10  ;;  %v15074_v10 = vld [vmem:[#allocation20_spill] sm:$0xff] }
 0x40e   : > { %2054 = vrot.lane.b32.xlu0 %v1964_v51, %s9985_s13  ;;  %v8802_v22 = vld [vmem:[%s14841_s3 + $0x30] ss:$8 sps:$4 sm:$0xff]  }
 0x40f   : > { %2056 = vrot.lane.b32.xlu1 %v1965_v25, %s9985_s13  ;;  %v2023_v34 = vpop.permute.xlu0 %2022  ;;  %v15072_v25 = vld [vmem:[#allocation17_spill] sm:$0xff] }
 0x410   : > { %v2029_v50 = vpop.permute.xlu1 %2028  ;;  %v2108_v33 = vmul.f32 %v15070_v13, %v2023_v34 }
 0x411   : > { %v2111_v47 = vmul.f32 %v15071_v20, %v2029_v50  ;;  %v15073_v50 = vld [vmem:[#allocation21_spill] sm:$0xff] }
 0x412   : > { %2182 = vrot.lane.b32.xlu0 %v2108_v33, %s9985_s13  ;;  %v9821_v33 = vld [vmem:[%s10129_s15 + $0xf0] sm:$0xff]  ;;  %s14803_s15 = scalar_lea.hbm %s14849_s11, %s8133_s14 }
 0x413   : > { %2188 = vrot.lane.b32.xlu1 %v2111_v47, %s9985_s13  ;;  %v1903_v62 = vpop.permute.xlu0 %1902 }
 0x414   : > { %v1905_v26 = vpop.permute.xlu1 %1904  ;;  %v1968_v20 = vsub.f32 %v9821_v33, %v1903_v62  ;;  %v8807_v62 = vld [vmem:[%s14841_s3 + $0x24] ss:$8 sps:$4 sm:$0xff]  }
 0x415   : > { %v1969_v47 = vsub.f32 %v9822_v3, %v1905_v26  ;;  %v8805_v26 = vld [vmem:[%s14841_s3 + $0x20] ss:$8 sps:$4 sm:$0xff]  }
 0x416   : > { %2058 = vrot.lane.b32.xlu0 %v1966_v36, %s9985_s13 }
 0x417   : > { %2060 = vrot.lane.b32.xlu1 %v1967_v0, %s9985_s13  ;;  %v2027_v51 = vpop.permute.xlu0 %2026  ;;  %v8804_v0 = vld [vmem:[%s14841_s3 + $0x34] ss:$8 sps:$4 sm:$0xff]  }
 0x418   : > { %v2033_v55 = vpop.permute.xlu1 %2032  ;;  %v2110_v34 = vmul.f32 %v15072_v25, %v2027_v51  ;;  %2439 = vmatprep.subr.bf16.mxu0 %v8804_v0 }
 0x419   : > { %v2113_v13 = vmul.f32 %v15073_v50, %v2033_v55  ;;  %2440 = vmatpush1.bf16.msra.mxu0 %v8802_v22 }
 0x41a   : > { %2186 = vrot.lane.b32.xlu0 %v2110_v34, %s9985_s13  ;;  %2441 = vmatprep.subr.bf16.mxu0 %v8807_v62 }
 0x41b   : > { %2192 = vrot.lane.b32.xlu1 %v2113_v13, %s9985_s13  ;;  %v2031_v52 = vpop.permute.xlu0 %2030 }
 0x41c   : > { %v2112_v36 = vmul.f32 %v15074_v10, %v2031_v52 }
 0x41d   : > { %2442 = vmatpush1.bf16.msra.mxu0 %v8805_v26 }
 0x41e   : > { %2062 = vrot.lane.b32.xlu0 %v1968_v20, %s9985_s13 }
 0x41f   : > { %2064 = vrot.lane.b32.xlu1 %v1969_v47, %s9985_s13 }
 0x422   : > { %2190 = vrot.lane.b32.xlu0 %v2112_v36, %s9985_s13 }
 0x44c   : > { %v2035_v51 = vpop.permute.xlu0 %2034 }
 0x44d   : > { %v2114_v55 = vmul.f32 %v10669_v8, %v2035_v51 }
 0x44f   : > { %2194 = vrot.lane.b32.xlu1 %v2114_v55, %s9985_s13 }
 0x454   : > { %v2165_v25 = vpop.permute.xlu1 %2164 }
 0x455   : > { %v11057_v50 = vadd.f32 %v10718_v28, %v2165_v25 }
 0x457   : > { %15075 = vst [vmem:[#allocation8_spill] sm:$0xff] %v11057_v50 }
 0x458   : > { %v2163_v34 = vpop.permute.xlu0 %2162  ;;  %v2037_v13 = vpop.permute.xlu1 %2036 }
 0x459   : > { %v11060_v33 = vadd.f32 %v10728_v63, %v2163_v34  ;;  %v2115_v28 = vmul.f32 %v10684_v18, %v2037_v13 }
 0x45b   : > { %15076 = vst [vmem:[#allocation10_spill] sm:$0xff] %v11060_v33  ;;  %v2290_v20 = vpack.c.bf16 %v11057_v50, %v11060_v33 }
 0x45c   : > { %v2167_v3 = vpop.permute.xlu0 %2166  ;;  %v2169_v47 = vpop.permute.xlu1 %2168 }
 0x45d   : > { %v11065_v52 = vadd.f32 %v10738_v57, %v2167_v3  ;;  %2327 = vrot.lane.b32.xlu0 %v2290_v20, %s9984_s12  ;;  %v11069_v8 = vadd.f32 %v10740_v61, %v2169_v47 }
 0x45f   : > { %15077 = vst [vmem:[#allocation9_spill] sm:$0xff] %v11065_v52  ;;  %15078 = vst [vmem:[#allocation12_spill] sm:$0xff] %v11069_v8  ;;  %v2291_v10 = vpack.c.bf16 %v11069_v8, %v11065_v52 }
 0x460   : > { %v2039_v63 = vpop.permute.xlu0 %2038  ;;  %v2041_v36 = vpop.permute.xlu1 %2040 }
 0x461   : > { %2196 = vrot.lane.b32.xlu0 %v2115_v28, %s9985_s13  ;;  %2329 = vrot.lane.b32.xlu1 %v2291_v10, %s9984_s12  ;;  %v2116_v22 = vmul.f32 %v10692_v37, %v2039_v63  ;;  %v2117_v57 = vmul.f32 %v10706_v21, %v2041_v36 }
 0x464   : > { %v2043_v62 = vpop.permute.xlu0 %2042 }
 0x465   : > { %v2173_v0 = vpop.permute.xlu1 %2172  ;;  %2198 = vrot.lane.b32.xlu0 %v2116_v22, %s9985_s13  ;;  %2200 = vrot.lane.b32.xlu1 %v2117_v57, %s9985_s13  ;;  %v2118_v18 = vmul.f32 %v10710_v40, %v2043_v62 }
 0x466   : > { %v11083_v51 = vadd.f32 %v10759_v43, %v2173_v0 }
 0x468   : > { %15079 = vst [vmem:[#allocation11_spill] sm:$0xff] %v11083_v51 }
 0x469   : > { %v2045_v61 = vpop.permute.xlu1 %2044  ;;  %2202 = vrot.lane.b32.xlu1 %v2118_v18, %s9985_s13 }
 0x46a   : > { %v2119_v40 = vmul.f32 %v10726_v45, %v2045_v61 }
 0x46c   : > { %v2171_v26 = vpop.permute.xlu0 %2170 }
 0x46d   : > { %v2177_v55 = vpop.permute.xlu1 %2176  ;;  %v11086_v37 = vadd.f32 %v10768_v42, %v2171_v26 }
 0x46e   : > { %v11093_v20 = vadd.f32 %v10779_v41, %v2177_v55 }
 0x46f   : > { %15080 = vst [vmem:[#allocation14_spill] sm:$0xff] %v11086_v37  ;;  %v2292_v21 = vpack.c.bf16 %v11083_v51, %v11086_v37 }
 0x470   : > { %v2047_v25 = vpop.permute.xlu0 %2046  ;;  %15081 = vst [vmem:[#allocation13_spill] sm:$0xff] %v11093_v20 }
 0x471   : > { %v2049_v34 = vpop.permute.xlu1 %2048  ;;  %2331 = vrot.lane.b32.xlu0 %v2292_v21, %s9984_s12  ;;  %v2120_v42 = vmul.f32 %v10733_v49, %v2047_v25 }
 0x472   : > { %v2121_v45 = vmul.f32 %v10748_v48, %v2049_v34 }
 0x474   : > { %v2175_v13 = vpop.permute.xlu0 %2174 }
 0x475   : > { %v2181_v3 = vpop.permute.xlu1 %2180  ;;  %v11096_v43 = vadd.f32 %v10788_v6, %v2175_v13  ;;  %2204 = vrot.lane.b32.xlu0 %v2119_v40, %s9985_s13 }
 0x476   : > { %v11106_v63 = vadd.f32 %v10801_v24, %v2181_v3 }
 0x477   : > { %15082 = vst [vmem:[#allocation16_spill] sm:$0xff] %v11096_v43  ;;  %v2293_v47 = vpack.c.bf16 %v11093_v20, %v11096_v43 }
 0x478   : > { %v2051_v28 = vpop.permute.xlu0 %2050  ;;  %15083 = vst [vmem:[#allocation15_spill] sm:$0xff] %v11106_v63 }
 0x479   : > { %v2053_v10 = vpop.permute.xlu1 %2052  ;;  %2206 = vrot.lane.b32.xlu0 %v2120_v42, %s9985_s13  ;;  %2333 = vrot.lane.b32.xlu1 %v2293_v47, %s9984_s12  ;;  %v2122_v49 = vmul.f32 %v10753_v27, %v2051_v28 }
 0x47a   : > { %v2123_v48 = vmul.f32 %v10766_v31, %v2053_v10 }
 0x47c   : > { %v2179_v41 = vpop.permute.xlu0 %2178 }
 0x47d   : > { %v2185_v6 = vpop.permute.xlu1 %2184  ;;  %v11109_v36 = vadd.f32 %v10810_v53, %v2179_v41  ;;  %2208 = vrot.lane.b32.xlu1 %v2121_v45, %s9985_s13 }
 0x47e   : > { %v11119_v62 = vadd.f32 %v10821_v38, %v2185_v6 }
 0x47f   : > { %15084 = vst [vmem:[#allocation19_spill] sm:$0xff] %v11109_v36  ;;  %v2294_v22 = vpack.c.bf16 %v11106_v63, %v11109_v36 }
 0x480   : > { %v2055_v57 = vpop.permute.xlu0 %2054  ;;  %15085 = vst [vmem:[#allocation17_spill] sm:$0xff] %v11119_v62 }
 0x481   : > { %v2057_v0 = vpop.permute.xlu1 %2056  ;;  %2210 = vrot.lane.b32.xlu1 %v2122_v49, %s9985_s13  ;;  %2335 = vrot.lane.b32.xlu0 %v2294_v22, %s9984_s12  ;;  %v2124_v18 = vmul.f32 %v10773_v14, %v2055_v57 }
 0x482   : > { %v2125_v31 = vmul.f32 %v10786_v4, %v2057_v0 }
 0x484   : > { %v2183_v24 = vpop.permute.xlu0 %2182 }
 0x485   : > { %v11122_v53 = vadd.f32 %v10828_v60, %v2183_v24  ;;  %2212 = vrot.lane.b32.xlu0 %v2123_v48, %s9985_s13  ;;  %v2189_v27 = vpop.permute.xlu1 %2188 }
 0x486   : > { %v11132_v60 = vadd.f32 %v10836_v19, %v2189_v27 }
 0x487   : > { %15086 = vst [vmem:[#allocation21_spill] sm:$0xff] %v11122_v53  ;;  %v2295_v61 = vpack.c.bf16 %v11119_v62, %v11122_v53 }
 0x488   : > { %v2059_v26 = vpop.permute.xlu0 %2058  ;;  %15087 = vst [vmem:[#allocation20_spill] sm:$0xff] %v11132_v60 }
 0x489   : > { %2214 = vrot.lane.b32.xlu0 %v2124_v18, %s9985_s13  ;;  %2337 = vrot.lane.b32.xlu1 %v2295_v61, %s9984_s12  ;;  %v2061_v38 = vpop.permute.xlu1 %2060  ;;  %v2126_v14 = vmul.f32 %v10795_v59, %v2059_v26 }
 0x48a   : > { %v2127_v40 = vmul.f32 %v10808_v5, %v2061_v38 }
 0x48c   : > { %v2187_v55 = vpop.permute.xlu0 %2186 }
 0x48d   : > { %v11135_v21 = vadd.f32 %v10834_v15, %v2187_v55  ;;  %2216 = vrot.lane.b32.xlu1 %v2125_v31, %s9985_s13  ;;  %v2193_v4 = vpop.permute.xlu1 %2192 }
 0x48e   : > { %v11145_v13 = vadd.f32 %v10846_v35, %v2193_v4 }
 0x48f   : > { %15088 = vst [vmem:[#allocation23_spill] sm:$0xff] %v11135_v21  ;;  %v2296_v25 = vpack.c.bf16 %v11132_v60, %v11135_v21 }
 0x490   : > { %v2063_v34 = vpop.permute.xlu0 %2062  ;;  %15089 = vst [vmem:[#allocation24_spill] sm:$0xff] %v11145_v13 }
 0x491   : > { %2218 = vrot.lane.b32.xlu1 %v2126_v14, %s9985_s13  ;;  %2339 = vrot.lane.b32.xlu0 %v2296_v25, %s9984_s12  ;;  %v2128_v59 = vmul.f32 %v10815_v30, %v2063_v34  ;;  %v2065_v42 = vpop.permute.xlu1 %2064 }
 0x492   : > { %v2129_v5 = vmul.f32 %v10826_v7, %v2065_v42 }
 0x494   : > { %v2191_v19 = vpop.permute.xlu0 %2190 }
 0x495   : > { %v11148_v15 = vadd.f32 %v10842_v12, %v2191_v19  ;;  %2220 = vrot.lane.b32.xlu0 %v2127_v40, %s9985_s13  ;;  %v15091_v12 = vmov 0  }
 0x497   : > { %15090 = vst [vmem:[#allocation25_spill] sm:$0xff] %v11148_v15  ;;  %v2297_v3 = vpack.c.bf16 %v11145_v13, %v11148_v15 }
 0x499   : > { %2222 = vrot.lane.b32.xlu0 %v2128_v59, %s9985_s13  ;;  %2341 = vrot.lane.b32.xlu1 %v2297_v3, %s9984_s12 }
 0x49d   : > { %2224 = vrot.lane.b32.xlu1 %v2129_v5, %s9985_s13 }
 0x4c1   : > { %v2195_v47 = vpop.permute.xlu1 %2194 }
 0x4c2   : > { %v11161_v30 = vadd.f32 %v10858_v58, %v2195_v47 }
 0x4c4   : > { %15092 = vst [vmem:[#allocation26_spill] sm:$0xff] %v11161_v30 }
 0x4cf   : > { %v2328_v35 = vpop.permute.xlu0 %2327 }
 0x4d0   : > { %7935 = vmatmul.mubr.msk.bf16.vlgmr.msra.gmra.mxu0 %vm534_vm0, %v2328_v35 }
 0x4d1   : > { %2469 = vmatprep.mubr.bf16.mxu0 %v15091_v12 }
 0x4d3   : > { %v2197_v28 = vpop.permute.xlu0 %2196  ;;  %v2330_v10 = vpop.permute.xlu1 %2329 }
 0x4d4   : > { %v11164_v45 = vadd.f32 %v10866_v56, %v2197_v28 }
 0x4d6   : > { %15093 = vst [vmem:[#allocation27_spill] sm:$0xff] %v11164_v45  ;;  %v2298_v41 = vpack.c.bf16 %v11164_v45, %v11161_v30 }
 0x4d7   : > { %v2199_v7 = vpop.permute.xlu0 %2198  ;;  %v2201_v6 = vpop.permute.xlu1 %2200 }
 0x4d8   : > { %v11169_v49 = vadd.f32 %v10870_v39, %v2199_v7  ;;  %7936 = vmatmul.mubr.msk.bf16.gmra.mxu0 %vm534_vm0, %v2330_v10  ;;  %2343 = vrot.lane.b32.xlu0 %v2298_v41, %s9984_s12  ;;  %v11174_v22 = vadd.f32 %v10881_v11, %v2201_v6 }
 0x4d9   : > { %2479 = vmatprep.mubr.bf16.mxu0 %v15091_v12 }
 0x4da   : > { %15094 = vst [vmem:[#allocation28_spill] sm:$0xff] %v11169_v49  ;;  %15095 = vst [vmem:[#allocation29_spill] sm:$0xff] %v11174_v22  ;;  %v2299_v58 = vpack.c.bf16 %v11174_v22, %v11169_v49 }
 0x4db   : > { %v2203_v57 = vpop.permute.xlu1 %2202 }
 0x4dc   : > { %2345 = vrot.lane.b32.xlu1 %v2299_v58, %s9984_s12  ;;  %v11183_v0 = vadd.f32 %v10892_v44, %v2203_v57 }
 0x4de   : > { %15096 = vst [vmem:[#allocation30_spill] sm:$0xff] %v11183_v0 }
 0x4e3   : > { %v2332_v56 = vpop.permute.xlu0 %2331 }
 0x4e4   : > { %7937 = vmatmul.mubr.msk.bf16.gmra.mxu0 %vm534_vm0, %v2332_v56 }
 0x4e5   : > { %2489 = vmatprep.mubr.bf16.mxu0 %v15091_v12 }
 0x4e7   : > { %v2205_v39 = vpop.permute.xlu0 %2204 }
 0x4e8   : > { %v11186_v11 = vadd.f32 %v10896_v23, %v2205_v39 }
 0x4ea   : > { %15097 = vst [vmem:[#allocation31_spill] sm:$0xff] %v11186_v11  ;;  %v2300_v48 = vpack.c.bf16 %v11186_v11, %v11183_v0 }
 0x4eb   : > { %v2334_v24 = vpop.permute.xlu1 %2333  ;;  %v2207_v27 = vpop.permute.xlu0 %2206 }
 0x4ec   : > { %7938 = vmatmul.mubr.msk.bf16.gmra.mxu0 %vm534_vm0, %v2334_v24  ;;  %2347 = vrot.lane.b32.xlu0 %v2300_v48, %s9984_s12  ;;  %v11194_v61 = vadd.f32 %v10906_v32, %v2207_v27  ;;  %v15109_v24 = vld [vmem:[#allocation7_spill] sm:$0xff] }
 0x4ed   : > { %2499 = vmatprep.mubr.bf16.mxu0 %v15091_v12 }
 0x4ee   : > { %15098 = vst [vmem:[#allocation32_spill] sm:$0xff] %v11194_v61 }
 0x4ef   : > { %v2209_v18 = vpop.permute.xlu1 %2208 }
 0x4f0   : > { %v11197_v44 = vadd.f32 %v10910_v2, %v2209_v18 }
 0x4f2   : > { %15099 = vst [vmem:[#allocation33_spill] sm:$0xff] %v11197_v44  ;;  %v2301_v23 = vpack.c.bf16 %v11197_v44, %v11194_v61 }
 0x4f3   : > { %v2336_v26 = vpop.permute.xlu0 %2335  ;;  %v2211_v31 = vpop.permute.xlu1 %2210 }
 0x4f4   : > { %2349 = vrot.lane.b32.xlu1 %v2301_v23, %s9984_s12  ;;  %7939 = vmatmul.mubr.msk.bf16.gmra.mxu0 %vm534_vm0, %v2336_v26  ;;  %v11205_v55 = vadd.f32 %v10922_v1, %v2211_v31 }
 0x4f5   : > { %2509 = vmatprep.mubr.bf16.mxu0 %v15091_v12 }
 0x4f6   : > { %15100 = vst [vmem:[#allocation34_spill] sm:$0xff] %v11205_v55 }
 0x4f7   : > { %v2213_v38 = vpop.permute.xlu0 %2212 }
 0x4f8   : > { %v11208_v32 = vadd.f32 %v10926_v17, %v2213_v38 }
 0x4fa   : > { %15101 = vst [vmem:[#allocation35_spill] sm:$0xff] %v11208_v32  ;;  %v2302_v2 = vpack.c.bf16 %v11208_v32, %v11205_v55 }
 0x4fb   : > { %v2338_v14 = vpop.permute.xlu1 %2337  ;;  %v2215_v25 = vpop.permute.xlu0 %2214 }
 0x4fc   : > { %7940 = vmatmul.mubr.msk.bf16.gmra.mxu0 %vm534_vm0, %v2338_v14  ;;  %2351 = vrot.lane.b32.xlu0 %v2302_v2, %s9984_s12  ;;  %v11216_v4 = vadd.f32 %v10938_v9, %v2215_v25 }
 0x4fd   : > { %2519 = vmatprep.mubr.bf16.mxu0 %v15091_v12 }
 0x4fe   : > { %15102 = vst [vmem:[#allocation36_spill] sm:$0xff] %v11216_v4 }
 0x4ff   : > { %v2217_v34 = vpop.permute.xlu1 %2216 }
 0x500   : > { %v11219_v1 = vadd.f32 %v10942_v54, %v2217_v34 }
 0x502   : > { %15103 = vst [vmem:[#allocation37_spill] sm:$0xff] %v11219_v1  ;;  %v2303_v17 = vpack.c.bf16 %v11219_v1, %v11216_v4 }
 0x503   : > { %v2340_v40 = vpop.permute.xlu0 %2339  ;;  %v2219_v19 = vpop.permute.xlu1 %2218 }
 0x504   : > { %2353 = vrot.lane.b32.xlu1 %v2303_v17, %s9984_s12  ;;  %7941 = vmatmul.mubr.msk.bf16.gmra.mxu0 %vm534_vm0, %v2340_v40  ;;  %v11227_v3 = vadd.f32 %v10952_v29, %v2219_v19  ;;  %v15107_v29 = vld [vmem:[#allocation22_spill] sm:$0xff] }
 0x505   : > { %2529 = vmatprep.mubr.bf16.mxu0 %v15091_v12 }
 0x506   : > { %15104 = vst [vmem:[#allocation38_spill] sm:$0xff] %v11227_v3 }
 0x507   : > { %v2221_v59 = vpop.permute.xlu0 %2220 }
 0x508   : > { %v11230_v9 = vadd.f32 %v10954_v16, %v2221_v59 }
 0x50a   : > { %15105 = vst [vmem:[#allocation39_spill] sm:$0xff] %v11230_v9  ;;  %v2304_v54 = vpack.c.bf16 %v11230_v9, %v11227_v3 }
 0x50b   : > { %v2342_v42 = vpop.permute.xlu1 %2341  ;;  %v2223_v5 = vpop.permute.xlu0 %2222 }
 0x50c   : > { %7942 = vmatmul.mubr.msk.bf16.gmra.mxu0 %vm534_vm0, %v2342_v42  ;;  %2355 = vrot.lane.b32.xlu0 %v2304_v54, %s9984_s12  ;;  %v11238_v47 = vadd.f32 %v10964_v46, %v2223_v5 }
 0x50d   : > { %2539 = vmatprep.mubr.bf16.mxu0 %v15091_v12 }
 0x50e   : > { %15106 = vst [vmem:[#allocation40_spill] sm:$0xff] %v11238_v47 }
 0x50f   : > { %v2225_v35 = vpop.permute.xlu1 %2224 }
 0x510   : > { %v11241_v28 = vadd.f32 %v15107_v29, %v2225_v35 }
 0x512   : > { %15108 = vst [vmem:[#allocation22_spill] sm:$0xff] %v11241_v28  ;;  %v2305_v16 = vpack.c.bf16 %v11241_v28, %v11238_v47 }
 0x514   : > { %2357 = vrot.lane.b32.xlu1 %v2305_v16, %s9984_s12 }
 0x54a   : > { %v2344_v10 = vpop.permute.xlu0 %2343 }
 0x54b   : > { %7943 = vmatmul.mubr.msk.bf16.gmra.mxu0 %vm534_vm0, %v2344_v10 }
 0x54c   : > { %2549 = vmatprep.mubr.bf16.mxu0 %v15091_v12 }
 0x54e   : > { %v2346_v41 = vpop.permute.xlu1 %2345 }
 0x553   : > { %7944 = vmatmul.mubr.msk.bf16.gmra.mxu0 %vm534_vm0, %v2346_v41 }
 0x554   : > { %2559 = vmatprep.mubr.bf16.mxu0 %v15091_v12 }
 0x55e   : > { %v2348_v46 = vpop.permute.xlu0 %2347 }
 0x55f   : > { %7945 = vmatmul.mubr.msk.bf16.gmra.mxu0 %vm534_vm0, %v2348_v46 }
 0x560   : > { %2569 = vmatprep.mubr.bf16.mxu0 %v15091_v12 }
 0x566   : > { %v2350_v7 = vpop.permute.xlu1 %2349 }
 0x567   : > { %7946 = vmatmul.mubr.msk.bf16.gmra.mxu0 %vm534_vm0, %v2350_v7 }
 0x568   : > { %2579 = vmatprep.mubr.bf16.mxu0 %v15091_v12 }
 0x56e   : > { %v2352_v6 = vpop.permute.xlu0 %2351 }
 0x56f   : > { %7947 = vmatmul.mubr.msk.bf16.gmra.mxu0 %vm534_vm0, %v2352_v6 }
 0x570   : > { %2589 = vmatprep.mubr.bf16.mxu0 %v15091_v12 }
 0x576   : > { %v2354_v58 = vpop.permute.xlu1 %2353 }
 0x577   : > { %7948 = vmatmul.mubr.msk.bf16.gmra.mxu0 %vm534_vm0, %v2354_v58 }
 0x578   : > { %2599 = vmatprep.mubr.bf16.mxu0 %v15091_v12 }
 0x57e   : > { %v2356_v56 = vpop.permute.xlu0 %2355 }
 0x57f   : > { %7949 = vmatmul.mubr.msk.bf16.gmra.mxu0 %vm534_vm0, %v2356_v56 }
 0x580   : > { %2609 = vmatprep.mubr.bf16.mxu0 %v15091_v12 }
 0x586   : > { %v2358_v57 = vpop.permute.xlu1 %2357 }
 0x587   : > { %7950 = vmatmul.mubr.msk.bf16.gmra.mxu0 %vm534_vm0, %v2358_v57 }
 0x588   : > { %3990 = vmatprep.mubr.bf16.mxu0 %v15091_v12 }
 0x590   : > { %v11262_v39 = vpop.f32.mrf.mxu0 }
 0x592   : > { %v11264_v48 = vpop.f32.mrf.mxu0 }
 0x593   : > { %v3085_v27 = vadd.f32 %v11264_v48, %v15109_v24 }
 0x594   : > { %v11268_v18 = vpop.f32.mrf.mxu0 }
 0x595   : > { %3149 = vrot.lane.b32.xlu0 %v3085_v27, %s9984_s12 }
 0x596   : > { %v11273_v26 = vpop.f32.mrf.mxu0 }
 0x597   : > { %v3086_v31 = vadd.f32 %v11273_v26, %v15109_v24 }
 0x598   : > { %v11277_v38 = vpop.f32.mrf.mxu0 }
 0x599   : > { %3151 = vrot.lane.b32.xlu1 %v3086_v31, %s9984_s12 }
 0x59a   : > { %v11280_v2 = vpop.f32.mrf.mxu0 }
 0x59b   : > { %v3087_v14 = vadd.f32 %v11280_v2, %v15109_v24 }
 0x59c   : > { %v11284_v25 = vpop.f32.mrf.mxu0 }
 0x59d   : > { %3153 = vrot.lane.b32.xlu0 %v3087_v14, %s9984_s12 }
 0x59e   : > { %v11289_v17 = vpop.f32.mrf.mxu0 }
 0x59f   : > { %v3088_v40 = vadd.f32 %v11289_v17, %v15109_v24 }
 0x5a1   : > { %3155 = vrot.lane.b32.xlu1 %v3088_v40, %s9984_s12 }
 0x5a4   : > { %v11294_v19 = vpop.f32.mrf.mxu0 }
 0x5a6   : > { %v11296_v59 = vpop.f32.mrf.mxu0 }
 0x5a7   : > { %v3089_v54 = vadd.f32 %v11296_v59, %v15109_v24 }
 0x5a8   : > { %v11300_v42 = vpop.f32.mrf.mxu0 }
 0x5a9   : > { %3157 = vrot.lane.b32.xlu0 %v3089_v54, %s9984_s12 }
 0x5aa   : > { %v11305_v35 = vpop.f32.mrf.mxu0 }
 0x5ab   : > { %v3090_v29 = vadd.f32 %v11305_v35, %v15109_v24 }
 0x5ac   : > { %v11309_v16 = vpop.f32.mrf.mxu0 }
 0x5ad   : > { %3159 = vrot.lane.b32.xlu1 %v3090_v29, %s9984_s12 }
 0x5ae   : > { %v11312_v10 = vpop.f32.mrf.mxu0 }
 0x5af   : > { %v3091_v41 = vadd.f32 %v11312_v10, %v15109_v24 }
 0x5b0   : > { %v11316_v46 = vpop.f32.mrf.mxu0 }
 0x5b1   : > { %3161 = vrot.lane.b32.xlu0 %v3091_v41, %s9984_s12 }
 0x5b2   : > { %v11321_v6 = vpop.f32.mrf.mxu0 }
 0x5b3   : > { %v3092_v58 = vadd.f32 %v11321_v6, %v15109_v24 }
 0x5b4   : > { %v11325_v56 = vpop.f32.mrf.mxu0 }
 0x5b5   : > { %3163 = vrot.lane.b32.xlu1 %v3092_v58, %s9984_s12 }
 0x5b6   : > { %v11328_v57 = vpop.f32.mrf.mxu0 }
 0x5b7   : > { %v3093_v27 = vadd.f32 %v11328_v57, %v15109_v24 }
 0x5b8   : > { %v11332_v31 = vpop.f32.mrf.mxu0 }
 0x5b9   : > { %3165 = vrot.lane.b32.xlu0 %v3093_v27, %s9984_s12 }
 0x5ba   : > { %v11337_v40 = vpop.f32.mrf.mxu0 }
 0x5bb   : > { %v3094_v54 = vadd.f32 %v11337_v40, %v15109_v24 }
 0x5bc   : > { %v11341_v29 = vpop.f32.mrf.mxu0 }
 0x5bd   : > { %3167 = vrot.lane.b32.xlu1 %v3094_v54, %s9984_s12 }
 0x5be   : > { %v11344_v41 = vpop.f32.mrf.mxu0 }
 0x5bf   : > { %v3095_v58 = vadd.f32 %v11344_v41, %v15109_v24 }
 0x5c0   : > { %v11348_v23 = vpop.f32.mrf.mxu0 }
 0x5c1   : > { %3169 = vrot.lane.b32.xlu0 %v3095_v58, %s9984_s12 }
 0x5c2   : > { %v11353_v27 = vpop.f32.mrf.mxu0 }
 0x5c3   : > { %v3096_v5 = vadd.f32 %v11353_v27, %v15109_v24 }
 0x5c4   : > { %v2521_v7 = vpop.f32.mrf.mxu0 }
 0x5c5   : > { %3171 = vrot.lane.b32.xlu1 %v3096_v5, %s9984_s12 }
 0x5c6   : > { %v11358_v54 = vpop.f32.mrf.mxu0 }
 0x5c7   : > { %v3097_v14 = vadd.f32 %v11358_v54, %v15109_v24 }
 0x5c8   : > { %v2525_v12 = vpop.f32.mrf.mxu0 }
 0x5c9   : > { %v2626_v28 = vpack.c.bf16 %v2525_v12, %v2521_v7  ;;  %3173 = vrot.lane.b32.xlu0 %v3097_v14, %s9984_s12 }
 0x5ca   : > { %v11363_v34 = vpop.f32.mrf.mxu0 }
 0x5cb   : > { %v3098_v58 = vadd.f32 %v11363_v34, %v15109_v24 }
 0x5cc   : > { %v2531_v47 = vpop.f32.mrf.mxu0 }
 0x5cd   : > { %3175 = vrot.lane.b32.xlu1 %v3098_v58, %s9984_s12 }
 0x5ce   : > { %v11368_v9 = vpop.f32.mrf.mxu0 }
 0x5cf   : > { %v3099_v5 = vadd.f32 %v11368_v9, %v15109_v24 }
 0x5d0   : > { %v2535_v3 = vpop.f32.mrf.mxu0 }
 0x5d1   : > { %v2627_v1 = vpack.c.bf16 %v2535_v3, %v2531_v47  ;;  %3177 = vrot.lane.b32.xlu0 %v3099_v5, %s9984_s12 }
 0x5d2   : > { %v11373_v12 = vpop.f32.mrf.mxu0 }
 0x5d3   : > { %v3100_v7 = vadd.f32 %v11373_v12, %v15109_v24 }
 0x5d5   : > { %3179 = vrot.lane.b32.xlu1 %v3100_v7, %s9984_s12 }
 0x60b   : > { %v2541_v14 = vpop.f32.mrf.mxu0 }
 0x60d   : > { %v11378_v4 = vpop.f32.mrf.mxu0 }
 0x60f   : > { %v2545_v58 = vpop.f32.mrf.mxu0 }
 0x610   : > { %v2628_v32 = vpack.c.bf16 %v2545_v58, %v2541_v14 }
 0x611   : > { %v11380_v55 = vpop.f32.mrf.mxu0 }
 0x613   : > { %v2551_v44 = vpop.f32.mrf.mxu0 }
 0x615   : > { %v11382_v61 = vpop.f32.mrf.mxu0 }
 0x617   : > { %v2555_v3 = vpop.f32.mrf.mxu0 }
 0x618   : > { %v2629_v47 = vpack.c.bf16 %v2555_v3, %v2551_v44 }
 0x619   : > { %v11384_v5 = vpop.f32.mrf.mxu0 }
 0x61f   : > { %v2561_v11 = vpop.f32.mrf.mxu0 }
 0x621   : > { %v11386_v0 = vpop.f32.mrf.mxu0 }
 0x623   : > { %v2565_v22 = vpop.f32.mrf.mxu0 }
 0x625   : > { %v11388_v49 = vpop.f32.mrf.mxu0 }
 0x627   : > { %v2571_v7 = vpop.f32.mrf.mxu0 }
 0x629   : > { %v11390_v45 = vpop.f32.mrf.mxu0 }
 0x62b   : > { %v2575_v30 = vpop.f32.mrf.mxu0 }
 0x62d   : > { %v11392_v14 = vpop.f32.mrf.mxu0 }
 0x62f   : > { %v2581_v58 = vpop.f32.mrf.mxu0 }
 0x631   : > { %v11394_v13 = vpop.f32.mrf.mxu0 }
 0x633   : > { %v2585_v15 = vpop.f32.mrf.mxu0 }
 0x634   : > { %v2632_v33 = vpack.c.bf16 %v2585_v15, %v2581_v58  ;;  %v9828_v15 = vld [vmem:[%s10241_s18 + $0x34] ss:$8 sps:$4 sm:$0xff]   ;;  %v9849_v58 = vld [vmem:[%s10241_s18 + $0xd0] ss:$8 sps:$4 sm:$0xff]  }
 0x635   : > { %v11396_v60 = vpop.f32.mrf.mxu0 }
 0x637   : > { %v2591_v44 = vpop.f32.mrf.mxu0 }
 0x639   : > { %v11398_v3 = vpop.f32.mrf.mxu0 }
 0x63b   : > { %v2595_v21 = vpop.f32.mrf.mxu0 }
 0x63c   : > { %v2633_v50 = vpack.c.bf16 %v2595_v21, %v2591_v44  ;;  %v9827_v21 = vld [vmem:[%s10241_s18 + $0x20] ss:$8 sps:$4 sm:$0xff]   ;;  %v9850_v44 = vld [vmem:[%s10241_s18 + $0xe4] ss:$8 sps:$4 sm:$0xff]  }
 0x63d   : > { %v11400_v62 = vpop.f32.mrf.mxu0 }
 0x63f   : > { %v2601_v53 = vpop.f32.mrf.mxu0 }
 0x641   : > { %v11402_v63 = vpop.f32.mrf.mxu0 }
 0x642   : > { %15110 = vst [vmem:[#allocation41_spill] sm:$0xff] %v11402_v63  ;;  %v15112_v63 = vpack.c.bf16 %v11348_v23, %v11341_v29  ;;  %v9837_v23 = vld [vmem:[%s10241_s18 + $0x70] ss:$8 sps:$4 sm:$0xff]   ;;  %v9846_v29 = vld [vmem:[%s10241_s18 + $0xc4] ss:$8 sps:$4 sm:$0xff]  }
 0x643   : > { %v2605_v36 = vpop.f32.mrf.mxu0 }
 0x644   : > { %v2634_v52 = vpack.c.bf16 %v2605_v36, %v2601_v53  ;;  %v9825_v36 = vld [vmem:[%s10241_s18 + $0x10] ss:$8 sps:$4 sm:$0xff]   ;;  %v9826_v53 = vld [vmem:[%s10241_s18 + $0x24] ss:$8 sps:$4 sm:$0xff]  }
 0x645   : > { %v11404_v20 = vpop.f32.mrf.mxu0 }
 0x646   : > { %15111 = vst [vmem:[#allocation42_spill] sm:$0xff] %v11404_v20  ;;  %v2631_v20 = vpack.c.bf16 %v2575_v30, %v2571_v7  ;;  %v9829_v30 = vld [vmem:[%s10241_s18 + $0x30] ss:$8 sps:$4 sm:$0xff]   ;;  %v9848_v7 = vld [vmem:[%s10241_s18 + $0xd4] ss:$8 sps:$4 sm:$0xff]  }
 0x647   : > { %v2611_v43 = vpop.f32.mrf.mxu0 }
 0x649   : > { %v11406_v51 = vpop.f32.mrf.mxu0 }
 0x64b   : > { %v2615_v37 = vpop.f32.mrf.mxu0 }
 0x64c   : > { %v2635_v8 = vpack.c.bf16 %v2615_v37, %v2611_v43  ;;  %v15113_v37 = vpack.c.bf16 %v11332_v31, %v11325_v56  ;;  %v9823_v43 = vld [vmem:[%s10241_s18] ss:$8 sps:$4 sm:$0xff]   ;;  %v9844_v56 = vld [vmem:[%s10241_s18 + $0xb4] ss:$8 sps:$4 sm:$0xff]   ;;  %v9845_v31 = vld [vmem:[%s10241_s18 + $0xb0] ss:$8 sps:$4 sm:$0xff]  }
 0x64e   : > { %8251 = vmatprep.subr.bf16.mxu1 %v2635_v8  ;;  %v15114_v8 = vpack.c.bf16 %v11316_v46, %v11309_v16  ;;  %v9842_v16 = vld [vmem:[%s10241_s18 + $0xa4] ss:$8 sps:$4 sm:$0xff]   ;;  %v9843_v46 = vld [vmem:[%s10241_s18 + $0xa0] ss:$8 sps:$4 sm:$0xff]  }
 0x64f   : > { %8252 = vmatpush3.bf16.msra.mxu1 %v2627_v1  ;;  %v9833_v1 = vld [vmem:[%s10241_s18 + $0x50] ss:$8 sps:$4 sm:$0xff]  }
 0x650   : > { %8253 = vmatprep.subr.bf16.mxu1 %v2634_v52  ;;  %v2630_v52 = vpack.c.bf16 %v2565_v22, %v2561_v11  ;;  %v9830_v22 = vld [vmem:[%s10241_s18 + $0x44] ss:$8 sps:$4 sm:$0xff]   ;;  %v9831_v11 = vld [vmem:[%s10241_s18 + $0x40] ss:$8 sps:$4 sm:$0xff]  }
 0x653   : > { %8254 = vmatpush3.bf16.msra.mxu1 %v2626_v28  ;;  %v9834_v28 = vld [vmem:[%s10241_s18 + $0x64] ss:$8 sps:$4 sm:$0xff]  }
 0x654   : > { %8255 = vmatprep.subr.bf16.mxu1 %v2633_v50  ;;  %v15115_v50 = vpack.c.bf16 %v11300_v42, %v11294_v19  ;;  %v9840_v19 = vld [vmem:[%s10241_s18 + $0x94] ss:$8 sps:$4 sm:$0xff]   ;;  %v9841_v42 = vld [vmem:[%s10241_s18 + $0x90] ss:$8 sps:$4 sm:$0xff]  }
 0x657   : > { %8256 = vmatpush3.bf16.msra.mxu1 %v15112_v63  ;;  %v9824_v63 = vld [vmem:[%s10241_s18 + $0x14] ss:$8 sps:$4 sm:$0xff]  }
 0x658   : > { %8257 = vmatprep.subr.bf16.mxu1 %v2632_v33  ;;  %v15116_v33 = vpack.c.bf16 %v11284_v25, %v11277_v38  ;;  %v9838_v38 = vld [vmem:[%s10241_s18 + $0x84] ss:$8 sps:$4 sm:$0xff]   ;;  %v9839_v25 = vld [vmem:[%s10241_s18 + $0x80] ss:$8 sps:$4 sm:$0xff]  }
 0x65b   : > { %8258 = vmatpush3.bf16.msra.mxu1 %v15113_v37  ;;  %v9851_v37 = vld [vmem:[%s10241_s18 + $0xe0] ss:$8 sps:$4 sm:$0xff]  }
 0x65c   : > { %8259 = vmatprep.subr.bf16.mxu1 %v2631_v20  ;;  %v15117_v20 = vpack.c.bf16 %v11268_v18, %v11262_v39  ;;  %v9835_v39 = vld [vmem:[%s10241_s18 + $0x60] ss:$8 sps:$4 sm:$0xff]   ;;  %v9836_v18 = vld [vmem:[%s10241_s18 + $0x74] ss:$8 sps:$4 sm:$0xff]  }
 0x65f   : > { %8260 = vmatpush3.bf16.msra.mxu1 %v15114_v8  ;;  %v9853_v8 = vld [vmem:[%s10241_s18 + $0xf0] ss:$8 sps:$4 sm:$0xff]  }
 0x660   : > { %8261 = vmatprep.subr.bf16.mxu1 %v2630_v52  ;;  %v9852_v52 = vld [vmem:[%s10241_s18 + $0xf4] ss:$8 sps:$4 sm:$0xff]  }
 0x663   : > { %8262 = vmatpush3.bf16.msra.mxu1 %v15115_v50  ;;  %v9854_v50 = vld [vmem:[%s10241_s18 + $0x4] ss:$8 sps:$4 sm:$0xff]  }
 0x664   : > { %8263 = vmatprep.subr.bf16.mxu1 %v2629_v47  ;;  %v9847_v47 = vld [vmem:[%s10241_s18 + $0xc0] ss:$8 sps:$4 sm:$0xff]  }
 0x667   : > { %8264 = vmatpush3.bf16.msra.mxu1 %v15116_v33 }
 0x668   : > { %8265 = vmatprep.subr.bf16.mxu1 %v2628_v32  ;;  %v9832_v32 = vld [vmem:[%s10241_s18 + $0x54] ss:$8 sps:$4 sm:$0xff]  }
 0x66b   : > { %8266 = vmatpush3.bf16.msra.mxu1 %v15117_v20 }
 0x66e   : > { %2669 = vmatmul.mubr.bf16.vlgmr.msra.gmra.mxu1 %v9823_v43 }
 0x66f   : > { %2676 = vmatprep.mubr.bf16.mxu1 %v9824_v63 }
 0x676   : > { %2677 = vmatmul.mubr.bf16.gmra.mxu1 %v9825_v36 }
 0x677   : > { %2684 = vmatprep.mubr.bf16.mxu1 %v9826_v53 }
 0x67e   : > { %2685 = vmatmul.mubr.bf16.gmra.mxu1 %v9827_v21  ;;  %v11465_v21 = vld [vmem:[%s14842_s4] ss:$0 sm:$0xff] }
 0x67f   : > { %2692 = vmatprep.mubr.bf16.mxu1 %v9828_v15 }
 0x686   : > { %2693 = vmatmul.mubr.bf16.gmra.mxu1 %v9829_v30 }
 0x687   : > { %2700 = vmatprep.mubr.bf16.mxu1 %v9830_v22 }
 0x68e   : > { %2701 = vmatmul.mubr.bf16.gmra.mxu1 %v9831_v11 }
 0x68f   : > { %2708 = vmatprep.mubr.bf16.mxu1 %v9832_v32 }
 0x696   : > { %2709 = vmatmul.mubr.bf16.gmra.mxu1 %v9833_v1 }
 0x697   : > { %2716 = vmatprep.mubr.bf16.mxu1 %v9834_v28 }
 0x69e   : > { %2717 = vmatmul.mubr.bf16.gmra.mxu1 %v9835_v39 }
 0x69f   : > { %2724 = vmatprep.mubr.bf16.mxu1 %v9836_v18 }
 0x6a6   : > { %2725 = vmatmul.mubr.bf16.gmra.mxu1 %v9837_v23 }
 0x6a7   : > { %2732 = vmatprep.mubr.bf16.mxu1 %v9838_v38 }
 0x6ae   : > { %2733 = vmatmul.mubr.bf16.gmra.mxu1 %v9839_v25 }
 0x6af   : > { %2740 = vmatprep.mubr.bf16.mxu1 %v9840_v19 }
 0x6b6   : > { %2741 = vmatmul.mubr.bf16.gmra.mxu1 %v9841_v42 }
 0x6b7   : > { %2748 = vmatprep.mubr.bf16.mxu1 %v9842_v16 }
 0x6be   : > { %2749 = vmatmul.mubr.bf16.gmra.mxu1 %v9843_v46 }
 0x6bf   : > { %2756 = vmatprep.mubr.bf16.mxu1 %v9844_v56 }
 0x6c6   : > { %2757 = vmatmul.mubr.bf16.gmra.mxu1 %v9845_v31 }
 0x6c7   : > { %2764 = vmatprep.mubr.bf16.mxu1 %v9846_v29 }
 0x6ce   : > { %2765 = vmatmul.mubr.bf16.gmra.mxu1 %v9847_v47 }
 0x6cf   : > { %2772 = vmatprep.mubr.bf16.mxu1 %v9848_v7 }
 0x6d6   : > { %2773 = vmatmul.mubr.bf16.gmra.mxu1 %v9849_v58 }
 0x6d7   : > { %2780 = vmatprep.mubr.bf16.mxu1 %v9850_v44 }
 0x6de   : > { %2781 = vmatmul.mubr.bf16.gmra.mxu1 %v9851_v37 }
 0x6df   : > { %2788 = vmatprep.mubr.bf16.mxu1 %v9852_v52 }
 0x6e6   : > { %2789 = vmatmul.mubr.bf16.gmra.mxu1 %v9853_v8 }
 0x6e7   : > { %4199 = vmatprep.mubr.bf16.mxu1 %v9854_v50 }
 0x72e   : > { %v8267_v33 = vpop.f32.mrf.mxu1 }
 0x730   : > { %v8268_v20 = vpop.f32.mrf.mxu1 }
 0x731   : > { %v11458_v43 = vadd.f32 %v8268_v20, %v8267_v33 }
 0x732   : > { %v8270_v63 = vpop.f32.mrf.mxu1 }
 0x733   : > { %v2797_v36 = vadd.f32 %v11458_v43, %v11264_v48 }
 0x734   : > { %v8271_v53 = vpop.f32.mrf.mxu1 }
 0x735   : > { %v2829_v15 = vadd.f32 %v11465_v21, %v2797_v36  ;;  %v11468_v30 = vadd.f32 %v8271_v53, %v8270_v63 }
 0x736   : > { %v8273_v22 = vpop.f32.mrf.mxu1 }
 0x737   : > { %v7951_v11 = vmul.f32 -1.442695, %v2829_v15  ;;  %v2798_v32 = vadd.f32 %v11468_v30, %v11273_v26 }
 0x738   : > { %v8274_v1 = vpop.f32.mrf.mxu1 }
 0x739   : > { %9015 = vpow2.f32 %v7951_v11  ;;  %v2830_v28 = vadd.f32 %v11465_v21, %v2798_v32  ;;  %v11473_v48 = vadd.f32 %v8274_v1, %v8273_v22 }
 0x73a   : > { %v8276_v39 = vpop.f32.mrf.mxu1 }
 0x73b   : > { %v7952_v18 = vmul.f32 -1.442695, %v2830_v28  ;;  %v2799_v23 = vadd.f32 %v11473_v48, %v11280_v2 }
 0x73c   : > { %v8277_v38 = vpop.f32.mrf.mxu1 }
 0x73d   : > { %9017 = vpow2.f32 %v7952_v18  ;;  %v2831_v25 = vadd.f32 %v11465_v21, %v2799_v23  ;;  %v11478_v19 = vadd.f32 %v8277_v38, %v8276_v39 }
 0x73e   : > { %v8279_v42 = vpop.f32.mrf.mxu1 }
 0x73f   : > { %v7953_v16 = vmul.f32 -1.442695, %v2831_v25  ;;  %v2800_v26 = vadd.f32 %v11478_v19, %v11289_v17 }
 0x740   : > { %v8280_v46 = vpop.f32.mrf.mxu1 }
 0x741   : > { %9019 = vpow2.f32 %v7953_v16  ;;  %v2832_v56 = vadd.f32 %v11465_v21, %v2800_v26  ;;  %v11483_v31 = vadd.f32 %v8280_v46, %v8279_v42 }
 0x742   : > { %v8282_v29 = vpop.f32.mrf.mxu1 }
 0x743   : > { %v7954_v47 = vmul.f32 -1.442695, %v2832_v56  ;;  %v2801_v2 = vadd.f32 %v11483_v31, %v11296_v59 }
 0x744   : > { %v8283_v7 = vpop.f32.mrf.mxu1 }
 0x745   : > { %9021 = vpow2.f32 %v7954_v47  ;;  %v2833_v58 = vadd.f32 %v11465_v21, %v2801_v2  ;;  %v11488_v44 = vadd.f32 %v8283_v7, %v8282_v29  ;;  %v3150_v7 = vpop.permute.xlu0 %3149 }
 0x746   : > { %v9016_v37 = vpop.eup %9015  ;;  %v8285_v52 = vpop.f32.mrf.mxu1 }
 0x747   : > { %v2957_v17 = vadd.f32 1.0, %v9016_v37  ;;  %v7955_v8 = vmul.f32 -1.442695, %v2833_v58  ;;  %v2802_v50 = vadd.f32 %v11488_v44, %v11305_v35 }
 0x748   : > { %v8286_v33 = vpop.f32.mrf.mxu1 }
 0x749   : > { %9023 = vrcp.f32 %v2957_v17  ;;  %v2834_v20 = vadd.f32 %v11465_v21, %v2802_v50  ;;  %v11493_v63 = vadd.f32 %v8286_v33, %v8285_v52 }
 0x74a   : > { %v9018_v59 = vpop.eup %9017  ;;  %9025 = vpow2.f32 %v7955_v8  ;;  %v8288_v36 = vpop.f32.mrf.mxu1 }
 0x74b   : > { %v2958_v53 = vadd.f32 1.0, %v9018_v59  ;;  %v7956_v15 = vmul.f32 -1.442695, %v2834_v20  ;;  %v2803_v22 = vadd.f32 %v11493_v63, %v11312_v10 }
 0x74c   : > { %v8289_v11 = vpop.f32.mrf.mxu1 }
 0x74d   : > { %9027 = vrcp.f32 %v2958_v53  ;;  %v2835_v32 = vadd.f32 %v11465_v21, %v2803_v22  ;;  %v11498_v1 = vadd.f32 %v8289_v11, %v8288_v36  ;;  %v3152_v36 = vpop.permute.xlu1 %3151 }
 0x74e   : > { %v9020_v35 = vpop.eup %9019  ;;  %9029 = vpow2.f32 %v7956_v15  ;;  %v8291_v28 = vpop.f32.mrf.mxu1 }
 0x74f   : > { %v2959_v39 = vadd.f32 1.0, %v9020_v35  ;;  %v7957_v18 = vmul.f32 -1.442695, %v2835_v32  ;;  %v2804_v23 = vadd.f32 %v11498_v1, %v11321_v6 }
 0x750   : > { %v8292_v38 = vpop.f32.mrf.mxu1 }
 0x751   : > { %9031 = vrcp.f32 %v2959_v39  ;;  %v2836_v25 = vadd.f32 %v11465_v21, %v2804_v23  ;;  %v11503_v42 = vadd.f32 %v8292_v38, %v8291_v28  ;;  %v3154_v38 = vpop.permute.xlu0 %3153 }
 0x752   : > { %v9022_v10 = vpop.eup %9021  ;;  %9033 = vpow2.f32 %v7957_v18  ;;  %v8294_v16 = vpop.f32.mrf.mxu1 }
 0x753   : > { %v2960_v26 = vadd.f32 1.0, %v9022_v10  ;;  %v7958_v46 = vmul.f32 -1.442695, %v2836_v25  ;;  %v2805_v56 = vadd.f32 %v11503_v42, %v11328_v57 }
 0x754   : > { %v8295_v29 = vpop.f32.mrf.mxu1 }
 0x755   : > { %9035 = vrcp.f32 %v2960_v26  ;;  %v2837_v47 = vadd.f32 %v11465_v21, %v2805_v56  ;;  %v11508_v2 = vadd.f32 %v8295_v29, %v8294_v16 }
 0x756   : > { %v11510_v6 = vpop.eup %9023  ;;  %9037 = vpow2.f32 %v7958_v46  ;;  %v8297_v58 = vpop.f32.mrf.mxu1 }
 0x757   : > { %v9026_v37 = vpop.eup %9025  ;;  %v7959_v52 = vmul.f32 -1.442695, %v2837_v47  ;;  %v2806_v17 = vadd.f32 %v11508_v2, %v11337_v40  ;;  %v3245_v8 = vmul.f32 %v11510_v6, %v3150_v7  ;;  %v3101_v40 = vadd.f32 %v11378_v4, %v15109_v24 }
 0x758   : > { %v2961_v50 = vadd.f32 1.0, %v9026_v37  ;;  %v8298_v57 = vpop.f32.mrf.mxu1  ;;  %v3156_v37 = vpop.permute.xlu1 %3155 }
 0x759   : > { %9039 = vpow2.f32 %v7959_v52  ;;  %v2838_v33 = vadd.f32 %v11465_v21, %v2806_v17  ;;  %v11516_v20 = vadd.f32 %v8298_v57, %v8297_v58  ;;  %3309 = vrot.lane.b32.xlu0 %v3245_v8, %s9984_s12 }
 0x75a   : > { %v11519_v59 = vpop.eup %9027  ;;  %9041 = vrcp.f32 %v2961_v50  ;;  %v8300_v53 = vpop.f32.mrf.mxu1 }
 0x75b   : > { %v9030_v15 = vpop.eup %9029  ;;  %v7960_v22 = vmul.f32 -1.442695, %v2838_v33  ;;  %v2807_v11 = vadd.f32 %v11516_v20, %v11344_v41  ;;  %v3246_v32 = vmul.f32 %v11519_v59, %v3152_v36  ;;  %v3102_v41 = vadd.f32 %v11380_v55, %v15109_v24 }
 0x75c   : > { %v2962_v35 = vadd.f32 1.0, %v9030_v15  ;;  %v8301_v28 = vpop.f32.mrf.mxu1 }
 0x75d   : > { %9043 = vpow2.f32 %v7960_v22  ;;  %v2839_v39 = vadd.f32 %v11465_v21, %v2807_v11  ;;  %v11527_v18 = vadd.f32 %v8301_v28, %v8300_v53  ;;  %3311 = vrot.lane.b32.xlu1 %v3246_v32, %s9984_s12  ;;  %3181 = vrot.lane.b32.xlu0 %v3101_v40, %s9984_s12  ;;  %v3158_v32 = vpop.permute.xlu0 %3157 }
 0x75e   : > { %v11531_v23 = vpop.eup %9031  ;;  %9045 = vrcp.f32 %v2962_v35  ;;  %v8303_v25 = vpop.f32.mrf.mxu1 }
 0x75f   : > { %v9034_v10 = vpop.eup %9033  ;;  %v7961_v16 = vmul.f32 -1.442695, %v2839_v39  ;;  %v2808_v26 = vadd.f32 %v11527_v18, %v11353_v27  ;;  %v3247_v46 = vmul.f32 %v11531_v23, %v3154_v38  ;;  %v3103_v27 = vadd.f32 %v11382_v61, %v15109_v24 }
 0x760   : > { %v2963_v56 = vadd.f32 1.0, %v9034_v10  ;;  %v8304_v29 = vpop.f32.mrf.mxu1 }
 0x761   : > { %9047 = vpow2.f32 %v7961_v16  ;;  %v2840_v47 = vadd.f32 %v11465_v21, %v2808_v26  ;;  %v11539_v7 = vadd.f32 %v8304_v29, %v8303_v25  ;;  %3183 = vrot.lane.b32.xlu1 %v3102_v41, %s9984_s12  ;;  %3313 = vrot.lane.b32.xlu0 %v3247_v46, %s9984_s12 }
 0x762   : > { %v11543_v58 = vpop.eup %9035  ;;  %9049 = vrcp.f32 %v2963_v56  ;;  %v8306_v52 = vpop.f32.mrf.mxu1 }
 0x763   : > { %v9038_v17 = vpop.eup %9037  ;;  %v7962_v8 = vmul.f32 -1.442695, %v2840_v47  ;;  %v2809_v50 = vadd.f32 %v11539_v7, %v11358_v54  ;;  %v3248_v57 = vmul.f32 %v11543_v58, %v3156_v37  ;;  %v3104_v54 = vadd.f32 %v11384_v5, %v15109_v24  ;;  %v3160_v56 = vpop.permute.xlu1 %3159 }
 0x764   : > { %v2964_v33 = vadd.f32 1.0, %v9038_v17  ;;  %v8307_v36 = vpop.f32.mrf.mxu1  ;;  %v3105_v37 = vadd.f32 %v11386_v0, %v15109_v24 }
 0x765   : > { %9051 = vpow2.f32 %v7962_v8  ;;  %v2841_v53 = vadd.f32 %v11465_v21, %v2809_v50  ;;  %v11551_v15 = vadd.f32 %v8307_v36, %v8306_v52  ;;  %3315 = vrot.lane.b32.xlu1 %v3248_v57, %s9984_s12  ;;  %3185 = vrot.lane.b32.xlu0 %v3103_v27, %s9984_s12 }
 0x766   : > { %v9040_v40 = vpop.eup %9039  ;;  %9053 = vrcp.f32 %v2964_v33  ;;  %v8309_v22 = vpop.f32.mrf.mxu1 }
 0x767   : > { %v11555_v11 = vpop.eup %9041  ;;  %v2965_v35 = vadd.f32 1.0, %v9040_v40  ;;  %v7963_v28 = vmul.f32 -1.442695, %v2841_v53  ;;  %v2810_v39 = vadd.f32 %v11551_v15, %v11363_v34  ;;  %v3162_v33 = vpop.permute.xlu0 %3161 }
 0x768   : > { %15118 = vst [vmem:[#allocation43_spill] sm:$0xff] %v11555_v11  ;;  %v8310_v38 = vpop.f32.mrf.mxu1  ;;  %v3249_v25 = vmul.f32 %v11555_v11, %v3158_v32 }
 0x769   : > { %9055 = vrcp.f32 %v2965_v35  ;;  %v2842_v10 = vadd.f32 %v11465_v21, %v2810_v39  ;;  %v11563_v41 = vadd.f32 %v8310_v38, %v8309_v22  ;;  %3187 = vrot.lane.b32.xlu1 %v3104_v54, %s9984_s12  ;;  %v3106_v22 = vadd.f32 %v11388_v49, %v15109_v24 }
 0x76a   : > { %v9044_v16 = vpop.eup %9043  ;;  %9057 = vpow2.f32 %v7963_v28  ;;  %3317 = vrot.lane.b32.xlu0 %v3249_v25, %s9984_s12  ;;  %v8312_v26 = vpop.f32.mrf.mxu1 }
 0x76b   : > { %v11567_v46 = vpop.eup %9045  ;;  %v2966_v29 = vadd.f32 1.0, %v9044_v16  ;;  %v7964_v34 = vmul.f32 -1.442695, %v2842_v10  ;;  %v2811_v47 = vadd.f32 %v11563_v41, %v11368_v9  ;;  %v3107_v16 = vadd.f32 %v11390_v45, %v15109_v24 }
 0x76c   : > { %15119 = vst [vmem:[#allocation44_spill] sm:$0xff] %v11567_v46  ;;  %v8313_v52 = vpop.f32.mrf.mxu1  ;;  %v3250_v17 = vmul.f32 %v11567_v46, %v3160_v56 }
 0x76d   : > { %9059 = vrcp.f32 %v2966_v29  ;;  %v2843_v27 = vadd.f32 %v11465_v21, %v2811_v47  ;;  %v11575_v8 = vadd.f32 %v8313_v52, %v8312_v26 }
 0x76e   : > { %v9048_v50 = vpop.eup %9047  ;;  %9061 = vpow2.f32 %v7964_v34  ;;  %3319 = vrot.lane.b32.xlu1 %v3250_v17, %s9984_s12  ;;  %3189 = vrot.lane.b32.xlu0 %v3105_v37, %s9984_s12  ;;  %v11579_v57 = vpop.f32.mrf.mxu1  ;;  %v3108_v17 = vadd.f32 %v11392_v14, %v15109_v24 }
 0x76f   : > { %v11581_v9 = vpop.eup %9049  ;;  %v2967_v36 = vadd.f32 1.0, %v9048_v50  ;;  %v7965_v53 = vmul.f32 -1.442695, %v2843_v27  ;;  %v2812_v40 = vadd.f32 %v11575_v8, %v11373_v12  ;;  %v3164_v12 = vpop.permute.xlu1 %3163 }
 0x770   : > { %15120 = vst [vmem:[#allocation45_spill] sm:$0xff] %v11581_v9  ;;  %v11587_v54 = vpop.f32.mrf.mxu1  ;;  %v3251_v32 = vmul.f32 %v11581_v9, %v3162_v33  ;;  %v3166_v34 = vpop.permute.xlu0 %3165 }
 0x771   : > { %9063 = vrcp.f32 %v2967_v36  ;;  %v2844_v35 = vadd.f32 %v11465_v21, %v2812_v40 }
 0x772   : > { %v9052_v28 = vpop.eup %9051  ;;  %9065 = vpow2.f32 %v7965_v53  ;;  %3191 = vrot.lane.b32.xlu1 %v3106_v22, %s9984_s12  ;;  %3321 = vrot.lane.b32.xlu0 %v3251_v32, %s9984_s12  ;;  %v11593_v39 = vpop.f32.mrf.mxu1  ;;  %v3109_v32 = vadd.f32 %v11394_v13, %v15109_v24 }
 0x773   : > { %v11595_v38 = vpop.eup %9053  ;;  %v2968_v25 = vadd.f32 1.0, %v9052_v28  ;;  %v7966_v10 = vmul.f32 -1.442695, %v2844_v35  ;;  %v3168_v36 = vpop.permute.xlu1 %3167 }
 0x774   : > { %15121 = vst [vmem:[#allocation46_spill] sm:$0xff] %v11595_v38  ;;  %v11599_v26 = vpop.f32.mrf.mxu1  ;;  %v3252_v56 = vmul.f32 %v11595_v38, %v3164_v12 }
 0x775   : > { %9067 = vrcp.f32 %v2968_v25  ;;  %v3170_v25 = vpop.permute.xlu0 %3169 }
 0x776   : > { %v11602_v29 = vpop.eup %9055  ;;  %9069 = vpow2.f32 %v7966_v10  ;;  %3323 = vrot.lane.b32.xlu1 %v3252_v56, %s9984_s12  ;;  %3193 = vrot.lane.b32.xlu0 %v3107_v16, %s9984_s12  ;;  %v11606_v47 = vpop.f32.mrf.mxu1 }
 0x777   : > { %15122 = vst [vmem:[#allocation47_spill] sm:$0xff] %v11602_v29  ;;  %v9058_v37 = vpop.eup %9057  ;;  %v3253_v52 = vmul.f32 %v11602_v29, %v3166_v34  ;;  %v3110_v34 = vadd.f32 %v11396_v60, %v15109_v24 }
 0x778   : > { %v2969_v27 = vadd.f32 1.0, %v9058_v37  ;;  %v11611_v50 = vpop.f32.mrf.mxu1 }
 0x77a   : > { %v11613_v33 = vpop.eup %9059  ;;  %9071 = vrcp.f32 %v2969_v27  ;;  %3195 = vrot.lane.b32.xlu1 %v3108_v17, %s9984_s12  ;;  %3325 = vrot.lane.b32.xlu0 %v3253_v52, %s9984_s12  ;;  %v11617_v53 = vpop.f32.mrf.mxu1 }
 0x77b   : > { %15123 = vst [vmem:[#allocation48_spill] sm:$0xff] %v11613_v33  ;;  %v9062_v40 = vpop.eup %9061  ;;  %v3254_v22 = vmul.f32 %v11613_v33, %v3168_v36  ;;  %v3172_v27 = vpop.permute.xlu1 %3171 }
 0x77c   : > { %v2970_v35 = vadd.f32 1.0, %v9062_v40  ;;  %v11622_v28 = vpop.f32.mrf.mxu1 }
 0x77e   : > { %v11624_v12 = vpop.eup %9063  ;;  %9073 = vrcp.f32 %v2970_v35  ;;  %3327 = vrot.lane.b32.xlu1 %v3254_v22, %s9984_s12  ;;  %3197 = vrot.lane.b32.xlu0 %v3109_v32, %s9984_s12  ;;  %v11628_v10 = vpop.f32.mrf.mxu1  ;;  %v3111_v32 = vadd.f32 %v11398_v3, %v15109_v24 }
 0x77f   : > { %15124 = vst [vmem:[#allocation49_spill] sm:$0xff] %v11624_v12  ;;  %v9066_v16 = vpop.eup %9065  ;;  %v3255_v56 = vmul.f32 %v11624_v12, %v3170_v25 }
 0x780   : > { %v2971_v37 = vadd.f32 1.0, %v9066_v16  ;;  %v11633_v52 = vpop.f32.mrf.mxu1 }
 0x782   : > { %v11635_v17 = vpop.eup %9067  ;;  %9075 = vrcp.f32 %v2971_v37  ;;  %3199 = vrot.lane.b32.xlu1 %v3110_v34, %s9984_s12  ;;  %3329 = vrot.lane.b32.xlu0 %v3255_v56, %s9984_s12  ;;  %v11639_v36 = vpop.f32.mrf.mxu1  ;;  %v3112_v56 = vadd.f32 %v11400_v62, %v15109_v24 }
 0x783   : > { %15125 = vst [vmem:[#allocation50_spill] sm:$0xff] %v11635_v17  ;;  %v9070_v40 = vpop.eup %9069  ;;  %v3256_v22 = vmul.f32 %v11635_v17, %v3172_v27  ;;  %v3174_v34 = vpop.permute.xlu0 %3173 }
 0x784   : > { %v2972_v35 = vadd.f32 1.0, %v9070_v40  ;;  %v8331_v25 = vpop.f32.mrf.mxu1  ;;  %v3176_v40 = vpop.permute.xlu1 %3175 }
 0x786   : > { %9077 = vrcp.f32 %v2972_v35  ;;  %3331 = vrot.lane.b32.xlu1 %v3256_v22, %s9984_s12  ;;  %3201 = vrot.lane.b32.xlu0 %v3111_v32, %s9984_s12  ;;  %v8333_v12 = vpop.f32.mrf.mxu1  ;;  %v15128_v22 = vld [vmem:[#allocation41_spill] sm:$0xff] }
 0x787   : > { %v11646_v16 = vpop.eup %9071  ;;  %v3113_v35 = vadd.f32 %v15128_v22, %v15109_v24 }
 0x788   : > { %15126 = vst [vmem:[#allocation51_spill] sm:$0xff] %v11646_v16  ;;  %v3257_v37 = vmul.f32 %v11646_v16, %v3174_v34  ;;  %v8334_v17 = vpop.f32.mrf.mxu1  ;;  %v3178_v34 = vpop.permute.xlu0 %3177 }
 0x78a   : > { %3203 = vrot.lane.b32.xlu1 %v3112_v56, %s9984_s12  ;;  %3333 = vrot.lane.b32.xlu0 %v3257_v37, %s9984_s12  ;;  %v15130_v56 = vld [vmem:[#allocation42_spill] sm:$0xff]  ;;  %v8336_v33 = vpop.f32.mrf.mxu1 }
 0x78b   : > { %v11653_v27 = vpop.eup %9073  ;;  %v3114_v16 = vadd.f32 %v15130_v56, %v15109_v24 }
 0x78c   : > { %15127 = vst [vmem:[#allocation52_spill] sm:$0xff] %v11653_v27  ;;  %v3258_v32 = vmul.f32 %v11653_v27, %v3176_v40  ;;  %v3180_v40 = vpop.permute.xlu1 %3179  ;;  %v11672_v27 = vpop.f32.mrf.mxu0 }
 0x78d   : > { %v8337_v38 = vpop.f32.mrf.mxu1 }
 0x78e   : > { %3335 = vrot.lane.b32.xlu1 %v3258_v32, %s9984_s12  ;;  %3205 = vrot.lane.b32.xlu0 %v3113_v35, %s9984_s12  ;;  %v3115_v32 = vadd.f32 %v11406_v51, %v15109_v24 }
 0x78f   : > { %v11660_v29 = vpop.eup %9075 }
 0x790   : > { %15129 = vst [vmem:[#allocation41_spill] sm:$0xff] %v11660_v29  ;;  %v3259_v37 = vmul.f32 %v11660_v29, %v3178_v34  ;;  %v8339_v34 = vpop.f32.mrf.mxu1 }
 0x792   : > { %3207 = vrot.lane.b32.xlu1 %v3114_v16, %s9984_s12  ;;  %3337 = vrot.lane.b32.xlu0 %v3259_v37, %s9984_s12  ;;  %v3116_v16 = vadd.f32 %v11672_v27, %v15109_v24  ;;  %v11681_v37 = vadd.f32 %v11587_v54, %v11579_v57  ;;  %v8340_v29 = vpop.f32.mrf.mxu1  ;;  %v11698_v54 = vadd.f32 %v11622_v28, %v11617_v53 }
 0x793   : > { %v11667_v9 = vpop.eup %9077  ;;  %v11709_v53 = vadd.f32 %v11633_v52, %v11628_v10  ;;  %v11719_v10 = vadd.f32 %v8334_v17, %v8333_v12  ;;  %v11721_v52 = vadd.f32 %v8337_v38, %v8336_v33 }
 0x794   : > { %15131 = vst [vmem:[#allocation42_spill] sm:$0xff] %v11667_v9  ;;  %v3260_v35 = vmul.f32 %v11667_v9, %v3180_v40  ;;  %v2813_v40 = vadd.f32 %v11681_v37, %v11378_v4  ;;  %v11687_v9 = vadd.f32 %v11599_v26, %v11593_v39 }
 0x796   : > { %3339 = vrot.lane.b32.xlu1 %v3260_v35, %s9984_s12  ;;  %3209 = vrot.lane.b32.xlu0 %v3115_v32, %s9984_s12  ;;  %v8342_v35 = vpop.f32.mrf.mxu1  ;;  %v2845_v32 = vadd.f32 %v11465_v21, %v2813_v40  ;;  %v2814_v24 = vadd.f32 %v11687_v9, %v11380_v55  ;;  %v2816_v40 = vadd.f32 %v11698_v54, %v11384_v5 }
 0x797   : > { %v11714_v5 = vadd.f32 %v8331_v25, %v11639_v36  ;;  %v2819_v36 = vadd.f32 %v11719_v10, %v11390_v45  ;;  %v11726_v25 = vadd.f32 %v8340_v29, %v8339_v34 }
 0x798   : > { %v8343_v57 = vpop.f32.mrf.mxu1  ;;  %v7967_v4 = vmul.f32 -1.442695, %v2845_v32  ;;  %v2846_v11 = vadd.f32 %v11465_v21, %v2814_v24  ;;  %v2848_v46 = vadd.f32 %v11465_v21, %v2816_v40 }
 0x799   : > { %v2851_v38 = vadd.f32 %v11465_v21, %v2819_v36  ;;  %v2821_v33 = vadd.f32 %v11726_v25, %v11394_v13 }
 0x79a   : > { %3211 = vrot.lane.b32.xlu1 %v3116_v16, %s9984_s12  ;;  %v11694_v16 = vadd.f32 %v11611_v50, %v11606_v47  ;;  %v8345_v26 = vpop.f32.mrf.mxu1  ;;  %9079 = vpow2.f32 %v7967_v4  ;;  %v7968_v55 = vmul.f32 -1.442695, %v2846_v11  ;;  %v7970_v32 = vmul.f32 -1.442695, %v2848_v46 }
 0x79c   : > { %v2815_v39 = vadd.f32 %v11694_v16, %v11382_v61  ;;  %v8346_v50 = vpop.f32.mrf.mxu1  ;;  %9081 = vpow2.f32 %v7968_v55  ;;  %v2817_v61 = vadd.f32 %v11709_v53, %v11386_v0 }
 0x79e   : > { %v2847_v47 = vadd.f32 %v11465_v21, %v2815_v39  ;;  %v8348_v28 = vpop.f32.mrf.mxu1  ;;  %v2849_v4 = vadd.f32 %v11465_v21, %v2817_v61  ;;  %v2818_v39 = vadd.f32 %v11714_v5, %v11388_v49  ;;  %v11734_v61 = vadd.f32 %v8343_v57, %v8342_v35 }
 0x7a0   : > { %v7969_v24 = vmul.f32 -1.442695, %v2847_v47  ;;  %v8349_v11 = vpop.f32.mrf.mxu1  ;;  %v7971_v55 = vmul.f32 -1.442695, %v2849_v4  ;;  %v2850_v0 = vadd.f32 %v11465_v21, %v2818_v39  ;;  %v2820_v47 = vadd.f32 %v11721_v52, %v11392_v14 }
 0x7a1   : > { %v7973_v14 = vmul.f32 -1.442695, %v2851_v38  ;;  %v2853_v39 = vadd.f32 %v11465_v21, %v2821_v33 }
 0x7a2   : > { %9083 = vpow2.f32 %v7969_v24  ;;  %v8351_v40 = vpop.f32.mrf.mxu1  ;;  %v7972_v12 = vmul.f32 -1.442695, %v2850_v0  ;;  %v2852_v17 = vadd.f32 %v11465_v21, %v2820_v47  ;;  %v11739_v0 = vadd.f32 %v8346_v50, %v8345_v26 }
 0x7a3   : > { %9085 = vpow2.f32 %v7970_v32  ;;  %v7975_v57 = vmul.f32 -1.442695, %v2853_v39 }
 0x7a4   : > { %v8352_v32 = vpop.f32.mrf.mxu1  ;;  %9087 = vpow2.f32 %v7971_v55  ;;  %v2822_v55 = vadd.f32 %v11734_v61, %v11396_v60 }
 0x7a6   : > { %v8354_v29 = vpop.f32.mrf.mxu1  ;;  %v2854_v47 = vadd.f32 %v11465_v21, %v2822_v55 }
 0x7a7   : > { %v9080_v46 = vpop.eup %9079 }
 0x7a8   : > { %v2973_v24 = vadd.f32 1.0, %v9080_v46  ;;  %v7974_v46 = vmul.f32 -1.442695, %v2852_v17  ;;  %v8355_v36 = vpop.f32.mrf.mxu1  ;;  %v7976_v17 = vmul.f32 -1.442695, %v2854_v47 }
 0x7a9   : > { %v9082_v49 = vpop.eup %9081 }
 0x7aa   : > { %9089 = vrcp.f32 %v2973_v24  ;;  %v2974_v45 = vadd.f32 1.0, %v9082_v49  ;;  %v2823_v24 = vadd.f32 %v11739_v0, %v11398_v3  ;;  %v11744_v49 = vadd.f32 %v8349_v11, %v8348_v28  ;;  %v8357_v60 = vpop.f32.mrf.mxu1 }
 0x7ab   : > { %9091 = vpow2.f32 %v7972_v12  ;;  %v15132_v12 = vld [vmem:[#allocation18_spill] sm:$0xff] }
 0x7ac   : > { %9093 = vrcp.f32 %v2974_v45  ;;  %v3053_v38 = vadd.f32 %v11458_v43, %v15132_v12  ;;  %v2855_v45 = vadd.f32 %v11465_v21, %v2823_v24  ;;  %v8358_v3 = vpop.f32.mrf.mxu1  ;;  %v3054_v43 = vadd.f32 %v11468_v30, %v15132_v12 }
 0x7ad   : > { %9095 = vpow2.f32 %v7973_v14  ;;  %v11751_v14 = vadd.f32 %v8352_v32, %v8351_v40  ;;  %v3055_v32 = vadd.f32 %v11473_v48, %v15132_v12  ;;  %v11763_v30 = vadd.f32 %v8355_v36, %v8354_v29 }
 0x7ae   : > { %9097 = vpow2.f32 %v7974_v46 }
 0x7af   : > { %v9084_v34 = vpop.eup %9083  ;;  %v2825_v40 = vadd.f32 %v11751_v14, %v15128_v22  ;;  %v2826_v36 = vadd.f32 %v11763_v30, %v15130_v56 }
 0x7b0   : > { %v9086_v4 = vpop.eup %9085  ;;  %v2975_v13 = vadd.f32 1.0, %v9084_v34  ;;  %v2824_v34 = vadd.f32 %v11744_v49, %v11400_v62 }
 0x7b1   : > { %v2976_v35 = vadd.f32 1.0, %v9086_v4  ;;  %v9088_v50 = vpop.eup %9087  ;;  %v2857_v48 = vadd.f32 %v11465_v21, %v2825_v40 }
 0x7b2   : > { %9099 = vrcp.f32 %v2975_v13  ;;  %v2977_v11 = vadd.f32 1.0, %v9088_v50  ;;  %v2856_v62 = vadd.f32 %v11465_v21, %v2824_v34 }
 0x7b3   : > { %9101 = vrcp.f32 %v2976_v35  ;;  %v7977_v35 = vmul.f32 -1.442695, %v2855_v45  ;;  %v11772_v45 = vadd.f32 %v8358_v3, %v8357_v60 }
 0x7b4   : > { %9103 = vpow2.f32 %v7975_v57  ;;  %v8360_v57 = vpop.f32.mrf.mxu1  ;;  %v7978_v22 = vmul.f32 -1.442695, %v2856_v62  ;;  %v2858_v62 = vadd.f32 %v11465_v21, %v2826_v36 }
 0x7b6   : > { %v8361_v34 = vpop.f32.mrf.mxu1 }
 0x7b7   : > { %v11755_v28 = vpop.eup %9089  ;;  %v11785_v40 = vadd.f32 %v8361_v34, %v8360_v57  ;;  %v3058_v34 = vadd.f32 %v11488_v44, %v15132_v12 }
 0x7b8   : > { %v9092_v46 = vpop.eup %9091 }
 0x7b9   : > { %v11766_v47 = vpop.eup %9093  ;;  %v2978_v24 = vadd.f32 1.0, %v9092_v46  ;;  %v2828_v36 = vadd.f32 %v11785_v40, %v11672_v27 }
 0x7ba   : > { %v9096_v50 = vpop.eup %9095 }
 0x7bb   : > { %v9098_v29 = vpop.eup %9097 }
 0x7bc   : > { %v2980_v3 = vadd.f32 1.0, %v9098_v29 }
 0x7cb   : > { %v3310_v26 = vpop.permute.xlu0 %3309 }
 0x7cc   : > { %v3405_v33 = vadd.f32 %v3310_v26, %v3053_v38 }
 0x7ce   : > { %9105 = vtanh.f32 %v3405_v33 }
 0x7cf   : > { %v3312_v4 = vpop.permute.xlu1 %3311  ;;  %v3182_v39 = vpop.permute.xlu0 %3181  ;;  %9107 = vpow2.f32 %v7976_v17 }
 0x7d0   : > { %v3406_v55 = vadd.f32 %v3312_v4, %v3054_v43  ;;  %v3261_v13 = vmul.f32 %v11755_v28, %v3182_v39  ;;  %v3056_v43 = vadd.f32 %v11478_v19, %v15132_v12  ;;  %v2979_v4 = vadd.f32 1.0, %v9096_v50 }
 0x7d1   : > { %v2827_v19 = vadd.f32 %v11772_v45, %v11406_v51 }
 0x7d2   : > { %9109 = vtanh.f32 %v3406_v55  ;;  %3341 = vrot.lane.b32.xlu0 %v3261_v13, %s9984_s12 }
 0x7d3   : > { %9111 = vrcp.f32 %v2977_v11  ;;  %v3184_v38 = vpop.permute.xlu1 %3183  ;;  %v3314_v26 = vpop.permute.xlu0 %3313  ;;  %v2859_v29 = vadd.f32 %v11465_v21, %v2827_v19  ;;  %v3059_v19 = vadd.f32 %v11493_v63, %v15132_v12  ;;  %v3060_v63 = vadd.f32 %v11498_v1, %v15132_v12 }
 0x7d4   : > { %v3262_v33 = vmul.f32 %v11766_v47, %v3184_v38  ;;  %v3407_v17 = vadd.f32 %v3314_v26, %v3055_v32  ;;  %9113 = vpow2.f32 %v7977_v35  ;;  %v11777_v11 = vpop.eup %9099  ;;  %v7979_v35 = vmul.f32 -1.442695, %v2857_v48 }
 0x7d5   : > { %v11779_v55 = vpop.eup %9101  ;;  %v7980_v48 = vmul.f32 -1.442695, %v2858_v62  ;;  %v2860_v62 = vadd.f32 %v11465_v21, %v2828_v36 }
 0x7d6   : > { %9115 = vtanh.f32 %v3407_v17  ;;  %3343 = vrot.lane.b32.xlu1 %v3262_v33, %s9984_s12  ;;  %v9104_v60 = vpop.eup %9103  ;;  %v15133_v33 = vld [vmem:[#allocation10_spill] sm:$0xff] }
 0x7d7   : > { %9117 = vrcp.f32 %v2978_v24  ;;  %v3316_v39 = vpop.permute.xlu1 %3315  ;;  %v3186_v46 = vpop.permute.xlu0 %3185  ;;  %v3057_v24 = vadd.f32 %v11483_v31, %v15132_v12  ;;  %v2981_v51 = vadd.f32 1.0, %v9104_v60 }
 0x7d8   : > { %v3408_v13 = vadd.f32 %v3316_v39, %v3056_v43  ;;  %v3263_v56 = vmul.f32 %v11777_v11, %v3186_v46  ;;  %9119 = vpow2.f32 %v7978_v22  ;;  %v15134_v46 = vld [vmem:[#allocation8_spill] sm:$0xff] }
 0x7da   : > { %9121 = vtanh.f32 %v3408_v13  ;;  %3345 = vrot.lane.b32.xlu0 %v3263_v56, %s9984_s12 }
 0x7db   : > { %v11788_v32 = vpop.eup %9105  ;;  %9123 = vrcp.f32 %v2979_v4  ;;  %v3188_v38 = vpop.permute.xlu1 %3187 }
 0x7dc   : > { %v3264_v26 = vmul.f32 %v11779_v55, %v3188_v38  ;;  %v3318_v50 = vpop.permute.xlu0 %3317  ;;  %v3469_v17 = vsub.f32 %v15133_v33, %v11788_v32  ;;  %9125 = vrcp.f32 %v2980_v3  ;;  %v9108_v22 = vpop.eup %9107 }
 0x7dd   : > { %v3409_v57 = vadd.f32 %v3318_v50, %v3057_v24  ;;  %9127 = vpow2.f32 %v7979_v35  ;;  %v2982_v27 = vadd.f32 1.0, %v9108_v22  ;;  %v7981_v35 = vmul.f32 -1.442695, %v2859_v29  ;;  %v15135_v50 = vld [vmem:[#allocation9_spill] sm:$0xff] }
 0x7de   : > { %3347 = vrot.lane.b32.xlu1 %v3264_v26, %s9984_s12  ;;  %3533 = vrot.lane.b32.xlu0 %v3469_v17, %s9986_s17  ;;  %v7982_v22 = vmul.f32 -1.442695, %v2860_v62 }
 0x7df   : > { %v11800_v31 = vpop.eup %9109  ;;  %9129 = vtanh.f32 %v3409_v57 }
 0x7e0   : > { %v11804_v43 = vpop.eup %9111  ;;  %v3320_v4 = vpop.permute.xlu1 %3319  ;;  %v3470_v13 = vsub.f32 %v15134_v46, %v11800_v31  ;;  %9131 = vrcp.f32 %v2981_v51 }
 0x7e1   : > { %v3190_v39 = vpop.permute.xlu0 %3189  ;;  %v3410_v56 = vadd.f32 %v3320_v4, %v3058_v34  ;;  %v9114_v3 = vpop.eup %9113  ;;  %9133 = vpow2.f32 %v7980_v48  ;;  %v15136_v4 = vld [vmem:[#allocation12_spill] sm:$0xff] }
 0x7e2   : > { %v3265_v60 = vmul.f32 %v11804_v43, %v3190_v39  ;;  %3535 = vrot.lane.b32.xlu1 %v3470_v13, %s9986_s17  ;;  %v2983_v17 = vadd.f32 1.0, %v9114_v3  ;;  %v3061_v3 = vadd.f32 %v11503_v42, %v15132_v12 }
 0x7e3   : > { %v11811_v44 = vpop.eup %9115  ;;  %9135 = vtanh.f32 %v3410_v56 }
 0x7e4   : > { %3349 = vrot.lane.b32.xlu0 %v3265_v60, %s9984_s12  ;;  %v11816_v24 = vpop.eup %9117  ;;  %v3192_v38 = vpop.permute.xlu1 %3191  ;;  %v3471_v33 = vsub.f32 %v15135_v50, %v11811_v44  ;;  %9137 = vrcp.f32 %v2982_v27 }
 0x7e5   : > { %v3322_v26 = vpop.permute.xlu0 %3321  ;;  %v3266_v21 = vmul.f32 %v11816_v24, %v3192_v38  ;;  %v9120_v57 = vpop.eup %9119  ;;  %9139 = vpow2.f32 %v7981_v35 }
 0x7e6   : > { %v3411_v51 = vadd.f32 %v3322_v26, %v3059_v19  ;;  %v2984_v56 = vadd.f32 1.0, %v9120_v57  ;;  %v15137_v26 = vld [vmem:[#allocation14_spill] sm:$0xff] }
 0x7e7   : > { %v11821_v48 = vpop.eup %9121  ;;  %3351 = vrot.lane.b32.xlu1 %v3266_v21, %s9984_s12  ;;  %v3062_v21 = vadd.f32 %v11508_v2, %v15132_v12 }
 0x7e8   : > { %9141 = vtanh.f32 %v3411_v51  ;;  %3537 = vrot.lane.b32.xlu0 %v3471_v33, %s9986_s17  ;;  %v11827_v29 = vpop.eup %9123  ;;  %v3324_v36 = vpop.permute.xlu1 %3323  ;;  %v3472_v39 = vsub.f32 %v15136_v4, %v11821_v48 }
 0x7e9   : > { %v3194_v34 = vpop.permute.xlu0 %3193  ;;  %9143 = vrcp.f32 %v2983_v17  ;;  %v3412_v46 = vadd.f32 %v3324_v36, %v3060_v63  ;;  %v11832_v27 = vpop.eup %9125 }
 0x7ea   : > { %v3267_v13 = vmul.f32 %v11827_v29, %v3194_v34  ;;  %9145 = vpow2.f32 %v7982_v22  ;;  %v9128_v60 = vpop.eup %9127  ;;  %v15138_v34 = vld [vmem:[#allocation11_spill] sm:$0xff] }
 0x7eb   : > { %9147 = vtanh.f32 %v3412_v46  ;;  %3539 = vrot.lane.b32.xlu1 %v3472_v39, %s9986_s17  ;;  %v2985_v17 = vadd.f32 1.0, %v9128_v60 }
 0x7ec   : > { %3353 = vrot.lane.b32.xlu0 %v3267_v13, %s9984_s12  ;;  %v11838_v1 = vpop.eup %9129  ;;  %v3196_v35 = vpop.permute.xlu1 %3195  ;;  %9149 = vrcp.f32 %v2984_v56  ;;  %v3063_v56 = vadd.f32 %v11516_v20, %v15132_v12 }
 0x7ed   : > { %v3326_v62 = vpop.permute.xlu0 %3325  ;;  %v3268_v19 = vmul.f32 %v11832_v27, %v3196_v35  ;;  %v3473_v50 = vsub.f32 %v15137_v26, %v11838_v1  ;;  %v11843_v33 = vpop.eup %9131 }
 0x7ee   : > { %v3413_v38 = vadd.f32 %v3326_v62, %v3061_v3  ;;  %v9134_v42 = vpop.eup %9133 }
 0x7ef   : > { %3355 = vrot.lane.b32.xlu1 %v3268_v19, %s9984_s12  ;;  %v2986_v46 = vadd.f32 1.0, %v9134_v42  ;;  %v15139_v19 = vld [vmem:[#allocation16_spill] sm:$0xff] }
 0x7f0   : > { %9151 = vtanh.f32 %v3413_v38  ;;  %3541 = vrot.lane.b32.xlu0 %v3473_v50, %s9986_s17  ;;  %v11849_v51 = vpop.eup %9135  ;;  %v3328_v57 = vpop.permute.xlu1 %3327 }
 0x7f1   : > { %v3198_v22 = vpop.permute.xlu0 %3197  ;;  %v3414_v63 = vadd.f32 %v3328_v57, %v3062_v21  ;;  %v3474_v4 = vsub.f32 %v15138_v34, %v11849_v51  ;;  %v11854_v39 = vpop.eup %9137  ;;  %9153 = vrcp.f32 %v2985_v17  ;;  %v3064_v17 = vadd.f32 %v11527_v18, %v15132_v12 }
 0x7f2   : > { %v3269_v36 = vmul.f32 %v11843_v33, %v3198_v22  ;;  %v9140_v13 = vpop.eup %9139 }
 0x7f3   : > { %9155 = vtanh.f32 %v3414_v63  ;;  %3543 = vrot.lane.b32.xlu1 %v3474_v4, %s9986_s17  ;;  %v2987_v50 = vadd.f32 1.0, %v9140_v13  ;;  %v3065_v13 = vadd.f32 %v11539_v7, %v15132_v12  ;;  %v3066_v7 = vadd.f32 %v11551_v15, %v15132_v12 }
 0x7f4   : > { %3357 = vrot.lane.b32.xlu0 %v3269_v36, %s9984_s12  ;;  %v3200_v60 = vpop.permute.xlu1 %3199  ;;  %9157 = vrcp.f32 %v2986_v46  ;;  %v15140_v36 = vld [vmem:[#allocation13_spill] sm:$0xff] }
 0x7f5   : > { %v11860_v2 = vpop.eup %9141  ;;  %v3330_v3 = vpop.permute.xlu0 %3329  ;;  %v3270_v35 = vmul.f32 %v11854_v39, %v3200_v60 }
 0x7f6   : > { %v3415_v62 = vadd.f32 %v3330_v3, %v3063_v56  ;;  %v3475_v38 = vsub.f32 %v15139_v19, %v11860_v2  ;;  %v11865_v26 = vpop.eup %9143 }
 0x7f7   : > { %v9146_v20 = vpop.eup %9145  ;;  %3359 = vrot.lane.b32.xlu1 %v3270_v35, %s9984_s12 }
 0x7f8   : > { %9159 = vtanh.f32 %v3415_v62  ;;  %3545 = vrot.lane.b32.xlu0 %v3475_v38, %s9986_s17  ;;  %v11871_v42 = vpop.eup %9147  ;;  %v3332_v21 = vpop.permute.xlu1 %3331  ;;  %v2988_v4 = vadd.f32 1.0, %v9146_v20  ;;  %v15141_v62 = vld [vmem:[#allocation19_spill] sm:$0xff] }
 0x7f9   : > { %v3202_v57 = vpop.permute.xlu0 %3201  ;;  %v3416_v22 = vadd.f32 %v3332_v21, %v3064_v17  ;;  %v3476_v34 = vsub.f32 %v15140_v36, %v11871_v42  ;;  %9161 = vrcp.f32 %v2987_v50  ;;  %v11876_v46 = vpop.eup %9149 }
 0x7fa   : > { %v3271_v63 = vmul.f32 %v11865_v26, %v3202_v57 }
 0x7fb   : > { %9163 = vtanh.f32 %v3416_v22  ;;  %3547 = vrot.lane.b32.xlu1 %v3476_v34, %s9986_s17  ;;  %v15142_v22 = vld [vmem:[#allocation15_spill] sm:$0xff]  ;;  %v3067_v34 = vadd.f32 %v11563_v41, %v15132_v12  ;;  %v3068_v41 = vadd.f32 %v11575_v8, %v15132_v12 }
 0x7fc   : > { %3361 = vrot.lane.b32.xlu0 %v3271_v63, %s9984_s12  ;;  %v3204_v56 = vpop.permute.xlu1 %3203  ;;  %9165 = vrcp.f32 %v2988_v4 }
 0x7fd   : > { %v11882_v18 = vpop.eup %9151  ;;  %v3334_v60 = vpop.permute.xlu0 %3333  ;;  %v3272_v3 = vmul.f32 %v11876_v46, %v3204_v56 }
 0x7fe   : > { %v3417_v35 = vadd.f32 %v3334_v60, %v3065_v13  ;;  %v3477_v19 = vsub.f32 %v15141_v62, %v11882_v18  ;;  %v11887_v38 = vpop.eup %9153 }
 0x7ff   : > { %3363 = vrot.lane.b32.xlu1 %v3272_v3, %s9984_s12  ;;  %v15143_v3 = vld [vmem:[#allocation21_spill] sm:$0xff] }
 0x800   : > { %9167 = vtanh.f32 %v3417_v35  ;;  %3549 = vrot.lane.b32.xlu0 %v3477_v19, %s9986_s17  ;;  %v11893_v50 = vpop.eup %9155  ;;  %v3336_v20 = vpop.permute.xlu1 %3335 }
 0x801   : > { %v3206_v17 = vpop.permute.xlu0 %3205  ;;  %v3418_v21 = vadd.f32 %v3336_v20, %v3066_v7  ;;  %v3478_v63 = vsub.f32 %v15142_v22, %v11893_v50  ;;  %v11898_v36 = vpop.eup %9157 }
 0x802   : > { %v3273_v57 = vmul.f32 %v11887_v38, %v3206_v17 }
 0x803   : > { %9169 = vtanh.f32 %v3418_v21  ;;  %3551 = vrot.lane.b32.xlu1 %v3478_v63, %s9986_s17 }
 0x804   : > { %3365 = vrot.lane.b32.xlu0 %v3273_v57, %s9984_s12  ;;  %v3208_v4 = vpop.permute.xlu1 %3207  ;;  %v15144_v57 = vld [vmem:[#allocation17_spill] sm:$0xff] }
 0x805   : > { %v11904_v15 = vpop.eup %9159  ;;  %v3338_v13 = vpop.permute.xlu0 %3337  ;;  %v3274_v56 = vmul.f32 %v11898_v36, %v3208_v4 }
 0x806   : > { %v3419_v60 = vadd.f32 %v3338_v13, %v3067_v34  ;;  %v3479_v35 = vsub.f32 %v15143_v3, %v11904_v15  ;;  %v11909_v62 = vpop.eup %9161  ;;  %v15146_v13 = vld [vmem:[#allocation23_spill] sm:$0xff]  ;;  %v15147_v3 = vld [vmem:[#allocation20_spill] sm:$0xff] }
 0x807   : > { %3367 = vrot.lane.b32.xlu1 %v3274_v56, %s9984_s12 }
 0x808   : > { %9171 = vtanh.f32 %v3419_v60  ;;  %3553 = vrot.lane.b32.xlu0 %v3479_v35, %s9986_s17  ;;  %v11915_v19 = vpop.eup %9163  ;;  %v3340_v7 = vpop.permute.xlu1 %3339 }
 0x809   : > { %v3210_v20 = vpop.permute.xlu0 %3209  ;;  %v3420_v17 = vadd.f32 %v3340_v7, %v3068_v41  ;;  %v3480_v22 = vsub.f32 %v15144_v57, %v11915_v19  ;;  %v11920_v63 = vpop.eup %9165  ;;  %v15148_v7 = vld [vmem:[#allocation25_spill] sm:$0xff] }
 0x80a   : > { %v3275_v21 = vmul.f32 %v11909_v62, %v3210_v20  ;;  %15145 = vst [vmem:[#allocation10_spill] sm:$0xff] %v11920_v63 }
 0x80b   : > { %9173 = vtanh.f32 %v3420_v17  ;;  %3555 = vrot.lane.b32.xlu1 %v3480_v22, %s9986_s17  ;;  %v3069_v22 = vadd.f32 %v11681_v37, %v15132_v12 }
 0x80c   : > { %3369 = vrot.lane.b32.xlu0 %v3275_v21, %s9984_s12  ;;  %v3212_v8 = vpop.permute.xlu1 %3211  ;;  %v15149_v21 = vld [vmem:[#allocation24_spill] sm:$0xff] }
 0x80d   : > { %v11924_v34 = vpop.eup %9167  ;;  %v3276_v4 = vmul.f32 %v11920_v63, %v3212_v8 }
 0x80e   : > { %v3481_v56 = vsub.f32 %v15146_v13, %v11924_v34  ;;  %v3070_v13 = vadd.f32 %v11687_v9, %v15132_v12  ;;  %v3073_v9 = vadd.f32 %v11709_v53, %v15132_v12 }
 0x80f   : > { %3371 = vrot.lane.b32.xlu1 %v3276_v4, %s9984_s12 }
 0x810   : > { %3557 = vrot.lane.b32.xlu0 %v3481_v56, %s9986_s17  ;;  %v11931_v60 = vpop.eup %9169 }
 0x811   : > { %v3482_v35 = vsub.f32 %v15147_v3, %v11931_v60 }
 0x813   : > { %3559 = vrot.lane.b32.xlu1 %v3482_v35, %s9986_s17  ;;  %v3071_v35 = vadd.f32 %v11694_v16, %v15132_v12 }
 0x815   : > { %v11936_v41 = vpop.eup %9171 }
 0x816   : > { %v3483_v20 = vsub.f32 %v15148_v7, %v11936_v41 }
 0x818   : > { %3561 = vrot.lane.b32.xlu0 %v3483_v20, %s9986_s17  ;;  %v11941_v17 = vpop.eup %9173 }
 0x819   : > { %v3484_v57 = vsub.f32 %v15149_v21, %v11941_v17  ;;  %v3072_v21 = vadd.f32 %v11698_v54, %v15132_v12 }
 0x81b   : > { %3563 = vrot.lane.b32.xlu1 %v3484_v57, %s9986_s17 }
 0x844   : > { %v3342_v8 = vpop.permute.xlu0 %3341 }
 0x845   : > { %v3421_v4 = vadd.f32 %v3342_v8, %v3069_v22 }
 0x847   : > { %9175 = vtanh.f32 %v3421_v4 }
 0x848   : > { %v3344_v56 = vpop.permute.xlu1 %3343 }
 0x849   : > { %v3422_v3 = vadd.f32 %v3344_v56, %v3070_v13  ;;  %v15150_v13 = vld [vmem:[#allocation26_spill] sm:$0xff] }
 0x84b   : > { %9177 = vtanh.f32 %v3422_v3 }
 0x84c   : > { %v3346_v7 = vpop.permute.xlu0 %3345 }
 0x84d   : > { %v3423_v20 = vadd.f32 %v3346_v7, %v3071_v35 }
 0x84f   : > { %9179 = vtanh.f32 %v3423_v20 }
 0x850   : > { %v3348_v57 = vpop.permute.xlu1 %3347  ;;  %v3534_v37 = vpop.permute.xlu0 %3533 }
 0x851   : > { %v3424_v63 = vadd.f32 %v3348_v57, %v3072_v21  ;;  %v3629_v53 = vmul.f32 %v11510_v6, %v3534_v37  ;;  %v15152_v6 = vld [vmem:[#allocation28_spill] sm:$0xff] }
 0x853   : > { %9181 = vtanh.f32 %v3424_v63  ;;  %v3074_v63 = vadd.f32 %v11714_v5, %v15132_v12 }
 0x854   : > { %v11954_v22 = vpop.eup %9175  ;;  %v3536_v8 = vpop.permute.xlu1 %3535 }
 0x855   : > { %v3630_v4 = vmul.f32 %v11519_v59, %v3536_v8  ;;  %v3485_v56 = vsub.f32 %v15150_v13, %v11954_v22  ;;  %v15151_v59 = vld [vmem:[#allocation27_spill] sm:$0xff] }
 0x856   : > { %v3350_v16 = vpop.permute.xlu0 %3349 }
 0x857   : > { %v3425_v3 = vadd.f32 %v3350_v16, %v3073_v9  ;;  %3695 = vrot.lane.b32.xlu1 %v3630_v4, %s9985_s13  ;;  %3565 = vrot.lane.b32.xlu0 %v3485_v56, %s9986_s17  ;;  %v3075_v9 = vadd.f32 %v11719_v10, %v15132_v12  ;;  %v3076_v56 = vadd.f32 %v11721_v52, %v15132_v12 }
 0x858   : > { %v11963_v54 = vpop.eup %9177 }
 0x859   : > { %9183 = vtanh.f32 %v3425_v3  ;;  %v3352_v35 = vpop.permute.xlu1 %3351  ;;  %v3486_v20 = vsub.f32 %v15151_v59, %v11963_v54 }
 0x85a   : > { %v3538_v7 = vpop.permute.xlu0 %3537  ;;  %v3426_v21 = vadd.f32 %v3352_v35, %v3074_v63 }
 0x85b   : > { %3567 = vrot.lane.b32.xlu1 %v3486_v20, %s9986_s17  ;;  %3693 = vrot.lane.b32.xlu0 %v3629_v53, %s9985_s13  ;;  %v3631_v10 = vmul.f32 %v11531_v23, %v3538_v7  ;;  %v15153_v53 = vld [vmem:[#allocation29_spill] sm:$0xff] }
 0x85c   : > { %v11972_v57 = vpop.eup %9179  ;;  %9185 = vtanh.f32 %v3426_v21 }
 0x85d   : > { %v3540_v8 = vpop.permute.xlu1 %3539  ;;  %v3487_v37 = vsub.f32 %v15152_v6, %v11972_v57 }
 0x85e   : > { %v3354_v5 = vpop.permute.xlu0 %3353  ;;  %v3632_v4 = vmul.f32 %v11543_v58, %v3540_v8  ;;  %v3077_v58 = vadd.f32 %v11726_v25, %v15132_v12  ;;  %v15155_v8 = vld [vmem:[#allocation30_spill] sm:$0xff]  ;;  %v3078_v25 = vadd.f32 %v11734_v61, %v15132_v12 }
 0x85f   : > { %v3427_v16 = vadd.f32 %v3354_v5, %v3075_v9  ;;  %3569 = vrot.lane.b32.xlu0 %v3487_v37, %s9986_s17  ;;  %v15154_v9 = vld [vmem:[#allocation44_spill] sm:$0xff] }
 0x860   : > { %v11980_v13 = vpop.eup %9181  ;;  %3699 = vrot.lane.b32.xlu1 %v3632_v4, %s9985_s13 }
 0x861   : > { %9187 = vtanh.f32 %v3427_v16  ;;  %v3356_v3 = vpop.permute.xlu1 %3355  ;;  %v3488_v35 = vsub.f32 %v15153_v53, %v11980_v13  ;;  %v15156_v16 = vld [vmem:[#allocation43_spill] sm:$0xff] }
 0x862   : > { %v3542_v63 = vpop.permute.xlu0 %3541  ;;  %v3428_v59 = vadd.f32 %v3356_v3, %v3076_v56  ;;  %v15157_v3 = vld [vmem:[#allocation31_spill] sm:$0xff] }
 0x863   : > { %3697 = vrot.lane.b32.xlu0 %v3631_v10, %s9985_s13  ;;  %v3633_v56 = vmul.f32 %v15156_v16, %v3542_v63  ;;  %v15159_v63 = vld [vmem:[#allocation32_spill] sm:$0xff] }
 0x864   : > { %9189 = vtanh.f32 %v3428_v59  ;;  %3571 = vrot.lane.b32.xlu1 %v3488_v35, %s9986_s17  ;;  %v3079_v35 = vadd.f32 %v11739_v0, %v15132_v12  ;;  %v3080_v0 = vadd.f32 %v11744_v49, %v15132_v12 }
 0x865   : > { %v3544_v21 = vpop.permute.xlu1 %3543 }
 0x866   : > { %v11992_v20 = vpop.eup %9183  ;;  %v3358_v52 = vpop.permute.xlu0 %3357  ;;  %v3634_v23 = vmul.f32 %v15154_v9, %v3544_v21  ;;  %v15158_v21 = vld [vmem:[#allocation46_spill] sm:$0xff] }
 0x867   : > { %v3429_v7 = vadd.f32 %v3358_v52, %v3077_v58  ;;  %v3489_v5 = vsub.f32 %v15155_v8, %v11992_v20 }
 0x868   : > { %3703 = vrot.lane.b32.xlu1 %v3634_v23, %s9985_s13 }
 0x869   : > { %9191 = vtanh.f32 %v3429_v7  ;;  %3573 = vrot.lane.b32.xlu0 %v3489_v5, %s9986_s17  ;;  %v12001_v6 = vpop.eup %9185  ;;  %v3360_v37 = vpop.permute.xlu1 %3359 }
 0x86a   : > { %v3546_v4 = vpop.permute.xlu0 %3545  ;;  %v3430_v10 = vadd.f32 %v3360_v37, %v3078_v25  ;;  %v3490_v53 = vsub.f32 %v15157_v3, %v12001_v6  ;;  %v15160_v25 = vld [vmem:[#allocation45_spill] sm:$0xff]  ;;  %v3081_v3 = vadd.f32 %v11751_v14, %v15132_v12  ;;  %v3082_v14 = vadd.f32 %v11763_v30, %v15132_v12 }
 0x86b   : > { %v3635_v37 = vmul.f32 %v15160_v25, %v3546_v4  ;;  %v15163_v4 = vld [vmem:[#allocation34_spill] sm:$0xff] }
 0x86c   : > { %9193 = vtanh.f32 %v3430_v10  ;;  %3575 = vrot.lane.b32.xlu1 %v3490_v53, %s9986_s17 }
 0x86d   : > { %3701 = vrot.lane.b32.xlu0 %v3633_v56, %s9985_s13  ;;  %v3548_v61 = vpop.permute.xlu1 %3547  ;;  %v15161_v56 = vld [vmem:[#allocation33_spill] sm:$0xff] }
 0x86e   : > { %v12010_v59 = vpop.eup %9187  ;;  %v3362_v58 = vpop.permute.xlu0 %3361  ;;  %v3636_v52 = vmul.f32 %v15158_v21, %v3548_v61  ;;  %v15162_v61 = vld [vmem:[#allocation48_spill] sm:$0xff] }
 0x86f   : > { %v3431_v9 = vadd.f32 %v3362_v58, %v3079_v35  ;;  %v3491_v23 = vsub.f32 %v15159_v63, %v12010_v59 }
 0x870   : > { %3707 = vrot.lane.b32.xlu1 %v3636_v52, %s9985_s13 }
 0x871   : > { %9195 = vtanh.f32 %v3431_v9  ;;  %3577 = vrot.lane.b32.xlu0 %v3491_v23, %s9986_s17  ;;  %v12019_v7 = vpop.eup %9189  ;;  %v3364_v8 = vpop.permute.xlu1 %3363 }
 0x872   : > { %v3550_v5 = vpop.permute.xlu0 %3549  ;;  %v3432_v16 = vadd.f32 %v3364_v8, %v3080_v0  ;;  %v3492_v10 = vsub.f32 %v15161_v56, %v12019_v7  ;;  %v15164_v0 = vld [vmem:[#allocation47_spill] sm:$0xff]  ;;  %v3083_v56 = vadd.f32 %v11772_v45, %v15132_v12  ;;  %v3084_v45 = vadd.f32 %v11785_v40, %v15132_v12  ;;  %v15171_v40 = vld [vmem:[#allocation38_spill] sm:$0xff] }
 0x873   : > { %v3637_v8 = vmul.f32 %v15164_v0, %v3550_v5  ;;  %v15167_v5 = vld [vmem:[#allocation36_spill] sm:$0xff]  ;;  %v15169_v0 = vld [vmem:[#allocation37_spill] sm:$0xff] }
 0x874   : > { %9197 = vtanh.f32 %v3432_v16  ;;  %3579 = vrot.lane.b32.xlu1 %v3492_v10, %s9986_s17 }
 0x875   : > { %3705 = vrot.lane.b32.xlu0 %v3635_v37, %s9985_s13  ;;  %v3552_v49 = vpop.permute.xlu1 %3551  ;;  %v15165_v37 = vld [vmem:[#allocation35_spill] sm:$0xff] }
 0x876   : > { %v12028_v53 = vpop.eup %9191  ;;  %v3366_v35 = vpop.permute.xlu0 %3365  ;;  %v3638_v58 = vmul.f32 %v15162_v61, %v3552_v49  ;;  %v15166_v49 = vld [vmem:[#allocation50_spill] sm:$0xff] }
 0x877   : > { %v3433_v21 = vadd.f32 %v3366_v35, %v3081_v3  ;;  %v3493_v52 = vsub.f32 %v15163_v4, %v12028_v53 }
 0x878   : > { %3711 = vrot.lane.b32.xlu1 %v3638_v58, %s9985_s13 }
 0x879   : > { %9199 = vtanh.f32 %v3433_v21  ;;  %3581 = vrot.lane.b32.xlu0 %v3493_v52, %s9986_s17  ;;  %v12037_v9 = vpop.eup %9193  ;;  %v3368_v63 = vpop.permute.xlu1 %3367  ;;  %v15168_v52 = vld [vmem:[#allocation49_spill] sm:$0xff] }
 0x87a   : > { %v3554_v23 = vpop.permute.xlu0 %3553  ;;  %v3434_v25 = vadd.f32 %v3368_v63, %v3082_v14  ;;  %v3494_v16 = vsub.f32 %v15165_v37, %v12037_v9 }
 0x87b   : > { %v3639_v14 = vmul.f32 %v15168_v52, %v3554_v23 }
 0x87c   : > { %9201 = vtanh.f32 %v3434_v25  ;;  %3583 = vrot.lane.b32.xlu1 %v3494_v16, %s9986_s17  ;;  %v15170_v16 = vld [vmem:[#allocation52_spill] sm:$0xff] }
 0x87d   : > { %3709 = vrot.lane.b32.xlu0 %v3637_v8, %s9985_s13  ;;  %v3556_v30 = vpop.permute.xlu1 %3555 }
 0x87e   : > { %v12046_v10 = vpop.eup %9195  ;;  %v3370_v3 = vpop.permute.xlu0 %3369  ;;  %v3640_v35 = vmul.f32 %v15166_v49, %v3556_v30  ;;  %v15172_v49 = vld [vmem:[#allocation51_spill] sm:$0xff] }
 0x87f   : > { %v3435_v61 = vadd.f32 %v3370_v3, %v3083_v56  ;;  %v3495_v58 = vsub.f32 %v15167_v5, %v12046_v10 }
 0x880   : > { %3715 = vrot.lane.b32.xlu1 %v3640_v35, %s9985_s13 }
 0x881   : > { %9203 = vtanh.f32 %v3435_v61  ;;  %3585 = vrot.lane.b32.xlu0 %v3495_v58, %s9986_s17  ;;  %v12055_v21 = vpop.eup %9197  ;;  %v3372_v4 = vpop.permute.xlu1 %3371  ;;  %v15173_v61 = vld [vmem:[#allocation39_spill] sm:$0xff] }
 0x882   : > { %v3436_v63 = vadd.f32 %v3372_v4, %v3084_v45  ;;  %v3496_v8 = vsub.f32 %v15169_v0, %v12055_v21  ;;  %v3558_v3 = vpop.permute.xlu0 %3557  ;;  %v15174_v4 = vld [vmem:[#allocation42_spill] sm:$0xff] }
 0x883   : > { %v3641_v35 = vmul.f32 %v15172_v49, %v3558_v3  ;;  %v8811_v49 = vld [vmem:[%s14841_s3 + $0x40] ss:$8 sps:$4 sm:$0xff]  }
 0x884   : > { %9205 = vtanh.f32 %v3436_v63  ;;  %3587 = vrot.lane.b32.xlu1 %v3496_v8, %s9986_s17  ;;  %v8808_v8 = vld [vmem:[%s14841_s3 + $0x50] ss:$8 sps:$4 sm:$0xff]  }
 0x885   : > { %3713 = vrot.lane.b32.xlu0 %v3639_v14, %s9985_s13  ;;  %v3560_v37 = vpop.permute.xlu1 %3559  ;;  %v15175_v14 = vld [vmem:[#allocation40_spill] sm:$0xff] }
 0x886   : > { %v12062_v25 = vpop.eup %9199  ;;  %v3642_v56 = vmul.f32 %v15170_v16, %v3560_v37  ;;  %v8810_v37 = vld [vmem:[%s14841_s3 + $0x54] ss:$8 sps:$4 sm:$0xff]  }
 0x887   : > { %v3497_v30 = vsub.f32 %v15171_v40, %v12062_v25  ;;  %3970 = vmatprep.subr.bf16.mxu0 %v8810_v37 }
 0x888   : > { %3719 = vrot.lane.b32.xlu1 %v3642_v56, %s9985_s13  ;;  %v15176_v56 = vld [vmem:[#allocation41_spill] sm:$0xff]  ;;  %3971 = vmatpush1.bf16.msra.mxu0 %v8808_v8 }
 0x889   : > { %3589 = vrot.lane.b32.xlu0 %v3497_v30, %s9986_s17  ;;  %v12069_v23 = vpop.eup %9201  ;;  %v15177_v30 = vld [vmem:[#allocation22_spill] sm:$0xff] }
 0x88a   : > { %v3498_v5 = vsub.f32 %v15173_v61, %v12069_v23  ;;  %v3562_v0 = vpop.permute.xlu0 %3561 }
 0x88b   : > { %v3643_v40 = vmul.f32 %v15176_v56, %v3562_v0 }
 0x88c   : > { %3591 = vrot.lane.b32.xlu1 %v3498_v5, %s9986_s17 }
 0x88d   : > { %3717 = vrot.lane.b32.xlu0 %v3641_v35, %s9985_s13  ;;  %v3564_v45 = vpop.permute.xlu1 %3563  ;;  %v8813_v35 = vld [vmem:[%s14841_s3 + $0x44] ss:$8 sps:$4 sm:$0xff]  }
 0x88e   : > { %v12076_v58 = vpop.eup %9203  ;;  %v3644_v52 = vmul.f32 %v15174_v4, %v3564_v45  ;;  %3972 = vmatprep.subr.bf16.mxu0 %v8813_v35 }
 0x88f   : > { %v3499_v63 = vsub.f32 %v15175_v14, %v12076_v58  ;;  %3973 = vmatpush1.bf16.msra.mxu0 %v8811_v49 }
 0x890   : > { %3723 = vrot.lane.b32.xlu1 %v3644_v52, %s9985_s13 }
 0x891   : > { %3593 = vrot.lane.b32.xlu0 %v3499_v63, %s9986_s17  ;;  %v12089_v16 = vpop.eup %9205 }
 0x892   : > { %v3500_v3 = vsub.f32 %v15177_v30, %v12089_v16 }
 0x894   : > { %3595 = vrot.lane.b32.xlu1 %v3500_v3, %s9986_s17 }
 0x895   : > { %3721 = vrot.lane.b32.xlu0 %v3643_v40, %s9985_s13 }
 0x8c9   : > { %v3696_v61 = vpop.permute.xlu1 %3695  ;;  %v3566_v5 = vpop.permute.xlu0 %3565 }
 0x8ca   : > { %v3645_v45 = vmul.f32 %v11755_v28, %v3566_v5  ;;  %v12105_v14 = vadd.f32 %v11800_v31, %v3696_v61 }
 0x8cc   : > { %3725 = vrot.lane.b32.xlu1 %v3645_v45, %s9985_s13  ;;  %15178 = vst [vmem:[#allocation8_spill] sm:$0xff] %v12105_v14 }
 0x8cd   : > { %v3568_v4 = vpop.permute.xlu1 %3567  ;;  %v3694_v52 = vpop.permute.xlu0 %3693 }
 0x8ce   : > { %v12108_v63 = vadd.f32 %v11788_v32, %v3694_v52  ;;  %v3646_v56 = vmul.f32 %v11766_v47, %v3568_v4 }
 0x8d0   : > { %15179 = vst [vmem:[#allocation9_spill] sm:$0xff] %v12108_v63  ;;  %v3821_v0 = vpack.c.bf16 %v12105_v14, %v12108_v63 }
 0x8d1   : > { %v3570_v8 = vpop.permute.xlu0 %3569 }
 0x8d2   : > { %v3700_v37 = vpop.permute.xlu1 %3699  ;;  %3858 = vrot.lane.b32.xlu0 %v3821_v0, %s9984_s12  ;;  %v3647_v32 = vmul.f32 %v11777_v11, %v3570_v8 }
 0x8d3   : > { %v12115_v40 = vadd.f32 %v11821_v48, %v3700_v37 }
 0x8d5   : > { %v3698_v28 = vpop.permute.xlu0 %3697  ;;  %15180 = vst [vmem:[#allocation12_spill] sm:$0xff] %v12115_v40 }
 0x8d6   : > { %v3572_v30 = vpop.permute.xlu1 %3571  ;;  %v12118_v31 = vadd.f32 %v11811_v44, %v3698_v28  ;;  %3727 = vrot.lane.b32.xlu0 %v3646_v56, %s9985_s13 }
 0x8d7   : > { %v3648_v47 = vmul.f32 %v11779_v55, %v3572_v30 }
 0x8d8   : > { %15181 = vst [vmem:[#allocation14_spill] sm:$0xff] %v12118_v31  ;;  %v3822_v3 = vpack.c.bf16 %v12115_v40, %v12118_v31 }
 0x8da   : > { %v3704_v49 = vpop.permute.xlu1 %3703  ;;  %3729 = vrot.lane.b32.xlu0 %v3647_v32, %s9985_s13  ;;  %3860 = vrot.lane.b32.xlu1 %v3822_v3, %s9984_s12 }
 0x8db   : > { %v3574_v35 = vpop.permute.xlu0 %3573  ;;  %v12129_v44 = vadd.f32 %v11849_v51, %v3704_v49 }
 0x8dc   : > { %v3649_v5 = vmul.f32 %v11804_v43, %v3574_v35 }
 0x8dd   : > { %15182 = vst [vmem:[#allocation11_spill] sm:$0xff] %v12129_v44 }
 0x8de   : > { %v3576_v48 = vpop.permute.xlu1 %3575  ;;  %3731 = vrot.lane.b32.xlu1 %v3648_v47, %s9985_s13 }
 0x8df   : > { %v3702_v61 = vpop.permute.xlu0 %3701  ;;  %v3650_v55 = vmul.f32 %v11816_v24, %v3576_v48 }
 0x8e0   : > { %v12132_v11 = vadd.f32 %v11838_v1, %v3702_v61 }
 0x8e2   : > { %15183 = vst [vmem:[#allocation16_spill] sm:$0xff] %v12132_v11  ;;  %v3823_v45 = vpack.c.bf16 %v12129_v44, %v12132_v11  ;;  %v3708_v4 = vpop.permute.xlu1 %3707  ;;  %3733 = vrot.lane.b32.xlu1 %v3649_v5, %s9985_s13 }
 0x8e3   : > { %v3578_v52 = vpop.permute.xlu0 %3577  ;;  %v12141_v51 = vadd.f32 %v11871_v42, %v3708_v4 }
 0x8e4   : > { %3862 = vrot.lane.b32.xlu0 %v3823_v45, %s9984_s12  ;;  %v3651_v43 = vmul.f32 %v11827_v29, %v3578_v52 }
 0x8e5   : > { %15184 = vst [vmem:[#allocation13_spill] sm:$0xff] %v12141_v51 }
 0x8e6   : > { %v3580_v0 = vpop.permute.xlu1 %3579 }
 0x8e7   : > { %v3706_v8 = vpop.permute.xlu0 %3705  ;;  %v3652_v24 = vmul.f32 %v11832_v27, %v3580_v0 }
 0x8e8   : > { %v12144_v1 = vadd.f32 %v11860_v2, %v3706_v8  ;;  %3735 = vrot.lane.b32.xlu0 %v3650_v55, %s9985_s13 }
 0x8ea   : > { %15185 = vst [vmem:[#allocation19_spill] sm:$0xff] %v12144_v1  ;;  %v3824_v37 = vpack.c.bf16 %v12141_v51, %v12144_v1  ;;  %v3712_v56 = vpop.permute.xlu1 %3711 }
 0x8eb   : > { %v3582_v28 = vpop.permute.xlu0 %3581  ;;  %v12154_v2 = vadd.f32 %v11893_v50, %v3712_v56 }
 0x8ec   : > { %3737 = vrot.lane.b32.xlu0 %v3651_v43, %s9985_s13  ;;  %3864 = vrot.lane.b32.xlu1 %v3824_v37, %s9984_s12  ;;  %v3653_v29 = vmul.f32 %v11843_v33, %v3582_v28 }
 0x8ed   : > { %15186 = vst [vmem:[#allocation15_spill] sm:$0xff] %v12154_v2 }
 0x8ee   : > { %v3584_v42 = vpop.permute.xlu1 %3583 }
 0x8ef   : > { %v3710_v30 = vpop.permute.xlu0 %3709  ;;  %v3654_v27 = vmul.f32 %v11854_v39, %v3584_v42 }
 0x8f0   : > { %v12157_v32 = vadd.f32 %v11882_v18, %v3710_v30  ;;  %3739 = vrot.lane.b32.xlu1 %v3652_v24, %s9985_s13  ;;  %v15195_v24 = vmov 0  }
 0x8f2   : > { %15187 = vst [vmem:[#allocation21_spill] sm:$0xff] %v12157_v32  ;;  %v3825_v3 = vpack.c.bf16 %v12154_v2, %v12157_v32  ;;  %v3716_v49 = vpop.permute.xlu1 %3715 }
 0x8f3   : > { %v3586_v35 = vpop.permute.xlu0 %3585  ;;  %v12167_v18 = vadd.f32 %v11915_v19, %v3716_v49 }
 0x8f4   : > { %3741 = vrot.lane.b32.xlu1 %v3653_v29, %s9985_s13  ;;  %3866 = vrot.lane.b32.xlu0 %v3825_v3, %s9984_s12  ;;  %v3655_v33 = vmul.f32 %v11865_v26, %v3586_v35 }
 0x8f5   : > { %15188 = vst [vmem:[#allocation17_spill] sm:$0xff] %v12167_v18 }
 0x8f6   : > { %v3588_v50 = vpop.permute.xlu1 %3587 }
 0x8f7   : > { %v3714_v47 = vpop.permute.xlu0 %3713  ;;  %v3656_v39 = vmul.f32 %v11876_v46, %v3588_v50 }
 0x8f8   : > { %v12170_v48 = vadd.f32 %v11904_v15, %v3714_v47  ;;  %3743 = vrot.lane.b32.xlu0 %v3654_v27, %s9985_s13 }
 0x8fa   : > { %15189 = vst [vmem:[#allocation23_spill] sm:$0xff] %v12170_v48  ;;  %v3826_v61 = vpack.c.bf16 %v12167_v18, %v12170_v48  ;;  %v3720_v5 = vpop.permute.xlu1 %3719 }
 0x8fb   : > { %v3590_v45 = vpop.permute.xlu0 %3589  ;;  %v12180_v15 = vadd.f32 %v11931_v60, %v3720_v5 }
 0x8fc   : > { %3745 = vrot.lane.b32.xlu0 %v3655_v33, %s9985_s13  ;;  %3868 = vrot.lane.b32.xlu1 %v3826_v61, %s9984_s12  ;;  %v3657_v26 = vmul.f32 %v11887_v38, %v3590_v45 }
 0x8fd   : > { %15190 = vst [vmem:[#allocation20_spill] sm:$0xff] %v12180_v15 }
 0x8fe   : > { %v3592_v19 = vpop.permute.xlu1 %3591 }
 0x8ff   : > { %v3718_v4 = vpop.permute.xlu0 %3717  ;;  %v3658_v8 = vmul.f32 %v11898_v36, %v3592_v19  ;;  %v15194_v36 = vld [vmem:[#allocation10_spill] sm:$0xff] }
 0x900   : > { %v12183_v52 = vadd.f32 %v11924_v34, %v3718_v4  ;;  %3747 = vrot.lane.b32.xlu1 %v3656_v39, %s9985_s13 }
 0x902   : > { %15191 = vst [vmem:[#allocation25_spill] sm:$0xff] %v12183_v52  ;;  %v3827_v55 = vpack.c.bf16 %v12180_v15, %v12183_v52  ;;  %v3724_v46 = vpop.permute.xlu1 %3723 }
 0x903   : > { %v3594_v0 = vpop.permute.xlu0 %3593  ;;  %v12193_v43 = vadd.f32 %v11941_v17, %v3724_v46 }
 0x904   : > { %3749 = vrot.lane.b32.xlu1 %v3657_v26, %s9985_s13  ;;  %3870 = vrot.lane.b32.xlu0 %v3827_v55, %s9984_s12  ;;  %v3659_v38 = vmul.f32 %v11909_v62, %v3594_v0 }
 0x905   : > { %15192 = vst [vmem:[#allocation24_spill] sm:$0xff] %v12193_v43 }
 0x906   : > { %v3596_v56 = vpop.permute.xlu1 %3595 }
 0x907   : > { %v3722_v60 = vpop.permute.xlu0 %3721  ;;  %v3660_v28 = vmul.f32 %v15194_v36, %v3596_v56 }
 0x908   : > { %v12196_v34 = vadd.f32 %v11936_v41, %v3722_v60  ;;  %3751 = vrot.lane.b32.xlu0 %v3658_v8, %s9985_s13 }
 0x90a   : > { %15193 = vst [vmem:[#allocation26_spill] sm:$0xff] %v12196_v34  ;;  %v3828_v37 = vpack.c.bf16 %v12193_v43, %v12196_v34 }
 0x90c   : > { %3753 = vrot.lane.b32.xlu0 %v3659_v38, %s9985_s13  ;;  %3872 = vrot.lane.b32.xlu1 %v3828_v37, %s9984_s12 }
 0x910   : > { %3755 = vrot.lane.b32.xlu1 %v3660_v28, %s9985_s13 }
 0x93e   : > { %v3726_v41 = vpop.permute.xlu1 %3725 }
 0x93f   : > { %v12209_v62 = vadd.f32 %v11954_v22, %v3726_v41 }
 0x941   : > { %15196 = vst [vmem:[#allocation27_spill] sm:$0xff] %v12209_v62 }
 0x944   : > { %v3859_v17 = vpop.permute.xlu0 %3858 }
 0x945   : > { %7991 = vmatmul.mubr.msk.bf16.vlgmr.msra.gmra.mxu0 %vm534_vm0, %v3859_v17 }
 0x946   : > { %4000 = vmatprep.mubr.bf16.mxu0 %v15195_v24 }
 0x948   : > { %v3728_v42 = vpop.permute.xlu0 %3727 }
 0x949   : > { %v12212_v30 = vadd.f32 %v11963_v54, %v3728_v42 }
 0x94b   : > { %15197 = vst [vmem:[#allocation28_spill] sm:$0xff] %v12212_v30  ;;  %v3829_v29 = vpack.c.bf16 %v12212_v30, %v12209_v62 }
 0x94c   : > { %v3861_v3 = vpop.permute.xlu1 %3860  ;;  %v3730_v49 = vpop.permute.xlu0 %3729 }
 0x94d   : > { %7992 = vmatmul.mubr.msk.bf16.gmra.mxu0 %vm534_vm0, %v3861_v3  ;;  %3874 = vrot.lane.b32.xlu0 %v3829_v29, %s9984_s12  ;;  %v12220_v27 = vadd.f32 %v11972_v57, %v3730_v49 }
 0x94e   : > { %4010 = vmatprep.mubr.bf16.mxu0 %v15195_v24 }
 0x94f   : > { %15198 = vst [vmem:[#allocation29_spill] sm:$0xff] %v12220_v27 }
 0x950   : > { %v3732_v35 = vpop.permute.xlu1 %3731 }
 0x951   : > { %v12223_v22 = vadd.f32 %v11980_v13, %v3732_v35 }
 0x953   : > { %15199 = vst [vmem:[#allocation44_spill] sm:$0xff] %v12223_v22  ;;  %v3830_v54 = vpack.c.bf16 %v12223_v22, %v12220_v27 }
 0x954   : > { %v3734_v47 = vpop.permute.xlu1 %3733 }
 0x955   : > { %3876 = vrot.lane.b32.xlu1 %v3830_v54, %s9984_s12  ;;  %v12231_v61 = vadd.f32 %v11992_v20, %v3734_v47 }
 0x956   : > { %v3863_v50 = vpop.permute.xlu0 %3862 }
 0x957   : > { %7993 = vmatmul.mubr.msk.bf16.gmra.mxu0 %vm534_vm0, %v3863_v50  ;;  %15200 = vst [vmem:[#allocation30_spill] sm:$0xff] %v12231_v61 }
 0x958   : > { %4020 = vmatprep.mubr.bf16.mxu0 %v15195_v24 }
 0x95a   : > { %v3736_v33 = vpop.permute.xlu0 %3735 }
 0x95b   : > { %v12234_v57 = vadd.f32 %v12001_v6, %v3736_v33 }
 0x95d   : > { %15201 = vst [vmem:[#allocation43_spill] sm:$0xff] %v12234_v57  ;;  %v3831_v13 = vpack.c.bf16 %v12234_v57, %v12231_v61 }
 0x95e   : > { %v3865_v5 = vpop.permute.xlu1 %3864  ;;  %v3738_v45 = vpop.permute.xlu0 %3737 }
 0x95f   : > { %7994 = vmatmul.mubr.msk.bf16.gmra.mxu0 %vm534_vm0, %v3865_v5  ;;  %3878 = vrot.lane.b32.xlu0 %v3831_v13, %s9984_s12  ;;  %v12242_v19 = vadd.f32 %v12010_v59, %v3738_v45  ;;  %v15212_v5 = vld [vmem:[#allocation7_spill] sm:$0xff] }
 0x960   : > { %4030 = vmatprep.mubr.bf16.mxu0 %v15195_v24 }
 0x961   : > { %15202 = vst [vmem:[#allocation31_spill] sm:$0xff] %v12242_v19 }
 0x962   : > { %v3740_v39 = vpop.permute.xlu1 %3739 }
 0x963   : > { %v12245_v20 = vadd.f32 %v12019_v7, %v3740_v39 }
 0x965   : > { %15203 = vst [vmem:[#allocation46_spill] sm:$0xff] %v12245_v20  ;;  %v3832_v6 = vpack.c.bf16 %v12245_v20, %v12242_v19 }
 0x966   : > { %v3867_v4 = vpop.permute.xlu0 %3866  ;;  %v3742_v26 = vpop.permute.xlu1 %3741 }
 0x967   : > { %3880 = vrot.lane.b32.xlu1 %v3832_v6, %s9984_s12  ;;  %7995 = vmatmul.mubr.msk.bf16.gmra.mxu0 %vm534_vm0, %v3867_v4  ;;  %v12253_v0 = vadd.f32 %v12028_v53, %v3742_v26 }
 0x968   : > { %4040 = vmatprep.mubr.bf16.mxu0 %v15195_v24 }
 0x969   : > { %15204 = vst [vmem:[#allocation32_spill] sm:$0xff] %v12253_v0 }
 0x96a   : > { %v3744_v55 = vpop.permute.xlu0 %3743 }
 0x96b   : > { %v12256_v59 = vadd.f32 %v12037_v9, %v3744_v55 }
 0x96d   : > { %15205 = vst [vmem:[#allocation45_spill] sm:$0xff] %v12256_v59  ;;  %v3833_v7 = vpack.c.bf16 %v12256_v59, %v12253_v0 }
 0x96e   : > { %v3869_v46 = vpop.permute.xlu1 %3868  ;;  %v3746_v8 = vpop.permute.xlu0 %3745 }
 0x96f   : > { %7996 = vmatmul.mubr.msk.bf16.gmra.mxu0 %vm534_vm0, %v3869_v46  ;;  %3882 = vrot.lane.b32.xlu0 %v3833_v7, %s9984_s12  ;;  %v12264_v38 = vadd.f32 %v12046_v10, %v3746_v8 }
 0x970   : > { %4050 = vmatprep.mubr.bf16.mxu0 %v15195_v24 }
 0x971   : > { %15206 = vst [vmem:[#allocation33_spill] sm:$0xff] %v12264_v38 }
 0x972   : > { %v3748_v60 = vpop.permute.xlu1 %3747 }
 0x973   : > { %v12267_v53 = vadd.f32 %v12055_v21, %v3748_v60 }
 0x975   : > { %15207 = vst [vmem:[#allocation48_spill] sm:$0xff] %v12267_v53  ;;  %v3834_v9 = vpack.c.bf16 %v12267_v53, %v12264_v38 }
 0x976   : > { %v3871_v37 = vpop.permute.xlu0 %3870  ;;  %v3750_v56 = vpop.permute.xlu1 %3749 }
 0x977   : > { %3884 = vrot.lane.b32.xlu1 %v3834_v9, %s9984_s12  ;;  %7997 = vmatmul.mubr.msk.bf16.gmra.mxu0 %vm534_vm0, %v3871_v37  ;;  %v12275_v28 = vadd.f32 %v12062_v25, %v3750_v56 }
 0x978   : > { %4060 = vmatprep.mubr.bf16.mxu0 %v15195_v24 }
 0x979   : > { %15208 = vst [vmem:[#allocation34_spill] sm:$0xff] %v12275_v28 }
 0x97a   : > { %v3752_v36 = vpop.permute.xlu0 %3751 }
 0x97b   : > { %v12278_v10 = vadd.f32 %v12069_v23, %v3752_v36 }
 0x97d   : > { %15209 = vst [vmem:[#allocation47_spill] sm:$0xff] %v12278_v10  ;;  %v3835_v21 = vpack.c.bf16 %v12278_v10, %v12275_v28 }
 0x97e   : > { %v3873_v17 = vpop.permute.xlu1 %3872  ;;  %v3754_v41 = vpop.permute.xlu0 %3753 }
 0x97f   : > { %7998 = vmatmul.mubr.msk.bf16.gmra.mxu0 %vm534_vm0, %v3873_v17  ;;  %3886 = vrot.lane.b32.xlu0 %v3835_v21, %s9984_s12  ;;  %v12286_v29 = vadd.f32 %v12076_v58, %v3754_v41 }
 0x980   : > { %4070 = vmatprep.mubr.bf16.mxu0 %v15195_v24 }
 0x981   : > { %15210 = vst [vmem:[#allocation35_spill] sm:$0xff] %v12286_v29 }
 0x982   : > { %v3756_v42 = vpop.permute.xlu1 %3755 }
 0x983   : > { %v12289_v25 = vadd.f32 %v12089_v16, %v3756_v42 }
 0x985   : > { %15211 = vst [vmem:[#allocation50_spill] sm:$0xff] %v12289_v25  ;;  %v3836_v23 = vpack.c.bf16 %v12289_v25, %v12286_v29 }
 0x987   : > { %3888 = vrot.lane.b32.xlu1 %v3836_v23, %s9984_s12 }
 0x9bf   : > { %v3875_v3 = vpop.permute.xlu0 %3874 }
 0x9c0   : > { %7999 = vmatmul.mubr.msk.bf16.gmra.mxu0 %vm534_vm0, %v3875_v3 }
 0x9c1   : > { %4080 = vmatprep.mubr.bf16.mxu0 %v15195_v24 }
 0x9c7   : > { %v3877_v49 = vpop.permute.xlu1 %3876 }
 0x9c8   : > { %8000 = vmatmul.mubr.msk.bf16.gmra.mxu0 %vm534_vm0, %v3877_v49 }
 0x9c9   : > { %4090 = vmatprep.mubr.bf16.mxu0 %v15195_v24 }
 0x9d1   : > { %v3879_v58 = vpop.permute.xlu0 %3878 }
 0x9d2   : > { %8001 = vmatmul.mubr.msk.bf16.gmra.mxu0 %vm534_vm0, %v3879_v58 }
 0x9d3   : > { %4100 = vmatprep.mubr.bf16.mxu0 %v15195_v24 }
 0x9d9   : > { %v3881_v16 = vpop.permute.xlu1 %3880 }
 0x9da   : > { %8002 = vmatmul.mubr.msk.bf16.gmra.mxu0 %vm534_vm0, %v3881_v16 }
 0x9db   : > { %4110 = vmatprep.mubr.bf16.mxu0 %v15195_v24 }
 0x9e1   : > { %v3883_v35 = vpop.permute.xlu0 %3882 }
 0x9e2   : > { %8003 = vmatmul.mubr.msk.bf16.gmra.mxu0 %vm534_vm0, %v3883_v35 }
 0x9e3   : > { %4120 = vmatprep.mubr.bf16.mxu0 %v15195_v24 }
 0x9e9   : > { %v3885_v54 = vpop.permute.xlu1 %3884 }
 0x9ea   : > { %8004 = vmatmul.mubr.msk.bf16.gmra.mxu0 %vm534_vm0, %v3885_v54 }
 0x9eb   : > { %4130 = vmatprep.mubr.bf16.mxu0 %v15195_v24 }
 0x9f1   : > { %v3887_v50 = vpop.permute.xlu0 %3886 }
 0x9f2   : > { %8005 = vmatmul.mubr.msk.bf16.gmra.mxu0 %vm534_vm0, %v3887_v50 }
 0x9f3   : > { %4140 = vmatprep.mubr.bf16.mxu0 %v15195_v24 }
 0x9f9   : > { %v3889_v47 = vpop.permute.xlu1 %3888 }
 0x9fa   : > { %8006 = vmatmul.mubr.msk.bf16.gmra.mxu0 %vm534_vm0, %v3889_v47 }
 0x9fb   : > { %5521 = vmatprep.mubr.bf16.mxu0 %v15195_v24 }
 0xa05   : > { %v12310_v33 = vpop.f32.mrf.mxu0 }
 0xa07   : > { %v12312_v13 = vpop.f32.mrf.mxu0 }
 0xa08   : > { %v4616_v45 = vadd.f32 %v12312_v13, %v15212_v5 }
 0xa09   : > { %v12316_v39 = vpop.f32.mrf.mxu0 }
 0xa0a   : > { %4680 = vrot.lane.b32.xlu0 %v4616_v45, %s9984_s12 }
 0xa0b   : > { %v12321_v4 = vpop.f32.mrf.mxu0 }
 0xa0c   : > { %v4617_v26 = vadd.f32 %v12321_v4, %v15212_v5 }
 0xa0d   : > { %v12325_v55 = vpop.f32.mrf.mxu0 }
 0xa0e   : > { %4682 = vrot.lane.b32.xlu1 %v4617_v26, %s9984_s12 }
 0xa0f   : > { %v12328_v7 = vpop.f32.mrf.mxu0 }
 0xa10   : > { %v4618_v46 = vadd.f32 %v12328_v7, %v15212_v5 }
 0xa11   : > { %v12332_v8 = vpop.f32.mrf.mxu0 }
 0xa12   : > { %4684 = vrot.lane.b32.xlu0 %v4618_v46, %s9984_s12 }
 0xa13   : > { %v12337_v9 = vpop.f32.mrf.mxu0 }
 0xa14   : > { %v4619_v37 = vadd.f32 %v12337_v9, %v15212_v5 }
 0xa16   : > { %4686 = vrot.lane.b32.xlu1 %v4619_v37, %s9984_s12 }
 0xa17   : > { %v12341_v56 = vpop.f32.mrf.mxu0 }
 0xa19   : > { %v12344_v36 = vpop.f32.mrf.mxu0 }
 0xa1a   : > { %v4620_v21 = vadd.f32 %v12344_v36, %v15212_v5 }
 0xa1b   : > { %v12348_v17 = vpop.f32.mrf.mxu0 }
 0xa1c   : > { %4688 = vrot.lane.b32.xlu0 %v4620_v21, %s9984_s12 }
 0xa1d   : > { %v12353_v42 = vpop.f32.mrf.mxu0 }
 0xa1e   : > { %v4621_v23 = vadd.f32 %v12353_v42, %v15212_v5 }
 0xa1f   : > { %v12357_v3 = vpop.f32.mrf.mxu0 }
 0xa20   : > { %4690 = vrot.lane.b32.xlu1 %v4621_v23, %s9984_s12 }
 0xa21   : > { %v12360_v49 = vpop.f32.mrf.mxu0 }
 0xa22   : > { %v4622_v58 = vadd.f32 %v12360_v49, %v15212_v5 }
 0xa23   : > { %v12364_v16 = vpop.f32.mrf.mxu0 }
 0xa24   : > { %4692 = vrot.lane.b32.xlu0 %v4622_v58, %s9984_s12 }
 0xa25   : > { %v12369_v54 = vpop.f32.mrf.mxu0 }
 0xa26   : > { %v4623_v50 = vadd.f32 %v12369_v54, %v15212_v5 }
 0xa27   : > { %v12373_v47 = vpop.f32.mrf.mxu0 }
 0xa28   : > { %4694 = vrot.lane.b32.xlu1 %v4623_v50, %s9984_s12 }
 0xa29   : > { %v12376_v45 = vpop.f32.mrf.mxu0 }
 0xa2a   : > { %v4624_v26 = vadd.f32 %v12376_v45, %v15212_v5 }
 0xa2b   : > { %v12380_v46 = vpop.f32.mrf.mxu0 }
 0xa2c   : > { %4696 = vrot.lane.b32.xlu0 %v4624_v26, %s9984_s12 }
 0xa2d   : > { %v12385_v21 = vpop.f32.mrf.mxu0 }
 0xa2e   : > { %v4625_v23 = vadd.f32 %v12385_v21, %v15212_v5 }
 0xa2f   : > { %v12389_v58 = vpop.f32.mrf.mxu0 }
 0xa30   : > { %4698 = vrot.lane.b32.xlu1 %v4625_v23, %s9984_s12 }
 0xa31   : > { %v12392_v50 = vpop.f32.mrf.mxu0 }
 0xa32   : > { %v4626_v6 = vadd.f32 %v12392_v50, %v15212_v5 }
 0xa33   : > { %v12396_v60 = vpop.f32.mrf.mxu0 }
 0xa34   : > { %4700 = vrot.lane.b32.xlu0 %v4626_v6, %s9984_s12 }
 0xa35   : > { %v12401_v26 = vpop.f32.mrf.mxu0 }
 0xa36   : > { %v4627_v35 = vadd.f32 %v12401_v26, %v15212_v5 }
 0xa37   : > { %v4052_v37 = vpop.f32.mrf.mxu0 }
 0xa38   : > { %4702 = vrot.lane.b32.xlu1 %v4627_v35, %s9984_s12 }
 0xa39   : > { %v12406_v23 = vpop.f32.mrf.mxu0 }
 0xa3a   : > { %v4628_v24 = vadd.f32 %v12406_v23, %v15212_v5 }
 0xa3b   : > { %v4056_v25 = vpop.f32.mrf.mxu0 }
 0xa3c   : > { %v4157_v29 = vpack.c.bf16 %v4056_v25, %v4052_v37  ;;  %4704 = vrot.lane.b32.xlu0 %v4628_v24, %s9984_s12 }
 0xa3d   : > { %v12411_v41 = vpop.f32.mrf.mxu0 }
 0xa3e   : > { %v4629_v6 = vadd.f32 %v12411_v41, %v15212_v5 }
 0xa3f   : > { %v4062_v10 = vpop.f32.mrf.mxu0 }
 0xa40   : > { %4706 = vrot.lane.b32.xlu1 %v4629_v6, %s9984_s12 }
 0xa41   : > { %v12416_v28 = vpop.f32.mrf.mxu0 }
 0xa42   : > { %v4630_v35 = vadd.f32 %v12416_v28, %v15212_v5 }
 0xa43   : > { %v4066_v53 = vpop.f32.mrf.mxu0 }
 0xa44   : > { %v4158_v38 = vpack.c.bf16 %v4066_v53, %v4062_v10  ;;  %4708 = vrot.lane.b32.xlu0 %v4630_v35, %s9984_s12 }
 0xa45   : > { %v12421_v25 = vpop.f32.mrf.mxu0 }
 0xa46   : > { %v4631_v24 = vadd.f32 %v12421_v25, %v15212_v5 }
 0xa48   : > { %4710 = vrot.lane.b32.xlu1 %v4631_v24, %s9984_s12 }
 0xa80   : > { %v4072_v37 = vpop.f32.mrf.mxu0 }
 0xa82   : > { %v12426_v59 = vpop.f32.mrf.mxu0 }
 0xa84   : > { %v4076_v6 = vpop.f32.mrf.mxu0 }
 0xa85   : > { %v4159_v0 = vpack.c.bf16 %v4076_v6, %v4072_v37 }
 0xa86   : > { %v12428_v20 = vpop.f32.mrf.mxu0 }
 0xa88   : > { %v4082_v19 = vpop.f32.mrf.mxu0 }
 0xa8a   : > { %v12430_v57 = vpop.f32.mrf.mxu0 }
 0xa8c   : > { %v4086_v53 = vpop.f32.mrf.mxu0 }
 0xa8d   : > { %v4160_v10 = vpack.c.bf16 %v4086_v53, %v4082_v19 }
 0xa8e   : > { %v12432_v35 = vpop.f32.mrf.mxu0 }
 0xa92   : > { %v4092_v61 = vpop.f32.mrf.mxu0 }
 0xa94   : > { %v12434_v22 = vpop.f32.mrf.mxu0 }
 0xa96   : > { %v4096_v27 = vpop.f32.mrf.mxu0 }
 0xa98   : > { %v12436_v30 = vpop.f32.mrf.mxu0 }
 0xa9a   : > { %v4102_v24 = vpop.f32.mrf.mxu0 }
 0xa9c   : > { %v12438_v62 = vpop.f32.mrf.mxu0 }
 0xa9e   : > { %v4106_v43 = vpop.f32.mrf.mxu0 }
 0xaa0   : > { %v12440_v37 = vpop.f32.mrf.mxu0 }
 0xaa2   : > { %v4112_v6 = vpop.f32.mrf.mxu0 }
 0xaa4   : > { %v12442_v34 = vpop.f32.mrf.mxu0 }
 0xaa6   : > { %v4116_v15 = vpop.f32.mrf.mxu0 }
 0xaa7   : > { %v4163_v12 = vpack.c.bf16 %v4116_v15, %v4112_v6  ;;  %v9861_v15 = vld [vmem:[%s10241_s18 + $0x34] ss:$8 sps:$4 sm:$0xff]   ;;  %v9882_v6 = vld [vmem:[%s10241_s18 + $0xd0] ss:$8 sps:$4 sm:$0xff]  }
 0xaa8   : > { %v12444_v52 = vpop.f32.mrf.mxu0 }
 0xaaa   : > { %v4122_v19 = vpop.f32.mrf.mxu0 }
 0xaac   : > { %v12446_v53 = vpop.f32.mrf.mxu0 }
 0xaae   : > { %v4126_v18 = vpop.f32.mrf.mxu0 }
 0xaaf   : > { %v4164_v63 = vpack.c.bf16 %v4126_v18, %v4122_v19  ;;  %v9860_v18 = vld [vmem:[%s10241_s18 + $0x20] ss:$8 sps:$4 sm:$0xff]   ;;  %v9883_v19 = vld [vmem:[%s10241_s18 + $0xe4] ss:$8 sps:$4 sm:$0xff]  }
 0xab0   : > { %v12448_v48 = vpop.f32.mrf.mxu0 }
 0xab2   : > { %v4132_v2 = vpop.f32.mrf.mxu0 }
 0xab4   : > { %v12450_v32 = vpop.f32.mrf.mxu0 }
 0xab5   : > { %15213 = vst [vmem:[#allocation36_spill] sm:$0xff] %v12450_v32  ;;  %v15215_v32 = vpack.c.bf16 %v12396_v60, %v12389_v58  ;;  %v9872_v60 = vld [vmem:[%s10241_s18 + $0x80] ss:$8 sps:$4 sm:$0xff]   ;;  %v9879_v58 = vld [vmem:[%s10241_s18 + $0xc4] ss:$8 sps:$4 sm:$0xff]  }
 0xab6   : > { %v4136_v51 = vpop.f32.mrf.mxu0 }
 0xab7   : > { %v4165_v14 = vpack.c.bf16 %v4136_v51, %v4132_v2  ;;  %v9856_v51 = vld [vmem:[%s10241_s18] ss:$8 sps:$4 sm:$0xff]   ;;  %v9858_v2 = vld [vmem:[%s10241_s18 + $0x10] ss:$8 sps:$4 sm:$0xff]  }
 0xab8   : > { %v12452_v1 = vpop.f32.mrf.mxu0 }
 0xab9   : > { %15214 = vst [vmem:[#allocation49_spill] sm:$0xff] %v12452_v1  ;;  %v4162_v1 = vpack.c.bf16 %v4106_v43, %v4102_v24  ;;  %v9862_v43 = vld [vmem:[%s10241_s18 + $0x30] ss:$8 sps:$4 sm:$0xff]   ;;  %v9881_v24 = vld [vmem:[%s10241_s18 + $0xd4] ss:$8 sps:$4 sm:$0xff]  }
 0xaba   : > { %v4142_v44 = vpop.f32.mrf.mxu0 }
 0xabc   : > { %v12454_v11 = vpop.f32.mrf.mxu0 }
 0xabe   : > { %v4146_v40 = vpop.f32.mrf.mxu0 }
 0xabf   : > { %v4166_v31 = vpack.c.bf16 %v4146_v40, %v4142_v44  ;;  %v15216_v40 = vpack.c.bf16 %v12380_v46, %v12373_v47  ;;  %v15220_v44 = vpack.c.bf16 %v12316_v39, %v12310_v33  ;;  %v9868_v33 = vld [vmem:[%s10241_s18 + $0x60] ss:$8 sps:$4 sm:$0xff]   ;;  %v9869_v39 = vld [vmem:[%s10241_s18 + $0x74] ss:$8 sps:$4 sm:$0xff]   ;;  %v9878_v46 = vld [vmem:[%s10241_s18 + $0xb0] ss:$8 sps:$4 sm:$0xff]  }
 0xac0   : > { %v9877_v47 = vld [vmem:[%s10241_s18 + $0xb4] ss:$8 sps:$4 sm:$0xff]  }
 0xac1   : > { %8363 = vmatprep.subr.bf16.mxu1 %v4166_v31  ;;  %v15217_v31 = vpack.c.bf16 %v12364_v16, %v12357_v3  ;;  %v9875_v3 = vld [vmem:[%s10241_s18 + $0xa4] ss:$8 sps:$4 sm:$0xff]   ;;  %v9876_v16 = vld [vmem:[%s10241_s18 + $0xa0] ss:$8 sps:$4 sm:$0xff]  }
 0xac2   : > { %8364 = vmatpush3.bf16.msra.mxu1 %v4158_v38  ;;  %v9866_v38 = vld [vmem:[%s10241_s18 + $0x50] ss:$8 sps:$4 sm:$0xff]  }
 0xac3   : > { %8365 = vmatprep.subr.bf16.mxu1 %v4165_v14  ;;  %v4161_v14 = vpack.c.bf16 %v4096_v27, %v4092_v61  ;;  %v9863_v27 = vld [vmem:[%s10241_s18 + $0x44] ss:$8 sps:$4 sm:$0xff]   ;;  %v9864_v61 = vld [vmem:[%s10241_s18 + $0x40] ss:$8 sps:$4 sm:$0xff]  }
 0xac6   : > { %8366 = vmatpush3.bf16.msra.mxu1 %v4157_v29  ;;  %v9867_v29 = vld [vmem:[%s10241_s18 + $0x64] ss:$8 sps:$4 sm:$0xff]  }
 0xac7   : > { %8367 = vmatprep.subr.bf16.mxu1 %v4164_v63  ;;  %v15218_v63 = vpack.c.bf16 %v12348_v17, %v12341_v56  ;;  %v9873_v56 = vld [vmem:[%s10241_s18 + $0x94] ss:$8 sps:$4 sm:$0xff]   ;;  %v9874_v17 = vld [vmem:[%s10241_s18 + $0x90] ss:$8 sps:$4 sm:$0xff]  }
 0xaca   : > { %8368 = vmatpush3.bf16.msra.mxu1 %v15215_v32  ;;  %v9859_v32 = vld [vmem:[%s10241_s18 + $0x24] ss:$8 sps:$4 sm:$0xff]  }
 0xacb   : > { %8369 = vmatprep.subr.bf16.mxu1 %v4163_v12  ;;  %v15219_v12 = vpack.c.bf16 %v12332_v8, %v12325_v55  ;;  %v9870_v55 = vld [vmem:[%s10241_s18 + $0x70] ss:$8 sps:$4 sm:$0xff]   ;;  %v9871_v8 = vld [vmem:[%s10241_s18 + $0x84] ss:$8 sps:$4 sm:$0xff]  }
 0xace   : > { %8370 = vmatpush3.bf16.msra.mxu1 %v15216_v40  ;;  %v9884_v40 = vld [vmem:[%s10241_s18 + $0xe0] ss:$8 sps:$4 sm:$0xff]  }
 0xacf   : > { %8371 = vmatprep.subr.bf16.mxu1 %v4162_v1  ;;  %v9857_v1 = vld [vmem:[%s10241_s18 + $0x14] ss:$8 sps:$4 sm:$0xff]  }
 0xad2   : > { %8372 = vmatpush3.bf16.msra.mxu1 %v15217_v31  ;;  %v9886_v31 = vld [vmem:[%s10241_s18 + $0xf0] ss:$8 sps:$4 sm:$0xff]  }
 0xad3   : > { %8373 = vmatprep.subr.bf16.mxu1 %v4161_v14  ;;  %v9885_v14 = vld [vmem:[%s10241_s18 + $0xf4] ss:$8 sps:$4 sm:$0xff]  }
 0xad6   : > { %8374 = vmatpush3.bf16.msra.mxu1 %v15218_v63  ;;  %v9887_v63 = vld [vmem:[%s10241_s18 + $0x4] ss:$8 sps:$4 sm:$0xff]  }
 0xad7   : > { %8375 = vmatprep.subr.bf16.mxu1 %v4160_v10  ;;  %v9880_v10 = vld [vmem:[%s10241_s18 + $0xc0] ss:$8 sps:$4 sm:$0xff]  }
 0xada   : > { %8376 = vmatpush3.bf16.msra.mxu1 %v15219_v12 }
 0xadb   : > { %8377 = vmatprep.subr.bf16.mxu1 %v4159_v0  ;;  %v9865_v0 = vld [vmem:[%s10241_s18 + $0x54] ss:$8 sps:$4 sm:$0xff]  }
 0xade   : > { %8378 = vmatpush3.bf16.msra.mxu1 %v15220_v44 }
 0xae1   : > { %4200 = vmatmul.mubr.bf16.vlgmr.msra.gmra.mxu1 %v9856_v51 }
 0xae2   : > { %4207 = vmatprep.mubr.bf16.mxu1 %v9857_v1 }
 0xae9   : > { %4208 = vmatmul.mubr.bf16.gmra.mxu1 %v9858_v2 }
 0xaea   : > { %4215 = vmatprep.mubr.bf16.mxu1 %v9859_v32 }
 0xaf1   : > { %4216 = vmatmul.mubr.bf16.gmra.mxu1 %v9860_v18  ;;  %v12513_v18 = vld [vmem:[%s14842_s4] ss:$0 sm:$0xff] }
 0xaf2   : > { %4223 = vmatprep.mubr.bf16.mxu1 %v9861_v15 }
 0xaf9   : > { %4224 = vmatmul.mubr.bf16.gmra.mxu1 %v9862_v43 }
 0xafa   : > { %4231 = vmatprep.mubr.bf16.mxu1 %v9863_v27 }
 0xb01   : > { %4232 = vmatmul.mubr.bf16.gmra.mxu1 %v9864_v61 }
 0xb02   : > { %4239 = vmatprep.mubr.bf16.mxu1 %v9865_v0 }
 0xb09   : > { %4240 = vmatmul.mubr.bf16.gmra.mxu1 %v9866_v38 }
 0xb0a   : > { %4247 = vmatprep.mubr.bf16.mxu1 %v9867_v29 }
 0xb11   : > { %4248 = vmatmul.mubr.bf16.gmra.mxu1 %v9868_v33 }
 0xb12   : > { %4255 = vmatprep.mubr.bf16.mxu1 %v9869_v39 }
 0xb19   : > { %4256 = vmatmul.mubr.bf16.gmra.mxu1 %v9870_v55 }
 0xb1a   : > { %4263 = vmatprep.mubr.bf16.mxu1 %v9871_v8 }
 0xb21   : > { %4264 = vmatmul.mubr.bf16.gmra.mxu1 %v9872_v60 }
 0xb22   : > { %4271 = vmatprep.mubr.bf16.mxu1 %v9873_v56 }
 0xb29   : > { %4272 = vmatmul.mubr.bf16.gmra.mxu1 %v9874_v17 }
 0xb2a   : > { %4279 = vmatprep.mubr.bf16.mxu1 %v9875_v3 }
 0xb31   : > { %4280 = vmatmul.mubr.bf16.gmra.mxu1 %v9876_v16 }
 0xb32   : > { %4287 = vmatprep.mubr.bf16.mxu1 %v9877_v47 }
 0xb39   : > { %4288 = vmatmul.mubr.bf16.gmra.mxu1 %v9878_v46 }
 0xb3a   : > { %4295 = vmatprep.mubr.bf16.mxu1 %v9879_v58 }
 0xb41   : > { %4296 = vmatmul.mubr.bf16.gmra.mxu1 %v9880_v10 }
 0xb42   : > { %4303 = vmatprep.mubr.bf16.mxu1 %v9881_v24 }
 0xb49   : > { %4304 = vmatmul.mubr.bf16.gmra.mxu1 %v9882_v6 }
 0xb4a   : > { %4311 = vmatprep.mubr.bf16.mxu1 %v9883_v19 }
 0xb51   : > { %4312 = vmatmul.mubr.bf16.gmra.mxu1 %v9884_v40 }
 0xb52   : > { %4319 = vmatprep.mubr.bf16.mxu1 %v9885_v14 }
 0xb59   : > { %4320 = vmatmul.mubr.bf16.gmra.mxu1 %v9886_v31 }
 0xb5a   : > { %5730 = vmatprep.mubr.bf16.mxu1 %v9887_v63 }
 0xba1   : > { %v8379_v12 = vpop.f32.mrf.mxu1 }
 0xba3   : > { %v8380_v44 = vpop.f32.mrf.mxu1 }
 0xba4   : > { %v12506_v51 = vadd.f32 %v8380_v44, %v8379_v12 }
 0xba5   : > { %v8382_v1 = vpop.f32.mrf.mxu1 }
 0xba6   : > { %v4328_v2 = vadd.f32 %v12506_v51, %v12312_v13 }
 0xba7   : > { %v8383_v32 = vpop.f32.mrf.mxu1 }
 0xba8   : > { %v4360_v15 = vadd.f32 %v12513_v18, %v4328_v2  ;;  %v12516_v43 = vadd.f32 %v8383_v32, %v8382_v1 }
 0xba9   : > { %v8385_v27 = vpop.f32.mrf.mxu1 }
 0xbaa   : > { %v8007_v61 = vmul.f32 -1.442695, %v4360_v15  ;;  %v4329_v0 = vadd.f32 %v12516_v43, %v12321_v4 }
 0xbab   : > { %v8386_v38 = vpop.f32.mrf.mxu1 }
 0xbac   : > { %9207 = vpow2.f32 %v8007_v61  ;;  %v4361_v29 = vadd.f32 %v12513_v18, %v4329_v0  ;;  %v12521_v13 = vadd.f32 %v8386_v38, %v8385_v27 }
 0xbad   : > { %v8388_v33 = vpop.f32.mrf.mxu1 }
 0xbae   : > { %v8008_v39 = vmul.f32 -1.442695, %v4361_v29  ;;  %v4330_v55 = vadd.f32 %v12521_v13, %v12328_v7 }
 0xbaf   : > { %v8389_v8 = vpop.f32.mrf.mxu1 }
 0xbb0   : > { %9209 = vpow2.f32 %v8008_v39  ;;  %v4362_v60 = vadd.f32 %v12513_v18, %v4330_v55  ;;  %v12526_v56 = vadd.f32 %v8389_v8, %v8388_v33 }
 0xbb1   : > { %v8391_v17 = vpop.f32.mrf.mxu1 }
 0xbb2   : > { %v8009_v3 = vmul.f32 -1.442695, %v4362_v60  ;;  %v4331_v4 = vadd.f32 %v12526_v56, %v12337_v9 }
 0xbb3   : > { %v8392_v16 = vpop.f32.mrf.mxu1 }
 0xbb4   : > { %9211 = vpow2.f32 %v8009_v3  ;;  %v4363_v47 = vadd.f32 %v12513_v18, %v4331_v4  ;;  %v12531_v46 = vadd.f32 %v8392_v16, %v8391_v17 }
 0xbb5   : > { %v8394_v58 = vpop.f32.mrf.mxu1 }
 0xbb6   : > { %v8010_v10 = vmul.f32 -1.442695, %v4363_v47  ;;  %v4332_v7 = vadd.f32 %v12531_v46, %v12344_v36 }
 0xbb7   : > { %v8395_v24 = vpop.f32.mrf.mxu1 }
 0xbb8   : > { %9213 = vpow2.f32 %v8010_v10  ;;  %v4364_v6 = vadd.f32 %v12513_v18, %v4332_v7  ;;  %v12536_v19 = vadd.f32 %v8395_v24, %v8394_v58  ;;  %v4681_v24 = vpop.permute.xlu0 %4680 }
 0xbb9   : > { %v9208_v40 = vpop.eup %9207  ;;  %v8397_v14 = vpop.f32.mrf.mxu1 }
 0xbba   : > { %v4488_v9 = vadd.f32 1.0, %v9208_v40  ;;  %v8011_v31 = vmul.f32 -1.442695, %v4364_v6  ;;  %v4333_v63 = vadd.f32 %v12536_v19, %v12353_v42 }
 0xbbb   : > { %v8398_v12 = vpop.f32.mrf.mxu1 }
 0xbbc   : > { %9215 = vrcp.f32 %v4488_v9  ;;  %v4365_v44 = vadd.f32 %v12513_v18, %v4333_v63  ;;  %v12541_v1 = vadd.f32 %v8398_v12, %v8397_v14 }
 0xbbd   : > { %v9210_v36 = vpop.eup %9209  ;;  %9217 = vpow2.f32 %v8011_v31  ;;  %v8400_v2 = vpop.f32.mrf.mxu1 }
 0xbbe   : > { %v4489_v32 = vadd.f32 1.0, %v9210_v36  ;;  %v8012_v15 = vmul.f32 -1.442695, %v4365_v44  ;;  %v4334_v27 = vadd.f32 %v12541_v1, %v12360_v49 }
 0xbbf   : > { %v8401_v61 = vpop.f32.mrf.mxu1 }
 0xbc0   : > { %9219 = vrcp.f32 %v4489_v32  ;;  %v4366_v0 = vadd.f32 %v12513_v18, %v4334_v27  ;;  %v12546_v38 = vadd.f32 %v8401_v61, %v8400_v2  ;;  %v4683_v2 = vpop.permute.xlu1 %4682 }
 0xbc1   : > { %v9212_v42 = vpop.eup %9211  ;;  %9221 = vpow2.f32 %v8012_v15  ;;  %v8403_v29 = vpop.f32.mrf.mxu1 }
 0xbc2   : > { %v4490_v33 = vadd.f32 1.0, %v9212_v42  ;;  %v8013_v39 = vmul.f32 -1.442695, %v4366_v0  ;;  %v4335_v55 = vadd.f32 %v12546_v38, %v12369_v54 }
 0xbc3   : > { %v8404_v8 = vpop.f32.mrf.mxu1 }
 0xbc4   : > { %9223 = vrcp.f32 %v4490_v33  ;;  %v4367_v60 = vadd.f32 %v12513_v18, %v4335_v55  ;;  %v12551_v17 = vadd.f32 %v8404_v8, %v8403_v29  ;;  %v4685_v8 = vpop.permute.xlu0 %4684 }
 0xbc5   : > { %v9214_v49 = vpop.eup %9213  ;;  %9225 = vpow2.f32 %v8013_v39  ;;  %v8406_v3 = vpop.f32.mrf.mxu1 }
 0xbc6   : > { %v4491_v4 = vadd.f32 1.0, %v9214_v49  ;;  %v8014_v16 = vmul.f32 -1.442695, %v4367_v60  ;;  %v4336_v47 = vadd.f32 %v12551_v17, %v12376_v45 }
 0xbc7   : > { %v8407_v58 = vpop.f32.mrf.mxu1 }
 0xbc8   : > { %9227 = vrcp.f32 %v4491_v4  ;;  %v4368_v10 = vadd.f32 %v12513_v18, %v4336_v47  ;;  %v12556_v7 = vadd.f32 %v8407_v58, %v8406_v3 }
 0xbc9   : > { %v12558_v54 = vpop.eup %9215  ;;  %9229 = vpow2.f32 %v8014_v16  ;;  %v8409_v6 = vpop.f32.mrf.mxu1 }
 0xbca   : > { %v9218_v40 = vpop.eup %9217  ;;  %v8015_v14 = vmul.f32 -1.442695, %v4368_v10  ;;  %v4337_v9 = vadd.f32 %v12556_v7, %v12385_v21  ;;  %v4776_v31 = vmul.f32 %v12558_v54, %v4681_v24  ;;  %v4632_v21 = vadd.f32 %v12426_v59, %v15212_v5 }
 0xbcb   : > { %v4492_v63 = vadd.f32 1.0, %v9218_v40  ;;  %v8410_v45 = vpop.f32.mrf.mxu1  ;;  %v4687_v40 = vpop.permute.xlu1 %4686 }
 0xbcc   : > { %9231 = vpow2.f32 %v8015_v14  ;;  %v4369_v12 = vadd.f32 %v12513_v18, %v4337_v9  ;;  %v12564_v44 = vadd.f32 %v8410_v45, %v8409_v6  ;;  %4840 = vrot.lane.b32.xlu0 %v4776_v31, %s9984_s12 }
 0xbcd   : > { %v12567_v36 = vpop.eup %9219  ;;  %9233 = vrcp.f32 %v4492_v63  ;;  %v8412_v32 = vpop.f32.mrf.mxu1 }
 0xbce   : > { %v9222_v15 = vpop.eup %9221  ;;  %v8016_v27 = vmul.f32 -1.442695, %v4369_v12  ;;  %v4338_v61 = vadd.f32 %v12564_v44, %v12392_v50  ;;  %v4777_v0 = vmul.f32 %v12567_v36, %v4683_v2  ;;  %v4633_v50 = vadd.f32 %v12428_v20, %v15212_v5 }
 0xbcf   : > { %v4493_v42 = vadd.f32 1.0, %v9222_v15  ;;  %v8413_v29 = vpop.f32.mrf.mxu1 }
 0xbd0   : > { %9235 = vpow2.f32 %v8016_v27  ;;  %v4370_v33 = vadd.f32 %v12513_v18, %v4338_v61  ;;  %v12575_v39 = vadd.f32 %v8413_v29, %v8412_v32  ;;  %4842 = vrot.lane.b32.xlu1 %v4777_v0, %s9984_s12  ;;  %4712 = vrot.lane.b32.xlu0 %v4632_v21, %s9984_s12  ;;  %v4689_v0 = vpop.permute.xlu0 %4688 }
 0xbd1   : > { %v12579_v55 = vpop.eup %9223  ;;  %9237 = vrcp.f32 %v4493_v42  ;;  %v8415_v60 = vpop.f32.mrf.mxu1 }
 0xbd2   : > { %v9226_v49 = vpop.eup %9225  ;;  %v8017_v3 = vmul.f32 -1.442695, %v4370_v33  ;;  %v4339_v4 = vadd.f32 %v12575_v39, %v12401_v26  ;;  %v4778_v16 = vmul.f32 %v12579_v55, %v4685_v8  ;;  %v4634_v26 = vadd.f32 %v12430_v57, %v15212_v5 }
 0xbd3   : > { %v4494_v47 = vadd.f32 1.0, %v9226_v49  ;;  %v8416_v58 = vpop.f32.mrf.mxu1 }
 0xbd4   : > { %9239 = vpow2.f32 %v8017_v3  ;;  %v4371_v10 = vadd.f32 %v12513_v18, %v4339_v4  ;;  %v12587_v24 = vadd.f32 %v8416_v58, %v8415_v60  ;;  %4714 = vrot.lane.b32.xlu1 %v4633_v50, %s9984_s12  ;;  %4844 = vrot.lane.b32.xlu0 %v4778_v16, %s9984_s12 }
 0xbd5   : > { %v12591_v6 = vpop.eup %9227  ;;  %9241 = vrcp.f32 %v4494_v47  ;;  %v8418_v14 = vpop.f32.mrf.mxu1 }
 0xbd6   : > { %v9230_v9 = vpop.eup %9229  ;;  %v8018_v31 = vmul.f32 -1.442695, %v4371_v10  ;;  %v4340_v63 = vadd.f32 %v12587_v24, %v12406_v23  ;;  %v4779_v45 = vmul.f32 %v12591_v6, %v4687_v40  ;;  %v4635_v23 = vadd.f32 %v12432_v35, %v15212_v5  ;;  %v4691_v47 = vpop.permute.xlu1 %4690 }
 0xbd7   : > { %v4495_v12 = vadd.f32 1.0, %v9230_v9  ;;  %v8419_v2 = vpop.f32.mrf.mxu1  ;;  %v4636_v40 = vadd.f32 %v12434_v22, %v15212_v5 }
 0xbd8   : > { %9243 = vpow2.f32 %v8018_v31  ;;  %v4372_v32 = vadd.f32 %v12513_v18, %v4340_v63  ;;  %v12599_v15 = vadd.f32 %v8419_v2, %v8418_v14  ;;  %4846 = vrot.lane.b32.xlu1 %v4779_v45, %s9984_s12  ;;  %4716 = vrot.lane.b32.xlu0 %v4634_v26, %s9984_s12 }
 0xbd9   : > { %v9232_v21 = vpop.eup %9231  ;;  %9245 = vrcp.f32 %v4495_v12  ;;  %v8421_v27 = vpop.f32.mrf.mxu1 }
 0xbda   : > { %v12603_v61 = vpop.eup %9233  ;;  %v4496_v42 = vadd.f32 1.0, %v9232_v21  ;;  %v8019_v29 = vmul.f32 -1.442695, %v4372_v32  ;;  %v4341_v33 = vadd.f32 %v12599_v15, %v12411_v41  ;;  %v4693_v12 = vpop.permute.xlu0 %4692 }
 0xbdb   : > { %15221 = vst [vmem:[#allocation37_spill] sm:$0xff] %v12603_v61  ;;  %v8422_v8 = vpop.f32.mrf.mxu1  ;;  %v4780_v60 = vmul.f32 %v12603_v61, %v4689_v0 }
 0xbdc   : > { %9247 = vrcp.f32 %v4496_v42  ;;  %v4373_v49 = vadd.f32 %v12513_v18, %v4341_v33  ;;  %v12611_v50 = vadd.f32 %v8422_v8, %v8421_v27  ;;  %4718 = vrot.lane.b32.xlu1 %v4635_v23, %s9984_s12  ;;  %v4637_v27 = vadd.f32 %v12436_v30, %v15212_v5 }
 0xbdd   : > { %v9236_v3 = vpop.eup %9235  ;;  %9249 = vpow2.f32 %v8019_v29  ;;  %4848 = vrot.lane.b32.xlu0 %v4780_v60, %s9984_s12  ;;  %v8424_v4 = vpop.f32.mrf.mxu1 }
 0xbde   : > { %v12615_v16 = vpop.eup %9237  ;;  %v4497_v58 = vadd.f32 1.0, %v9236_v3  ;;  %v8020_v41 = vmul.f32 -1.442695, %v4373_v49  ;;  %v4342_v10 = vadd.f32 %v12611_v50, %v12416_v28  ;;  %v4638_v3 = vadd.f32 %v12438_v62, %v15212_v5 }
 0xbdf   : > { %15222 = vst [vmem:[#allocation52_spill] sm:$0xff] %v12615_v16  ;;  %v8425_v14 = vpop.f32.mrf.mxu1  ;;  %v4781_v9 = vmul.f32 %v12615_v16, %v4691_v47 }
 0xbe0   : > { %9251 = vrcp.f32 %v4497_v58  ;;  %v4374_v26 = vadd.f32 %v12513_v18, %v4342_v10  ;;  %v12623_v31 = vadd.f32 %v8425_v14, %v8424_v4 }
 0xbe1   : > { %v9240_v63 = vpop.eup %9239  ;;  %9253 = vpow2.f32 %v8020_v41  ;;  %4850 = vrot.lane.b32.xlu1 %v4781_v9, %s9984_s12  ;;  %4720 = vrot.lane.b32.xlu0 %v4636_v40, %s9984_s12  ;;  %v12627_v45 = vpop.f32.mrf.mxu1  ;;  %v4639_v9 = vadd.f32 %v12440_v37, %v15212_v5 }
 0xbe2   : > { %v12629_v28 = vpop.eup %9241  ;;  %v4498_v2 = vadd.f32 1.0, %v9240_v63  ;;  %v8021_v32 = vmul.f32 -1.442695, %v4374_v26  ;;  %v4343_v21 = vadd.f32 %v12623_v31, %v12421_v25  ;;  %v4695_v25 = vpop.permute.xlu1 %4694 }
 0xbe3   : > { %15223 = vst [vmem:[#allocation38_spill] sm:$0xff] %v12629_v28  ;;  %v12635_v0 = vpop.f32.mrf.mxu1  ;;  %v4782_v23 = vmul.f32 %v12629_v28, %v4693_v12  ;;  %v4697_v41 = vpop.permute.xlu0 %4696 }
 0xbe4   : > { %9255 = vrcp.f32 %v4498_v2  ;;  %v4375_v42 = vadd.f32 %v12513_v18, %v4343_v21 }
 0xbe5   : > { %v9244_v29 = vpop.eup %9243  ;;  %9257 = vpow2.f32 %v8021_v32  ;;  %4722 = vrot.lane.b32.xlu1 %v4637_v27, %s9984_s12  ;;  %4852 = vrot.lane.b32.xlu0 %v4782_v23, %s9984_s12  ;;  %v12641_v33 = vpop.f32.mrf.mxu1  ;;  %v4640_v23 = vadd.f32 %v12442_v34, %v15212_v5 }
 0xbe6   : > { %v12643_v8 = vpop.eup %9245  ;;  %v4499_v60 = vadd.f32 1.0, %v9244_v29  ;;  %v8022_v49 = vmul.f32 -1.442695, %v4375_v42  ;;  %v4699_v2 = vpop.permute.xlu1 %4698 }
 0xbe7   : > { %15224 = vst [vmem:[#allocation51_spill] sm:$0xff] %v12643_v8  ;;  %v12647_v4 = vpop.f32.mrf.mxu1  ;;  %v4783_v47 = vmul.f32 %v12643_v8, %v4695_v25 }
 0xbe8   : > { %9259 = vrcp.f32 %v4499_v60  ;;  %v4701_v60 = vpop.permute.xlu0 %4700 }
 0xbe9   : > { %v12650_v58 = vpop.eup %9247  ;;  %9261 = vpow2.f32 %v8022_v49  ;;  %4854 = vrot.lane.b32.xlu1 %v4783_v47, %s9984_s12  ;;  %4724 = vrot.lane.b32.xlu0 %v4638_v3, %s9984_s12  ;;  %v12654_v10 = vpop.f32.mrf.mxu1 }
 0xbea   : > { %15225 = vst [vmem:[#allocation39_spill] sm:$0xff] %v12650_v58  ;;  %v9250_v40 = vpop.eup %9249  ;;  %v4784_v14 = vmul.f32 %v12650_v58, %v4697_v41  ;;  %v4641_v41 = vadd.f32 %v12444_v52, %v15212_v5 }
 0xbeb   : > { %v4500_v26 = vadd.f32 1.0, %v9250_v40  ;;  %v12659_v63 = vpop.f32.mrf.mxu1 }
 0xbed   : > { %v12661_v12 = vpop.eup %9251  ;;  %9263 = vrcp.f32 %v4500_v26  ;;  %4726 = vrot.lane.b32.xlu1 %v4639_v9, %s9984_s12  ;;  %4856 = vrot.lane.b32.xlu0 %v4784_v14, %s9984_s12  ;;  %v12665_v32 = vpop.f32.mrf.mxu1 }
 0xbee   : > { %15226 = vst [vmem:[#allocation42_spill] sm:$0xff] %v12661_v12  ;;  %v9254_v21 = vpop.eup %9253  ;;  %v4785_v27 = vmul.f32 %v12661_v12, %v4699_v2  ;;  %v4703_v26 = vpop.permute.xlu1 %4702 }
 0xbef   : > { %v4501_v42 = vadd.f32 1.0, %v9254_v21  ;;  %v12670_v29 = vpop.f32.mrf.mxu1 }
 0xbf1   : > { %v12672_v25 = vpop.eup %9255  ;;  %9265 = vrcp.f32 %v4501_v42  ;;  %4858 = vrot.lane.b32.xlu1 %v4785_v27, %s9984_s12  ;;  %4728 = vrot.lane.b32.xlu0 %v4640_v23, %s9984_s12  ;;  %v12676_v49 = vpop.f32.mrf.mxu1  ;;  %v4642_v23 = vadd.f32 %v12446_v53, %v15212_v5 }
 0xbf2   : > { %15227 = vst [vmem:[#allocation40_spill] sm:$0xff] %v12672_v25  ;;  %v9258_v3 = vpop.eup %9257  ;;  %v4786_v47 = vmul.f32 %v12672_v25, %v4701_v60 }
 0xbf3   : > { %v4502_v40 = vadd.f32 1.0, %v9258_v3  ;;  %v12681_v14 = vpop.f32.mrf.mxu1 }
 0xbf5   : > { %v12683_v9 = vpop.eup %9259  ;;  %9267 = vrcp.f32 %v4502_v40  ;;  %4730 = vrot.lane.b32.xlu1 %v4641_v41, %s9984_s12  ;;  %4860 = vrot.lane.b32.xlu0 %v4786_v47, %s9984_s12  ;;  %v12687_v2 = vpop.f32.mrf.mxu1  ;;  %v4643_v47 = vadd.f32 %v12448_v48, %v15212_v5 }
 0xbf6   : > { %15228 = vst [vmem:[#allocation41_spill] sm:$0xff] %v12683_v9  ;;  %v9262_v21 = vpop.eup %9261  ;;  %v4787_v27 = vmul.f32 %v12683_v9, %v4703_v26  ;;  %v4705_v41 = vpop.permute.xlu0 %4704 }
 0xbf7   : > { %v4503_v42 = vadd.f32 1.0, %v9262_v21  ;;  %v8443_v60 = vpop.f32.mrf.mxu1  ;;  %v4707_v21 = vpop.permute.xlu1 %4706 }
 0xbf9   : > { %9269 = vrcp.f32 %v4503_v42  ;;  %4862 = vrot.lane.b32.xlu1 %v4787_v27, %s9984_s12  ;;  %4732 = vrot.lane.b32.xlu0 %v4642_v23, %s9984_s12  ;;  %v8445_v25 = vpop.f32.mrf.mxu1  ;;  %v15231_v27 = vld [vmem:[#allocation36_spill] sm:$0xff] }
 0xbfa   : > { %v12694_v3 = vpop.eup %9263  ;;  %v4644_v42 = vadd.f32 %v15231_v27, %v15212_v5 }
 0xbfb   : > { %15229 = vst [vmem:[#allocation22_spill] sm:$0xff] %v12694_v3  ;;  %v4788_v40 = vmul.f32 %v12694_v3, %v4705_v41  ;;  %v8446_v9 = vpop.f32.mrf.mxu1  ;;  %v4709_v41 = vpop.permute.xlu0 %4708 }
 0xbfd   : > { %4734 = vrot.lane.b32.xlu1 %v4643_v47, %s9984_s12  ;;  %4864 = vrot.lane.b32.xlu0 %v4788_v40, %s9984_s12  ;;  %v15233_v47 = vld [vmem:[#allocation49_spill] sm:$0xff]  ;;  %v8448_v12 = vpop.f32.mrf.mxu1 }
 0xbfe   : > { %v12701_v26 = vpop.eup %9265  ;;  %v4645_v3 = vadd.f32 %v15233_v47, %v15212_v5 }
 0xbff   : > { %15230 = vst [vmem:[#allocation10_spill] sm:$0xff] %v12701_v26  ;;  %v4789_v23 = vmul.f32 %v12701_v26, %v4707_v21  ;;  %v4711_v21 = vpop.permute.xlu1 %4710  ;;  %v12720_v26 = vpop.f32.mrf.mxu0 }
 0xc00   : > { %v8449_v8 = vpop.f32.mrf.mxu1 }
 0xc01   : > { %4866 = vrot.lane.b32.xlu1 %v4789_v23, %s9984_s12  ;;  %4736 = vrot.lane.b32.xlu0 %v4644_v42, %s9984_s12  ;;  %v4646_v23 = vadd.f32 %v12454_v11, %v15212_v5 }
 0xc02   : > { %v12708_v58 = vpop.eup %9267 }
 0xc03   : > { %15232 = vst [vmem:[#allocation36_spill] sm:$0xff] %v12708_v58  ;;  %v4790_v40 = vmul.f32 %v12708_v58, %v4709_v41  ;;  %v8451_v41 = vpop.f32.mrf.mxu1 }
 0xc05   : > { %4738 = vrot.lane.b32.xlu1 %v4645_v3, %s9984_s12  ;;  %4868 = vrot.lane.b32.xlu0 %v4790_v40, %s9984_s12  ;;  %v4647_v3 = vadd.f32 %v12720_v26, %v15212_v5  ;;  %v12729_v40 = vadd.f32 %v12635_v0, %v12627_v45  ;;  %v8452_v58 = vpop.f32.mrf.mxu1  ;;  %v12746_v0 = vadd.f32 %v12670_v29, %v12665_v32 }
 0xc06   : > { %v12715_v28 = vpop.eup %9269  ;;  %v12757_v32 = vadd.f32 %v12681_v14, %v12676_v49  ;;  %v12767_v49 = vadd.f32 %v8446_v9, %v8445_v25  ;;  %v12769_v14 = vadd.f32 %v8449_v8, %v8448_v12 }
 0xc07   : > { %15234 = vst [vmem:[#allocation49_spill] sm:$0xff] %v12715_v28  ;;  %v4791_v42 = vmul.f32 %v12715_v28, %v4711_v21  ;;  %v4344_v21 = vadd.f32 %v12729_v40, %v12426_v59  ;;  %v12735_v28 = vadd.f32 %v12647_v4, %v12641_v33 }
 0xc09   : > { %4870 = vrot.lane.b32.xlu1 %v4791_v42, %s9984_s12  ;;  %4740 = vrot.lane.b32.xlu0 %v4646_v23, %s9984_s12  ;;  %v8454_v42 = vpop.f32.mrf.mxu1  ;;  %v4376_v23 = vadd.f32 %v12513_v18, %v4344_v21  ;;  %v4345_v5 = vadd.f32 %v12735_v28, %v12428_v20  ;;  %v4347_v21 = vadd.f32 %v12746_v0, %v12432_v35 }
 0xc0a   : > { %v12762_v35 = vadd.f32 %v8443_v60, %v12687_v2  ;;  %v4350_v2 = vadd.f32 %v12767_v49, %v12438_v62  ;;  %v12774_v60 = vadd.f32 %v8452_v58, %v8451_v41 }
 0xc0b   : > { %v8455_v45 = vpop.f32.mrf.mxu1  ;;  %v8023_v59 = vmul.f32 -1.442695, %v4376_v23  ;;  %v4377_v61 = vadd.f32 %v12513_v18, %v4345_v5  ;;  %v4379_v16 = vadd.f32 %v12513_v18, %v4347_v21 }
 0xc0c   : > { %v4382_v8 = vadd.f32 %v12513_v18, %v4350_v2  ;;  %v4352_v12 = vadd.f32 %v12774_v60, %v12442_v34 }
 0xc0d   : > { %4742 = vrot.lane.b32.xlu1 %v4647_v3, %s9984_s12  ;;  %v12742_v3 = vadd.f32 %v12659_v63, %v12654_v10  ;;  %v8457_v4 = vpop.f32.mrf.mxu1  ;;  %9271 = vpow2.f32 %v8023_v59  ;;  %v8024_v20 = vmul.f32 -1.442695, %v4377_v61  ;;  %v8026_v23 = vmul.f32 -1.442695, %v4379_v16 }
 0xc0f   : > { %v4346_v33 = vadd.f32 %v12742_v3, %v12430_v57  ;;  %v8458_v63 = vpop.f32.mrf.mxu1  ;;  %9273 = vpow2.f32 %v8024_v20  ;;  %v4348_v57 = vadd.f32 %v12757_v32, %v12434_v22 }
 0xc11   : > { %v4378_v10 = vadd.f32 %v12513_v18, %v4346_v33  ;;  %v8460_v29 = vpop.f32.mrf.mxu1  ;;  %v4380_v59 = vadd.f32 %v12513_v18, %v4348_v57  ;;  %v4349_v33 = vadd.f32 %v12762_v35, %v12436_v30  ;;  %v12782_v57 = vadd.f32 %v8455_v45, %v8454_v42 }
 0xc13   : > { %v8025_v5 = vmul.f32 -1.442695, %v4378_v10  ;;  %v8461_v61 = vpop.f32.mrf.mxu1  ;;  %v8027_v20 = vmul.f32 -1.442695, %v4380_v59  ;;  %v4381_v22 = vadd.f32 %v12513_v18, %v4349_v33  ;;  %v4351_v10 = vadd.f32 %v12769_v14, %v12440_v37 }
 0xc14   : > { %v8029_v37 = vmul.f32 -1.442695, %v4382_v8  ;;  %v4384_v33 = vadd.f32 %v12513_v18, %v4352_v12 }
 0xc15   : > { %9275 = vpow2.f32 %v8025_v5  ;;  %v8463_v21 = vpop.f32.mrf.mxu1  ;;  %v8028_v25 = vmul.f32 -1.442695, %v4381_v22  ;;  %v4383_v9 = vadd.f32 %v12513_v18, %v4351_v10  ;;  %v12787_v22 = vadd.f32 %v8458_v63, %v8457_v4 }
 0xc16   : > { %9277 = vpow2.f32 %v8026_v23  ;;  %v8031_v45 = vmul.f32 -1.442695, %v4384_v33 }
 0xc17   : > { %v8464_v23 = vpop.f32.mrf.mxu1  ;;  %9279 = vpow2.f32 %v8027_v20  ;;  %v4353_v20 = vadd.f32 %v12782_v57, %v12444_v52 }
 0xc19   : > { %v8466_v58 = vpop.f32.mrf.mxu1  ;;  %v4385_v10 = vadd.f32 %v12513_v18, %v4353_v20 }
 0xc1a   : > { %v9272_v16 = vpop.eup %9271 }
 0xc1b   : > { %v4504_v5 = vadd.f32 1.0, %v9272_v16  ;;  %v8030_v16 = vmul.f32 -1.442695, %v4383_v9  ;;  %v8467_v2 = vpop.f32.mrf.mxu1  ;;  %v8032_v9 = vmul.f32 -1.442695, %v4385_v10 }
 0xc1c   : > { %v9274_v30 = vpop.eup %9273 }
 0xc1d   : > { %9281 = vrcp.f32 %v4504_v5  ;;  %v4505_v62 = vadd.f32 1.0, %v9274_v30  ;;  %v4354_v5 = vadd.f32 %v12787_v22, %v12446_v53  ;;  %v12792_v30 = vadd.f32 %v8461_v61, %v8460_v29  ;;  %v8469_v52 = vpop.f32.mrf.mxu1 }
 0xc1e   : > { %9283 = vpow2.f32 %v8028_v25  ;;  %v15235_v25 = vld [vmem:[#allocation18_spill] sm:$0xff] }
 0xc1f   : > { %9285 = vrcp.f32 %v4505_v62  ;;  %v4584_v8 = vadd.f32 %v12506_v51, %v15235_v25  ;;  %v4386_v62 = vadd.f32 %v12513_v18, %v4354_v5  ;;  %v8470_v53 = vpop.f32.mrf.mxu1  ;;  %v4585_v51 = vadd.f32 %v12516_v43, %v15235_v25 }
 0xc20   : > { %9287 = vpow2.f32 %v8029_v37  ;;  %v12799_v37 = vadd.f32 %v8464_v23, %v8463_v21  ;;  %v4586_v23 = vadd.f32 %v12521_v13, %v15235_v25  ;;  %v12811_v43 = vadd.f32 %v8467_v2, %v8466_v58 }
 0xc21   : > { %9289 = vpow2.f32 %v8030_v16 }
 0xc22   : > { %v9276_v41 = vpop.eup %9275  ;;  %v4356_v21 = vadd.f32 %v12799_v37, %v15231_v27  ;;  %v4357_v2 = vadd.f32 %v12811_v43, %v15233_v47 }
 0xc23   : > { %v9278_v59 = vpop.eup %9277  ;;  %v4506_v34 = vadd.f32 1.0, %v9276_v41  ;;  %v4355_v41 = vadd.f32 %v12792_v30, %v12448_v48 }
 0xc24   : > { %v4507_v42 = vadd.f32 1.0, %v9278_v59  ;;  %v9280_v63 = vpop.eup %9279  ;;  %v4388_v13 = vadd.f32 %v12513_v18, %v4356_v21 }
 0xc25   : > { %9291 = vrcp.f32 %v4506_v34  ;;  %v4508_v61 = vadd.f32 1.0, %v9280_v63  ;;  %v4387_v48 = vadd.f32 %v12513_v18, %v4355_v41 }
 0xc26   : > { %9293 = vrcp.f32 %v4507_v42  ;;  %v8033_v42 = vmul.f32 -1.442695, %v4386_v62  ;;  %v12820_v62 = vadd.f32 %v8470_v53, %v8469_v52 }
 0xc27   : > { %9295 = vpow2.f32 %v8031_v45  ;;  %v8472_v45 = vpop.f32.mrf.mxu1  ;;  %v8034_v27 = vmul.f32 -1.442695, %v4387_v48  ;;  %v4389_v48 = vadd.f32 %v12513_v18, %v4357_v2 }
 0xc29   : > { %v8473_v41 = vpop.f32.mrf.mxu1 }
 0xc2a   : > { %v12803_v29 = vpop.eup %9281  ;;  %v12833_v21 = vadd.f32 %v8473_v41, %v8472_v45  ;;  %v4589_v41 = vadd.f32 %v12536_v19, %v15235_v25 }
 0xc2b   : > { %v9284_v16 = vpop.eup %9283 }
 0xc2c   : > { %v12814_v10 = vpop.eup %9285  ;;  %v4509_v5 = vadd.f32 1.0, %v9284_v16  ;;  %v4359_v2 = vadd.f32 %v12833_v21, %v12720_v26 }
 0xc2d   : > { %v9288_v63 = vpop.eup %9287 }
 0xc2e   : > { %v9290_v58 = vpop.eup %9289 }
 0xc2f   : > { %v4511_v53 = vadd.f32 1.0, %v9290_v58 }
 0xc3e   : > { %v4841_v4 = vpop.permute.xlu0 %4840 }
 0xc3f   : > { %v4936_v12 = vadd.f32 %v4841_v4, %v4584_v8 }
 0xc41   : > { %9297 = vtanh.f32 %v4936_v12 }
 0xc42   : > { %v4843_v59 = vpop.permute.xlu1 %4842  ;;  %v4713_v33 = vpop.permute.xlu0 %4712  ;;  %9299 = vpow2.f32 %v8032_v9 }
 0xc43   : > { %v4937_v20 = vadd.f32 %v4843_v59, %v4585_v51  ;;  %v4792_v34 = vmul.f32 %v12803_v29, %v4713_v33  ;;  %v4587_v51 = vadd.f32 %v12526_v56, %v15235_v25  ;;  %v4510_v59 = vadd.f32 1.0, %v9288_v63 }
 0xc44   : > { %v4358_v56 = vadd.f32 %v12820_v62, %v12454_v11 }
 0xc45   : > { %9301 = vtanh.f32 %v4937_v20  ;;  %4872 = vrot.lane.b32.xlu0 %v4792_v34, %s9984_s12 }
 0xc46   : > { %9303 = vrcp.f32 %v4508_v61  ;;  %v4715_v8 = vpop.permute.xlu1 %4714  ;;  %v4845_v4 = vpop.permute.xlu0 %4844  ;;  %v4390_v58 = vadd.f32 %v12513_v18, %v4358_v56  ;;  %v4590_v56 = vadd.f32 %v12541_v1, %v15235_v25  ;;  %v4591_v1 = vadd.f32 %v12546_v38, %v15235_v25 }
 0xc47   : > { %v4793_v12 = vmul.f32 %v12814_v10, %v4715_v8  ;;  %v4938_v9 = vadd.f32 %v4845_v4, %v4586_v23  ;;  %9305 = vpow2.f32 %v8033_v42  ;;  %v12825_v61 = vpop.eup %9291  ;;  %v8035_v42 = vmul.f32 -1.442695, %v4388_v13 }
 0xc48   : > { %v12827_v20 = vpop.eup %9293  ;;  %v8036_v13 = vmul.f32 -1.442695, %v4389_v48  ;;  %v4391_v48 = vadd.f32 %v12513_v18, %v4359_v2 }
 0xc49   : > { %9307 = vtanh.f32 %v4938_v9  ;;  %4874 = vrot.lane.b32.xlu1 %v4793_v12, %s9984_s12  ;;  %v9296_v52 = vpop.eup %9295  ;;  %v15236_v12 = vld [vmem:[#allocation9_spill] sm:$0xff] }
 0xc4a   : > { %9309 = vrcp.f32 %v4509_v5  ;;  %v4847_v33 = vpop.permute.xlu1 %4846  ;;  %v4717_v16 = vpop.permute.xlu0 %4716  ;;  %v4588_v5 = vadd.f32 %v12531_v46, %v15235_v25  ;;  %v4512_v11 = vadd.f32 1.0, %v9296_v52 }
 0xc4b   : > { %v4939_v34 = vadd.f32 %v4847_v33, %v4587_v51  ;;  %v4794_v47 = vmul.f32 %v12825_v61, %v4717_v16  ;;  %9311 = vpow2.f32 %v8034_v27  ;;  %v15237_v16 = vld [vmem:[#allocation8_spill] sm:$0xff] }
 0xc4d   : > { %9313 = vtanh.f32 %v4939_v34  ;;  %4876 = vrot.lane.b32.xlu0 %v4794_v47, %s9984_s12 }
 0xc4e   : > { %v12836_v23 = vpop.eup %9297  ;;  %9315 = vrcp.f32 %v4510_v59  ;;  %v4719_v8 = vpop.permute.xlu1 %4718 }
 0xc4f   : > { %v4795_v4 = vmul.f32 %v12827_v20, %v4719_v8  ;;  %v4849_v63 = vpop.permute.xlu0 %4848  ;;  %v5000_v9 = vsub.f32 %v15236_v12, %v12836_v23  ;;  %9317 = vrcp.f32 %v4511_v53  ;;  %v9300_v27 = vpop.eup %9299 }
 0xc50   : > { %v4940_v45 = vadd.f32 %v4849_v63, %v4588_v5  ;;  %9319 = vpow2.f32 %v8035_v42  ;;  %v4513_v47 = vadd.f32 1.0, %v9300_v27  ;;  %v8037_v42 = vmul.f32 -1.442695, %v4390_v58  ;;  %v15238_v63 = vld [vmem:[#allocation14_spill] sm:$0xff] }
 0xc51   : > { %4878 = vrot.lane.b32.xlu1 %v4795_v4, %s9984_s12  ;;  %5064 = vrot.lane.b32.xlu0 %v5000_v9, %s9986_s17  ;;  %v8038_v27 = vmul.f32 -1.442695, %v4391_v48 }
 0xc52   : > { %v12848_v46 = vpop.eup %9301  ;;  %9321 = vtanh.f32 %v4940_v45 }
 0xc53   : > { %v12852_v51 = vpop.eup %9303  ;;  %v4851_v59 = vpop.permute.xlu1 %4850  ;;  %v5001_v34 = vsub.f32 %v15237_v16, %v12848_v46  ;;  %9323 = vrcp.f32 %v4512_v11 }
 0xc54   : > { %v4721_v33 = vpop.permute.xlu0 %4720  ;;  %v4941_v26 = vadd.f32 %v4851_v59, %v4589_v41  ;;  %v9306_v53 = vpop.eup %9305  ;;  %9325 = vpow2.f32 %v8036_v13  ;;  %v15239_v59 = vld [vmem:[#allocation12_spill] sm:$0xff] }
 0xc55   : > { %v4796_v52 = vmul.f32 %v12852_v51, %v4721_v33  ;;  %5066 = vrot.lane.b32.xlu1 %v5001_v34, %s9986_s17  ;;  %v4514_v9 = vadd.f32 1.0, %v9306_v53  ;;  %v4592_v53 = vadd.f32 %v12551_v17, %v15235_v25 }
 0xc56   : > { %v12859_v19 = vpop.eup %9307  ;;  %9327 = vtanh.f32 %v4941_v26 }
 0xc57   : > { %4880 = vrot.lane.b32.xlu0 %v4796_v52, %s9984_s12  ;;  %v12864_v5 = vpop.eup %9309  ;;  %v4723_v8 = vpop.permute.xlu1 %4722  ;;  %v5002_v12 = vsub.f32 %v15238_v63, %v12859_v19  ;;  %9329 = vrcp.f32 %v4513_v47 }
 0xc58   : > { %v4853_v4 = vpop.permute.xlu0 %4852  ;;  %v4797_v18 = vmul.f32 %v12864_v5, %v4723_v8  ;;  %v9312_v45 = vpop.eup %9311  ;;  %9331 = vpow2.f32 %v8037_v42 }
 0xc59   : > { %v4942_v11 = vadd.f32 %v4853_v4, %v4590_v56  ;;  %v4515_v26 = vadd.f32 1.0, %v9312_v45  ;;  %v15240_v4 = vld [vmem:[#allocation16_spill] sm:$0xff] }
 0xc5a   : > { %v12869_v13 = vpop.eup %9313  ;;  %4882 = vrot.lane.b32.xlu1 %v4797_v18, %s9984_s12  ;;  %v4593_v18 = vadd.f32 %v12556_v7, %v15235_v25 }
 0xc5b   : > { %9333 = vtanh.f32 %v4942_v11  ;;  %5068 = vrot.lane.b32.xlu0 %v5002_v12, %s9986_s17  ;;  %v12875_v58 = vpop.eup %9315  ;;  %v4855_v2 = vpop.permute.xlu1 %4854  ;;  %v5003_v33 = vsub.f32 %v15239_v59, %v12869_v13 }
 0xc5c   : > { %v4725_v41 = vpop.permute.xlu0 %4724  ;;  %9335 = vrcp.f32 %v4514_v9  ;;  %v4943_v16 = vadd.f32 %v4855_v2, %v4591_v1  ;;  %v12880_v47 = vpop.eup %9317 }
 0xc5d   : > { %v4798_v34 = vmul.f32 %v12875_v58, %v4725_v41  ;;  %9337 = vpow2.f32 %v8038_v27  ;;  %v9320_v52 = vpop.eup %9319  ;;  %v15241_v41 = vld [vmem:[#allocation11_spill] sm:$0xff] }
 0xc5e   : > { %9339 = vtanh.f32 %v4943_v16  ;;  %5070 = vrot.lane.b32.xlu1 %v5003_v33, %s9986_s17  ;;  %v4516_v9 = vadd.f32 1.0, %v9320_v52 }
 0xc5f   : > { %4884 = vrot.lane.b32.xlu0 %v4798_v34, %s9984_s12  ;;  %v12886_v38 = vpop.eup %9321  ;;  %v4727_v42 = vpop.permute.xlu1 %4726  ;;  %9341 = vrcp.f32 %v4515_v26  ;;  %v4594_v34 = vadd.f32 %v12564_v44, %v15235_v25 }
 0xc60   : > { %v4857_v48 = vpop.permute.xlu0 %4856  ;;  %v4799_v56 = vmul.f32 %v12880_v47, %v4727_v42  ;;  %v5004_v63 = vsub.f32 %v15240_v4, %v12886_v38  ;;  %v12891_v12 = vpop.eup %9323 }
 0xc61   : > { %v4944_v8 = vadd.f32 %v4857_v48, %v4592_v53  ;;  %v9326_v17 = vpop.eup %9325 }
 0xc62   : > { %4886 = vrot.lane.b32.xlu1 %v4799_v56, %s9984_s12  ;;  %v4517_v16 = vadd.f32 1.0, %v9326_v17  ;;  %v15242_v56 = vld [vmem:[#allocation19_spill] sm:$0xff] }
 0xc63   : > { %9343 = vtanh.f32 %v4944_v8  ;;  %5072 = vrot.lane.b32.xlu0 %v5004_v63, %s9986_s17  ;;  %v12897_v11 = vpop.eup %9327  ;;  %v4859_v45 = vpop.permute.xlu1 %4858 }
 0xc64   : > { %v4729_v27 = vpop.permute.xlu0 %4728  ;;  %v4945_v1 = vadd.f32 %v4859_v45, %v4593_v18  ;;  %v5005_v59 = vsub.f32 %v15241_v41, %v12897_v11  ;;  %v12902_v33 = vpop.eup %9329  ;;  %9345 = vrcp.f32 %v4516_v9  ;;  %v4595_v9 = vadd.f32 %v12575_v39, %v15235_v25 }
 0xc65   : > { %v4800_v2 = vmul.f32 %v12891_v12, %v4729_v27  ;;  %v9332_v7 = vpop.eup %9331  ;;  %v4596_v39 = vadd.f32 %v12587_v24, %v15235_v25  ;;  %v4597_v24 = vadd.f32 %v12599_v15, %v15235_v25  ;;  %v4598_v15 = vadd.f32 %v12611_v50, %v15235_v25 }
 0xc66   : > { %9347 = vtanh.f32 %v4945_v1  ;;  %5074 = vrot.lane.b32.xlu1 %v5005_v59, %s9986_s17  ;;  %v4518_v63 = vadd.f32 1.0, %v9332_v7  ;;  %v4599_v50 = vadd.f32 %v12623_v31, %v15235_v25 }
 0xc67   : > { %4888 = vrot.lane.b32.xlu0 %v4800_v2, %s9984_s12  ;;  %v4731_v52 = vpop.permute.xlu1 %4730  ;;  %9349 = vrcp.f32 %v4517_v16  ;;  %v15243_v2 = vld [vmem:[#allocation13_spill] sm:$0xff] }
 0xc68   : > { %v12908_v26 = vpop.eup %9333  ;;  %v4861_v53 = vpop.permute.xlu0 %4860  ;;  %v4801_v42 = vmul.f32 %v12902_v33, %v4731_v52 }
 0xc69   : > { %v4946_v48 = vadd.f32 %v4861_v53, %v4594_v34  ;;  %v5006_v8 = vsub.f32 %v15242_v56, %v12908_v26  ;;  %v12913_v4 = vpop.eup %9335 }
 0xc6a   : > { %v9338_v44 = vpop.eup %9337  ;;  %4890 = vrot.lane.b32.xlu1 %v4801_v42, %s9984_s12 }
 0xc6b   : > { %9351 = vtanh.f32 %v4946_v48  ;;  %5076 = vrot.lane.b32.xlu0 %v5006_v8, %s9986_s17  ;;  %v12919_v17 = vpop.eup %9339  ;;  %v4863_v18 = vpop.permute.xlu1 %4862  ;;  %v4519_v59 = vadd.f32 1.0, %v9338_v44  ;;  %v15244_v48 = vld [vmem:[#allocation21_spill] sm:$0xff] }
 0xc6c   : > { %v4733_v45 = vpop.permute.xlu0 %4732  ;;  %v4947_v27 = vadd.f32 %v4863_v18, %v4595_v9  ;;  %v5007_v41 = vsub.f32 %v15243_v2, %v12919_v17  ;;  %9353 = vrcp.f32 %v4518_v63  ;;  %v12924_v16 = vpop.eup %9341 }
 0xc6d   : > { %v4802_v1 = vmul.f32 %v12913_v4, %v4733_v45 }
 0xc6e   : > { %9355 = vtanh.f32 %v4947_v27  ;;  %5078 = vrot.lane.b32.xlu1 %v5007_v41, %s9986_s17  ;;  %v15245_v27 = vld [vmem:[#allocation15_spill] sm:$0xff] }
 0xc6f   : > { %4892 = vrot.lane.b32.xlu0 %v4802_v1, %s9984_s12  ;;  %v4735_v34 = vpop.permute.xlu1 %4734  ;;  %9357 = vrcp.f32 %v4519_v59 }
 0xc70   : > { %v12930_v7 = vpop.eup %9343  ;;  %v4865_v52 = vpop.permute.xlu0 %4864  ;;  %v4803_v53 = vmul.f32 %v12924_v16, %v4735_v34 }
 0xc71   : > { %v4948_v42 = vadd.f32 %v4865_v52, %v4596_v39  ;;  %v5008_v56 = vsub.f32 %v15244_v48, %v12930_v7  ;;  %v12935_v8 = vpop.eup %9345 }
 0xc72   : > { %4894 = vrot.lane.b32.xlu1 %v4803_v53, %s9984_s12  ;;  %v15246_v53 = vld [vmem:[#allocation23_spill] sm:$0xff] }
 0xc73   : > { %9359 = vtanh.f32 %v4948_v42  ;;  %5080 = vrot.lane.b32.xlu0 %v5008_v56, %s9986_s17  ;;  %v12941_v63 = vpop.eup %9347  ;;  %v4867_v44 = vpop.permute.xlu1 %4866 }
 0xc74   : > { %v4737_v9 = vpop.permute.xlu0 %4736  ;;  %v4949_v18 = vadd.f32 %v4867_v44, %v4597_v24  ;;  %v5009_v1 = vsub.f32 %v15245_v27, %v12941_v63  ;;  %v12946_v2 = vpop.eup %9349 }
 0xc75   : > { %v4804_v45 = vmul.f32 %v12935_v8, %v4737_v9 }
 0xc76   : > { %9361 = vtanh.f32 %v4949_v18  ;;  %5082 = vrot.lane.b32.xlu1 %v5009_v1, %s9986_s17 }
 0xc77   : > { %4896 = vrot.lane.b32.xlu0 %v4804_v45, %s9984_s12  ;;  %v4739_v59 = vpop.permute.xlu1 %4738  ;;  %v15247_v45 = vld [vmem:[#allocation17_spill] sm:$0xff] }
 0xc78   : > { %v12952_v41 = vpop.eup %9351  ;;  %v4869_v39 = vpop.permute.xlu0 %4868  ;;  %v4805_v34 = vmul.f32 %v12946_v2, %v4739_v59 }
 0xc79   : > { %v4950_v52 = vadd.f32 %v4869_v39, %v4598_v15  ;;  %v5010_v42 = vsub.f32 %v15246_v53, %v12952_v41  ;;  %v12957_v48 = vpop.eup %9353  ;;  %v15249_v39 = vld [vmem:[#allocation25_spill] sm:$0xff]  ;;  %v15250_v53 = vld [vmem:[#allocation20_spill] sm:$0xff] }
 0xc7a   : > { %4898 = vrot.lane.b32.xlu1 %v4805_v34, %s9984_s12 }
 0xc7b   : > { %9363 = vtanh.f32 %v4950_v52  ;;  %5084 = vrot.lane.b32.xlu0 %v5010_v42, %s9986_s17  ;;  %v12963_v56 = vpop.eup %9355  ;;  %v4871_v24 = vpop.permute.xlu1 %4870 }
 0xc7c   : > { %v4741_v44 = vpop.permute.xlu0 %4740  ;;  %v4951_v9 = vadd.f32 %v4871_v24, %v4599_v50  ;;  %v5011_v27 = vsub.f32 %v15247_v45, %v12963_v56  ;;  %v12968_v1 = vpop.eup %9357  ;;  %v15251_v24 = vld [vmem:[#allocation26_spill] sm:$0xff] }
 0xc7d   : > { %v4806_v18 = vmul.f32 %v12957_v48, %v4741_v44  ;;  %15248 = vst [vmem:[#allocation9_spill] sm:$0xff] %v12968_v1 }
 0xc7e   : > { %9365 = vtanh.f32 %v4951_v9  ;;  %5086 = vrot.lane.b32.xlu1 %v5011_v27, %s9986_s17  ;;  %v4600_v27 = vadd.f32 %v12729_v40, %v15235_v25 }
 0xc7f   : > { %4900 = vrot.lane.b32.xlu0 %v4806_v18, %s9984_s12  ;;  %v4743_v15 = vpop.permute.xlu1 %4742  ;;  %v15252_v18 = vld [vmem:[#allocation24_spill] sm:$0xff] }
 0xc80   : > { %v12972_v31 = vpop.eup %9359  ;;  %v4807_v59 = vmul.f32 %v12968_v1, %v4743_v15 }
 0xc81   : > { %v5012_v34 = vsub.f32 %v15249_v39, %v12972_v31  ;;  %v4601_v39 = vadd.f32 %v12735_v28, %v15235_v25  ;;  %v4604_v28 = vadd.f32 %v12757_v32, %v15235_v25 }
 0xc82   : > { %4902 = vrot.lane.b32.xlu1 %v4807_v59, %s9984_s12 }
 0xc83   : > { %5088 = vrot.lane.b32.xlu0 %v5012_v34, %s9986_s17  ;;  %v12979_v52 = vpop.eup %9361 }
 0xc84   : > { %v5013_v42 = vsub.f32 %v15250_v53, %v12979_v52 }
 0xc86   : > { %5090 = vrot.lane.b32.xlu1 %v5013_v42, %s9986_s17  ;;  %v4602_v42 = vadd.f32 %v12742_v3, %v15235_v25 }
 0xc88   : > { %v12984_v50 = vpop.eup %9363 }
 0xc89   : > { %v5014_v44 = vsub.f32 %v15251_v24, %v12984_v50 }
 0xc8b   : > { %5092 = vrot.lane.b32.xlu0 %v5014_v44, %s9986_s17  ;;  %v12989_v9 = vpop.eup %9365 }
 0xc8c   : > { %v5015_v45 = vsub.f32 %v15252_v18, %v12989_v9  ;;  %v4603_v18 = vadd.f32 %v12746_v0, %v15235_v25 }
 0xc8e   : > { %5094 = vrot.lane.b32.xlu1 %v5015_v45, %s9986_s17 }
 0xcb7   : > { %v4873_v15 = vpop.permute.xlu0 %4872 }
 0xcb8   : > { %v4952_v59 = vadd.f32 %v4873_v15, %v4600_v27 }
 0xcba   : > { %9367 = vtanh.f32 %v4952_v59 }
 0xcbb   : > { %v4875_v34 = vpop.permute.xlu1 %4874 }
 0xcbc   : > { %v4953_v53 = vadd.f32 %v4875_v34, %v4601_v39  ;;  %v15253_v39 = vld [vmem:[#allocation27_spill] sm:$0xff] }
 0xcbe   : > { %9369 = vtanh.f32 %v4953_v53 }
 0xcbf   : > { %v4877_v24 = vpop.permute.xlu0 %4876 }
 0xcc0   : > { %v4954_v44 = vadd.f32 %v4877_v24, %v4602_v42 }
 0xcc2   : > { %9371 = vtanh.f32 %v4954_v44 }
 0xcc3   : > { %v4879_v45 = vpop.permute.xlu1 %4878  ;;  %v5065_v40 = vpop.permute.xlu0 %5064 }
 0xcc4   : > { %v4955_v1 = vadd.f32 %v4879_v45, %v4603_v18  ;;  %v5160_v32 = vmul.f32 %v12558_v54, %v5065_v40  ;;  %v15255_v54 = vld [vmem:[#allocation29_spill] sm:$0xff] }
 0xcc6   : > { %9373 = vtanh.f32 %v4955_v1  ;;  %v4605_v1 = vadd.f32 %v12762_v35, %v15235_v25 }
 0xcc7   : > { %v13002_v27 = vpop.eup %9367  ;;  %v5067_v15 = vpop.permute.xlu1 %5066 }
 0xcc8   : > { %v5161_v59 = vmul.f32 %v12567_v36, %v5067_v15  ;;  %v5016_v34 = vsub.f32 %v15253_v39, %v13002_v27  ;;  %v15254_v36 = vld [vmem:[#allocation28_spill] sm:$0xff] }
 0xcc9   : > { %v4881_v3 = vpop.permute.xlu0 %4880 }
 0xcca   : > { %v4956_v53 = vadd.f32 %v4881_v3, %v4604_v28  ;;  %5226 = vrot.lane.b32.xlu1 %v5161_v59, %s9985_s13  ;;  %5096 = vrot.lane.b32.xlu0 %v5016_v34, %s9986_s17  ;;  %v4606_v28 = vadd.f32 %v12767_v49, %v15235_v25  ;;  %v4607_v34 = vadd.f32 %v12769_v14, %v15235_v25 }
 0xccb   : > { %v13011_v0 = vpop.eup %9369 }
 0xccc   : > { %9375 = vtanh.f32 %v4956_v53  ;;  %v4883_v42 = vpop.permute.xlu1 %4882  ;;  %v5017_v44 = vsub.f32 %v15254_v36, %v13011_v0 }
 0xccd   : > { %v5069_v24 = vpop.permute.xlu0 %5068  ;;  %v4957_v18 = vadd.f32 %v4883_v42, %v4605_v1 }
 0xcce   : > { %5098 = vrot.lane.b32.xlu1 %v5017_v44, %s9986_s17  ;;  %5224 = vrot.lane.b32.xlu0 %v5160_v32, %s9985_s13  ;;  %v5162_v49 = vmul.f32 %v12579_v55, %v5069_v24  ;;  %v15256_v32 = vld [vmem:[#allocation44_spill] sm:$0xff] }
 0xccf   : > { %v13020_v45 = vpop.eup %9371  ;;  %9377 = vtanh.f32 %v4957_v18 }
 0xcd0   : > { %v5071_v35 = vpop.permute.xlu1 %5070  ;;  %v5018_v40 = vsub.f32 %v15255_v54, %v13020_v45  ;;  %v4609_v54 = vadd.f32 %v12782_v57, %v15235_v25 }
 0xcd1   : > { %v4885_v15 = vpop.permute.xlu0 %4884  ;;  %v5163_v59 = vmul.f32 %v12591_v6, %v5071_v35  ;;  %v4608_v6 = vadd.f32 %v12774_v60, %v15235_v25  ;;  %v15258_v35 = vld [vmem:[#allocation30_spill] sm:$0xff] }
 0xcd2   : > { %v4958_v3 = vadd.f32 %v4885_v15, %v4606_v28  ;;  %5100 = vrot.lane.b32.xlu0 %v5018_v40, %s9986_s17  ;;  %v15257_v28 = vld [vmem:[#allocation52_spill] sm:$0xff] }
 0xcd3   : > { %v13028_v39 = vpop.eup %9373  ;;  %5230 = vrot.lane.b32.xlu1 %v5163_v59, %s9985_s13 }
 0xcd4   : > { %9379 = vtanh.f32 %v4958_v3  ;;  %v4887_v53 = vpop.permute.xlu1 %4886  ;;  %v5019_v42 = vsub.f32 %v15256_v32, %v13028_v39  ;;  %v15259_v3 = vld [vmem:[#allocation37_spill] sm:$0xff] }
 0xcd5   : > { %v5073_v1 = vpop.permute.xlu0 %5072  ;;  %v4959_v36 = vadd.f32 %v4887_v53, %v4607_v34  ;;  %v15260_v53 = vld [vmem:[#allocation43_spill] sm:$0xff] }
 0xcd6   : > { %5228 = vrot.lane.b32.xlu0 %v5162_v49, %s9985_s13  ;;  %v5164_v34 = vmul.f32 %v15259_v3, %v5073_v1  ;;  %v15262_v1 = vld [vmem:[#allocation31_spill] sm:$0xff] }
 0xcd7   : > { %9381 = vtanh.f32 %v4959_v36  ;;  %5102 = vrot.lane.b32.xlu1 %v5019_v42, %s9986_s17  ;;  %v4610_v42 = vadd.f32 %v12787_v22, %v15235_v25 }
 0xcd8   : > { %v5075_v44 = vpop.permute.xlu1 %5074 }
 0xcd9   : > { %v13040_v14 = vpop.eup %9375  ;;  %v4889_v18 = vpop.permute.xlu0 %4888  ;;  %v5165_v55 = vmul.f32 %v15257_v28, %v5075_v44  ;;  %v15261_v44 = vld [vmem:[#allocation51_spill] sm:$0xff] }
 0xcda   : > { %v4960_v24 = vadd.f32 %v4889_v18, %v4608_v6  ;;  %v5020_v15 = vsub.f32 %v15258_v35, %v13040_v14 }
 0xcdb   : > { %5234 = vrot.lane.b32.xlu1 %v5165_v55, %s9985_s13 }
 0xcdc   : > { %9383 = vtanh.f32 %v4960_v24  ;;  %5104 = vrot.lane.b32.xlu0 %v5020_v15, %s9986_s17  ;;  %v13049_v60 = vpop.eup %9377  ;;  %v4891_v40 = vpop.permute.xlu1 %4890  ;;  %v4611_v24 = vadd.f32 %v12792_v30, %v15235_v25 }
 0xcdd   : > { %v5077_v59 = vpop.permute.xlu0 %5076  ;;  %v4961_v49 = vadd.f32 %v4891_v40, %v4609_v54  ;;  %v5021_v32 = vsub.f32 %v15260_v53, %v13049_v60  ;;  %v15263_v54 = vld [vmem:[#allocation38_spill] sm:$0xff]  ;;  %v4612_v53 = vadd.f32 %v12799_v37, %v15235_v25 }
 0xcde   : > { %v5166_v40 = vmul.f32 %v15263_v54, %v5077_v59  ;;  %v15266_v59 = vld [vmem:[#allocation32_spill] sm:$0xff] }
 0xcdf   : > { %9385 = vtanh.f32 %v4961_v49  ;;  %5106 = vrot.lane.b32.xlu1 %v5021_v32, %s9986_s17 }
 0xce0   : > { %5232 = vrot.lane.b32.xlu0 %v5164_v34, %s9985_s13  ;;  %v5079_v36 = vpop.permute.xlu1 %5078  ;;  %v15264_v34 = vld [vmem:[#allocation46_spill] sm:$0xff] }
 0xce1   : > { %v13058_v57 = vpop.eup %9379  ;;  %v4893_v6 = vpop.permute.xlu0 %4892  ;;  %v5167_v18 = vmul.f32 %v15261_v44, %v5079_v36  ;;  %v15265_v36 = vld [vmem:[#allocation42_spill] sm:$0xff] }
 0xce2   : > { %v4962_v28 = vadd.f32 %v4893_v6, %v4610_v42  ;;  %v5022_v55 = vsub.f32 %v15262_v1, %v13058_v57 }
 0xce3   : > { %5238 = vrot.lane.b32.xlu1 %v5167_v18, %s9985_s13 }
 0xce4   : > { %9387 = vtanh.f32 %v4962_v28  ;;  %5108 = vrot.lane.b32.xlu0 %v5022_v55, %s9986_s17  ;;  %v13067_v22 = vpop.eup %9381  ;;  %v4895_v35 = vpop.permute.xlu1 %4894  ;;  %v4613_v28 = vadd.f32 %v12811_v43, %v15235_v25 }
 0xce5   : > { %v5081_v15 = vpop.permute.xlu0 %5080  ;;  %v4963_v3 = vadd.f32 %v4895_v35, %v4611_v24  ;;  %v5023_v49 = vsub.f32 %v15264_v34, %v13067_v22  ;;  %v15267_v24 = vld [vmem:[#allocation39_spill] sm:$0xff]  ;;  %v4614_v34 = vadd.f32 %v12820_v62, %v15235_v25 }
 0xce6   : > { %v5168_v35 = vmul.f32 %v15267_v24, %v5081_v15  ;;  %v15270_v15 = vld [vmem:[#allocation33_spill] sm:$0xff]  ;;  %v15272_v24 = vld [vmem:[#allocation48_spill] sm:$0xff] }
 0xce7   : > { %9389 = vtanh.f32 %v4963_v3  ;;  %5110 = vrot.lane.b32.xlu1 %v5023_v49, %s9986_s17 }
 0xce8   : > { %5236 = vrot.lane.b32.xlu0 %v5166_v40, %s9985_s13  ;;  %v5083_v32 = vpop.permute.xlu1 %5082  ;;  %v15268_v40 = vld [vmem:[#allocation45_spill] sm:$0xff] }
 0xce9   : > { %v13076_v30 = vpop.eup %9383  ;;  %v4897_v42 = vpop.permute.xlu0 %4896  ;;  %v5169_v6 = vmul.f32 %v15265_v36, %v5083_v32  ;;  %v15269_v32 = vld [vmem:[#allocation41_spill] sm:$0xff] }
 0xcea   : > { %v4964_v44 = vadd.f32 %v4897_v42, %v4612_v53  ;;  %v5024_v18 = vsub.f32 %v15266_v59, %v13076_v30 }
 0xceb   : > { %5242 = vrot.lane.b32.xlu1 %v5169_v6, %s9985_s13 }
 0xcec   : > { %9391 = vtanh.f32 %v4964_v44  ;;  %5112 = vrot.lane.b32.xlu0 %v5024_v18, %s9986_s17  ;;  %v13085_v37 = vpop.eup %9385  ;;  %v4899_v1 = vpop.permute.xlu1 %4898  ;;  %v4615_v44 = vadd.f32 %v12833_v21, %v15235_v25  ;;  %v15271_v18 = vld [vmem:[#allocation40_spill] sm:$0xff] }
 0xced   : > { %v5085_v55 = vpop.permute.xlu0 %5084  ;;  %v4965_v54 = vadd.f32 %v4899_v1, %v4613_v28  ;;  %v5025_v3 = vsub.f32 %v15268_v40, %v13085_v37  ;;  %v15273_v40 = vld [vmem:[#allocation10_spill] sm:$0xff] }
 0xcee   : > { %v5170_v28 = vmul.f32 %v15271_v18, %v5085_v55 }
 0xcef   : > { %9393 = vtanh.f32 %v4965_v54  ;;  %5114 = vrot.lane.b32.xlu1 %v5025_v3, %s9986_s17 }
 0xcf0   : > { %5240 = vrot.lane.b32.xlu0 %v5168_v35, %s9985_s13  ;;  %v5087_v49 = vpop.permute.xlu1 %5086 }
 0xcf1   : > { %v13094_v43 = vpop.eup %9387  ;;  %v4901_v53 = vpop.permute.xlu0 %4900  ;;  %v5171_v42 = vmul.f32 %v15269_v32, %v5087_v49  ;;  %v15275_v32 = vld [vmem:[#allocation22_spill] sm:$0xff] }
 0xcf2   : > { %v4966_v36 = vadd.f32 %v4901_v53, %v4614_v34  ;;  %v5026_v6 = vsub.f32 %v15270_v15, %v13094_v43  ;;  %v15274_v34 = vld [vmem:[#allocation34_spill] sm:$0xff] }
 0xcf3   : > { %5246 = vrot.lane.b32.xlu1 %v5171_v42, %s9985_s13 }
 0xcf4   : > { %9395 = vtanh.f32 %v4966_v36  ;;  %5116 = vrot.lane.b32.xlu0 %v5026_v6, %s9986_s17  ;;  %v13103_v62 = vpop.eup %9389  ;;  %v4903_v59 = vpop.permute.xlu1 %4902  ;;  %v15276_v36 = vld [vmem:[#allocation47_spill] sm:$0xff] }
 0xcf5   : > { %v4967_v1 = vadd.f32 %v4903_v59, %v4615_v44  ;;  %v5027_v35 = vsub.f32 %v15272_v24, %v13103_v62  ;;  %v5089_v53 = vpop.permute.xlu0 %5088  ;;  %v15277_v59 = vld [vmem:[#allocation49_spill] sm:$0xff] }
 0xcf6   : > { %v5172_v42 = vmul.f32 %v15275_v32, %v5089_v53  ;;  %v8817_v32 = vld [vmem:[%s14841_s3 + $0x60] ss:$8 sps:$4 sm:$0xff]  }
 0xcf7   : > { %9397 = vtanh.f32 %v4967_v1  ;;  %5118 = vrot.lane.b32.xlu1 %v5027_v35, %s9986_s17  ;;  %v8814_v35 = vld [vmem:[%s14841_s3 + $0x70] ss:$8 sps:$4 sm:$0xff]  }
 0xcf8   : > { %5244 = vrot.lane.b32.xlu0 %v5170_v28, %s9985_s13  ;;  %v5091_v54 = vpop.permute.xlu1 %5090  ;;  %v15278_v28 = vld [vmem:[#allocation35_spill] sm:$0xff] }
 0xcf9   : > { %v13110_v21 = vpop.eup %9391  ;;  %v5173_v3 = vmul.f32 %v15273_v40, %v5091_v54  ;;  %v8816_v54 = vld [vmem:[%s14841_s3 + $0x74] ss:$8 sps:$4 sm:$0xff]  }
 0xcfa   : > { %v5028_v49 = vsub.f32 %v15274_v34, %v13110_v21  ;;  %5501 = vmatprep.subr.bf16.mxu0 %v8816_v54 }
 0xcfb   : > { %5250 = vrot.lane.b32.xlu1 %v5173_v3, %s9985_s13  ;;  %v15279_v3 = vld [vmem:[#allocation36_spill] sm:$0xff]  ;;  %5502 = vmatpush1.bf16.msra.mxu0 %v8814_v35 }
 0xcfc   : > { %5120 = vrot.lane.b32.xlu0 %v5028_v49, %s9986_s17  ;;  %v13117_v55 = vpop.eup %9393  ;;  %v15280_v49 = vld [vmem:[#allocation50_spill] sm:$0xff] }
 0xcfd   : > { %v5029_v15 = vsub.f32 %v15276_v36, %v13117_v55  ;;  %v5093_v24 = vpop.permute.xlu0 %5092 }
 0xcfe   : > { %v5174_v34 = vmul.f32 %v15279_v3, %v5093_v24 }
 0xcff   : > { %5122 = vrot.lane.b32.xlu1 %v5029_v15, %s9986_s17 }
 0xd00   : > { %5248 = vrot.lane.b32.xlu0 %v5172_v42, %s9985_s13  ;;  %v5095_v44 = vpop.permute.xlu1 %5094  ;;  %v8819_v42 = vld [vmem:[%s14841_s3 + $0x64] ss:$8 sps:$4 sm:$0xff]  }
 0xd01   : > { %v13124_v6 = vpop.eup %9395  ;;  %v5175_v18 = vmul.f32 %v15277_v59, %v5095_v44  ;;  %5503 = vmatprep.subr.bf16.mxu0 %v8819_v42 }
 0xd02   : > { %v5030_v1 = vsub.f32 %v15278_v28, %v13124_v6  ;;  %5504 = vmatpush1.bf16.msra.mxu0 %v8817_v32 }
 0xd03   : > { %5254 = vrot.lane.b32.xlu1 %v5175_v18, %s9985_s13 }
 0xd04   : > { %5124 = vrot.lane.b32.xlu0 %v5030_v1, %s9986_s17  ;;  %v13137_v40 = vpop.eup %9397 }
 0xd05   : > { %v5031_v53 = vsub.f32 %v15280_v49, %v13137_v40 }
 0xd07   : > { %5126 = vrot.lane.b32.xlu1 %v5031_v53, %s9986_s17 }
 0xd08   : > { %5252 = vrot.lane.b32.xlu0 %v5174_v34, %s9985_s13 }
 0xd3c   : > { %v5227_v36 = vpop.permute.xlu1 %5226  ;;  %v5097_v15 = vpop.permute.xlu0 %5096 }
 0xd3d   : > { %v5176_v44 = vmul.f32 %v12803_v29, %v5097_v15  ;;  %v13153_v28 = vadd.f32 %v12848_v46, %v5227_v36 }
 0xd3f   : > { %5256 = vrot.lane.b32.xlu1 %v5176_v44, %s9985_s13  ;;  %15281 = vst [vmem:[#allocation8_spill] sm:$0xff] %v13153_v28 }
 0xd40   : > { %v5099_v59 = vpop.permute.xlu1 %5098  ;;  %v5225_v18 = vpop.permute.xlu0 %5224 }
 0xd41   : > { %v13156_v1 = vadd.f32 %v12836_v23, %v5225_v18  ;;  %v5177_v3 = vmul.f32 %v12814_v10, %v5099_v59 }
 0xd43   : > { %15282 = vst [vmem:[#allocation14_spill] sm:$0xff] %v13156_v1  ;;  %v5352_v24 = vpack.c.bf16 %v13153_v28, %v13156_v1 }
 0xd44   : > { %v5101_v35 = vpop.permute.xlu0 %5100 }
 0xd45   : > { %v5231_v54 = vpop.permute.xlu1 %5230  ;;  %5389 = vrot.lane.b32.xlu0 %v5352_v24, %s9984_s12  ;;  %v5178_v23 = vmul.f32 %v12825_v61, %v5101_v35 }
 0xd46   : > { %v13163_v34 = vadd.f32 %v12869_v13, %v5231_v54 }
 0xd48   : > { %v5229_v29 = vpop.permute.xlu0 %5228  ;;  %15283 = vst [vmem:[#allocation12_spill] sm:$0xff] %v13163_v34 }
 0xd49   : > { %v5103_v49 = vpop.permute.xlu1 %5102  ;;  %v13166_v46 = vadd.f32 %v12859_v19, %v5229_v29  ;;  %5258 = vrot.lane.b32.xlu0 %v5177_v3, %s9985_s13 }
 0xd4a   : > { %v5179_v10 = vmul.f32 %v12827_v20, %v5103_v49 }
 0xd4b   : > { %15284 = vst [vmem:[#allocation16_spill] sm:$0xff] %v13166_v46  ;;  %v5353_v53 = vpack.c.bf16 %v13163_v34, %v13166_v46 }
 0xd4d   : > { %v5235_v32 = vpop.permute.xlu1 %5234  ;;  %5260 = vrot.lane.b32.xlu0 %v5178_v23, %s9985_s13  ;;  %5391 = vrot.lane.b32.xlu1 %v5353_v53, %s9984_s12 }
 0xd4e   : > { %v5105_v42 = vpop.permute.xlu0 %5104  ;;  %v13177_v19 = vadd.f32 %v12897_v11, %v5235_v32 }
 0xd4f   : > { %v5180_v15 = vmul.f32 %v12852_v51, %v5105_v42 }
 0xd50   : > { %15285 = vst [vmem:[#allocation11_spill] sm:$0xff] %v13177_v19 }
 0xd51   : > { %v5107_v13 = vpop.permute.xlu1 %5106  ;;  %5262 = vrot.lane.b32.xlu1 %v5179_v10, %s9985_s13 }
 0xd52   : > { %v5233_v36 = vpop.permute.xlu0 %5232  ;;  %v5181_v20 = vmul.f32 %v12864_v5, %v5107_v13 }
 0xd53   : > { %v13180_v61 = vadd.f32 %v12886_v38, %v5233_v36 }
 0xd55   : > { %15286 = vst [vmem:[#allocation19_spill] sm:$0xff] %v13180_v61  ;;  %v5354_v44 = vpack.c.bf16 %v13177_v19, %v13180_v61  ;;  %v5239_v59 = vpop.permute.xlu1 %5238  ;;  %5264 = vrot.lane.b32.xlu1 %v5180_v15, %s9985_s13 }
 0xd56   : > { %v5109_v18 = vpop.permute.xlu0 %5108  ;;  %v13189_v11 = vadd.f32 %v12919_v17, %v5239_v59 }
 0xd57   : > { %5393 = vrot.lane.b32.xlu0 %v5354_v44, %s9984_s12  ;;  %v5182_v51 = vmul.f32 %v12875_v58, %v5109_v18 }
 0xd58   : > { %15287 = vst [vmem:[#allocation13_spill] sm:$0xff] %v13189_v11 }
 0xd59   : > { %v5111_v24 = vpop.permute.xlu1 %5110 }
 0xd5a   : > { %v5237_v35 = vpop.permute.xlu0 %5236  ;;  %v5183_v5 = vmul.f32 %v12880_v47, %v5111_v24 }
 0xd5b   : > { %v13192_v38 = vadd.f32 %v12908_v26, %v5237_v35  ;;  %5266 = vrot.lane.b32.xlu0 %v5181_v20, %s9985_s13 }
 0xd5d   : > { %15288 = vst [vmem:[#allocation21_spill] sm:$0xff] %v13192_v38  ;;  %v5355_v54 = vpack.c.bf16 %v13189_v11, %v13192_v38  ;;  %v5243_v3 = vpop.permute.xlu1 %5242 }
 0xd5e   : > { %v5113_v29 = vpop.permute.xlu0 %5112  ;;  %v13202_v26 = vadd.f32 %v12941_v63, %v5243_v3 }
 0xd5f   : > { %5268 = vrot.lane.b32.xlu0 %v5182_v51, %s9985_s13  ;;  %5395 = vrot.lane.b32.xlu1 %v5355_v54, %s9984_s12  ;;  %v5184_v58 = vmul.f32 %v12891_v12, %v5113_v29 }
 0xd60   : > { %15289 = vst [vmem:[#allocation15_spill] sm:$0xff] %v13202_v26 }
 0xd61   : > { %v5115_v17 = vpop.permute.xlu1 %5114 }
 0xd62   : > { %v5241_v49 = vpop.permute.xlu0 %5240  ;;  %v5185_v47 = vmul.f32 %v12902_v33, %v5115_v17 }
 0xd63   : > { %v13205_v23 = vadd.f32 %v12930_v7, %v5241_v49  ;;  %5270 = vrot.lane.b32.xlu1 %v5183_v5, %s9985_s13  ;;  %v15298_v5 = vmov 0  }
 0xd65   : > { %15290 = vst [vmem:[#allocation23_spill] sm:$0xff] %v13205_v23  ;;  %v5356_v53 = vpack.c.bf16 %v13202_v26, %v13205_v23  ;;  %v5247_v32 = vpop.permute.xlu1 %5246 }
 0xd66   : > { %v5117_v42 = vpop.permute.xlu0 %5116  ;;  %v13215_v7 = vadd.f32 %v12963_v56, %v5247_v32 }
 0xd67   : > { %5272 = vrot.lane.b32.xlu1 %v5184_v58, %s9985_s13  ;;  %5397 = vrot.lane.b32.xlu0 %v5356_v53, %s9984_s12  ;;  %v5186_v12 = vmul.f32 %v12913_v4, %v5117_v42 }
 0xd68   : > { %15291 = vst [vmem:[#allocation17_spill] sm:$0xff] %v13215_v7 }
 0xd69   : > { %v5119_v63 = vpop.permute.xlu1 %5118 }
 0xd6a   : > { %v5245_v10 = vpop.permute.xlu0 %5244  ;;  %v5187_v33 = vmul.f32 %v12924_v16, %v5119_v63 }
 0xd6b   : > { %v13218_v13 = vadd.f32 %v12952_v41, %v5245_v10  ;;  %5274 = vrot.lane.b32.xlu0 %v5185_v47, %s9985_s13 }
 0xd6d   : > { %15292 = vst [vmem:[#allocation25_spill] sm:$0xff] %v13218_v13  ;;  %v5357_v36 = vpack.c.bf16 %v13215_v7, %v13218_v13  ;;  %v5251_v15 = vpop.permute.xlu1 %5250 }
 0xd6e   : > { %v5121_v44 = vpop.permute.xlu0 %5120  ;;  %v13228_v41 = vadd.f32 %v12979_v52, %v5251_v15 }
 0xd6f   : > { %5276 = vrot.lane.b32.xlu0 %v5186_v12, %s9985_s13  ;;  %5399 = vrot.lane.b32.xlu1 %v5357_v36, %s9984_s12  ;;  %v5188_v4 = vmul.f32 %v12935_v8, %v5121_v44 }
 0xd70   : > { %15293 = vst [vmem:[#allocation20_spill] sm:$0xff] %v13228_v41 }
 0xd71   : > { %v5123_v56 = vpop.permute.xlu1 %5122 }
 0xd72   : > { %v5249_v59 = vpop.permute.xlu0 %5248  ;;  %v5189_v35 = vmul.f32 %v12946_v2, %v5123_v56  ;;  %v15297_v2 = vld [vmem:[#allocation9_spill] sm:$0xff] }
 0xd73   : > { %v13231_v18 = vadd.f32 %v12972_v31, %v5249_v59  ;;  %5278 = vrot.lane.b32.xlu1 %v5187_v33, %s9985_s13 }
 0xd75   : > { %15294 = vst [vmem:[#allocation26_spill] sm:$0xff] %v13231_v18  ;;  %v5358_v20 = vpack.c.bf16 %v13228_v41, %v13231_v18  ;;  %v5255_v16 = vpop.permute.xlu1 %5254 }
 0xd76   : > { %v5125_v24 = vpop.permute.xlu0 %5124  ;;  %v13241_v51 = vadd.f32 %v12989_v9, %v5255_v16 }
 0xd77   : > { %5280 = vrot.lane.b32.xlu1 %v5188_v4, %s9985_s13  ;;  %5401 = vrot.lane.b32.xlu0 %v5358_v20, %s9984_s12  ;;  %v5190_v8 = vmul.f32 %v12957_v48, %v5125_v24 }
 0xd78   : > { %15295 = vst [vmem:[#allocation24_spill] sm:$0xff] %v13241_v51 }
 0xd79   : > { %v5127_v3 = vpop.permute.xlu1 %5126 }
 0xd7a   : > { %v5253_v52 = vpop.permute.xlu0 %5252  ;;  %v5191_v29 = vmul.f32 %v15297_v2, %v5127_v3 }
 0xd7b   : > { %v13244_v31 = vadd.f32 %v12984_v50, %v5253_v52  ;;  %5282 = vrot.lane.b32.xlu0 %v5189_v35, %s9985_s13 }
 0xd7d   : > { %15296 = vst [vmem:[#allocation27_spill] sm:$0xff] %v13244_v31  ;;  %v5359_v54 = vpack.c.bf16 %v13241_v51, %v13244_v31 }
 0xd7f   : > { %5284 = vrot.lane.b32.xlu0 %v5190_v8, %s9985_s13  ;;  %5403 = vrot.lane.b32.xlu1 %v5359_v54, %s9984_s12 }
 0xd83   : > { %5286 = vrot.lane.b32.xlu1 %v5191_v29, %s9985_s13 }
 0xdb1   : > { %v5257_v50 = vpop.permute.xlu1 %5256 }
 0xdb2   : > { %v13257_v48 = vadd.f32 %v13002_v27, %v5257_v50 }
 0xdb4   : > { %15299 = vst [vmem:[#allocation28_spill] sm:$0xff] %v13257_v48 }
 0xdb7   : > { %v5390_v9 = vpop.permute.xlu0 %5389 }
 0xdb8   : > { %8047 = vmatmul.mubr.msk.bf16.vlgmr.msra.gmra.mxu0 %vm534_vm0, %v5390_v9 }
 0xdb9   : > { %5531 = vmatprep.mubr.bf16.mxu0 %v15298_v5 }
 0xdbb   : > { %v5259_v17 = vpop.permute.xlu0 %5258 }
 0xdbc   : > { %v13260_v49 = vadd.f32 %v13011_v0, %v5259_v17 }
 0xdbe   : > { %15300 = vst [vmem:[#allocation29_spill] sm:$0xff] %v13260_v49  ;;  %v5360_v58 = vpack.c.bf16 %v13260_v49, %v13257_v48 }
 0xdbf   : > { %v5392_v53 = vpop.permute.xlu1 %5391  ;;  %v5261_v32 = vpop.permute.xlu0 %5260 }
 0xdc0   : > { %8048 = vmatmul.mubr.msk.bf16.gmra.mxu0 %vm534_vm0, %v5392_v53  ;;  %5405 = vrot.lane.b32.xlu0 %v5360_v58, %s9984_s12  ;;  %v13268_v47 = vadd.f32 %v13020_v45, %v5261_v32 }
 0xdc1   : > { %5541 = vmatprep.mubr.bf16.mxu0 %v15298_v5 }
 0xdc2   : > { %15301 = vst [vmem:[#allocation44_spill] sm:$0xff] %v13268_v47 }
 0xdc3   : > { %v5263_v42 = vpop.permute.xlu1 %5262 }
 0xdc4   : > { %v13271_v27 = vadd.f32 %v13028_v39, %v5263_v42 }
 0xdc6   : > { %15302 = vst [vmem:[#allocation52_spill] sm:$0xff] %v13271_v27  ;;  %v5361_v0 = vpack.c.bf16 %v13271_v27, %v13268_v47 }
 0xdc7   : > { %v5265_v10 = vpop.permute.xlu1 %5264 }
 0xdc8   : > { %5407 = vrot.lane.b32.xlu1 %v5361_v0, %s9984_s12  ;;  %v13279_v36 = vadd.f32 %v13040_v14, %v5265_v10 }
 0xdc9   : > { %v5394_v63 = vpop.permute.xlu0 %5393 }
 0xdca   : > { %8049 = vmatmul.mubr.msk.bf16.gmra.mxu0 %vm534_vm0, %v5394_v63  ;;  %15303 = vst [vmem:[#allocation30_spill] sm:$0xff] %v13279_v36 }
 0xdcb   : > { %5551 = vmatprep.mubr.bf16.mxu0 %v15298_v5 }
 0xdcd   : > { %v5267_v12 = vpop.permute.xlu0 %5266 }
 0xdce   : > { %v13282_v45 = vadd.f32 %v13049_v60, %v5267_v12 }
 0xdd0   : > { %15304 = vst [vmem:[#allocation37_spill] sm:$0xff] %v13282_v45  ;;  %v5362_v39 = vpack.c.bf16 %v13282_v45, %v13279_v36 }
 0xdd1   : > { %v5396_v15 = vpop.permute.xlu1 %5395  ;;  %v5269_v44 = vpop.permute.xlu0 %5268 }
 0xdd2   : > { %8050 = vmatmul.mubr.msk.bf16.gmra.mxu0 %vm534_vm0, %v5396_v15  ;;  %5409 = vrot.lane.b32.xlu0 %v5362_v39, %s9984_s12  ;;  %v13290_v56 = vadd.f32 %v13058_v57, %v5269_v44 }
 0xdd3   : > { %5561 = vmatprep.mubr.bf16.mxu0 %v15298_v5 }
 0xdd4   : > { %15305 = vst [vmem:[#allocation43_spill] sm:$0xff] %v13290_v56 }
 0xdd5   : > { %v5271_v33 = vpop.permute.xlu1 %5270 }
 0xdd6   : > { %v13293_v14 = vadd.f32 %v13067_v22, %v5271_v33 }
 0xdd8   : > { %15306 = vst [vmem:[#allocation51_spill] sm:$0xff] %v13293_v14  ;;  %v5363_v60 = vpack.c.bf16 %v13293_v14, %v13290_v56 }
 0xdd9   : > { %v5398_v59 = vpop.permute.xlu0 %5397  ;;  %v5273_v4 = vpop.permute.xlu1 %5272 }
 0xdda   : > { %5411 = vrot.lane.b32.xlu1 %v5363_v60, %s9984_s12  ;;  %8051 = vmatmul.mubr.msk.bf16.gmra.mxu0 %vm534_vm0, %v5398_v59  ;;  %v13301_v24 = vadd.f32 %v13076_v30, %v5273_v4 }
 0xddb   : > { %5571 = vmatprep.mubr.bf16.mxu0 %v15298_v5 }
 0xddc   : > { %15307 = vst [vmem:[#allocation31_spill] sm:$0xff] %v13301_v24 }
 0xddd   : > { %v5275_v20 = vpop.permute.xlu0 %5274 }
 0xdde   : > { %v13304_v57 = vadd.f32 %v13085_v37, %v5275_v20 }
 0xde0   : > { %15308 = vst [vmem:[#allocation38_spill] sm:$0xff] %v13304_v57  ;;  %v5364_v22 = vpack.c.bf16 %v13304_v57, %v13301_v24 }
 0xde1   : > { %v5400_v16 = vpop.permute.xlu1 %5399  ;;  %v5277_v35 = vpop.permute.xlu0 %5276 }
 0xde2   : > { %8052 = vmatmul.mubr.msk.bf16.gmra.mxu0 %vm534_vm0, %v5400_v16  ;;  %5413 = vrot.lane.b32.xlu0 %v5364_v22, %s9984_s12  ;;  %v13312_v8 = vadd.f32 %v13094_v43, %v5277_v35  ;;  %v15315_v35 = vld [vmem:[#allocation7_spill] sm:$0xff] }
 0xde3   : > { %5581 = vmatprep.mubr.bf16.mxu0 %v15298_v5 }
 0xde4   : > { %15309 = vst [vmem:[#allocation46_spill] sm:$0xff] %v13312_v8 }
 0xde5   : > { %v5279_v52 = vpop.permute.xlu1 %5278 }
 0xde6   : > { %v13315_v30 = vadd.f32 %v13103_v62, %v5279_v52 }
 0xde8   : > { %15310 = vst [vmem:[#allocation42_spill] sm:$0xff] %v13315_v30  ;;  %v5365_v37 = vpack.c.bf16 %v13315_v30, %v13312_v8 }
 0xde9   : > { %v5402_v54 = vpop.permute.xlu0 %5401  ;;  %v5281_v3 = vpop.permute.xlu1 %5280 }
 0xdea   : > { %5415 = vrot.lane.b32.xlu1 %v5365_v37, %s9984_s12  ;;  %8053 = vmatmul.mubr.msk.bf16.gmra.mxu0 %vm534_vm0, %v5402_v54  ;;  %v13323_v29 = vadd.f32 %v13110_v21, %v5281_v3 }
 0xdeb   : > { %5591 = vmatprep.mubr.bf16.mxu0 %v15298_v5 }
 0xdec   : > { %15311 = vst [vmem:[#allocation32_spill] sm:$0xff] %v13323_v29 }
 0xded   : > { %v5283_v2 = vpop.permute.xlu0 %5282 }
 0xdee   : > { %v13326_v43 = vadd.f32 %v13117_v55, %v5283_v2 }
 0xdf0   : > { %15312 = vst [vmem:[#allocation39_spill] sm:$0xff] %v13326_v43  ;;  %v5366_v62 = vpack.c.bf16 %v13326_v43, %v13323_v29 }
 0xdf1   : > { %v5404_v9 = vpop.permute.xlu1 %5403  ;;  %v5285_v50 = vpop.permute.xlu0 %5284 }
 0xdf2   : > { %8054 = vmatmul.mubr.msk.bf16.gmra.mxu0 %vm534_vm0, %v5404_v9  ;;  %5417 = vrot.lane.b32.xlu0 %v5366_v62, %s9984_s12  ;;  %v13334_v58 = vadd.f32 %v13124_v6, %v5285_v50 }
 0xdf3   : > { %5601 = vmatprep.mubr.bf16.mxu0 %v15298_v5 }
 0xdf4   : > { %15313 = vst [vmem:[#allocation45_spill] sm:$0xff] %v13334_v58 }
 0xdf5   : > { %v5287_v17 = vpop.permute.xlu1 %5286 }
 0xdf6   : > { %v13337_v21 = vadd.f32 %v13137_v40, %v5287_v17 }
 0xdf8   : > { %15314 = vst [vmem:[#allocation41_spill] sm:$0xff] %v13337_v21  ;;  %v5367_v55 = vpack.c.bf16 %v13337_v21, %v13334_v58 }
 0xdfa   : > { %5419 = vrot.lane.b32.xlu1 %v5367_v55, %s9984_s12 }
 0xe32   : > { %v5406_v53 = vpop.permute.xlu0 %5405 }
 0xe33   : > { %8055 = vmatmul.mubr.msk.bf16.gmra.mxu0 %vm534_vm0, %v5406_v53 }
 0xe34   : > { %5611 = vmatprep.mubr.bf16.mxu0 %v15298_v5 }
 0xe3a   : > { %v5408_v32 = vpop.permute.xlu1 %5407 }
 0xe3b   : > { %8056 = vmatmul.mubr.msk.bf16.gmra.mxu0 %vm534_vm0, %v5408_v32 }
 0xe3c   : > { %5621 = vmatprep.mubr.bf16.mxu0 %v15298_v5 }
 0xe44   : > { %v5410_v6 = vpop.permute.xlu0 %5409 }
 0xe45   : > { %8057 = vmatmul.mubr.msk.bf16.gmra.mxu0 %vm534_vm0, %v5410_v6 }
 0xe46   : > { %5631 = vmatprep.mubr.bf16.mxu0 %v15298_v5 }
 0xe4c   : > { %v5412_v40 = vpop.permute.xlu1 %5411 }
 0xe4d   : > { %8058 = vmatmul.mubr.msk.bf16.gmra.mxu0 %vm534_vm0, %v5412_v40 }
 0xe4e   : > { %5641 = vmatprep.mubr.bf16.mxu0 %v15298_v5 }
 0xe54   : > { %v5414_v42 = vpop.permute.xlu0 %5413 }
 0xe55   : > { %8059 = vmatmul.mubr.msk.bf16.gmra.mxu0 %vm534_vm0, %v5414_v42 }
 0xe56   : > { %5651 = vmatprep.mubr.bf16.mxu0 %v15298_v5 }
 0xe5c   : > { %v5416_v0 = vpop.permute.xlu1 %5415 }
 0xe5d   : > { %8060 = vmatmul.mubr.msk.bf16.gmra.mxu0 %vm534_vm0, %v5416_v0 }
 0xe5e   : > { %5661 = vmatprep.mubr.bf16.mxu0 %v15298_v5 }
 0xe64   : > { %v5418_v63 = vpop.permute.xlu0 %5417 }
 0xe65   : > { %8061 = vmatmul.mubr.msk.bf16.gmra.mxu0 %vm534_vm0, %v5418_v63 }
 0xe66   : > { %5671 = vmatprep.mubr.bf16.mxu0 %v15298_v5 }
 0xe6c   : > { %v5420_v10 = vpop.permute.xlu1 %5419 }
 0xe6d   : > { %8062 = vmatmul.mubr.msk.bf16.gmra.mxu0 %vm534_vm0, %v5420_v10 }
 0xe78   : > { %v13357_v12 = vpop.f32.mrf.mxu0 }
 0xe7a   : > { %v13359_v39 = vpop.f32.mrf.mxu0 }
 0xe7c   : > { %v13361_v15 = vpop.f32.mrf.mxu0 }
 0xe7e   : > { %v13365_v33 = vpop.f32.mrf.mxu0 }
 0xe80   : > { %v13367_v60 = vpop.f32.mrf.mxu0 }
 0xe82   : > { %v13369_v59 = vpop.f32.mrf.mxu0 }
 0xe84   : > { %v13371_v4 = vpop.f32.mrf.mxu0 }
 0xe86   : > { %v13375_v20 = vpop.f32.mrf.mxu0 }
 0xe8a   : > { %v13377_v22 = vpop.f32.mrf.mxu0 }
 0xe8c   : > { %v13379_v16 = vpop.f32.mrf.mxu0 }
 0xe8d   : > { %v6151_v52 = vadd.f32 %v13379_v16, %v15315_v35 }
 0xe8e   : > { %v13383_v37 = vpop.f32.mrf.mxu0 }
 0xe8f   : > { %6219 = vrot.lane.b32.xlu0 %v6151_v52, %s9984_s12 }
 0xe90   : > { %v13388_v3 = vpop.f32.mrf.mxu0 }
 0xe91   : > { %15316 = vst [vmem:[#allocation33_spill] sm:$0xff] %v13388_v3  ;;  %v6152_v2 = vadd.f32 %v13388_v3, %v15315_v35 }
 0xe92   : > { %v13392_v62 = vpop.f32.mrf.mxu0 }
 0xe93   : > { %6221 = vrot.lane.b32.xlu1 %v6152_v2, %s9984_s12 }
 0xe94   : > { %v13395_v9 = vpop.f32.mrf.mxu0 }
 0xe95   : > { %v6153_v50 = vadd.f32 %v13395_v9, %v15315_v35 }
 0xe96   : > { %v13399_v17 = vpop.f32.mrf.mxu0 }
 0xe97   : > { %6223 = vrot.lane.b32.xlu0 %v6153_v50, %s9984_s12 }
 0xe98   : > { %v13404_v53 = vpop.f32.mrf.mxu0 }
 0xe99   : > { %v6154_v32 = vadd.f32 %v13404_v53, %v15315_v35 }
 0xe9a   : > { %v13408_v6 = vpop.f32.mrf.mxu0 }
 0xe9b   : > { %6225 = vrot.lane.b32.xlu1 %v6154_v32, %s9984_s12 }
 0xe9c   : > { %v13411_v40 = vpop.f32.mrf.mxu0 }
 0xe9d   : > { %v6155_v42 = vadd.f32 %v13411_v40, %v15315_v35 }
 0xe9e   : > { %v13415_v0 = vpop.f32.mrf.mxu0 }
 0xe9f   : > { %6227 = vrot.lane.b32.xlu0 %v6155_v42, %s9984_s12 }
 0xea0   : > { %v13420_v10 = vpop.f32.mrf.mxu0 }
 0xea1   : > { %v6156_v52 = vadd.f32 %v13420_v10, %v15315_v35 }
 0xea2   : > { %v13424_v2 = vpop.f32.mrf.mxu0 }
 0xea3   : > { %6229 = vrot.lane.b32.xlu1 %v6156_v52, %s9984_s12 }
 0xea4   : > { %v13427_v50 = vpop.f32.mrf.mxu0 }
 0xea5   : > { %v6157_v32 = vadd.f32 %v13427_v50, %v15315_v35 }
 0xea6   : > { %v13431_v44 = vpop.f32.mrf.mxu0 }
 0xea7   : > { %6231 = vrot.lane.b32.xlu0 %v6157_v32, %s9984_s12 }
 0xea8   : > { %v13436_v42 = vpop.f32.mrf.mxu0 }
 0xea9   : > { %v6158_v54 = vadd.f32 %v13436_v42, %v15315_v35 }
 0xeaa   : > { %v13440_v55 = vpop.f32.mrf.mxu0 }
 0xeab   : > { %6233 = vrot.lane.b32.xlu1 %v6158_v54, %s9984_s12 }
 0xeac   : > { %v13443_v52 = vpop.f32.mrf.mxu0 }
 0xead   : > { %v6159_v63 = vadd.f32 %v13443_v52, %v15315_v35 }
 0xeae   : > { %v13447_v28 = vpop.f32.mrf.mxu0 }
 0xeaf   : > { %6235 = vrot.lane.b32.xlu0 %v6159_v63, %s9984_s12 }
 0xeb0   : > { %v13452_v32 = vpop.f32.mrf.mxu0 }
 0xeb1   : > { %v6160_v49 = vadd.f32 %v13452_v32, %v15315_v35 }
 0xeb2   : > { %v13456_v1 = vpop.f32.mrf.mxu0 }
 0xeb3   : > { %6237 = vrot.lane.b32.xlu1 %v6160_v49, %s9984_s12 }
 0xeb4   : > { %v13459_v54 = vpop.f32.mrf.mxu0 }
 0xeb5   : > { %v6161_v21 = vadd.f32 %v13459_v54, %v15315_v35 }
 0xeb6   : > { %v13463_v58 = vpop.f32.mrf.mxu0 }
 0xeb7   : > { %6239 = vrot.lane.b32.xlu0 %v6161_v21, %s9984_s12 }
 0xeb8   : > { %v13468_v63 = vpop.f32.mrf.mxu0 }
 0xeb9   : > { %v6162_v43 = vadd.f32 %v13468_v63, %v15315_v35 }
 0xebb   : > { %6241 = vrot.lane.b32.xlu1 %v6162_v43, %s9984_s12 }
 0xef3   : > { %v13473_v49 = vpop.f32.mrf.mxu0 }
 0xef5   : > { %v13475_v29 = vpop.f32.mrf.mxu0 }
 0xef7   : > { %v13477_v30 = vpop.f32.mrf.mxu0 }
 0xef9   : > { %v13481_v57 = vpop.f32.mrf.mxu0 }
 0xefb   : > { %v13483_v5 = vpop.f32.mrf.mxu0 }
 0xefd   : > { %v13485_v21 = vpop.f32.mrf.mxu0 }
 0xefe   : > { %15317 = vst [vmem:[#allocation40_spill] sm:$0xff] %v13485_v21  ;;  %v6165_v24 = vadd.f32 %v13485_v21, %v15315_v35 }
 0xeff   : > { %v13489_v14 = vpop.f32.mrf.mxu0 }
 0xf00   : > { %6247 = vrot.lane.b32.xlu0 %v6165_v24, %s9984_s12 }
 0xf01   : > { %v13494_v56 = vpop.f32.mrf.mxu0 }
 0xf05   : > { %v13496_v45 = vpop.f32.mrf.mxu0 }
 0xf07   : > { %v13498_v8 = vpop.f32.mrf.mxu0 }
 0xf08   : > { %v6167_v36 = vadd.f32 %v13498_v8, %v15315_v35 }
 0xf09   : > { %v13502_v27 = vpop.f32.mrf.mxu0 }
 0xf0a   : > { %6251 = vrot.lane.b32.xlu0 %v6167_v36, %s9984_s12 }
 0xf0b   : > { %v13505_v47 = vpop.f32.mrf.mxu0 }
 0xf0c   : > { %v6168_v43 = vadd.f32 %v13505_v47, %v15315_v35 }
 0xf0d   : > { %v13509_v51 = vpop.f32.mrf.mxu0 }
 0xf0e   : > { %6253 = vrot.lane.b32.xlu1 %v6168_v43, %s9984_s12 }
 0xf0f   : > { %v13512_v24 = vpop.f32.mrf.mxu0 }
 0xf10   : > { %v6169_v48 = vadd.f32 %v13512_v24, %v15315_v35 }
 0xf11   : > { %v5637_v41 = vpop.f32.mrf.mxu0 }
 0xf12   : > { %6255 = vrot.lane.b32.xlu0 %v6169_v48, %s9984_s12 }
 0xf13   : > { %v13517_v31 = vpop.f32.mrf.mxu0 }
 0xf14   : > { %v6170_v36 = vadd.f32 %v13517_v31, %v15315_v35 }
 0xf15   : > { %v5643_v7 = vpop.f32.mrf.mxu0 }
 0xf16   : > { %6257 = vrot.lane.b32.xlu1 %v6170_v36, %s9984_s12 }
 0xf17   : > { %v13522_v18 = vpop.f32.mrf.mxu0 }
 0xf18   : > { %v6171_v43 = vadd.f32 %v13522_v18, %v15315_v35 }
 0xf19   : > { %v5647_v26 = vpop.f32.mrf.mxu0 }
 0xf1a   : > { %6259 = vrot.lane.b32.xlu0 %v6171_v43, %s9984_s12 }
 0xf1b   : > { %v13527_v13 = vpop.f32.mrf.mxu0 }
 0xf1c   : > { %15318 = vst [vmem:[#allocation48_spill] sm:$0xff] %v13527_v13  ;;  %v6172_v48 = vadd.f32 %v13527_v13, %v15315_v35 }
 0xf1d   : > { %v5653_v11 = vpop.f32.mrf.mxu0 }
 0xf1e   : > { %6261 = vrot.lane.b32.xlu1 %v6172_v48, %s9984_s12 }
 0xf1f   : > { %v13532_v23 = vpop.f32.mrf.mxu0 }
 0xf20   : > { %15319 = vst [vmem:[#allocation10_spill] sm:$0xff] %v13532_v23  ;;  %v6173_v36 = vadd.f32 %v13532_v23, %v15315_v35 }
 0xf21   : > { %v5657_v19 = vpop.f32.mrf.mxu0 }
 0xf22   : > { %6263 = vrot.lane.b32.xlu0 %v6173_v36, %s9984_s12 }
 0xf23   : > { %v13537_v38 = vpop.f32.mrf.mxu0 }
 0xf24   : > { %15320 = vst [vmem:[#allocation34_spill] sm:$0xff] %v13537_v38  ;;  %v6174_v43 = vadd.f32 %v13537_v38, %v15315_v35 }
 0xf25   : > { %v5663_v34 = vpop.f32.mrf.mxu0 }
 0xf26   : > { %6265 = vrot.lane.b32.xlu1 %v6174_v43, %s9984_s12 }
 0xf27   : > { %v13542_v61 = vpop.f32.mrf.mxu0 }
 0xf28   : > { %15321 = vst [vmem:[#allocation22_spill] sm:$0xff] %v13542_v61  ;;  %v6175_v48 = vadd.f32 %v13542_v61, %v15315_v35 }
 0xf29   : > { %v5667_v46 = vpop.f32.mrf.mxu0 }
 0xf2a   : > { %6267 = vrot.lane.b32.xlu0 %v6175_v48, %s9984_s12  ;;  %v6149_v48 = vadd.f32 %v13369_v59, %v15315_v35  ;;  %v5696_v13 = vpack.c.bf16 %v5667_v46, %v5663_v34  ;;  %v6166_v34 = vadd.f32 %v13494_v56, %v15315_v35  ;;  %v15324_v46 = vpack.c.bf16 %v13447_v28, %v13440_v55  ;;  %v9901_v55 = vld [vmem:[%s10241_s18 + $0x60] ss:$8 sps:$4 sm:$0xff]  }
 0xf2b   : > { %v13547_v25 = vpop.f32.mrf.mxu0  ;;  %v5693_v28 = vpack.c.bf16 %v5637_v41, %v13509_v51  ;;  %v15327_v41 = vpack.c.bf16 %v13399_v17, %v13392_v62  ;;  %v15328_v51 = vpack.c.bf16 %v13383_v37, %v13377_v22  ;;  %v9889_v22 = vld [vmem:[%s10241_s18] ss:$8 sps:$4 sm:$0xff]   ;;  %v9898_v37 = vld [vmem:[%s10241_s18 + $0x54] ss:$8 sps:$4 sm:$0xff]   ;;  %v9899_v62 = vld [vmem:[%s10241_s18 + $0x50] ss:$8 sps:$4 sm:$0xff]  }
 0xf2c   : > { %15322 = vst [vmem:[#allocation47_spill] sm:$0xff] %v13547_v25  ;;  %v6176_v36 = vadd.f32 %v13547_v25, %v15315_v35  ;;  %v9900_v17 = vld [vmem:[%s10241_s18 + $0x64] ss:$8 sps:$4 sm:$0xff]  }
 0xf2d   : > { %v5673_v3 = vpop.f32.mrf.mxu0 }
 0xf2e   : > { %6269 = vrot.lane.b32.xlu1 %v6176_v36, %s9984_s12  ;;  %v15323_v36 = vpack.c.bf16 %v13463_v58, %v13456_v1  ;;  %v6147_v1 = vadd.f32 %v13359_v39, %v15315_v35  ;;  %v15331_v58 = vpack.c.bf16 %v13477_v30, %v13473_v49  ;;  %v9894_v30 = vld [vmem:[%s10241_s18 + $0x34] ss:$8 sps:$4 sm:$0xff]   ;;  %v9905_v49 = vld [vmem:[%s10241_s18 + $0x80] ss:$8 sps:$4 sm:$0xff]  }
 0xf2f   : > { %v13552_v21 = vpop.f32.mrf.mxu0 }
 0xf30   : > { %v6177_v43 = vadd.f32 %v13552_v21, %v15315_v35 }
 0xf31   : > { %v5677_v38 = vpop.f32.mrf.mxu0 }
 0xf32   : > { %v5697_v23 = vpack.c.bf16 %v5677_v38, %v5673_v3  ;;  %6271 = vrot.lane.b32.xlu0 %v6177_v43, %s9984_s12  ;;  %v6163_v38 = vadd.f32 %v13475_v29, %v15315_v35  ;;  %v5695_v3 = vpack.c.bf16 %v5657_v19, %v5653_v11  ;;  %v15325_v19 = vpack.c.bf16 %v13431_v44, %v13424_v2  ;;  %v9904_v2 = vld [vmem:[%s10241_s18 + $0x84] ss:$8 sps:$4 sm:$0xff]   ;;  %v9906_v43 = vld [vmem:[%s10241_s18 + $0x94] ss:$8 sps:$4 sm:$0xff]  }
 0xf33   : > { %v13557_v61 = vpop.f32.mrf.mxu0  ;;  %v6164_v11 = vadd.f32 %v13481_v57, %v15315_v35  ;;  %v15332_v44 = vpack.c.bf16 %v13361_v15, %v13357_v12  ;;  %v9895_v12 = vld [vmem:[%s10241_s18 + $0x30] ss:$8 sps:$4 sm:$0xff]   ;;  %v9896_v15 = vld [vmem:[%s10241_s18 + $0x44] ss:$8 sps:$4 sm:$0xff]  }
 0xf34   : > { %v6178_v25 = vadd.f32 %v13557_v61, %v15315_v35  ;;  %8475 = vmatprep.subr.bf16.mxu1 %v5697_v23  ;;  %v6150_v23 = vadd.f32 %v13375_v20, %v15315_v35 }
 0xf35   : > { %8476 = vmatpush3.bf16.msra.mxu1 %v15323_v36  ;;  %v9908_v36 = vld [vmem:[%s10241_s18 + $0xa4] ss:$8 sps:$4 sm:$0xff]  }
 0xf36   : > { %6215 = vrot.lane.b32.xlu0 %v6149_v48, %s9984_s12  ;;  %8477 = vmatprep.subr.bf16.mxu1 %v5696_v13  ;;  %v6148_v13 = vadd.f32 %v13365_v33, %v15315_v35  ;;  %v9890_v35 = vld [vmem:[%s10241_s18 + $0x14] ss:$8 sps:$4 sm:$0xff]   ;;  %v9907_v48 = vld [vmem:[%s10241_s18 + $0x90] ss:$8 sps:$4 sm:$0xff]  }
 0xf37   : > { %6273 = vrot.lane.b32.xlu1 %v6178_v25, %s9984_s12  ;;  %v5694_v25 = vpack.c.bf16 %v5647_v26, %v5643_v7  ;;  %v15326_v26 = vpack.c.bf16 %v13415_v0, %v13408_v6  ;;  %v5692_v7 = vpack.c.bf16 %v13502_v27, %v13496_v45  ;;  %v15329_v27 = vpack.c.bf16 %v13489_v14, %v13483_v5  ;;  %v9891_v14 = vld [vmem:[%s10241_s18 + $0x10] ss:$8 sps:$4 sm:$0xff]   ;;  %v9897_v5 = vld [vmem:[%s10241_s18 + $0x40] ss:$8 sps:$4 sm:$0xff]   ;;  %v9902_v6 = vld [vmem:[%s10241_s18 + $0x74] ss:$8 sps:$4 sm:$0xff]  }
 0xf38   : > { %v15330_v45 = vpack.c.bf16 %v13371_v4, %v13367_v60  ;;  %v9892_v60 = vld [vmem:[%s10241_s18 + $0x24] ss:$8 sps:$4 sm:$0xff]   ;;  %v9893_v4 = vld [vmem:[%s10241_s18 + $0x20] ss:$8 sps:$4 sm:$0xff]   ;;  %v9903_v0 = vld [vmem:[%s10241_s18 + $0x70] ss:$8 sps:$4 sm:$0xff]  }
 0xf39   : > { %8478 = vmatpush3.bf16.msra.mxu1 %v15324_v46  ;;  %v9912_v46 = vld [vmem:[%s10241_s18 + $0xc4] ss:$8 sps:$4 sm:$0xff]  }
 0xf3a   : > { %6243 = vrot.lane.b32.xlu0 %v6163_v38, %s9984_s12  ;;  %8479 = vmatprep.subr.bf16.mxu1 %v5695_v3  ;;  %v9909_v38 = vld [vmem:[%s10241_s18 + $0xa0] ss:$8 sps:$4 sm:$0xff]   ;;  %v9910_v3 = vld [vmem:[%s10241_s18 + $0xb4] ss:$8 sps:$4 sm:$0xff]  }
 0xf3b   : > { %6249 = vrot.lane.b32.xlu1 %v6166_v34, %s9984_s12  ;;  %v9911_v34 = vld [vmem:[%s10241_s18 + $0xb0] ss:$8 sps:$4 sm:$0xff]  }
 0xf3d   : > { %8480 = vmatpush3.bf16.msra.mxu1 %v15325_v19  ;;  %v9916_v19 = vld [vmem:[%s10241_s18 + $0xe4] ss:$8 sps:$4 sm:$0xff]  }
 0xf3e   : > { %6211 = vrot.lane.b32.xlu0 %v6147_v1, %s9984_s12  ;;  %8481 = vmatprep.subr.bf16.mxu1 %v5694_v25  ;;  %v9913_v1 = vld [vmem:[%s10241_s18 + $0xc0] ss:$8 sps:$4 sm:$0xff]   ;;  %v9914_v25 = vld [vmem:[%s10241_s18 + $0xd4] ss:$8 sps:$4 sm:$0xff]  }
 0xf3f   : > { %6217 = vrot.lane.b32.xlu1 %v6150_v23, %s9984_s12  ;;  %v9915_v23 = vld [vmem:[%s10241_s18 + $0xd0] ss:$8 sps:$4 sm:$0xff]  }
 0xf41   : > { %8482 = vmatpush3.bf16.msra.mxu1 %v15326_v26  ;;  %v9919_v26 = vld [vmem:[%s10241_s18 + $0xf0] ss:$8 sps:$4 sm:$0xff]  }
 0xf42   : > { %8483 = vmatprep.subr.bf16.mxu1 %v5693_v28  ;;  %v9917_v28 = vld [vmem:[%s10241_s18 + $0xe0] ss:$8 sps:$4 sm:$0xff]  }
 0xf43   : > { %6245 = vrot.lane.b32.xlu1 %v6164_v11, %s9984_s12  ;;  %v9918_v11 = vld [vmem:[%s10241_s18 + $0xf4] ss:$8 sps:$4 sm:$0xff]   ;;  %s7722_s18 = sld [smem:[#allocation3]] }
 0xf45   : > { %8484 = vmatpush3.bf16.msra.mxu1 %v15327_v41 }
 0xf46   : > { %8485 = vmatprep.subr.bf16.mxu1 %v5692_v7 }
 0xf47   : > { %6213 = vrot.lane.b32.xlu1 %v6148_v13, %s9984_s12 }
 0xf49   : > { %8486 = vmatpush3.bf16.msra.mxu1 %v15328_v51 }
 0xf4a   : > { %8487 = vmatprep.subr.bf16.mxu1 %v15329_v27 }
 0xf4d   : > { %8488 = vmatpush3.bf16.msra.mxu1 %v15330_v45 }
 0xf4e   : > { %8489 = vmatprep.subr.bf16.mxu1 %v15331_v58 }
 0xf51   : > { %8490 = vmatpush3.bf16.msra.mxu1 %v15332_v44 }
 0xf54   : > { %5731 = vmatmul.mubr.bf16.vlgmr.msra.gmra.mxu1 %v9889_v22 }
 0xf55   : > { %5738 = vmatprep.mubr.bf16.mxu1 %v9890_v35 }
 0xf5c   : > { %5739 = vmatmul.mubr.bf16.gmra.mxu1 %v9891_v14 }
 0xf5d   : > { %5746 = vmatprep.mubr.bf16.mxu1 %v9892_v60 }
 0xf64   : > { %5747 = vmatmul.mubr.bf16.gmra.mxu1 %v9893_v4 }
 0xf65   : > { %5754 = vmatprep.mubr.bf16.mxu1 %v9894_v30 }
 0xf6c   : > { %5755 = vmatmul.mubr.bf16.gmra.mxu1 %v9895_v12 }
 0xf6d   : > { %5762 = vmatprep.mubr.bf16.mxu1 %v9896_v15 }
 0xf74   : > { %5763 = vmatmul.mubr.bf16.gmra.mxu1 %v9897_v5 }
 0xf75   : > { %5770 = vmatprep.mubr.bf16.mxu1 %v9898_v37 }
 0xf7c   : > { %5771 = vmatmul.mubr.bf16.gmra.mxu1 %v9899_v62  ;;  %v13662_v62 = vld [vmem:[%s14842_s4] ss:$0 sm:$0xff] }
 0xf7d   : > { %5778 = vmatprep.mubr.bf16.mxu1 %v9900_v17 }
 0xf84   : > { %5779 = vmatmul.mubr.bf16.gmra.mxu1 %v9901_v55 }
 0xf85   : > { %5786 = vmatprep.mubr.bf16.mxu1 %v9902_v6 }
 0xf8c   : > { %5787 = vmatmul.mubr.bf16.gmra.mxu1 %v9903_v0 }
 0xf8d   : > { %5794 = vmatprep.mubr.bf16.mxu1 %v9904_v2 }
 0xf94   : > { %5795 = vmatmul.mubr.bf16.gmra.mxu1 %v9905_v49 }
 0xf95   : > { %5802 = vmatprep.mubr.bf16.mxu1 %v9906_v43 }
 0xf9c   : > { %5803 = vmatmul.mubr.bf16.gmra.mxu1 %v9907_v48 }
 0xf9d   : > { %5810 = vmatprep.mubr.bf16.mxu1 %v9908_v36 }
 0xfa4   : > { %5811 = vmatmul.mubr.bf16.gmra.mxu1 %v9909_v38 }
 0xfa5   : > { %5818 = vmatprep.mubr.bf16.mxu1 %v9910_v3 }
 0xfac   : > { %5819 = vmatmul.mubr.bf16.gmra.mxu1 %v9911_v34 }
 0xfad   : > { %5826 = vmatprep.mubr.bf16.mxu1 %v9912_v46 }
 0xfb4   : > { %5827 = vmatmul.mubr.bf16.gmra.mxu1 %v9913_v1 }
 0xfb5   : > { %5834 = vmatprep.mubr.bf16.mxu1 %v9914_v25 }
 0xfbc   : > { %5835 = vmatmul.mubr.bf16.gmra.mxu1 %v9915_v23 }
 0xfbd   : > { %5842 = vmatprep.mubr.bf16.mxu1 %v9916_v19 }
 0xfc4   : > { %5843 = vmatmul.mubr.bf16.gmra.mxu1 %v9917_v28 }
 0xfc5   : > { %5850 = vmatprep.mubr.bf16.mxu1 %v9918_v11 }
 0xfcc   : > { %5851 = vmatmul.mubr.bf16.gmra.mxu1 %v9919_v26 }
0x1014   : > { %v8491_v7 = vpop.f32.mrf.mxu1 }
0x1016   : > { %v8492_v13 = vpop.f32.mrf.mxu1 }
0x1017   : > { %v13647_v41 = vadd.f32 %v8492_v13, %v8491_v7 }
0x1018   : > { %v8494_v51 = vpop.f32.mrf.mxu1 }
0x1019   : > { %15333 = vst [vmem:[#allocation49_spill] sm:$0xff] %v13647_v41 }
0x101a   : > { %v8495_v27 = vpop.f32.mrf.mxu1 }
0x101b   : > { %v13649_v45 = vadd.f32 %v8495_v27, %v8494_v51 }
0x101c   : > { %v8497_v58 = vpop.f32.mrf.mxu1 }
0x101d   : > { %15334 = vst [vmem:[#allocation35_spill] sm:$0xff] %v13649_v45 }
0x101e   : > { %v8498_v44 = vpop.f32.mrf.mxu1 }
0x101f   : > { %v13651_v22 = vadd.f32 %v8498_v44, %v8497_v58 }
0x1020   : > { %v8500_v35 = vpop.f32.mrf.mxu1 }
0x1022   : > { %v8501_v14 = vpop.f32.mrf.mxu1 }
0x1023   : > { %v13653_v60 = vadd.f32 %v8501_v14, %v8500_v35 }
0x1024   : > { %v8503_v4 = vpop.f32.mrf.mxu1 }
0x1026   : > { %v8504_v30 = vpop.f32.mrf.mxu1 }
0x1027   : > { %v13655_v12 = vadd.f32 %v8504_v30, %v8503_v4 }
0x1028   : > { %v8506_v15 = vpop.f32.mrf.mxu1 }
0x1029   : > { %v5863_v5 = vadd.f32 %v13655_v12, %v13379_v16 }
0x102a   : > { %v8507_v37 = vpop.f32.mrf.mxu1 }
0x102b   : > { %v5895_v17 = vadd.f32 %v13662_v62, %v5863_v5  ;;  %v13665_v55 = vadd.f32 %v8507_v37, %v8506_v15 }
0x102c   : > { %v8509_v6 = vpop.f32.mrf.mxu1 }
0x102d   : > { %v8067_v0 = vmul.f32 -1.442695, %v5895_v17 }
0x102e   : > { %v8510_v2 = vpop.f32.mrf.mxu1 }
0x102f   : > { %v13667_v49 = vadd.f32 %v8510_v2, %v8509_v6  ;;  %9399 = vpow2.f32 %v8067_v0 }
0x1030   : > { %v8512_v43 = vpop.f32.mrf.mxu1 }
0x1031   : > { %v5865_v16 = vadd.f32 %v13667_v49, %v13395_v9 }
0x1032   : > { %v8513_v48 = vpop.f32.mrf.mxu1 }
0x1033   : > { %v5897_v36 = vadd.f32 %v13662_v62, %v5865_v16  ;;  %v13672_v38 = vadd.f32 %v8513_v48, %v8512_v43 }
0x1034   : > { %v8515_v3 = vpop.f32.mrf.mxu1 }
0x1035   : > { %v8069_v34 = vmul.f32 -1.442695, %v5897_v36  ;;  %v5866_v46 = vadd.f32 %v13672_v38, %v13404_v53 }
0x1036   : > { %v8516_v1 = vpop.f32.mrf.mxu1 }
0x1037   : > { %v5898_v25 = vadd.f32 %v13662_v62, %v5866_v46  ;;  %v13677_v23 = vadd.f32 %v8516_v1, %v8515_v3  ;;  %9401 = vpow2.f32 %v8069_v34 }
0x1038   : > { %v8518_v19 = vpop.f32.mrf.mxu1 }
0x1039   : > { %v8070_v28 = vmul.f32 -1.442695, %v5898_v25  ;;  %v5867_v9 = vadd.f32 %v13677_v23, %v13411_v40 }
0x103a   : > { %v8519_v11 = vpop.f32.mrf.mxu1 }
0x103b   : > { %v5899_v26 = vadd.f32 %v13662_v62, %v5867_v9  ;;  %v13682_v7 = vadd.f32 %v8519_v11, %v8518_v19  ;;  %9403 = vpow2.f32 %v8070_v28  ;;  %v6220_v11 = vpop.permute.xlu0 %6219 }
0x103c   : > { %v8521_v13 = vpop.f32.mrf.mxu1  ;;  %v9400_v51 = vpop.eup %9399 }
0x103d   : > { %v8071_v53 = vmul.f32 -1.442695, %v5899_v26  ;;  %v5868_v27 = vadd.f32 %v13682_v7, %v13420_v10  ;;  %v6023_v58 = vadd.f32 1.0, %v9400_v51 }
0x103e   : > { %v8522_v44 = vpop.f32.mrf.mxu1 }
0x103f   : > { %9405 = vpow2.f32 %v8071_v53  ;;  %v5900_v35 = vadd.f32 %v13662_v62, %v5868_v27  ;;  %v13687_v14 = vadd.f32 %v8522_v44, %v8521_v13 }
0x1040   : > { %9407 = vrcp.f32 %v6023_v58  ;;  %v8524_v40 = vpop.f32.mrf.mxu1 }
0x1041   : > { %v8072_v4 = vmul.f32 -1.442695, %v5900_v35  ;;  %v5869_v30 = vadd.f32 %v13687_v14, %v13427_v50 }
0x1042   : > { %v8525_v15 = vpop.f32.mrf.mxu1 }
0x1043   : > { %9409 = vpow2.f32 %v8072_v4  ;;  %v5901_v5 = vadd.f32 %v13662_v62, %v5869_v30  ;;  %v13692_v37 = vadd.f32 %v8525_v15, %v8524_v40 }
0x1044   : > { %v8527_v10 = vpop.f32.mrf.mxu1  ;;  %v9402_v17 = vpop.eup %9401 }
0x1045   : > { %v8073_v6 = vmul.f32 -1.442695, %v5901_v5  ;;  %v5870_v0 = vadd.f32 %v13692_v37, %v13436_v42  ;;  %v6025_v2 = vadd.f32 1.0, %v9402_v17 }
0x1046   : > { %v8528_v43 = vpop.f32.mrf.mxu1 }
0x1047   : > { %9411 = vpow2.f32 %v8073_v6  ;;  %v5902_v16 = vadd.f32 %v13662_v62, %v5870_v0  ;;  %v13697_v48 = vadd.f32 %v8528_v43, %v8527_v10  ;;  %v13720_v0 = vpop.permute.xlu1 %6221 }
0x1048   : > { %9413 = vrcp.f32 %v6025_v2  ;;  %v8530_v50 = vpop.f32.mrf.mxu1  ;;  %v9404_v36 = vpop.eup %9403 }
0x1049   : > { %v8074_v3 = vmul.f32 -1.442695, %v5902_v16  ;;  %v5871_v34 = vadd.f32 %v13697_v48, %v13443_v52  ;;  %v6026_v46 = vadd.f32 1.0, %v9404_v36  ;;  %v6224_v2 = vpop.permute.xlu0 %6223 }
0x104a   : > { %v8531_v1 = vpop.f32.mrf.mxu1 }
0x104b   : > { %9415 = vpow2.f32 %v8074_v3  ;;  %v5903_v25 = vadd.f32 %v13662_v62, %v5871_v34  ;;  %v13702_v42 = vadd.f32 %v8531_v1, %v8530_v50 }
0x104c   : > { %v9406_v19 = vpop.eup %9405  ;;  %9417 = vrcp.f32 %v6026_v46  ;;  %v8533_v28 = vpop.f32.mrf.mxu1 }
0x104d   : > { %v13704_v9 = vpop.eup %9407  ;;  %v6027_v26 = vadd.f32 1.0, %v9406_v19  ;;  %v8075_v13 = vmul.f32 -1.442695, %v5903_v25  ;;  %v5872_v51 = vadd.f32 %v13702_v42, %v13452_v32  ;;  %v6226_v19 = vpop.permute.xlu1 %6225 }
0x104e   : > { %15335 = vst [vmem:[#allocation36_spill] sm:$0xff] %v13704_v9  ;;  %v8534_v53 = vpop.f32.mrf.mxu1  ;;  %v6311_v52 = vmul.f32 %v13704_v9, %v6220_v11 }
0x104f   : > { %9419 = vrcp.f32 %v6027_v26  ;;  %v5904_v27 = vadd.f32 %v13662_v62, %v5872_v51  ;;  %v13710_v58 = vadd.f32 %v8534_v53, %v8533_v28  ;;  %v6228_v53 = vpop.permute.xlu0 %6227 }
0x1050   : > { %v9410_v44 = vpop.eup %9409  ;;  %9421 = vpow2.f32 %v8075_v13  ;;  %6379 = vrot.lane.b32.xlu0 %v6311_v52, %s9984_s12  ;;  %v8536_v35 = vpop.f32.mrf.mxu1 }
0x1051   : > { %v6028_v40 = vadd.f32 1.0, %v9410_v44  ;;  %v8076_v4 = vmul.f32 -1.442695, %v5904_v27  ;;  %v5873_v30 = vadd.f32 %v13710_v58, %v13459_v54 }
0x1052   : > { %v8537_v15 = vpop.f32.mrf.mxu1 }
0x1053   : > { %9423 = vrcp.f32 %v6028_v40  ;;  %v5905_v32 = vadd.f32 %v13662_v62, %v5873_v30  ;;  %v13716_v5 = vadd.f32 %v8537_v15, %v8536_v35  ;;  %v6230_v30 = vpop.permute.xlu1 %6229 }
0x1054   : > { %v9412_v10 = vpop.eup %9411  ;;  %9425 = vpow2.f32 %v8076_v4  ;;  %v8539_v17 = vpop.f32.mrf.mxu1 }
0x1055   : > { %v13718_v6 = vpop.eup %9413  ;;  %v6029_v43 = vadd.f32 1.0, %v9412_v10  ;;  %v8077_v16 = vmul.f32 -1.442695, %v5905_v32  ;;  %v5874_v50 = vadd.f32 %v13716_v5, %v13468_v63 }
0x1056   : > { %15336 = vst [vmem:[#allocation50_spill] sm:$0xff] %v13718_v6  ;;  %v8540_v54 = vpop.f32.mrf.mxu1  ;;  %v6313_v36 = vmul.f32 %v13718_v6, %v6224_v2 }
0x1057   : > { %9427 = vrcp.f32 %v6029_v43  ;;  %v5906_v3 = vadd.f32 %v13662_v62, %v5874_v50  ;;  %v13726_v34 = vadd.f32 %v8540_v54, %v8539_v17 }
0x1058   : > { %v9416_v46 = vpop.eup %9415  ;;  %9429 = vpow2.f32 %v8077_v16  ;;  %6383 = vrot.lane.b32.xlu0 %v6313_v36, %s9984_s12  ;;  %v8542_v1 = vpop.f32.mrf.mxu1 }
0x1059   : > { %v13729_v25 = vpop.eup %9417  ;;  %v6030_v28 = vadd.f32 1.0, %v9416_v46  ;;  %v8078_v11 = vmul.f32 -1.442695, %v5906_v3  ;;  %v6232_v16 = vpop.permute.xlu0 %6231 }
0x105a   : > { %15337 = vst [vmem:[#allocation9_spill] sm:$0xff] %v13729_v25  ;;  %v8543_v26 = vpop.f32.mrf.mxu1  ;;  %v6314_v63 = vmul.f32 %v13729_v25, %v6226_v19 }
0x105b   : > { %9431 = vrcp.f32 %v6030_v28  ;;  %v13732_v13 = vadd.f32 %v8543_v26, %v8542_v1  ;;  %v6234_v28 = vpop.permute.xlu1 %6233 }
0x105c   : > { %v13734_v51 = vpop.eup %9419  ;;  %9433 = vpow2.f32 %v8078_v11  ;;  %6385 = vrot.lane.b32.xlu1 %v6314_v63, %s9984_s12  ;;  %v13737_v52 = vpop.f32.mrf.mxu1 }
0x105d   : > { %15338 = vst [vmem:[#allocation7_spill] sm:$0xff] %v13732_v13  ;;  %15339 = vst [vmem:[#allocation53_spill] sm:$0xff] %v13734_v51  ;;  %v9422_v27 = vpop.eup %9421  ;;  %v6315_v44 = vmul.f32 %v13734_v51, %v6228_v53 }
0x105e   : > { %v6031_v35 = vadd.f32 1.0, %v9422_v27  ;;  %v13740_v40 = vpop.f32.mrf.mxu1 }
0x105f   : > { %6387 = vrot.lane.b32.xlu0 %v6315_v44, %s9984_s12 }
0x1060   : > { %v13743_v4 = vpop.eup %9423  ;;  %9435 = vrcp.f32 %v6031_v35  ;;  %v13745_v15 = vpop.f32.mrf.mxu1 }
0x1061   : > { %15340 = vst [vmem:[#allocation54_spill] sm:$0xff] %v13743_v4  ;;  %v9426_v32 = vpop.eup %9425  ;;  %v6316_v10 = vmul.f32 %v13743_v4, %v6230_v30 }
0x1062   : > { %v6032_v17 = vadd.f32 1.0, %v9426_v32  ;;  %v13748_v2 = vpop.f32.mrf.mxu1 }
0x1063   : > { %6389 = vrot.lane.b32.xlu1 %v6316_v10, %s9984_s12 }
0x1064   : > { %v13751_v43 = vpop.eup %9427  ;;  %9437 = vrcp.f32 %v6032_v17  ;;  %v8551_v50 = vpop.f32.mrf.mxu1 }
0x1065   : > { %15341 = vst [vmem:[#allocation55_spill] sm:$0xff] %v13751_v43  ;;  %v9430_v54 = vpop.eup %9429  ;;  %v6317_v36 = vmul.f32 %v13751_v43, %v6232_v16  ;;  %v6236_v17 = vpop.permute.xlu0 %6235 }
0x1066   : > { %v6033_v3 = vadd.f32 1.0, %v9430_v54  ;;  %v8552_v46 = vpop.f32.mrf.mxu1 }
0x1067   : > { %v13754_v1 = vadd.f32 %v8552_v46, %v8551_v50  ;;  %6391 = vrot.lane.b32.xlu0 %v6317_v36, %s9984_s12 }
0x1068   : > { %v13757_v19 = vpop.eup %9431  ;;  %9439 = vrcp.f32 %v6033_v3  ;;  %v8554_v11 = vpop.f32.mrf.mxu1 }
0x1069   : > { %15342 = vst [vmem:[#allocation56_spill] sm:$0xff] %v13757_v19  ;;  %v9434_v26 = vpop.eup %9433  ;;  %v5879_v63 = vadd.f32 %v13754_v1, %v13498_v8  ;;  %v6318_v53 = vmul.f32 %v13757_v19, %v6234_v28  ;;  %v15350_v19 = vld [vmem:[#allocation22_spill] sm:$0xff] }
0x106a   : > { %v6034_v27 = vadd.f32 1.0, %v9434_v26  ;;  %v8555_v44 = vpop.f32.mrf.mxu1 }
0x106b   : > { %v5911_v35 = vadd.f32 %v13662_v62, %v5879_v63  ;;  %v13763_v30 = vadd.f32 %v8555_v44, %v8554_v11  ;;  %6393 = vrot.lane.b32.xlu1 %v6318_v53, %s9984_s12  ;;  %v6238_v11 = vpop.permute.xlu1 %6237 }
0x106c   : > { %9441 = vrcp.f32 %v6034_v27  ;;  %v8557_v32 = vpop.f32.mrf.mxu1 }
0x106d   : > { %v13766_v10 = vpop.eup %9435  ;;  %v8083_v16 = vmul.f32 -1.442695, %v5911_v35  ;;  %v5880_v50 = vadd.f32 %v13763_v30, %v13505_v47 }
0x106e   : > { %15343 = vst [vmem:[#allocation57_spill] sm:$0xff] %v13766_v10  ;;  %v8558_v8 = vpop.f32.mrf.mxu1  ;;  %v6319_v54 = vmul.f32 %v13766_v10, %v6236_v17  ;;  %v6240_v17 = vpop.permute.xlu0 %6239  ;;  %v15351_v10 = vld [vmem:[#allocation40_spill] sm:$0xff] }
0x106f   : > { %v5912_v36 = vadd.f32 %v13662_v62, %v5880_v50  ;;  %v13772_v3 = vadd.f32 %v8558_v8, %v8557_v32  ;;  %9443 = vpow2.f32 %v8083_v16 }
0x1070   : > { %6395 = vrot.lane.b32.xlu0 %v6319_v54, %s9984_s12  ;;  %v8560_v46 = vpop.f32.mrf.mxu1 }
0x1071   : > { %v13775_v28 = vpop.eup %9437  ;;  %v8084_v26 = vmul.f32 -1.442695, %v5912_v36  ;;  %v5881_v63 = vadd.f32 %v13772_v3, %v13512_v24 }
0x1072   : > { %15344 = vst [vmem:[#allocation58_spill] sm:$0xff] %v13775_v28  ;;  %v8561_v53 = vpop.f32.mrf.mxu1  ;;  %v6320_v47 = vmul.f32 %v13775_v28, %v6238_v11 }
0x1073   : > { %v5913_v27 = vadd.f32 %v13662_v62, %v5881_v63  ;;  %v13781_v44 = vadd.f32 %v8561_v53, %v8560_v46  ;;  %9445 = vpow2.f32 %v8084_v26  ;;  %v6242_v26 = vpop.permute.xlu1 %6241 }
0x1074   : > { %6397 = vrot.lane.b32.xlu1 %v6320_v47, %s9984_s12  ;;  %v8563_v35 = vpop.f32.mrf.mxu1 }
0x1075   : > { %v13784_v32 = vpop.eup %9439  ;;  %v8085_v16 = vmul.f32 -1.442695, %v5913_v27  ;;  %v5882_v50 = vadd.f32 %v13781_v44, %v13517_v31 }
0x1076   : > { %15345 = vst [vmem:[#allocation59_spill] sm:$0xff] %v13784_v32  ;;  %v8564_v8 = vpop.f32.mrf.mxu1  ;;  %v6321_v24 = vmul.f32 %v13784_v32, %v6240_v17 }
0x1077   : > { %v5914_v54 = vadd.f32 %v13662_v62, %v5882_v50  ;;  %v13790_v36 = vadd.f32 %v8564_v8, %v8563_v35  ;;  %9447 = vpow2.f32 %v8085_v16  ;;  %v15347_v8 = vld [vmem:[#allocation48_spill] sm:$0xff] }
0x1078   : > { %6399 = vrot.lane.b32.xlu0 %v6321_v24, %s9984_s12  ;;  %v8566_v46 = vpop.f32.mrf.mxu1 }
0x1079   : > { %v13793_v11 = vpop.eup %9441  ;;  %v8086_v63 = vmul.f32 -1.442695, %v5914_v54  ;;  %v5883_v53 = vadd.f32 %v13790_v36, %v13522_v18 }
0x107a   : > { %15346 = vst [vmem:[#allocation60_spill] sm:$0xff] %v13793_v11  ;;  %v8567_v47 = vpop.f32.mrf.mxu1  ;;  %v6322_v31 = vmul.f32 %v13793_v11, %v6242_v26 }
0x107b   : > { %v5915_v27 = vadd.f32 %v13662_v62, %v5883_v53  ;;  %v13799_v17 = vadd.f32 %v8567_v47, %v8566_v46  ;;  %9449 = vpow2.f32 %v8086_v63  ;;  %v5861_v63 = vadd.f32 %v13651_v22, %v13369_v59  ;;  %v15348_v47 = vld [vmem:[#allocation10_spill] sm:$0xff] }
0x107c   : > { %6401 = vrot.lane.b32.xlu1 %v6322_v31, %s9984_s12  ;;  %v8569_v35 = vpop.f32.mrf.mxu1  ;;  %v9444_v16 = vpop.eup %9443 }
0x107d   : > { %v8087_v50 = vmul.f32 -1.442695, %v5915_v27  ;;  %v5884_v24 = vadd.f32 %v13799_v17, %v15347_v8  ;;  %v6039_v54 = vadd.f32 1.0, %v9444_v16  ;;  %v5893_v8 = vadd.f32 %v13662_v62, %v5861_v63 }
0x107e   : > { %v8570_v32 = vpop.f32.mrf.mxu1 }
0x107f   : > { %9451 = vpow2.f32 %v8087_v50  ;;  %v5916_v18 = vadd.f32 %v13662_v62, %v5884_v24  ;;  %v13805_v28 = vadd.f32 %v8570_v32, %v8569_v35  ;;  %v8065_v63 = vmul.f32 -1.442695, %v5893_v8 }
0x1080   : > { %9453 = vrcp.f32 %v6039_v54  ;;  %v8572_v26 = vpop.f32.mrf.mxu1  ;;  %v9446_v46 = vpop.eup %9445  ;;  %v15349_v54 = vld [vmem:[#allocation34_spill] sm:$0xff] }
0x1081   : > { %v8088_v53 = vmul.f32 -1.442695, %v5916_v18  ;;  %v5885_v31 = vadd.f32 %v13805_v28, %v15348_v47  ;;  %v6040_v27 = vadd.f32 1.0, %v9446_v46  ;;  %v13819_v18 = vadd.f32 %v13740_v40, %v13737_v52 }
0x1082   : > { %v8573_v11 = vpop.f32.mrf.mxu1 }
0x1083   : > { %9455 = vpow2.f32 %v8088_v53  ;;  %v5917_v16 = vadd.f32 %v13662_v62, %v5885_v31  ;;  %v13812_v50 = vadd.f32 %v8573_v11, %v8572_v26  ;;  %v5877_v52 = vadd.f32 %v13819_v18, %v15351_v10  ;;  %v15354_v10 = vld [vmem:[#allocation33_spill] sm:$0xff] }
0x1084   : > { %9457 = vrcp.f32 %v6040_v27  ;;  %v8575_v32 = vpop.f32.mrf.mxu1  ;;  %v9448_v35 = vpop.eup %9447 }
0x1085   : > { %v8089_v24 = vmul.f32 -1.442695, %v5917_v16  ;;  %v5886_v59 = vadd.f32 %v13812_v50, %v15349_v54  ;;  %v6041_v46 = vadd.f32 1.0, %v9448_v35  ;;  %v13824_v27 = vpop.permute.xlu0 %6247 }
0x1086   : > { %v8576_v47 = vpop.f32.mrf.mxu1 }
0x1087   : > { %9459 = vpow2.f32 %v8089_v24  ;;  %v5918_v53 = vadd.f32 %v13662_v62, %v5886_v59  ;;  %v13822_v11 = vadd.f32 %v8576_v47, %v8575_v32 }
0x1088   : > { %9461 = vrcp.f32 %v6041_v46  ;;  %v8578_v26 = vpop.f32.mrf.mxu1  ;;  %v9450_v31 = vpop.eup %9449 }
0x1089   : > { %v8090_v16 = vmul.f32 -1.442695, %v5918_v53  ;;  %v5887_v54 = vadd.f32 %v13822_v11, %v15350_v19  ;;  %v6042_v40 = vadd.f32 1.0, %v9450_v31  ;;  %v6252_v8 = vpop.permute.xlu0 %6251  ;;  %v15353_v19 = vld [vmem:[#allocation47_spill] sm:$0xff]  ;;  %v5864_v31 = vadd.f32 %v13665_v55, %v15354_v10 }
0x108a   : > { %v8579_v35 = vpop.f32.mrf.mxu1 }
0x108b   : > { %9463 = vpow2.f32 %v8090_v16  ;;  %v5919_v24 = vadd.f32 %v13662_v62, %v5887_v54  ;;  %v13831_v32 = vadd.f32 %v8579_v35, %v8578_v26  ;;  %v5909_v16 = vadd.f32 %v13662_v62, %v5877_v52  ;;  %v6254_v52 = vpop.permute.xlu1 %6253 }
0x108c   : > { %v9452_v59 = vpop.eup %9451  ;;  %9465 = vrcp.f32 %v6042_v40  ;;  %v8581_v46 = vpop.f32.mrf.mxu1  ;;  %v13842_v26 = vadd.f32 %v13748_v2, %v13745_v15  ;;  %v5875_v15 = vadd.f32 %v13726_v34, %v13475_v29 }
0x108d   : > { %v13833_v47 = vpop.eup %9453  ;;  %9467 = vpow2.f32 %v8065_v63  ;;  %v6043_v53 = vadd.f32 1.0, %v9452_v59  ;;  %v8091_v4 = vmul.f32 -1.442695, %v5919_v24  ;;  %v5888_v43 = vadd.f32 %v13831_v32, %v15353_v19 }
0x108e   : > { %15352 = vst [vmem:[#allocation48_spill] sm:$0xff] %v13833_v47  ;;  %v8582_v54 = vpop.f32.mrf.mxu1  ;;  %v6327_v40 = vmul.f32 %v13833_v47, %v6252_v8 }
0x108f   : > { %9469 = vrcp.f32 %v6043_v53  ;;  %v5920_v63 = vadd.f32 %v13662_v62, %v5888_v43  ;;  %v13846_v35 = vadd.f32 %v8582_v54, %v8581_v46  ;;  %v5896_v43 = vadd.f32 %v13662_v62, %v5864_v31 }
0x1090   : > { %v9456_v24 = vpop.eup %9455  ;;  %9471 = vpow2.f32 %v8091_v4  ;;  %6411 = vrot.lane.b32.xlu0 %v6327_v40, %s9984_s12  ;;  %v8584_v59 = vpop.f32.mrf.mxu1  ;;  %v8081_v46 = vmul.f32 -1.442695, %v5909_v16  ;;  %v5878_v4 = vadd.f32 %v13842_v26, %v13494_v56  ;;  %v5907_v16 = vadd.f32 %v13662_v62, %v5875_v15 }
0x1091   : > { %v13849_v19 = vpop.eup %9457  ;;  %v6044_v2 = vadd.f32 1.0, %v9456_v24  ;;  %v8092_v10 = vmul.f32 -1.442695, %v5920_v63  ;;  %v5889_v8 = vadd.f32 %v13846_v35, %v13552_v21  ;;  %v5859_v63 = vadd.f32 %v13647_v41, %v13359_v39  ;;  %v6256_v56 = vpop.permute.xlu0 %6255 }
0x1092   : > { %15355 = vst [vmem:[#allocation10_spill] sm:$0xff] %v13849_v19  ;;  %v8585_v53 = vpop.f32.mrf.mxu1  ;;  %v6328_v54 = vmul.f32 %v13849_v19, %v6254_v52  ;;  %v5862_v21 = vadd.f32 %v13653_v60, %v13375_v20  ;;  %v5910_v39 = vadd.f32 %v13662_v62, %v5878_v4  ;;  %v15376_v19 = vld [vmem:[#allocation18_spill] sm:$0xff] }
0x1093   : > { %9473 = vrcp.f32 %v6044_v2  ;;  %v5921_v40 = vadd.f32 %v13662_v62, %v5889_v8  ;;  %v13860_v47 = vadd.f32 %v8585_v53, %v8584_v59  ;;  %v8068_v2 = vmul.f32 -1.442695, %v5896_v43 }
0x1094   : > { %v9460_v29 = vpop.eup %9459  ;;  %9475 = vpow2.f32 %v8092_v10  ;;  %6413 = vrot.lane.b32.xlu1 %v6328_v54, %s9984_s12  ;;  %v5891_v53 = vadd.f32 %v13662_v62, %v5859_v63  ;;  %v6258_v54 = vpop.permute.xlu1 %6257  ;;  %v8079_v43 = vmul.f32 -1.442695, %v5907_v16  ;;  %v5860_v16 = vadd.f32 %v13649_v45, %v13365_v33 }
0x1095   : > { %v13867_v31 = vpop.eup %9461  ;;  %v6045_v24 = vadd.f32 1.0, %v9460_v29  ;;  %v8093_v52 = vmul.f32 -1.442695, %v5921_v40  ;;  %v5890_v59 = vadd.f32 %v13860_v47, %v13557_v61  ;;  %9477 = vpow2.f32 %v8081_v46 }
0x1096   : > { %15356 = vst [vmem:[#allocation34_spill] sm:$0xff] %v13867_v31  ;;  %v6329_v8 = vmul.f32 %v13867_v31, %v6256_v56  ;;  %v5894_v61 = vadd.f32 %v13662_v62, %v5862_v21  ;;  %v5876_v29 = vadd.f32 %v13732_v13, %v13481_v57  ;;  %v8082_v56 = vmul.f32 -1.442695, %v5910_v39 }
0x1097   : > { %9479 = vrcp.f32 %v6045_v24  ;;  %v5922_v20 = vadd.f32 %v13662_v62, %v5890_v59  ;;  %v8063_v21 = vmul.f32 -1.442695, %v5891_v53  ;;  %v5892_v53 = vadd.f32 %v13662_v62, %v5860_v16 }
0x1098   : > { %v9464_v10 = vpop.eup %9463  ;;  %9481 = vpow2.f32 %v8093_v52  ;;  %6415 = vrot.lane.b32.xlu0 %v6329_v8, %s9984_s12  ;;  %v6260_v52 = vpop.permute.xlu0 %6259  ;;  %v8066_v8 = vmul.f32 -1.442695, %v5894_v61  ;;  %v5908_v57 = vadd.f32 %v13662_v62, %v5876_v29  ;;  %v6121_v9 = vadd.f32 %v13667_v49, %v15376_v19 }
0x1099   : > { %v13877_v15 = vpop.eup %9465  ;;  %v6046_v46 = vadd.f32 1.0, %v9464_v10  ;;  %v8094_v40 = vmul.f32 -1.442695, %v5922_v20  ;;  %9483 = vpow2.f32 %v8068_v2  ;;  %v6262_v10 = vpop.permute.xlu1 %6261  ;;  %v6122_v49 = vadd.f32 %v13672_v38, %v15376_v19 }
0x109a   : > { %15357 = vst [vmem:[#allocation22_spill] sm:$0xff] %v13877_v15  ;;  %v9468_v4 = vpop.eup %9467  ;;  %v6330_v24 = vmul.f32 %v13877_v15, %v6258_v54 }
0x109b   : > { %9485 = vrcp.f32 %v6046_v46 }
0x109c   : > { %v13883_v63 = vpop.eup %9469  ;;  %9487 = vpow2.f32 %v8094_v40  ;;  %6417 = vrot.lane.b32.xlu1 %v6330_v24, %s9984_s12  ;;  %v6264_v29 = vpop.permute.xlu0 %6263  ;;  %v8064_v24 = vmul.f32 -1.442695, %v5892_v53 }
0x109d   : > { %15358 = vst [vmem:[#allocation40_spill] sm:$0xff] %v13883_v63  ;;  %v9472_v59 = vpop.eup %9471  ;;  %9489 = vpow2.f32 %v8079_v43  ;;  %v6331_v2 = vmul.f32 %v13883_v63, %v6260_v52  ;;  %v8080_v43 = vmul.f32 -1.442695, %v5908_v57  ;;  %v6021_v57 = vadd.f32 1.0, %v9468_v4 }
0x109e   : > { %9491 = vpow2.f32 %v8082_v56  ;;  %v6047_v39 = vadd.f32 1.0, %v9472_v59 }
0x109f   : > { %6419 = vrot.lane.b32.xlu0 %v6331_v2, %s9984_s12  ;;  %v6266_v2 = vpop.permute.xlu1 %6265 }
0x10a0   : > { %v13891_v20 = vpop.eup %9473  ;;  %9493 = vrcp.f32 %v6047_v39 }
0x10a1   : > { %15359 = vst [vmem:[#allocation47_spill] sm:$0xff] %v13891_v20  ;;  %v9476_v54 = vpop.eup %9475  ;;  %9495 = vpow2.f32 %v8063_v21  ;;  %v6332_v33 = vmul.f32 %v13891_v20, %v6262_v10 }
0x10a2   : > { %9497 = vpow2.f32 %v8066_v8  ;;  %v6048_v46 = vadd.f32 1.0, %v9476_v54  ;;  %v9478_v61 = vpop.eup %9477 }
0x10a3   : > { %6421 = vrot.lane.b32.xlu1 %v6332_v33, %s9984_s12  ;;  %v6037_v59 = vadd.f32 1.0, %v9478_v61 }
0x10a4   : > { %v13896_v40 = vpop.eup %9479  ;;  %9499 = vrcp.f32 %v6048_v46  ;;  %v6268_v46 = vpop.permute.xlu0 %6267 }
0x10a5   : > { %15360 = vst [vmem:[#allocation33_spill] sm:$0xff] %v13896_v40  ;;  %v9482_v56 = vpop.eup %9481  ;;  %v6333_v52 = vmul.f32 %v13896_v40, %v6264_v29  ;;  %9501 = vpow2.f32 %v8080_v43 }
0x10a6   : > { %v6049_v21 = vadd.f32 1.0, %v9482_v56  ;;  %v9484_v62 = vpop.eup %9483 }
0x10a7   : > { %6423 = vrot.lane.b32.xlu0 %v6333_v52, %s9984_s12  ;;  %v6024_v54 = vadd.f32 1.0, %v9484_v62 }
0x10a8   : > { %v13900_v16 = vpop.eup %9485  ;;  %9503 = vrcp.f32 %v6049_v21 }
0x10a9   : > { %15361 = vst [vmem:[#allocation61_spill] sm:$0xff] %v13900_v16  ;;  %v9488_v8 = vpop.eup %9487  ;;  %9505 = vpow2.f32 %v8064_v24  ;;  %v6334_v39 = vmul.f32 %v13900_v16, %v6266_v2 }
0x10aa   : > { %v9490_v10 = vpop.eup %9489  ;;  %9507 = vrcp.f32 %v6037_v59  ;;  %v6050_v53 = vadd.f32 1.0, %v9488_v8  ;;  %v6270_v59 = vpop.permute.xlu1 %6269 }
0x10ab   : > { %v9492_v33 = vpop.eup %9491  ;;  %6425 = vrot.lane.b32.xlu1 %v6334_v39, %s9984_s12  ;;  %v6035_v61 = vadd.f32 1.0, %v9490_v10 }
0x10ac   : > { %9509 = vrcp.f32 %v6050_v53  ;;  %v6038_v56 = vadd.f32 1.0, %v9492_v33 }
0x10ad   : > { %v13904_v43 = vpop.eup %9493  ;;  %9511 = vrcp.f32 %v6021_v57  ;;  %v6272_v57 = vpop.permute.xlu0 %6271 }
0x10ae   : > { %15362 = vst [vmem:[#allocation62_spill] sm:$0xff] %v13904_v43  ;;  %v9496_v29 = vpop.eup %9495  ;;  %9513 = vrcp.f32 %v6024_v54  ;;  %v6335_v4 = vmul.f32 %v13904_v43, %v6268_v46  ;;  %v6274_v10 = vpop.permute.xlu1 %6273 }
0x10af   : > { %v9498_v24 = vpop.eup %9497  ;;  %v6019_v21 = vadd.f32 1.0, %v9496_v29  ;;  %9515 = vrcp.f32 %v6035_v61 }
0x10b0   : > { %6427 = vrot.lane.b32.xlu0 %v6335_v4, %s9984_s12  ;;  %v6022_v62 = vadd.f32 1.0, %v9498_v24  ;;  %9517 = vrcp.f32 %v6038_v56 }
0x10b1   : > { %v13908_v52 = vpop.eup %9499  ;;  %9519 = vrcp.f32 %v6019_v21  ;;  %v6216_v29 = vpop.permute.xlu0 %6215 }
0x10b2   : > { %15363 = vst [vmem:[#allocation63_spill] sm:$0xff] %v13908_v52  ;;  %v6336_v2 = vmul.f32 %v13908_v52, %v6270_v59  ;;  %v9502_v8 = vpop.eup %9501  ;;  %9521 = vrcp.f32 %v6022_v62  ;;  %v6250_v62 = vpop.permute.xlu1 %6249 }
0x10b3   : > { %v6036_v53 = vadd.f32 1.0, %v9502_v8 }
0x10b4   : > { %6429 = vrot.lane.b32.xlu1 %v6336_v2, %s9984_s12 }
0x10b5   : > { %v13912_v39 = vpop.eup %9503  ;;  %9523 = vrcp.f32 %v6036_v53 }
0x10b6   : > { %15364 = vst [vmem:[#allocation64_spill] sm:$0xff] %v13912_v39  ;;  %v9506_v54 = vpop.eup %9505  ;;  %v6337_v33 = vmul.f32 %v13912_v39, %v6272_v57 }
0x10b7   : > { %v13915_v46 = vpop.eup %9507  ;;  %v6020_v4 = vadd.f32 1.0, %v9506_v54 }
0x10b8   : > { %15365 = vst [vmem:[#allocation65_spill] sm:$0xff] %v13915_v46  ;;  %6431 = vrot.lane.b32.xlu0 %v6337_v33, %s9984_s12  ;;  %v6325_v59 = vmul.f32 %v13915_v46, %v13824_v27  ;;  %v6218_v27 = vpop.permute.xlu1 %6217  ;;  %v6119_v46 = vadd.f32 %v13655_v12, %v15376_v19  ;;  %v6123_v12 = vadd.f32 %v13677_v23, %v15376_v19 }
0x10b9   : > { %v13918_v61 = vpop.eup %9509  ;;  %9525 = vrcp.f32 %v6020_v4  ;;  %v6127_v23 = vadd.f32 %v13697_v48, %v15376_v19 }
0x10ba   : > { %15366 = vst [vmem:[#allocation66_spill] sm:$0xff] %v13918_v61  ;;  %v13920_v56 = vpop.eup %9511  ;;  %v6338_v24 = vmul.f32 %v13918_v61, %v6274_v10  ;;  %v6244_v10 = vpop.permute.xlu0 %6243 }
0x10bb   : > { %15367 = vst [vmem:[#allocation67_spill] sm:$0xff] %v13920_v56  ;;  %v13925_v21 = vpop.eup %9513  ;;  %v6309_v57 = vmul.f32 %v13920_v56, %v6216_v29 }
0x10bc   : > { %15368 = vst [vmem:[#allocation68_spill] sm:$0xff] %v13925_v21  ;;  %6433 = vrot.lane.b32.xlu1 %v6338_v24, %s9984_s12  ;;  %6407 = vrot.lane.b32.xlu0 %v6325_v59, %s9984_s12  ;;  %v13929_v2 = vpop.eup %9515  ;;  %v6312_v8 = vmul.f32 %v13925_v21, %v13720_v0 }
0x10bd   : > { %15369 = vst [vmem:[#allocation69_spill] sm:$0xff] %v13929_v2  ;;  %v13934_v54 = vpop.eup %9517  ;;  %v6323_v24 = vmul.f32 %v13929_v2, %v6244_v10 }
0x10be   : > { %15370 = vst [vmem:[#allocation70_spill] sm:$0xff] %v13934_v54  ;;  %v13938_v53 = vpop.eup %9519  ;;  %v6326_v33 = vmul.f32 %v13934_v54, %v6250_v62  ;;  %v6212_v0 = vpop.permute.xlu0 %6211  ;;  %v6117_v54 = vadd.f32 %v13651_v22, %v15376_v19  ;;  %v6120_v22 = vadd.f32 %v13665_v55, %v15376_v19  ;;  %v6124_v55 = vadd.f32 %v13682_v7, %v15376_v19 }
0x10bf   : > { %15371 = vst [vmem:[#allocation71_spill] sm:$0xff] %v13938_v53  ;;  %v13942_v4 = vpop.eup %9521  ;;  %v6307_v59 = vmul.f32 %v13938_v53, %v6212_v0  ;;  %v6129_v7 = vadd.f32 %v13710_v58, %v15376_v19 }
0x10c0   : > { %6381 = vrot.lane.b32.xlu1 %v6312_v8, %s9984_s12  ;;  %6375 = vrot.lane.b32.xlu0 %v6309_v57, %s9984_s12  ;;  %15372 = vst [vmem:[#allocation72_spill] sm:$0xff] %v13942_v4  ;;  %v6310_v29 = vmul.f32 %v13942_v4, %v6218_v27  ;;  %v6246_v57 = vpop.permute.xlu1 %6245 }
0x10c2   : > { %v13948_v8 = vpop.eup %9523  ;;  %v6380_v27 = vpop.permute.xlu0 %6379 }
0x10c3   : > { %15373 = vst [vmem:[#allocation73_spill] sm:$0xff] %v13948_v8  ;;  %v6324_v62 = vmul.f32 %v13948_v8, %v6246_v57  ;;  %v6471_v6 = vadd.f32 %v6380_v27, %v6119_v46 }
0x10c4   : > { %6409 = vrot.lane.b32.xlu1 %v6326_v33, %s9984_s12  ;;  %6403 = vrot.lane.b32.xlu0 %v6323_v24, %s9984_s12  ;;  %v6214_v33 = vpop.permute.xlu1 %6213 }
0x10c6   : > { %v13953_v10 = vpop.eup %9525 }
0x10c7   : > { %15374 = vst [vmem:[#allocation74_spill] sm:$0xff] %v13953_v10  ;;  %v6308_v24 = vmul.f32 %v13953_v10, %v6214_v33 }
0x10c8   : > { %6377 = vrot.lane.b32.xlu1 %v6310_v29, %s9984_s12  ;;  %6371 = vrot.lane.b32.xlu0 %v6307_v59, %s9984_s12 }
0x10ca   : > { %v6384_v0 = vpop.permute.xlu0 %6383 }
0x10cb   : > { %v6473_v13 = vadd.f32 %v6384_v0, %v6121_v9  ;;  %v6125_v9 = vadd.f32 %v13687_v14, %v15376_v19 }
0x10cc   : > { %6405 = vrot.lane.b32.xlu1 %v6324_v62, %s9984_s12 }
0x10ce   : > { %v6386_v53 = vpop.permute.xlu1 %6385 }
0x10d0   : > { %6373 = vrot.lane.b32.xlu1 %v6308_v24, %s9984_s12 }
0x10d1   : > { %v6388_v2 = vpop.permute.xlu0 %6387 }
0x10d5   : > { %v6390_v4 = vpop.permute.xlu1 %6389 }
0x10d9   : > { %v6392_v56 = vpop.permute.xlu0 %6391 }
0x10dd   : > { %v6394_v29 = vpop.permute.xlu1 %6393 }
0x10e2   : > { %v6396_v61 = vpop.permute.xlu0 %6395 }
0x10e3   : > { %v6479_v38 = vadd.f32 %v6396_v61, %v6127_v23 }
0x10e6   : > { %v13958_v59 = vpop.permute.xlu1 %6397 }
0x10ea   : > { %v6400_v57 = vpop.permute.xlu0 %6399 }
0x10ee   : > { %v13960_v8 = vpop.permute.xlu1 %6401 }
0x1102   : > { %v13962_v39 = vpop.permute.xlu0 %6411 }
0x1106   : > { %v13964_v62 = vpop.permute.xlu1 %6413 }
0x110a   : > { %v13966_v33 = vpop.permute.xlu0 %6415 }
0x110e   : > { %v13968_v24 = vpop.permute.xlu1 %6417 }
0x1111   : > { %v13970_v10 = vpop.permute.xlu0 %6419 }
0x1115   : > { %v13972_v52 = vpop.permute.xlu1 %6421 }
0x1119   : > { %v13974_v43 = vpop.permute.xlu0 %6423 }
0x111d   : > { %v13976_v16 = vpop.permute.xlu1 %6425 }
0x1122   : > { %v13978_v40 = vpop.permute.xlu0 %6427 }
0x1126   : > { %v13980_v20 = vpop.permute.xlu1 %6429 }
0x112a   : > { %v13982_v63 = vpop.permute.xlu0 %6431 }
0x112e   : > { %v13984_v15 = vpop.permute.xlu1 %6433  ;;  %v13986_v31 = vpop.permute.xlu0 %6407 }
0x112f   : > { %15375 = vst [vmem:[#allocation75_spill] sm:$0xff] %v13984_v15  ;;  %v6118_v15 = vadd.f32 %v13653_v60, %v15376_v19  ;;  %v6477_v60 = vadd.f32 %v6392_v56, %v6125_v9  ;;  %v6126_v56 = vadd.f32 %v13692_v37, %v15376_v19  ;;  %v6131_v37 = vadd.f32 %v13726_v34, %v15376_v19 }
0x1130   : > { %v6130_v34 = vadd.f32 %v13716_v5, %v15376_v19  ;;  %v15382_v5 = vld [vmem:[#allocation23_spill] sm:$0xff] }
0x1131   : > { %v6478_v48 = vadd.f32 %v6394_v29, %v6126_v56  ;;  %v15379_v29 = vld [vmem:[#allocation12_spill] sm:$0xff] }
0x1132   : > { %v6382_v25 = vpop.permute.xlu1 %6381  ;;  %v6376_v51 = vpop.permute.xlu0 %6375 }
0x1133   : > { %v6469_v21 = vadd.f32 %v6376_v51, %v6117_v54  ;;  %v6472_v51 = vadd.f32 %v6382_v25, %v6120_v22  ;;  %v6475_v54 = vadd.f32 %v6388_v2, %v6123_v12  ;;  %v6476_v25 = vadd.f32 %v6390_v4, %v6124_v55  ;;  %v15378_v2 = vld [vmem:[#allocation19_spill] sm:$0xff] }
0x1134   : > { %v6128_v4 = vadd.f32 %v13702_v42, %v15376_v19  ;;  %v15380_v42 = vld [vmem:[#allocation21_spill] sm:$0xff] }
0x1135   : > { %9527 = vtanh.f32 %v6469_v21  ;;  %v6481_v21 = vadd.f32 %v6400_v57, %v6129_v7 }
0x1136   : > { %v13994_v45 = vpop.permute.xlu1 %6409  ;;  %9529 = vtanh.f32 %v6471_v6  ;;  %v6474_v6 = vadd.f32 %v6386_v53, %v6122_v49  ;;  %v6404_v27 = vpop.permute.xlu0 %6403  ;;  %v6480_v58 = vadd.f32 %v13958_v59, %v6128_v4  ;;  %v6133_v59 = vadd.f32 %v13819_v18, %v15376_v19  ;;  %v15381_v49 = vld [vmem:[#allocation11_spill] sm:$0xff] }
0x1137   : > { %9531 = vtanh.f32 %v6473_v13  ;;  %v15377_v13 = vld [vmem:[#allocation16_spill] sm:$0xff]  ;;  %v6483_v12 = vadd.f32 %v6404_v27, %v6131_v37  ;;  %v6134_v18 = vadd.f32 %v13842_v26, %v15376_v19  ;;  %v15384_v26 = vld [vmem:[#allocation25_spill] sm:$0xff] }
0x113a   : > { %v6378_v41 = vpop.permute.xlu1 %6377 }
0x113b   : > { %v6470_v46 = vadd.f32 %v6378_v41, %v6118_v15 }
0x113d   : > { %9533 = vtanh.f32 %v6470_v46 }
0x113e   : > { %9535 = vtanh.f32 %v6472_v51 }
0x113f   : > { %9537 = vtanh.f32 %v6475_v54  ;;  %v6482_v54 = vadd.f32 %v13960_v8, %v6130_v34  ;;  %v6135_v8 = vadd.f32 %v13754_v1, %v15376_v19  ;;  %v6136_v1 = vadd.f32 %v13763_v30, %v15376_v19  ;;  %v15386_v30 = vld [vmem:[#allocation26_spill] sm:$0xff] }
0x1140   : > { %9539 = vtanh.f32 %v6474_v6 }
0x1141   : > { %9541 = vtanh.f32 %v6477_v60  ;;  %v6485_v60 = vadd.f32 %v13986_v31, %v6133_v59  ;;  %v15383_v31 = vld [vmem:[#allocation13_spill] sm:$0xff] }
0x1142   : > { %v14010_v41 = vpop.eup %9527  ;;  %9543 = vtanh.f32 %v6476_v25  ;;  %v6486_v25 = vadd.f32 %v13994_v45, %v6134_v18  ;;  %v6137_v45 = vadd.f32 %v13772_v3, %v15376_v19  ;;  %v6138_v3 = vadd.f32 %v13781_v44, %v15376_v19  ;;  %v15388_v44 = vld [vmem:[#allocation27_spill] sm:$0xff] }
0x1143   : > { %v6533_v15 = vsub.f32 %v15377_v13, %v14010_v41  ;;  %v14014_v14 = vpop.eup %9529  ;;  %9545 = vtanh.f32 %v6479_v38 }
0x1144   : > { %v6535_v61 = vsub.f32 %v15378_v2, %v14014_v14  ;;  %v14023_v53 = vpop.eup %9531  ;;  %9547 = vtanh.f32 %v6478_v48  ;;  %v6488_v48 = vadd.f32 %v13964_v62, %v6136_v1  ;;  %v6139_v62 = vadd.f32 %v13790_v36, %v15376_v19 }
0x1145   : > { %6599 = vrot.lane.b32.xlu0 %v6533_v15, %s9986_s17  ;;  %9549 = vtanh.f32 %v6481_v21  ;;  %v6537_v51 = vsub.f32 %v15380_v42, %v14023_v53  ;;  %v6487_v15 = vadd.f32 %v13962_v39, %v6135_v8  ;;  %v15385_v39 = vld [vmem:[#allocation15_spill] sm:$0xff]  ;;  %v6490_v37 = vadd.f32 %v13968_v24, %v6138_v3 }
0x1146   : > { %9551 = vtanh.f32 %v6480_v58  ;;  %v6140_v36 = vadd.f32 %v13799_v17, %v15376_v19  ;;  %v6141_v24 = vadd.f32 %v13805_v28, %v15376_v19  ;;  %v15390_v17 = vld [vmem:[#allocation28_spill] sm:$0xff]  ;;  %v6142_v28 = vadd.f32 %v13812_v50, %v15376_v19 }
0x1147   : > { %9553 = vtanh.f32 %v6483_v12  ;;  %v15392_v50 = vld [vmem:[#allocation44_spill] sm:$0xff] }
0x1148   : > { %9555 = vtanh.f32 %v6482_v54  ;;  %v6493_v54 = vadd.f32 %v13974_v43, %v6141_v24  ;;  %v15391_v43 = vld [vmem:[#allocation24_spill] sm:$0xff] }
0x1149   : > { %6603 = vrot.lane.b32.xlu0 %v6535_v61, %s9986_s17  ;;  %9557 = vtanh.f32 %v6485_v60  ;;  %v6489_v61 = vadd.f32 %v13966_v33, %v6137_v45  ;;  %v15387_v33 = vld [vmem:[#allocation17_spill] sm:$0xff]  ;;  %v6494_v60 = vadd.f32 %v13976_v16, %v6142_v28  ;;  %v6145_v16 = vadd.f32 %v13846_v35, %v15376_v19  ;;  %v6372_v45 = vpop.permute.xlu0 %6371  ;;  %v15403_v28 = vld [vmem:[#allocation38_spill] sm:$0xff] }
0x114a   : > { %v14027_v0 = vpop.eup %9533  ;;  %9559 = vtanh.f32 %v6486_v25  ;;  %v6146_v35 = vadd.f32 %v13860_v47, %v15376_v19  ;;  %v15398_v47 = vld [vmem:[#allocation43_spill] sm:$0xff] }
0x114b   : > { %v6534_v57 = vsub.f32 %v15379_v29, %v14027_v0  ;;  %v14035_v22 = vpop.eup %9535  ;;  %9561 = vtanh.f32 %v6487_v15 }
0x114c   : > { %v14039_v46 = vpop.eup %9537  ;;  %v6536_v9 = vsub.f32 %v15381_v49, %v14035_v22  ;;  %9563 = vtanh.f32 %v6488_v48 }
0x114d   : > { %6601 = vrot.lane.b32.xlu1 %v6534_v57, %s9986_s17  ;;  %6607 = vrot.lane.b32.xlu0 %v6537_v51, %s9986_s17  ;;  %v14050_v6 = vpop.eup %9539  ;;  %v6539_v55 = vsub.f32 %v15382_v5, %v14039_v46  ;;  %9565 = vtanh.f32 %v6489_v61  ;;  %v6491_v57 = vadd.f32 %v13970_v10, %v6139_v62  ;;  %v6492_v51 = vadd.f32 %v13972_v52, %v6140_v36  ;;  %v15389_v10 = vld [vmem:[#allocation20_spill] sm:$0xff]  ;;  %v15397_v61 = vld [vmem:[#allocation37_spill] sm:$0xff] }
0x114e   : > { %v14055_v23 = vpop.eup %9541  ;;  %v6538_v38 = vsub.f32 %v15383_v31, %v14050_v6  ;;  %9567 = vtanh.f32 %v6490_v37  ;;  %v6143_v52 = vadd.f32 %v13822_v11, %v15376_v19  ;;  %v6144_v11 = vadd.f32 %v13831_v32, %v15376_v19  ;;  %v15394_v32 = vld [vmem:[#allocation30_spill] sm:$0xff] }
0x114f   : > { %v14066_v13 = vpop.eup %9543  ;;  %v6541_v56 = vsub.f32 %v15384_v26, %v14055_v23  ;;  %9569 = vtanh.f32 %v6491_v57  ;;  %v6497_v26 = vadd.f32 %v13982_v63, %v6145_v16 }
0x1150   : > { %v14071_v7 = vpop.eup %9545  ;;  %v6540_v21 = vsub.f32 %v15385_v39, %v14066_v13  ;;  %9571 = vtanh.f32 %v6492_v51  ;;  %v6495_v18 = vadd.f32 %v13978_v40, %v6143_v52  ;;  %v6496_v31 = vadd.f32 %v13980_v20, %v6144_v11  ;;  %v15393_v40 = vld [vmem:[#allocation52_spill] sm:$0xff]  ;;  %v15395_v20 = vld [vmem:[#allocation49_spill] sm:$0xff]  ;;  %v6406_v39 = vpop.permute.xlu1 %6405  ;;  %v15401_v51 = vld [vmem:[#allocation31_spill] sm:$0xff] }
0x1151   : > { %6605 = vrot.lane.b32.xlu1 %v6536_v9, %s9986_s17  ;;  %6611 = vrot.lane.b32.xlu0 %v6539_v55, %s9986_s17  ;;  %v14082_v2 = vpop.eup %9547  ;;  %v6543_v4 = vsub.f32 %v15386_v30, %v14071_v7  ;;  %9573 = vtanh.f32 %v6493_v54  ;;  %v6115_v48 = vadd.f32 %v15395_v20, %v15376_v19  ;;  %v15402_v54 = vld [vmem:[#allocation35_spill] sm:$0xff]  ;;  %v15406_v11 = vld [vmem:[#allocation32_spill] sm:$0xff] }
0x1152   : > { %v14087_v27 = vpop.eup %9549  ;;  %v6542_v58 = vsub.f32 %v15387_v33, %v14082_v2  ;;  %9575 = vtanh.f32 %v6494_v60  ;;  %v15399_v33 = vld [vmem:[#allocation7_spill] sm:$0xff] }
0x1153   : > { %v14098_v29 = vpop.eup %9551  ;;  %v6545_v12 = vsub.f32 %v15388_v44, %v14087_v27  ;;  %9577 = vtanh.f32 %v6495_v18  ;;  %v6467_v3 = vadd.f32 %v6372_v45, %v6115_v48  ;;  %v15400_v44 = vld [vmem:[#allocation51_spill] sm:$0xff]  ;;  %v15409_v45 = vld [vmem:[#allocation41_spill] sm:$0xff] }
0x1154   : > { %v14103_v42 = vpop.eup %9553  ;;  %v6544_v34 = vsub.f32 %v15389_v10, %v14098_v29  ;;  %9579 = vtanh.f32 %v6496_v31  ;;  %v6374_v24 = vpop.permute.xlu1 %6373 }
0x1155   : > { %6609 = vrot.lane.b32.xlu1 %v6538_v38, %s9986_s17  ;;  %6615 = vrot.lane.b32.xlu0 %v6541_v56, %s9986_s17  ;;  %v14114_v59 = vpop.eup %9555  ;;  %v6547_v49 = vsub.f32 %v15390_v17, %v14103_v42  ;;  %9581 = vtanh.f32 %v6497_v26  ;;  %v6116_v17 = vadd.f32 %v15402_v54, %v15376_v19 }
0x1156   : > { %v14119_v9 = vpop.eup %9557  ;;  %v6546_v5 = vsub.f32 %v15391_v43, %v14114_v59  ;;  %v15404_v43 = vld [vmem:[#allocation46_spill] sm:$0xff] }
0x1157   : > { %v14130_v55 = vpop.eup %9559  ;;  %v6549_v8 = vsub.f32 %v15392_v50, %v14119_v9 }
0x1158   : > { %v14135_v25 = vpop.eup %9561  ;;  %v6550_v38 = vsub.f32 %v15393_v40, %v14130_v55  ;;  %v15407_v40 = vld [vmem:[#allocation39_spill] sm:$0xff] }
0x1159   : > { %6613 = vrot.lane.b32.xlu1 %v6540_v21, %s9986_s17  ;;  %6619 = vrot.lane.b32.xlu0 %v6543_v4, %s9986_s17  ;;  %v14146_v15 = vpop.eup %9563  ;;  %v6551_v56 = vsub.f32 %v15394_v32, %v14135_v25  ;;  %v15396_v21 = vld [vmem:[#allocation75_spill] sm:$0xff]  ;;  %v15408_v32 = vld [vmem:[#allocation45_spill] sm:$0xff] }
0x115a   : > { %v14151_v1 = vpop.eup %9565  ;;  %v6498_v63 = vadd.f32 %v15396_v21, %v6146_v35  ;;  %v6552_v30 = vsub.f32 %v15397_v61, %v14146_v15 }
0x115b   : > { %v14162_v4 = vpop.eup %9567  ;;  %v6553_v62 = vsub.f32 %v15398_v47, %v14151_v1  ;;  %v15412_v47 = vld [vmem:[#allocation8_spill] sm:$0xff] }
0x115c   : > { %v14166_v37 = vpop.eup %9569  ;;  %9583 = vtanh.f32 %v6498_v63  ;;  %v15411_v63 = vld [vmem:[#allocation29_spill] sm:$0xff] }
0x115d   : > { %6617 = vrot.lane.b32.xlu1 %v6542_v58, %s9986_s17  ;;  %6623 = vrot.lane.b32.xlu0 %v6545_v12, %s9986_s17  ;;  %v6132_v58 = vadd.f32 %v15399_v33, %v15376_v19  ;;  %v6554_v12 = vsub.f32 %v15400_v44, %v14162_v4  ;;  %v14174_v36 = vpop.eup %9571  ;;  %9585 = vtanh.f32 %v6467_v3  ;;  %v6555_v10 = vsub.f32 %v15401_v51, %v14166_v37  ;;  %v15405_v19 = vld [vmem:[#allocation42_spill] sm:$0xff] }
0x115e   : > { %v6556_v52 = vsub.f32 %v15403_v28, %v14174_v36  ;;  %v15414_v51 = vld [vmem:[#allocation50_spill] sm:$0xff] }
0x115f   : > { %v6484_v57 = vadd.f32 %v6406_v39, %v6132_v58  ;;  %v15410_v39 = vld [vmem:[#allocation14_spill] sm:$0xff] }
0x1161   : > { %6621 = vrot.lane.b32.xlu1 %v6544_v34, %s9986_s17  ;;  %6627 = vrot.lane.b32.xlu0 %v6547_v49, %s9986_s17  ;;  %v14178_v34 = vpop.eup %9573  ;;  %9587 = vtanh.f32 %v6484_v57  ;;  %v6468_v49 = vadd.f32 %v6374_v24, %v6116_v17  ;;  %v15413_v57 = vld [vmem:[#allocation36_spill] sm:$0xff] }
0x1162   : > { %v14186_v60 = vpop.eup %9575  ;;  %v15415_v17 = vld [vmem:[#allocation68_spill] sm:$0xff] }
0x1163   : > { %v14190_v18 = vpop.eup %9577  ;;  %9589 = vtanh.f32 %v6468_v49  ;;  %v6558_v50 = vsub.f32 %v15405_v19, %v14186_v60  ;;  %v15417_v19 = vld [vmem:[#allocation9_spill] sm:$0xff] }
0x1164   : > { %v6559_v16 = vsub.f32 %v15406_v11, %v14190_v18 }
0x1165   : > { %6625 = vrot.lane.b32.xlu1 %v6546_v5, %s9986_s17  ;;  %6631 = vrot.lane.b32.xlu0 %v6549_v8, %s9986_s17  ;;  %v6557_v5 = vsub.f32 %v15404_v43, %v14178_v34  ;;  %v14196_v8 = vpop.eup %9579 }
0x1166   : > { %v14200_v31 = vpop.eup %9581 }
0x1169   : > { %6633 = vrot.lane.b32.xlu1 %v6550_v38, %s9986_s17  ;;  %6635 = vrot.lane.b32.xlu0 %v6551_v56, %s9986_s17  ;;  %v6560_v38 = vsub.f32 %v15407_v40, %v14196_v8  ;;  %v14206_v26 = vpop.eup %9583  ;;  %v6561_v56 = vsub.f32 %v15408_v32, %v14200_v31  ;;  %v15419_v32 = vld [vmem:[#allocation54_spill] sm:$0xff] }
0x116a   : > { %v14210_v35 = vpop.eup %9585  ;;  %v6562_v20 = vsub.f32 %v15409_v45, %v14206_v26 }
0x116b   : > { %v6531_v21 = vsub.f32 %v15410_v39, %v14210_v35 }
0x116d   : > { %6637 = vrot.lane.b32.xlu1 %v6552_v30, %s9986_s17  ;;  %6639 = vrot.lane.b32.xlu0 %v6553_v62, %s9986_s17  ;;  %v8095_v30 = vld [vmem:[%s14845_s7] ss:$0 sm:$0xff] }
0x116e   : > { %v14216_v48 = vpop.eup %9587 }
0x116f   : > { %v6548_v61 = vsub.f32 %v15411_v63, %v14216_v48  ;;  %v15421_v63 = vld [vmem:[#allocation56_spill] sm:$0xff] }
0x1170   : > { %v14227_v3 = vpop.eup %9589 }
0x1171   : > { %6641 = vrot.lane.b32.xlu1 %v6554_v12, %s9986_s17  ;;  %6643 = vrot.lane.b32.xlu0 %v6555_v10, %s9986_s17  ;;  %v6532_v62 = vsub.f32 %v15412_v47, %v14227_v3 }
0x1175   : > { %6645 = vrot.lane.b32.xlu1 %v6556_v52, %s9986_s17  ;;  %6647 = vrot.lane.b32.xlu0 %v6557_v5, %s9986_s17  ;;  %v15416_v52 = vld [vmem:[#allocation53_spill] sm:$0xff] }
0x1179   : > { %6649 = vrot.lane.b32.xlu1 %v6558_v50, %s9986_s17  ;;  %6651 = vrot.lane.b32.xlu0 %v6559_v16, %s9986_s17  ;;  %v15418_v16 = vld [vmem:[#allocation55_spill] sm:$0xff] }
0x117d   : > { %6653 = vrot.lane.b32.xlu1 %v6560_v38, %s9986_s17  ;;  %6655 = vrot.lane.b32.xlu0 %v6561_v56, %s9986_s17 }
0x1181   : > { %6657 = vrot.lane.b32.xlu1 %v6562_v20, %s9986_s17  ;;  %6595 = vrot.lane.b32.xlu0 %v6531_v21, %s9986_s17  ;;  %v15420_v20 = vld [vmem:[#allocation57_spill] sm:$0xff] }
0x1185   : > { %6629 = vrot.lane.b32.xlu1 %v6548_v61, %s9986_s17  ;;  %6889 = vrot.lane.b32.xlu0 %v8095_v30, %s9984_s12 }
0x1189   : > { %6597 = vrot.lane.b32.xlu1 %v6532_v62, %s9986_s17  ;;  %v15422_v62 = vld [vmem:[#allocation58_spill] sm:$0xff] }
0x11b7   : > { %v14234_v33 = vpop.permute.xlu0 %6599 }
0x11bb   : > { %v6604_v58 = vpop.permute.xlu0 %6603 }
0x11bc   : > { %v6695_v44 = vmul.f32 %v15413_v57, %v6604_v58 }
0x11be   : > { %6763 = vrot.lane.b32.xlu1 %v6695_v44, %s9985_s13 }
0x11bf   : > { %v14238_v12 = vpop.permute.xlu1 %6601  ;;  %v6608_v24 = vpop.permute.xlu0 %6607 }
0x11c0   : > { %v6697_v10 = vmul.f32 %v15414_v51, %v6608_v24  ;;  %v15423_v24 = vld [vmem:[#allocation59_spill] sm:$0xff] }
0x11c2   : > { %6767 = vrot.lane.b32.xlu1 %v6697_v10, %s9985_s13  ;;  %v15424_v10 = vld [vmem:[#allocation60_spill] sm:$0xff] }
0x11c3   : > { %v6606_v54 = vpop.permute.xlu1 %6605  ;;  %v6612_v28 = vpop.permute.xlu0 %6611 }
0x11c4   : > { %v6696_v49 = vmul.f32 %v15415_v17, %v6606_v54  ;;  %v6699_v43 = vmul.f32 %v15416_v52, %v6612_v28  ;;  %v15425_v28 = vld [vmem:[#allocation65_spill] sm:$0xff] }
0x11c6   : > { %6765 = vrot.lane.b32.xlu0 %v6696_v49, %s9985_s13  ;;  %6771 = vrot.lane.b32.xlu1 %v6699_v43, %s9985_s13  ;;  %v15426_v43 = vld [vmem:[#allocation70_spill] sm:$0xff] }
0x11c7   : > { %v6610_v5 = vpop.permute.xlu1 %6609  ;;  %v6616_v11 = vpop.permute.xlu0 %6615 }
0x11c8   : > { %v6698_v50 = vmul.f32 %v15417_v19, %v6610_v5  ;;  %v6701_v40 = vmul.f32 %v15418_v16, %v6616_v11  ;;  %v15427_v11 = vld [vmem:[#allocation48_spill] sm:$0xff] }
0x11ca   : > { %6769 = vrot.lane.b32.xlu0 %v6698_v50, %s9985_s13  ;;  %6775 = vrot.lane.b32.xlu1 %v6701_v40, %s9985_s13  ;;  %v15428_v40 = vld [vmem:[#allocation10_spill] sm:$0xff] }
0x11cb   : > { %v6614_v38 = vpop.permute.xlu1 %6613  ;;  %v6620_v45 = vpop.permute.xlu0 %6619 }
0x11cc   : > { %v6700_v56 = vmul.f32 %v15419_v32, %v6614_v38  ;;  %v6703_v39 = vmul.f32 %v15420_v20, %v6620_v45  ;;  %v15429_v45 = vld [vmem:[#allocation34_spill] sm:$0xff] }
0x11ce   : > { %6773 = vrot.lane.b32.xlu0 %v6700_v56, %s9985_s13  ;;  %6779 = vrot.lane.b32.xlu1 %v6703_v39, %s9985_s13  ;;  %v15430_v39 = vld [vmem:[#allocation22_spill] sm:$0xff] }
0x11cf   : > { %v6618_v21 = vpop.permute.xlu1 %6617  ;;  %v6624_v30 = vpop.permute.xlu0 %6623 }
0x11d0   : > { %v6702_v61 = vmul.f32 %v15421_v63, %v6618_v21  ;;  %v6705_v51 = vmul.f32 %v15423_v24, %v6624_v30  ;;  %v15431_v30 = vld [vmem:[#allocation40_spill] sm:$0xff] }
0x11d2   : > { %6777 = vrot.lane.b32.xlu0 %v6702_v61, %s9985_s13 }
0x11d3   : > { %v6622_v47 = vpop.permute.xlu1 %6621  ;;  %v6628_v57 = vpop.permute.xlu0 %6627 }
0x11d4   : > { %v6704_v58 = vmul.f32 %v15422_v62, %v6622_v47  ;;  %v15432_v62 = vld [vmem:[#allocation47_spill] sm:$0xff] }
0x11d6   : > { %6781 = vrot.lane.b32.xlu0 %v6704_v58, %s9985_s13 }
0x11d7   : > { %v6626_v44 = vpop.permute.xlu1 %6625  ;;  %v6632_v17 = vpop.permute.xlu0 %6631 }
0x11d8   : > { %v6706_v54 = vmul.f32 %v15424_v10, %v6626_v44  ;;  %v6709_v52 = vmul.f32 %v15425_v28, %v6632_v17 }
0x11da   : > { %6785 = vrot.lane.b32.xlu1 %v6706_v54, %s9985_s13  ;;  %6783 = vrot.lane.b32.xlu0 %v6705_v51, %s9985_s13  ;;  %v15433_v51 = vld [vmem:[#allocation33_spill] sm:$0xff] }
0x11db   : > { %v6634_v49 = vpop.permute.xlu1 %6633  ;;  %v6636_v19 = vpop.permute.xlu0 %6635  ;;  %v15434_v54 = vld [vmem:[#allocation61_spill] sm:$0xff] }
0x11dc   : > { %v6710_v5 = vmul.f32 %v15426_v43, %v6634_v49  ;;  %v6711_v16 = vmul.f32 %v15427_v11, %v6636_v19 }
0x11de   : > { %6793 = vrot.lane.b32.xlu0 %v6710_v5, %s9985_s13  ;;  %6791 = vrot.lane.b32.xlu1 %v6709_v52, %s9985_s13  ;;  %v15435_v52 = vld [vmem:[#allocation62_spill] sm:$0xff]  ;;  %v15436_v5 = vld [vmem:[#allocation63_spill] sm:$0xff] }
0x11df   : > { %v6638_v50 = vpop.permute.xlu1 %6637  ;;  %v6640_v32 = vpop.permute.xlu0 %6639 }
0x11e0   : > { %v6712_v38 = vmul.f32 %v15428_v40, %v6638_v50  ;;  %v6713_v20 = vmul.f32 %v15429_v45, %v6640_v32  ;;  %v15439_v45 = vld [vmem:[#allocation67_spill] sm:$0xff] }
0x11e2   : > { %6797 = vrot.lane.b32.xlu0 %v6712_v38, %s9985_s13  ;;  %6795 = vrot.lane.b32.xlu1 %v6711_v16, %s9985_s13  ;;  %v15437_v16 = vld [vmem:[#allocation64_spill] sm:$0xff]  ;;  %v15438_v38 = vld [vmem:[#allocation66_spill] sm:$0xff] }
0x11e3   : > { %v6642_v56 = vpop.permute.xlu1 %6641  ;;  %v6644_v63 = vpop.permute.xlu0 %6643 }
0x11e4   : > { %v6714_v21 = vmul.f32 %v15430_v39, %v6642_v56  ;;  %v6715_v47 = vmul.f32 %v15431_v30, %v6644_v63  ;;  %v15440_v39 = vld [vmem:[#allocation72_spill] sm:$0xff]  ;;  %v15441_v63 = vld [vmem:[#allocation69_spill] sm:$0xff] }
0x11e5   : > { %v15442_v30 = vld [vmem:[#allocation73_spill] sm:$0xff] }
0x11e6   : > { %6801 = vrot.lane.b32.xlu0 %v6714_v21, %s9985_s13  ;;  %6799 = vrot.lane.b32.xlu1 %v6713_v20, %s9985_s13  ;;  %v6693_v20 = vmul.f32 %v15439_v45, %v14234_v33  ;;  %v6694_v21 = vmul.f32 %v15440_v39, %v14238_v12  ;;  %v15444_v33 = vld [vmem:[#allocation74_spill] sm:$0xff] }
0x11e7   : > { %v6646_v61 = vpop.permute.xlu1 %6645  ;;  %v6648_v44 = vpop.permute.xlu0 %6647 }
0x11e8   : > { %v6716_v58 = vmul.f32 %v15432_v62, %v6646_v61  ;;  %v6717_v10 = vmul.f32 %v15433_v51, %v6648_v44  ;;  %v6707_v61 = vmul.f32 %v15441_v63, %v6628_v57  ;;  %v15443_v44 = vld [vmem:[#allocation71_spill] sm:$0xff] }
0x11ea   : > { %6805 = vrot.lane.b32.xlu0 %v6716_v58, %s9985_s13  ;;  %6803 = vrot.lane.b32.xlu1 %v6715_v47, %s9985_s13 }
0x11eb   : > { %v6650_v24 = vpop.permute.xlu1 %6649  ;;  %v6652_v49 = vpop.permute.xlu0 %6651 }
0x11ec   : > { %v6718_v17 = vmul.f32 %v15434_v54, %v6650_v24  ;;  %v6719_v43 = vmul.f32 %v15435_v52, %v6652_v49 }
0x11ee   : > { %6809 = vrot.lane.b32.xlu0 %v6718_v17, %s9985_s13  ;;  %6807 = vrot.lane.b32.xlu1 %v6717_v10, %s9985_s13 }
0x11ef   : > { %v6654_v28 = vpop.permute.xlu1 %6653  ;;  %v6656_v50 = vpop.permute.xlu0 %6655 }
0x11f0   : > { %v6720_v19 = vmul.f32 %v15436_v5, %v6654_v28  ;;  %v6721_v40 = vmul.f32 %v15437_v16, %v6656_v50 }
0x11f2   : > { %6813 = vrot.lane.b32.xlu0 %v6720_v19, %s9985_s13  ;;  %6811 = vrot.lane.b32.xlu1 %v6719_v43, %s9985_s13 }
0x11f3   : > { %v6658_v11 = vpop.permute.xlu1 %6657  ;;  %v6596_v62 = vpop.permute.xlu0 %6595 }
0x11f4   : > { %v6722_v32 = vmul.f32 %v15438_v38, %v6658_v11  ;;  %v6691_v24 = vmul.f32 %v15443_v44, %v6596_v62 }
0x11f6   : > { %6817 = vrot.lane.b32.xlu1 %v6722_v32, %s9985_s13  ;;  %6815 = vrot.lane.b32.xlu0 %v6721_v40, %s9985_s13 }
0x11f7   : > { %v6630_v56 = vpop.permute.xlu1 %6629  ;;  %v14304_v10 = vpop.permute.xlu0 %6889 }
0x11f8   : > { %v6708_v47 = vmul.f32 %v15442_v30, %v6630_v56 }
0x11fa   : > { %6759 = vrot.lane.b32.xlu1 %v6693_v20, %s9985_s13  ;;  %6761 = vrot.lane.b32.xlu0 %v6694_v21, %s9985_s13 }
0x11fb   : > { %v6598_v58 = vpop.permute.xlu1 %6597 }
0x11fc   : > { %v6692_v51 = vmul.f32 %v15444_v33, %v6598_v58 }
0x11fe   : > { %6787 = vrot.lane.b32.xlu1 %v6707_v61, %s9985_s13  ;;  %6789 = vrot.lane.b32.xlu0 %v6708_v47, %s9985_s13 }
0x1202   : > { %6757 = vrot.lane.b32.xlu0 %v6692_v51, %s9985_s13  ;;  %6755 = vrot.lane.b32.xlu1 %v6691_v24, %s9985_s13  ;;  %s7148_s13 = sld [smem:[#allocation2]] }
0x1230   : > { %v6764_v12 = vpop.permute.xlu1 %6763 }
0x1231   : > { %v14307_v57 = vadd.f32 %v14014_v14, %v6764_v12 }
0x1233   : > { %v6896_v54 = vmul.f32 %v14304_v10, %v14307_v57 }
0x1234   : > { %v6768_v17 = vpop.permute.xlu1 %6767 }
0x1235   : > { %v14312_v49 = vadd.f32 %v14023_v53, %v6768_v17  ;;  %6964 = vrot.lane.b32.xlu1 %v6896_v54, %s9984_s12 }
0x1237   : > { %v6898_v28 = vmul.f32 %v14304_v10, %v14312_v49 }
0x1238   : > { %v6766_v52 = vpop.permute.xlu0 %6765  ;;  %v6772_v43 = vpop.permute.xlu1 %6771 }
0x1239   : > { %v14318_v5 = vadd.f32 %v14035_v22, %v6766_v52  ;;  %v14321_v14 = vadd.f32 %v14039_v46, %v6772_v43  ;;  %6968 = vrot.lane.b32.xlu1 %v6898_v28, %s9984_s12 }
0x123b   : > { %v6897_v19 = vmul.f32 %v14304_v10, %v14318_v5  ;;  %v6900_v53 = vmul.f32 %v14304_v10, %v14321_v14 }
0x123c   : > { %v6770_v50 = vpop.permute.xlu0 %6769  ;;  %v6776_v11 = vpop.permute.xlu1 %6775 }
0x123d   : > { %v14329_v16 = vadd.f32 %v14050_v6, %v6770_v50  ;;  %6966 = vrot.lane.b32.xlu0 %v6897_v19, %s9984_s12  ;;  %v14333_v22 = vadd.f32 %v14055_v23, %v6776_v11  ;;  %6972 = vrot.lane.b32.xlu1 %v6900_v53, %s9984_s12 }
0x123f   : > { %v6899_v46 = vmul.f32 %v14304_v10, %v14329_v16  ;;  %v6902_v40 = vmul.f32 %v14304_v10, %v14333_v22 }
0x1240   : > { %v6774_v38 = vpop.permute.xlu0 %6773  ;;  %v6780_v32 = vpop.permute.xlu1 %6779 }
0x1241   : > { %v14341_v56 = vadd.f32 %v14066_v13, %v6774_v38  ;;  %6970 = vrot.lane.b32.xlu0 %v6899_v46, %s9984_s12  ;;  %v14345_v6 = vadd.f32 %v14071_v7, %v6780_v32  ;;  %6976 = vrot.lane.b32.xlu1 %v6902_v40, %s9984_s12 }
0x1243   : > { %v6901_v23 = vmul.f32 %v14304_v10, %v14341_v56  ;;  %v6904_v45 = vmul.f32 %v14304_v10, %v14345_v6 }
0x1244   : > { %v6778_v20 = vpop.permute.xlu0 %6777 }
0x1245   : > { %v14353_v39 = vadd.f32 %v14082_v2, %v6778_v20  ;;  %6974 = vrot.lane.b32.xlu0 %v6901_v23, %s9984_s12  ;;  %6980 = vrot.lane.b32.xlu1 %v6904_v45, %s9984_s12 }
0x1247   : > { %v6903_v13 = vmul.f32 %v14304_v10, %v14353_v39 }
0x1248   : > { %v6782_v7 = vpop.permute.xlu0 %6781 }
0x1249   : > { %v14360_v21 = vadd.f32 %v14098_v29, %v6782_v7  ;;  %6978 = vrot.lane.b32.xlu0 %v6903_v13, %s9984_s12 }
0x124b   : > { %v6905_v63 = vmul.f32 %v14304_v10, %v14360_v21 }
0x124c   : > { %v6786_v61 = vpop.permute.xlu1 %6785  ;;  %v6784_v30 = vpop.permute.xlu0 %6783 }
0x124d   : > { %v14366_v2 = vadd.f32 %v14114_v59, %v6786_v61  ;;  %v14369_v47 = vadd.f32 %v14087_v27, %v6784_v30  ;;  %6982 = vrot.lane.b32.xlu0 %v6905_v63, %s9984_s12 }
0x124f   : > { %v6907_v62 = vmul.f32 %v14304_v10, %v14366_v2  ;;  %v6906_v29 = vmul.f32 %v14304_v10, %v14369_v47 }
0x1250   : > { %v6792_v58 = vpop.permute.xlu1 %6791  ;;  %v6794_v44 = vpop.permute.xlu0 %6793 }
0x1251   : > { %v14377_v24 = vadd.f32 %v14119_v9, %v6792_v58  ;;  %v14380_v33 = vadd.f32 %v14130_v55, %v6794_v44  ;;  %6986 = vrot.lane.b32.xlu0 %v6907_v62, %s9984_s12  ;;  %6984 = vrot.lane.b32.xlu1 %v6906_v29, %s9984_s12 }
0x1253   : > { %v6910_v27 = vmul.f32 %v14304_v10, %v14377_v24  ;;  %v6911_v59 = vmul.f32 %v14304_v10, %v14380_v33 }
0x1254   : > { %v6796_v51 = vpop.permute.xlu1 %6795  ;;  %v6798_v12 = vpop.permute.xlu0 %6797 }
0x1255   : > { %v14389_v54 = vadd.f32 %v14135_v25, %v6796_v51  ;;  %v14392_v9 = vadd.f32 %v14146_v15, %v6798_v12  ;;  %6992 = vrot.lane.b32.xlu1 %v6910_v27, %s9984_s12  ;;  %6994 = vrot.lane.b32.xlu0 %v6911_v59, %s9984_s12 }
0x1257   : > { %v6912_v55 = vmul.f32 %v14304_v10, %v14389_v54  ;;  %v6913_v17 = vmul.f32 %v14304_v10, %v14392_v9 }
0x1258   : > { %v6800_v28 = vpop.permute.xlu1 %6799  ;;  %v6802_v52 = vpop.permute.xlu0 %6801 }
0x1259   : > { %v14401_v43 = vadd.f32 %v14151_v1, %v6800_v28  ;;  %v14404_v25 = vadd.f32 %v14162_v4, %v6802_v52  ;;  %6996 = vrot.lane.b32.xlu1 %v6912_v55, %s9984_s12  ;;  %6998 = vrot.lane.b32.xlu0 %v6913_v17, %s9984_s12 }
0x125b   : > { %v6914_v15 = vmul.f32 %v14304_v10, %v14401_v43  ;;  %v6915_v19 = vmul.f32 %v14304_v10, %v14404_v25 }
0x125c   : > { %v6804_v53 = vpop.permute.xlu1 %6803  ;;  %v6806_v50 = vpop.permute.xlu0 %6805 }
0x125d   : > { %v14413_v11 = vadd.f32 %v14166_v37, %v6804_v53  ;;  %v14416_v1 = vadd.f32 %v14174_v36, %v6806_v50  ;;  %7000 = vrot.lane.b32.xlu1 %v6914_v15, %s9984_s12  ;;  %7002 = vrot.lane.b32.xlu0 %v6915_v19, %s9984_s12 }
0x125f   : > { %v6916_v4 = vmul.f32 %v14304_v10, %v14413_v11  ;;  %v6917_v46 = vmul.f32 %v14304_v10, %v14416_v1 }
0x1260   : > { %v6808_v40 = vpop.permute.xlu1 %6807  ;;  %v6810_v38 = vpop.permute.xlu0 %6809 }
0x1261   : > { %v14425_v32 = vadd.f32 %v14178_v34, %v6808_v40  ;;  %v14428_v37 = vadd.f32 %v14186_v60, %v6810_v38  ;;  %7004 = vrot.lane.b32.xlu1 %v6916_v4, %s9984_s12  ;;  %7006 = vrot.lane.b32.xlu0 %v6917_v46, %s9984_s12 }
0x1263   : > { %v6918_v36 = vmul.f32 %v14304_v10, %v14425_v32  ;;  %v6919_v23 = vmul.f32 %v14304_v10, %v14428_v37 }
0x1264   : > { %v6812_v45 = vpop.permute.xlu1 %6811  ;;  %v6814_v20 = vpop.permute.xlu0 %6813 }
0x1265   : > { %v14437_v13 = vadd.f32 %v14190_v18, %v6812_v45  ;;  %v14440_v34 = vadd.f32 %v14196_v8, %v6814_v20  ;;  %7008 = vrot.lane.b32.xlu1 %v6918_v36, %s9984_s12  ;;  %7010 = vrot.lane.b32.xlu0 %v6919_v23, %s9984_s12 }
0x1267   : > { %v6920_v60 = vmul.f32 %v14304_v10, %v14437_v13  ;;  %v6921_v7 = vmul.f32 %v14304_v10, %v14440_v34 }
0x1268   : > { %v6818_v63 = vpop.permute.xlu1 %6817  ;;  %v6816_v61 = vpop.permute.xlu0 %6815 }
0x1269   : > { %v14449_v30 = vadd.f32 %v14200_v31, %v6816_v61  ;;  %7012 = vrot.lane.b32.xlu1 %v6920_v60, %s9984_s12  ;;  %7014 = vrot.lane.b32.xlu0 %v6921_v7, %s9984_s12  ;;  %v14463_v31 = vadd.f32 %v14206_v26, %v6818_v63 }
0x126b   : > { %v6922_v18 = vmul.f32 %v14304_v10, %v14449_v30 }
0x126c   : > { %v6760_v8 = vpop.permute.xlu1 %6759  ;;  %v6762_v62 = vpop.permute.xlu0 %6761 }
0x126d   : > { %v14456_v29 = vadd.f32 %v14010_v41, %v6760_v8  ;;  %v14459_v58 = vadd.f32 %v14027_v0, %v6762_v62  ;;  %7016 = vrot.lane.b32.xlu1 %v6922_v18, %s9984_s12  ;;  %v6923_v41 = vmul.f32 %v14304_v10, %v14463_v31 }
0x126f   : > { %v6894_v44 = vmul.f32 %v14304_v10, %v14456_v29  ;;  %v6895_v27 = vmul.f32 %v14304_v10, %v14459_v58 }
0x1270   : > { %v6788_v59 = vpop.permute.xlu1 %6787  ;;  %v6790_v51 = vpop.permute.xlu0 %6789 }
0x1271   : > { %v14470_v12 = vadd.f32 %v14103_v42, %v6788_v59  ;;  %6960 = vrot.lane.b32.xlu1 %v6894_v44, %s9984_s12  ;;  %6962 = vrot.lane.b32.xlu0 %v6895_v27, %s9984_s12  ;;  %v14479_v26 = vadd.f32 %v14216_v48, %v6790_v51 }
0x1273   : > { %v6908_v0 = vmul.f32 %v14304_v10, %v14470_v12  ;;  %v6909_v42 = vmul.f32 %v14304_v10, %v14479_v26 }
0x1274   : > { %v6756_v55 = vpop.permute.xlu1 %6755  ;;  %v6758_v17 = vpop.permute.xlu0 %6757 }
0x1275   : > { %v14482_v28 = vadd.f32 %v14210_v35, %v6756_v55  ;;  %6988 = vrot.lane.b32.xlu1 %v6908_v0, %s9984_s12  ;;  %7018 = vrot.lane.b32.xlu0 %v6923_v41, %s9984_s12  ;;  %v14491_v15 = vadd.f32 %v14227_v3, %v6758_v17 }
0x1277   : > { %v6892_v52 = vmul.f32 %v14304_v10, %v14482_v28  ;;  %v6893_v35 = vmul.f32 %v14304_v10, %v14491_v15 }
0x1279   : > { %6956 = vrot.lane.b32.xlu1 %v6892_v52, %s9984_s12  ;;  %6990 = vrot.lane.b32.xlu0 %v6909_v42, %s9984_s12 }
0x127d   : > { %6958 = vrot.lane.b32.xlu0 %v6893_v35, %s9984_s12 }
0x12a7   : > { %v14498_v48 = vpop.permute.xlu1 %6964 }
0x12ab   : > { %v14500_v19 = vpop.permute.xlu1 %6968 }
0x12af   : > { %v14502_v53 = vpop.permute.xlu0 %6966  ;;  %v6973_v50 = vpop.permute.xlu1 %6972 }
0x12b0   : > { %v7076_v4 = vsel %vm534_vm0, %v6973_v50, 0.0 }
0x12b1   : > { %7077 = vadd.xlane.f32.xlu0 %v7076_v4 }
0x12b3   : > { %v6971_v3 = vpop.permute.xlu0 %6970  ;;  %v6977_v46 = vpop.permute.xlu1 %6976 }
0x12b4   : > { %v7082_v40 = vsel %vm534_vm0, %v6977_v46, 0.0 }
0x12b5   : > { %7083 = vadd.xlane.f32.xlu0 %v7082_v40 }
0x12b7   : > { %v6975_v38 = vpop.permute.xlu0 %6974  ;;  %v6981_v36 = vpop.permute.xlu1 %6980 }
0x12b8   : > { %v7079_v10 = vsel %vm534_vm0, %v6975_v38, 0.0  ;;  %v7088_v23 = vsel %vm534_vm0, %v6981_v36, 0.0 }
0x12b9   : > { %7080 = vadd.xlane.f32.xlu1 %v7079_v10  ;;  %7089 = vadd.xlane.f32.xlu0 %v7088_v23 }
0x12bb   : > { %v6979_v45 = vpop.permute.xlu0 %6978 }
0x12bc   : > { %v7085_v20 = vsel %vm534_vm0, %v6979_v45, 0.0 }
0x12bd   : > { %7086 = vadd.xlane.f32.xlu1 %v7085_v20 }
0x12bf   : > { %v6983_v60 = vpop.permute.xlu0 %6982 }
0x12c0   : > { %v7091_v7 = vsel %vm534_vm0, %v6983_v60, 0.0 }
0x12c1   : > { %7092 = vadd.xlane.f32.xlu1 %v7091_v7  ;;  %v7073_v7 = vsel %vm534_vm0, %v6971_v3, 0.0 }
0x12c3   : > { %v6985_v63 = vpop.permute.xlu1 %6984  ;;  %v6987_v61 = vpop.permute.xlu0 %6986 }
0x12c4   : > { %v7094_v18 = vsel %vm534_vm0, %v6985_v63, 0.0  ;;  %v7097_v8 = vsel %vm534_vm0, %v6987_v61, 0.0 }
0x12c5   : > { %7095 = vadd.xlane.f32.xlu0 %v7094_v18  ;;  %7098 = vadd.xlane.f32.xlu1 %v7097_v8  ;;  %v7070_v8 = vsel %vm534_vm0, %v14500_v19, 0.0 }
0x12c7   : > { %v6993_v62 = vpop.permute.xlu1 %6992  ;;  %v6995_v44 = vpop.permute.xlu0 %6994 }
0x12c8   : > { %v7109_v3 = vsel %vm534_vm0, %v6995_v44, 0.0  ;;  %v7106_v19 = vsel %vm534_vm0, %v6993_v62, 0.0 }
0x12cb   : > { %v6997_v27 = vpop.permute.xlu1 %6996  ;;  %v6999_v59 = vpop.permute.xlu0 %6998 }
0x12cc   : > { %v7115_v61 = vsel %vm534_vm0, %v6999_v59, 0.0  ;;  %v7064_v59 = vsel %vm534_vm0, %v14498_v48, 0.0 }
0x12cf   : > { %v7001_v51 = vpop.permute.xlu1 %7000  ;;  %v7003_v41 = vpop.permute.xlu0 %7002 }
0x12d0   : > { %v7121_v20 = vsel %vm534_vm0, %v7003_v41, 0.0  ;;  %v7118_v18 = vsel %vm534_vm0, %v7001_v51, 0.0  ;;  %v7067_v41 = vsel %vm534_vm0, %v14502_v53, 0.0 }
0x12d3   : > { %v7005_v0 = vpop.permute.xlu1 %7004  ;;  %v7007_v55 = vpop.permute.xlu0 %7006 }
0x12d4   : > { %v7124_v17 = vsel %vm534_vm0, %v7005_v0, 0.0  ;;  %v7127_v42 = vsel %vm534_vm0, %v7007_v55, 0.0  ;;  %v7112_v0 = vsel %vm534_vm0, %v6997_v27, 0.0 }
0x12d5   : > { %7125 = vadd.xlane.f32.xlu0 %v7124_v17  ;;  %7128 = vadd.xlane.f32.xlu1 %v7127_v42 }
0x12d7   : > { %v7009_v52 = vpop.permute.xlu1 %7008  ;;  %v7011_v35 = vpop.permute.xlu0 %7010 }
0x12d8   : > { %v7130_v50 = vsel %vm534_vm0, %v7009_v52, 0.0  ;;  %v7133_v4 = vsel %vm534_vm0, %v7011_v35, 0.0 }
0x12d9   : > { %7131 = vadd.xlane.f32.xlu0 %v7130_v50  ;;  %7134 = vadd.xlane.f32.xlu1 %v7133_v4  ;;  %v14539_v4 = vstv %s7148_s13 }
0x12db   : > { %v7013_v46 = vpop.permute.xlu1 %7012  ;;  %v7015_v40 = vpop.permute.xlu0 %7014 }
0x12dc   : > { %v7136_v38 = vsel %vm534_vm0, %v7013_v46, 0.0  ;;  %v7139_v36 = vsel %vm534_vm0, %v7015_v40, 0.0 }
0x12dd   : > { %7137 = vadd.xlane.f32.xlu0 %v7136_v38  ;;  %7140 = vadd.xlane.f32.xlu1 %v7139_v36 }
0x12df   : > { %v7017_v10 = vpop.permute.xlu1 %7016 }
0x12e0   : > { %v7142_v23 = vsel %vm534_vm0, %v7017_v10, 0.0 }
0x12e1   : > { %7143 = vadd.xlane.f32.xlu1 %v7142_v23 }
0x12e3   : > { %v6963_v45 = vpop.permute.xlu0 %6962  ;;  %v6961_v17 = vpop.permute.xlu1 %6960 }
0x12e4   : > { %v7061_v51 = vsel %vm534_vm0, %v6963_v45, 0.0  ;;  %v7058_v27 = vsel %vm534_vm0, %v6961_v17, 0.0 }
0x12e5   : > { %7122 = vadd.xlane.f32.xlu1 %v7121_v20 }
0x12e7   : > { %v7019_v60 = vpop.permute.xlu0 %7018  ;;  %v6989_v44 = vpop.permute.xlu1 %6988 }
0x12e8   : > { %v7145_v63 = vsel %vm534_vm0, %v7019_v60, 0.0  ;;  %v7100_v48 = vsel %vm534_vm0, %v6989_v44, 0.0 }
0x12e9   : > { %7074 = vadd.xlane.f32.xlu1 %v7073_v7  ;;  %7146 = vadd.xlane.f32.xlu0 %v7145_v63 }
0x12eb   : > { %v6991_v55 = vpop.permute.xlu0 %6990  ;;  %v6957_v35 = vpop.permute.xlu1 %6956 }
0x12ec   : > { %v7103_v53 = vsel %vm534_vm0, %v6991_v55, 0.0  ;;  %v7052_v50 = vsel %vm534_vm0, %v6957_v35, 0.0 }
0x12ed   : > { %7116 = vadd.xlane.f32.xlu1 %v7115_v61  ;;  %7119 = vadd.xlane.f32.xlu0 %v7118_v18 }
0x12ef   : > { %v6959_v42 = vpop.permute.xlu0 %6958 }
0x12f0   : > { %v7055_v52 = vsel %vm534_vm0, %v6959_v42, 0.0 }
0x12f1   : > { %7068 = vadd.xlane.f32.xlu1 %v7067_v41  ;;  %7071 = vadd.xlane.f32.xlu0 %v7070_v8 }
0x12f5   : > { %7110 = vadd.xlane.f32.xlu1 %v7109_v3  ;;  %7113 = vadd.xlane.f32.xlu0 %v7112_v0 }
0x12f9   : > { %7062 = vadd.xlane.f32.xlu1 %v7061_v51  ;;  %7065 = vadd.xlane.f32.xlu0 %v7064_v59 }
0x12fd   : > { %7107 = vadd.xlane.f32.xlu0 %v7106_v19  ;;  %7104 = vadd.xlane.f32.xlu1 %v7103_v53 }
0x1301   : > { %7059 = vadd.xlane.f32.xlu0 %v7058_v27  ;;  %7056 = vadd.xlane.f32.xlu1 %v7055_v52 }
0x1305   : > { %7101 = vadd.xlane.f32.xlu0 %v7100_v48 }
0x1309   : > { %7053 = vadd.xlane.f32.xlu0 %v7052_v50 }
0x133a   : > { %v7078_v62 = vpop.xlane.xlu0 %7077 }
0x133b   : > { %v7158_v46 = vadd.f32 %v14539_v4, %v7078_v62 }
0x133d   : > { %v8104_v10 = vmul.f32 -1.442695, %v7158_v46 }
0x133e   : > { %v7084_v40 = vpop.xlane.xlu0 %7083 }
0x133f   : > { %v7160_v38 = vadd.f32 %v14539_v4, %v7084_v40  ;;  %9591 = vpow2.f32 %v8104_v10 }
0x1341   : > { %v8106_v45 = vmul.f32 -1.442695, %v7160_v38 }
0x1342   : > { %v7081_v36 = vpop.xlane.xlu1 %7080  ;;  %v7090_v7 = vpop.xlane.xlu0 %7089 }
0x1343   : > { %v7159_v23 = vadd.f32 %v14539_v4, %v7081_v36  ;;  %9593 = vpow2.f32 %v8106_v45  ;;  %v7162_v63 = vadd.f32 %v14539_v4, %v7090_v7 }
0x1345   : > { %v8105_v20 = vmul.f32 -1.442695, %v7159_v23  ;;  %v8108_v8 = vmul.f32 -1.442695, %v7162_v63 }
0x1346   : > { %v7087_v60 = vpop.xlane.xlu1 %7086 }
0x1347   : > { %9595 = vpow2.f32 %v8105_v20  ;;  %v7161_v18 = vadd.f32 %v14539_v4, %v7087_v60 }
0x1348   : > { %9597 = vpow2.f32 %v8108_v8 }
0x1349   : > { %v8107_v51 = vmul.f32 -1.442695, %v7161_v18 }
0x134a   : > { %v7093_v61 = vpop.xlane.xlu1 %7092 }
0x134b   : > { %v7163_v0 = vadd.f32 %v14539_v4, %v7093_v61 }
0x134c   : > { %v9592_v42 = vpop.eup %9591 }
0x134d   : > { %v8109_v53 = vmul.f32 -1.442695, %v7163_v0  ;;  %v7286_v52 = vadd.f32 1.0, %v9592_v42 }
0x134e   : > { %v7099_v41 = vpop.xlane.xlu1 %7098  ;;  %v7096_v3 = vpop.xlane.xlu0 %7095 }
0x134f   : > { %v7165_v55 = vadd.f32 %v14539_v4, %v7099_v41  ;;  %v7164_v59 = vadd.f32 %v14539_v4, %v7096_v3 }
0x1350   : > { %v9594_v44 = vpop.eup %9593 }
0x1351   : > { %v8111_v17 = vmul.f32 -1.442695, %v7165_v55  ;;  %v8110_v19 = vmul.f32 -1.442695, %v7164_v59  ;;  %v7288_v48 = vadd.f32 1.0, %v9594_v44 }
0x1353   : > { %9599 = vpow2.f32 %v8111_v17 }
0x1354   : > { %9601 = vpow2.f32 %v8107_v51  ;;  %v9596_v27 = vpop.eup %9595 }
0x1355   : > { %9603 = vpow2.f32 %v8110_v19  ;;  %v7287_v35 = vadd.f32 1.0, %v9596_v27  ;;  %v9598_v46 = vpop.eup %9597 }
0x1356   : > { %9605 = vpow2.f32 %v8109_v53  ;;  %v7290_v63 = vadd.f32 1.0, %v9598_v46 }
0x1357   : > { %9607 = vrcp.f32 %v7286_v52 }
0x1358   : > { %9609 = vrcp.f32 %v7288_v48 }
0x1359   : > { %9611 = vrcp.f32 %v7287_v35 }
0x135e   : > { %v7129_v50 = vpop.xlane.xlu1 %7128  ;;  %v7126_v62 = vpop.xlane.xlu0 %7125 }
0x135f   : > { %v7175_v40 = vadd.f32 %v14539_v4, %v7129_v50  ;;  %v7174_v23 = vadd.f32 %v14539_v4, %v7126_v62 }
0x1360   : > { %v9600_v38 = vpop.eup %9599 }
0x1361   : > { %v9602_v36 = vpop.eup %9601  ;;  %v7293_v10 = vadd.f32 1.0, %v9600_v38  ;;  %v8121_v20 = vmul.f32 -1.442695, %v7175_v40  ;;  %v8120_v0 = vmul.f32 -1.442695, %v7174_v23 }
0x1362   : > { %v9604_v45 = vpop.eup %9603  ;;  %v7135_v60 = vpop.xlane.xlu1 %7134  ;;  %v7289_v41 = vadd.f32 1.0, %v9602_v36 }
0x1363   : > { %v7132_v7 = vpop.xlane.xlu0 %7131  ;;  %9613 = vrcp.f32 %v7293_v10  ;;  %v7292_v61 = vadd.f32 1.0, %v9604_v45  ;;  %v7177_v18 = vadd.f32 %v14539_v4, %v7135_v60  ;;  %v9606_v8 = vpop.eup %9605 }
0x1364   : > { %v7176_v3 = vadd.f32 %v14539_v4, %v7132_v7  ;;  %v7291_v17 = vadd.f32 1.0, %v9606_v8  ;;  %v9608_v42 = vpop.eup %9607 }
0x1365   : > { %9615 = vrcp.f32 %v7292_v61  ;;  %v8123_v55 = vmul.f32 -1.442695, %v7177_v18  ;;  %v9610_v52 = vpop.eup %9609  ;;  %v7390_v62 = vmul.f32 1.442695, %v9608_v42 }
0x1366   : > { %9617 = vpow2.f32 %v8121_v20  ;;  %v7141_v59 = vpop.xlane.xlu1 %7140  ;;  %v8122_v44 = vmul.f32 -1.442695, %v7176_v3  ;;  %v9612_v50 = vpop.eup %9611  ;;  %v7394_v40 = vmul.f32 1.442695, %v9610_v52 }
0x1367   : > { %v7138_v51 = vpop.xlane.xlu0 %7137  ;;  %9619 = vrcp.f32 %v7290_v63  ;;  %v7179_v19 = vadd.f32 %v14539_v4, %v7141_v59  ;;  %v7392_v36 = vmul.f32 1.442695, %v9612_v50 }
0x1368   : > { %v7178_v53 = vadd.f32 %v14539_v4, %v7138_v51  ;;  %9621 = vrcp.f32 %v7289_v41 }
0x1369   : > { %9623 = vpow2.f32 %v8120_v0  ;;  %v8125_v27 = vmul.f32 -1.442695, %v7179_v19 }
0x136a   : > { %9625 = vpow2.f32 %v8123_v55  ;;  %v8124_v48 = vmul.f32 -1.442695, %v7178_v53  ;;  %v7144_v35 = vpop.xlane.xlu1 %7143 }
0x136b   : > { %9627 = vrcp.f32 %v7291_v17  ;;  %v7180_v46 = vadd.f32 %v14539_v4, %v7144_v35 }
0x136c   : > { %9629 = vpow2.f32 %v8122_v44 }
0x136d   : > { %9631 = vpow2.f32 %v8125_v27  ;;  %v8126_v38 = vmul.f32 -1.442695, %v7180_v46 }
0x136e   : > { %9633 = vpow2.f32 %v8124_v48  ;;  %v7123_v10 = vpop.xlane.xlu1 %7122 }
0x136f   : > { %9635 = vpow2.f32 %v7390_v62  ;;  %v7173_v23 = vadd.f32 %v14539_v4, %v7123_v10 }
0x1370   : > { %v9614_v45 = vpop.eup %9613  ;;  %9637 = vpow2.f32 %v8126_v38 }
0x1371   : > { %9639 = vpow2.f32 %v7394_v40  ;;  %v7404_v20 = vmul.f32 1.442695, %v9614_v45  ;;  %v8119_v60 = vmul.f32 -1.442695, %v7173_v23 }
0x1372   : > { %v9616_v7 = vpop.eup %9615  ;;  %9641 = vpow2.f32 %v7392_v36  ;;  %v7075_v63 = vpop.xlane.xlu1 %7074 }
0x1373   : > { %v7147_v61 = vpop.xlane.xlu0 %7146  ;;  %v9618_v18 = vpop.eup %9617  ;;  %9643 = vpow2.f32 %v7404_v20  ;;  %v7402_v8 = vmul.f32 1.442695, %v9616_v7  ;;  %v7157_v41 = vadd.f32 %v14539_v4, %v7075_v63 }
0x1374   : > { %v7181_v3 = vadd.f32 %v14539_v4, %v7147_v61  ;;  %v9620_v0 = vpop.eup %9619  ;;  %v7303_v55 = vadd.f32 1.0, %v9618_v18  ;;  %9645 = vpow2.f32 %v8119_v60 }
0x1375   : > { %v9622_v59 = vpop.eup %9621  ;;  %9647 = vpow2.f32 %v7402_v8  ;;  %v8103_v51 = vmul.f32 -1.442695, %v7157_v41  ;;  %v7398_v8 = vmul.f32 1.442695, %v9620_v0 }
0x1376   : > { %v8127_v17 = vmul.f32 -1.442695, %v7181_v3  ;;  %v9624_v19 = vpop.eup %9623  ;;  %9649 = vrcp.f32 %v7303_v55  ;;  %v7117_v53 = vpop.xlane.xlu1 %7116 }
0x1377   : > { %v7120_v42 = vpop.xlane.xlu0 %7119  ;;  %v9626_v44 = vpop.eup %9625  ;;  %v7302_v27 = vadd.f32 1.0, %v9624_v19  ;;  %9651 = vpow2.f32 %v8103_v51  ;;  %v7171_v52 = vadd.f32 %v14539_v4, %v7117_v53 }
0x1378   : > { %v7172_v48 = vadd.f32 %v14539_v4, %v7120_v42  ;;  %v14561_v35 = vpop.eup %9627  ;;  %v7305_v50 = vadd.f32 1.0, %v9626_v44  ;;  %9653 = vpow2.f32 %v8127_v17 }
0x1379   : > { %v9630_v62 = vpop.eup %9629  ;;  %9655 = vrcp.f32 %v7302_v27  ;;  %v8117_v46 = vmul.f32 -1.442695, %v7171_v52  ;;  %v7396_v52 = vmul.f32 1.442695, %v9622_v59 }
0x137a   : > { %v9632_v40 = vpop.eup %9631  ;;  %9657 = vrcp.f32 %v7305_v50  ;;  %v7304_v38 = vadd.f32 1.0, %v9630_v62  ;;  %v8118_v36 = vmul.f32 -1.442695, %v7172_v48  ;;  %v7069_v10 = vpop.xlane.xlu1 %7068 }
0x137b   : > { %v7072_v23 = vpop.xlane.xlu0 %7071  ;;  %v9634_v45 = vpop.eup %9633  ;;  %v7307_v20 = vadd.f32 1.0, %v9632_v40  ;;  %9659 = vpow2.f32 %v8117_v46  ;;  %v7155_v60 = vadd.f32 %v14539_v4, %v7069_v10 }
0x137c   : > { %v7156_v7 = vadd.f32 %v14539_v4, %v7072_v23  ;;  %v14565_v63 = vpop.eup %9635  ;;  %9661 = vrcp.f32 %v7304_v38  ;;  %v7306_v61 = vadd.f32 1.0, %v9634_v45 }
0x137d   : > { %v9638_v18 = vpop.eup %9637  ;;  %9663 = vrcp.f32 %v7307_v20  ;;  %v8101_v53 = vmul.f32 -1.442695, %v7155_v60 }
0x137e   : > { %v14567_v41 = vpop.eup %9639  ;;  %9665 = vrcp.f32 %v7306_v61  ;;  %v7308_v3 = vadd.f32 1.0, %v9638_v18  ;;  %v8102_v55 = vmul.f32 -1.442695, %v7156_v7  ;;  %v7111_v51 = vpop.xlane.xlu1 %7110 }
0x137f   : > { %v7114_v17 = vpop.xlane.xlu0 %7113  ;;  %v14569_v19 = vpop.eup %9641  ;;  %9667 = vpow2.f32 %v8118_v36  ;;  %v7169_v42 = vadd.f32 %v14539_v4, %v7111_v51 }
0x1380   : > { %v7170_v44 = vadd.f32 %v14539_v4, %v7114_v17  ;;  %v14573_v27 = vpop.eup %9643  ;;  %9669 = vrcp.f32 %v7308_v3 }
0x1381   : > { %v9646_v0 = vpop.eup %9645  ;;  %9671 = vpow2.f32 %v7398_v8  ;;  %v8115_v62 = vmul.f32 -1.442695, %v7169_v42  ;;  %v7453_v40 = vmul.f32 %v14573_v27, %v14366_v2 }
0x1382   : > { %v8116_v48 = vmul.f32 -1.442695, %v7170_v44  ;;  %v14575_v50 = vpop.eup %9647  ;;  %9673 = vpow2.f32 %v8102_v55  ;;  %v7301_v36 = vadd.f32 1.0, %v9646_v0  ;;  %v7063_v7 = vpop.xlane.xlu1 %7062 }
0x1383   : > { %v7066_v46 = vpop.xlane.xlu0 %7065  ;;  %v9650_v38 = vpop.eup %9649  ;;  %9675 = vpow2.f32 %v8101_v53  ;;  %v7452_v10 = vmul.f32 %v14575_v50, %v14369_v47 }
0x1384   : > { %v9652_v23 = vpop.eup %9651  ;;  %9677 = vpow2.f32 %v7396_v52  ;;  %v7424_v45 = vmul.f32 1.442695, %v9650_v38 }
0x1385   : > { %v9654_v59 = vpop.eup %9653  ;;  %9679 = vpow2.f32 %v8116_v48  ;;  %v8673_v61 = vpack.i.bf16 %v7453_v40, %v7452_v10  ;;  %v7285_v0 = vadd.f32 1.0, %v9652_v23 }
0x1386   : > { %v9656_v20 = vpop.eup %9655  ;;  %v7309_v60 = vadd.f32 1.0, %v9654_v59  ;;  %9681 = vpow2.f32 %v8115_v62  ;;  %v7105_v48 = vpop.xlane.xlu1 %7104  ;;  %v7153_v59 = vadd.f32 %v14539_v4, %v7063_v7 }
0x1387   : > { %v9658_v18 = vpop.eup %9657  ;;  %9683 = vrcp.f32 %v7301_v36  ;;  %v7108_v8 = vpop.xlane.xlu0 %7107  ;;  %8674 = vrot.lane.b32.xlu1 %v8673_v61, %s9984_s12  ;;  %v7422_v40 = vmul.f32 1.442695, %v9656_v20  ;;  %v7154_v20 = vadd.f32 %v14539_v4, %v7066_v46 }
0x1388   : > { %v9660_v2 = vpop.eup %9659  ;;  %v7428_v3 = vmul.f32 1.442695, %v9658_v18  ;;  %9685 = vrcp.f32 %v7309_v60  ;;  %v7400_v60 = vmul.f32 1.442695, %v14561_v35 }
0x1389   : > { %v9662_v55 = vpop.eup %9661  ;;  %9687 = vpow2.f32 %v7424_v45  ;;  %v7299_v47 = vadd.f32 1.0, %v9660_v2 }
0x138a   : > { %v9664_v51 = vpop.eup %9663  ;;  %9689 = vpow2.f32 %v7428_v3  ;;  %v7426_v17 = vmul.f32 1.442695, %v9662_v55  ;;  %v8099_v55 = vmul.f32 -1.442695, %v7153_v59 }
0x138b   : > { %v9666_v53 = vpop.eup %9665  ;;  %v7432_v42 = vmul.f32 1.442695, %v9664_v51  ;;  %9691 = vrcp.f32 %v7299_v47  ;;  %v7060_v36 = vpop.xlane.xlu0 %7059  ;;  %v7167_v47 = vadd.f32 %v14539_v4, %v7105_v48 }
0x138c   : > { %v9668_v44 = vpop.eup %9667  ;;  %9693 = vpow2.f32 %v7426_v17  ;;  %v7430_v52 = vmul.f32 1.442695, %v9666_v53  ;;  %v7057_v51 = vpop.xlane.xlu1 %7056 }
0x138d   : > { %v9670_v62 = vpop.eup %9669  ;;  %9695 = vpow2.f32 %v7432_v42  ;;  %v7300_v38 = vadd.f32 1.0, %v9668_v44  ;;  %v7168_v44 = vadd.f32 %v14539_v4, %v7108_v8  ;;  %v7151_v46 = vadd.f32 %v14539_v4, %v7057_v51 }
0x138e   : > { %v14582_v10 = vpop.eup %9671  ;;  %9697 = vpow2.f32 %v7430_v52  ;;  %v7434_v18 = vmul.f32 1.442695, %v9670_v62  ;;  %v8113_v48 = vmul.f32 -1.442695, %v7167_v47 }
0x138f   : > { %v9674_v45 = vpop.eup %9673  ;;  %9699 = vrcp.f32 %v7300_v38  ;;  %v7102_v53 = vpop.xlane.xlu0 %7101  ;;  %v7152_v38 = vadd.f32 %v14539_v4, %v7060_v36 }
0x1390   : > { %v9676_v61 = vpop.eup %9675  ;;  %9701 = vrcp.f32 %v7285_v0  ;;  %v7284_v2 = vadd.f32 1.0, %v9674_v45  ;;  %v8100_v0 = vmul.f32 -1.442695, %v7154_v20  ;;  %v7166_v8 = vadd.f32 %v14539_v4, %v7102_v53 }
0x1391   : > { %v14586_v23 = vpop.eup %9677  ;;  %9703 = vpow2.f32 %v7422_v40  ;;  %v7283_v17 = vadd.f32 1.0, %v9676_v61  ;;  %v8114_v61 = vmul.f32 -1.442695, %v7168_v44 }
0x1392   : > { %v9680_v3 = vpop.eup %9679  ;;  %9705 = vrcp.f32 %v7284_v2  ;;  %v8097_v2 = vmul.f32 -1.442695, %v7151_v46 }
0x1393   : > { %v9682_v7 = vpop.eup %9681  ;;  %9707 = vpow2.f32 %v7400_v60  ;;  %v7298_v35 = vadd.f32 1.0, %v9680_v3  ;;  %v7054_v20 = vpop.xlane.xlu0 %7053 }
0x1394   : > { %v9684_v42 = vpop.eup %9683  ;;  %9709 = vpow2.f32 %v7434_v18 }
0x1395   : > { %v9686_v52 = vpop.eup %9685  ;;  %9711 = vrcp.f32 %v7298_v35  ;;  %v7420_v45 = vmul.f32 1.442695, %v9684_v42  ;;  %v7150_v35 = vadd.f32 %v14539_v4, %v7054_v20 }
0x1396   : > { %v14592_v62 = vpop.eup %9687  ;;  %v7436_v40 = vmul.f32 1.442695, %v9686_v52  ;;  %9713 = vpow2.f32 %v8099_v55  ;;  %v8098_v55 = vmul.f32 -1.442695, %v7152_v38  ;;  %v7297_v52 = vadd.f32 1.0, %v9682_v7 }
0x1397   : > { %v14595_v59 = vpop.eup %9689  ;;  %9715 = vrcp.f32 %v7283_v17  ;;  %v8112_v17 = vmul.f32 -1.442695, %v7166_v8 }
0x1398   : > { %v9692_v60 = vpop.eup %9691  ;;  %9717 = vpow2.f32 %v7436_v40 }
0x1399   : > { %v14598_v18 = vpop.eup %9693  ;;  %9719 = vpow2.f32 %v8100_v0  ;;  %v7465_v0 = vmul.f32 %v14595_v59, %v14428_v37  ;;  %v7416_v40 = vmul.f32 1.442695, %v9692_v60  ;;  %v7463_v37 = vmul.f32 %v14592_v62, %v14416_v1 }
0x139a   : > { %v14600_v3 = vpop.eup %9695  ;;  %9721 = vpow2.f32 %v8113_v48  ;;  %v7464_v48 = vmul.f32 %v14598_v18, %v14425_v32 }
0x139b   : > { %v14602_v47 = vpop.eup %9697  ;;  %9723 = vpow2.f32 %v7420_v45  ;;  %v7467_v36 = vmul.f32 %v14600_v3, %v14440_v34  ;;  %v8096_v45 = vmul.f32 -1.442695, %v7150_v35 }
0x139c   : > { %v9700_v51 = vpop.eup %9699  ;;  %9725 = vpow2.f32 %v8114_v61  ;;  %v7466_v53 = vmul.f32 %v14602_v47, %v14437_v13  ;;  %v8688_v8 = vpack.i.bf16 %v7465_v0, %v7464_v48 }
0x139d   : > { %v9702_v42 = vpop.eup %9701  ;;  %v7418_v44 = vmul.f32 1.442695, %v9700_v51  ;;  %9727 = vpow2.f32 %v8097_v2 }
0x139e   : > { %v14611_v46 = vpop.eup %9703  ;;  %9729 = vpow2.f32 %v8098_v55  ;;  %v8678_v34 = vpack.i.bf16 %v7467_v36, %v7466_v53  ;;  %v7388_v61 = vmul.f32 1.442695, %v9702_v42 }
0x139f   : > { %v9706_v38 = vpop.eup %9705  ;;  %9731 = vpow2.f32 %v7418_v44  ;;  %v7462_v32 = vmul.f32 %v14611_v46, %v14413_v11 }
0x13a0   : > { %v14615_v4 = vpop.eup %9707  ;;  %v7386_v13 = vmul.f32 1.442695, %v9706_v38  ;;  %9733 = vpow2.f32 %v8112_v17  ;;  %8679 = vrot.lane.b32.xlu1 %v8678_v34, %s9984_s12 }
0x13a1   : > { %v14618_v7 = vpop.eup %9709  ;;  %9735 = vrcp.f32 %v7297_v52  ;;  %v8698_v1 = vpack.i.bf16 %v7463_v37, %v7462_v32 }
0x13a2   : > { %v9712_v60 = vpop.eup %9711  ;;  %9737 = vpow2.f32 %v7416_v40  ;;  %v7468_v35 = vmul.f32 %v14618_v7, %v14449_v30  ;;  %v7451_v40 = vmul.f32 %v14615_v4, %v14360_v21  ;;  %v7449_v21 = vmul.f32 %v14586_v23, %v14353_v39 }
0x13a3   : > { %v9714_v2 = vpop.eup %9713  ;;  %9739 = vpow2.f32 %v7386_v13  ;;  %v7414_v20 = vmul.f32 1.442695, %v9712_v60 }
0x13a4   : > { %v9716_v55 = vpop.eup %9715  ;;  %v7281_v36 = vadd.f32 1.0, %v9714_v2  ;;  %9741 = vpow2.f32 %v8096_v45  ;;  %8689 = vrot.lane.b32.xlu1 %v8688_v8, %s9984_s12 }
0x13a5   : > { %v14625_v51 = vpop.eup %9717  ;;  %9743 = vpow2.f32 %v7414_v20  ;;  %v7448_v20 = vmul.f32 %v14567_v41, %v14333_v22  ;;  %v7446_v22 = vmul.f32 %v14565_v63, %v14321_v14 }
0x13a6   : > { %v9720_v17 = vpop.eup %9719  ;;  %9745 = vpow2.f32 %v7388_v61  ;;  %v7469_v11 = vmul.f32 %v14625_v51, %v14463_v31  ;;  %v7450_v31 = vmul.f32 %v14582_v10, %v14345_v6 }
0x13a7   : > { %v9722_v53 = vpop.eup %9721  ;;  %9747 = vrcp.f32 %v7281_v36  ;;  %v7282_v42 = vadd.f32 1.0, %v9720_v17 }
0x13a8   : > { %v14631_v44 = vpop.eup %9723  ;;  %v7295_v52 = vadd.f32 1.0, %v9722_v53  ;;  %8699 = vrot.lane.b32.xlu1 %v8698_v1, %s9984_s12  ;;  %v8668_v0 = vpack.i.bf16 %v7469_v11, %v7468_v35  ;;  %v8683_v60 = vpack.i.bf16 %v7451_v40, %v7450_v31  ;;  %v8693_v1 = vpack.i.bf16 %v7449_v21, %v7448_v20 }
0x13a9   : > { %v9726_v34 = vpop.eup %9725  ;;  %9749 = vrcp.f32 %v7282_v42  ;;  %v7461_v32 = vmul.f32 %v14631_v44, %v14404_v25  ;;  %v7384_v42 = vmul.f32 1.442695, %v9716_v55 }
0x13aa   : > { %v9728_v48 = vpop.eup %9727  ;;  %9751 = vrcp.f32 %v7295_v52  ;;  %v7296_v30 = vadd.f32 1.0, %v9726_v34  ;;  %8669 = vrot.lane.b32.xlu0 %v8668_v0, %s9984_s12 }
0x13ab   : > { %v9730_v38 = vpop.eup %9729  ;;  %v7279_v13 = vadd.f32 1.0, %v9728_v48 }
0x13ac   : > { %v14639_v45 = vpop.eup %9731  ;;  %9753 = vrcp.f32 %v7296_v30  ;;  %v7280_v37 = vadd.f32 1.0, %v9730_v38 }
0x13ad   : > { %v9734_v61 = vpop.eup %9733  ;;  %9755 = vrcp.f32 %v7279_v13  ;;  %v7460_v8 = vmul.f32 %v14639_v45, %v14401_v43  ;;  %v7447_v43 = vmul.f32 %v14569_v19, %v14341_v56 }
0x13ae   : > { %v9736_v2 = vpop.eup %9735  ;;  %9757 = vrcp.f32 %v7280_v37  ;;  %v7294_v6 = vadd.f32 1.0, %v9734_v61  ;;  %8684 = vrot.lane.b32.xlu0 %v8683_v60, %s9984_s12 }
0x13af   : > { %v14650_v36 = vpop.eup %9737  ;;  %v8708_v17 = vpack.i.bf16 %v7461_v32, %v7460_v8  ;;  %v8703_v40 = vpack.i.bf16 %v7447_v43, %v7446_v22  ;;  %v7412_v31 = vmul.f32 1.442695, %v9736_v2 }
0x13b0   : > { %v14652_v39 = vpop.eup %9739  ;;  %9759 = vrcp.f32 %v7294_v6  ;;  %v7459_v56 = vmul.f32 %v14650_v36, %v14392_v9 }
0x13b1   : > { %v9742_v35 = vpop.eup %9741  ;;  %8709 = vrot.lane.b32.xlu1 %v8708_v17, %s9984_s12  ;;  %v7444_v34 = vmul.f32 %v14652_v39, %v14312_v49 }
0x13b2   : > { %v14657_v25 = vpop.eup %9743  ;;  %v7278_v11 = vadd.f32 1.0, %v9742_v35  ;;  %8694 = vrot.lane.b32.xlu0 %v8693_v1, %s9984_s12 }
0x13b3   : > { %v14662_v53 = vpop.eup %9745  ;;  %v7458_v52 = vmul.f32 %v14657_v25, %v14389_v54 }
0x13b4   : > { %v9748_v0 = vpop.eup %9747  ;;  %9761 = vrcp.f32 %v7278_v11  ;;  %v7445_v14 = vmul.f32 %v14662_v53, %v14329_v16 }
0x13b5   : > { %v8718_v48 = vpack.i.bf16 %v7459_v56, %v7458_v52  ;;  %9763 = vpow2.f32 %v7384_v42  ;;  %v7380_v54 = vmul.f32 1.442695, %v9748_v0 }
0x13b6   : > { %v9750_v30 = vpop.eup %9749  ;;  %8704 = vrot.lane.b32.xlu0 %v8703_v40, %s9984_s12  ;;  %v8713_v9 = vpack.i.bf16 %v7445_v14, %v7444_v34  ;;  %v8822_v14 = vld [vmem:[%s14715_s26 + $0x4] ss:$8 sps:$4 sm:$0xff]  }
0x13b7   : > { %v9752_v55 = vpop.eup %9751  ;;  %v7382_v38 = vmul.f32 1.442695, %v9750_v30  ;;  %8719 = vrot.lane.b32.xlu1 %v8718_v48, %s9984_s12  ;;  %7688 = vmatprep.mubr.bf16.mxu0 %v8822_v14 }
0x13b8   : > { %v7408_v37 = vmul.f32 1.442695, %v9752_v55 }
0x13b9   : > { %v9754_v13 = vpop.eup %9753  ;;  %9765 = vpow2.f32 %v7382_v38 }
0x13ba   : > { %v9756_v60 = vpop.eup %9755  ;;  %9767 = vpow2.f32 %v7412_v31  ;;  %v7410_v49 = vmul.f32 1.442695, %v9754_v13  ;;  %8714 = vrot.lane.b32.xlu0 %v8713_v9, %s9984_s12 }
0x13bb   : > { %v9758_v21 = vpop.eup %9757  ;;  %9769 = vpow2.f32 %v7380_v54  ;;  %v7376_v8 = vmul.f32 1.442695, %v9756_v60 }
0x13bc   : > { %9771 = vpow2.f32 %v7410_v49  ;;  %v7378_v61 = vmul.f32 1.442695, %v9758_v21 }
0x13bd   : > { %v9760_v16 = vpop.eup %9759  ;;  %9773 = vpow2.f32 %v7408_v37 }
0x13be   : > { %9775 = vpow2.f32 %v7378_v61  ;;  %v7406_v32 = vmul.f32 1.442695, %v9760_v16 }
0x13c0   : > { %9777 = vpow2.f32 %v7406_v32 }
0x13c1   : > { %v9762_v2 = vpop.eup %9761  ;;  %9779 = vpow2.f32 %v7376_v8 }
0x13c2   : > { %v7374_v6 = vmul.f32 1.442695, %v9762_v2  ;;  %v14675_v20 = vpop.eup %9763 }
0x13c3   : > { %v7443_v35 = vmul.f32 %v14675_v20, %v14318_v5 }
0x13c4   : > { %9781 = vpow2.f32 %v7374_v6 }
0x13c6   : > { %v14677_v17 = vpop.eup %9765 }
0x13c7   : > { %v14679_v1 = vpop.eup %9767  ;;  %v7442_v43 = vmul.f32 %v14677_v17, %v14307_v57 }
0x13c8   : > { %v14685_v11 = vpop.eup %9769  ;;  %v7457_v0 = vmul.f32 %v14679_v1, %v14380_v33 }
0x13c9   : > { %v14687_v22 = vpop.eup %9771  ;;  %v8723_v42 = vpack.i.bf16 %v7443_v35, %v7442_v43  ;;  %v7441_v34 = vmul.f32 %v14685_v11, %v14459_v58 }
0x13ca   : > { %v14689_v52 = vpop.eup %9773  ;;  %v7456_v56 = vmul.f32 %v14687_v22, %v14377_v24 }
0x13cb   : > { %v14695_v40 = vpop.eup %9775  ;;  %8724 = vrot.lane.b32.xlu0 %v8723_v42, %s9984_s12  ;;  %v7455_v33 = vmul.f32 %v14689_v52, %v14479_v26 }
0x13cc   : > { %v8728_v57 = vpack.i.bf16 %v7457_v0, %v7456_v56  ;;  %v7440_v5 = vmul.f32 %v14695_v40, %v14456_v29 }
0x13cd   : > { %v14702_v48 = vpop.eup %9777 }
0x13ce   : > { %8729 = vrot.lane.b32.xlu1 %v8728_v57, %s9984_s12  ;;  %v8733_v30 = vpack.i.bf16 %v7441_v34, %v7440_v5  ;;  %v7454_v24 = vmul.f32 %v14702_v48, %v14470_v12  ;;  %v14710_v31 = vpop.eup %9779 }
0x13cf   : > { %v7439_v26 = vmul.f32 %v14710_v31, %v14491_v15 }
0x13d0   : > { %8734 = vrot.lane.b32.xlu0 %v8733_v30, %s9984_s12  ;;  %v8738_v29 = vpack.i.bf16 %v7455_v33, %v7454_v24 }
0x13d1   : > { %v14718_v58 = vpop.eup %9781 }
0x13d2   : > { %8739 = vrot.lane.b32.xlu1 %v8738_v29, %s9984_s12  ;;  %v7438_v12 = vmul.f32 %v14718_v58, %v14482_v28 }
0x13d4   : > { %v8743_v55 = vpack.i.bf16 %v7439_v26, %v7438_v12 }
0x13d6   : > { %8744 = vrot.lane.b32.xlu0 %v8743_v55, %s9984_s12  ;;  %s9987_s12 = smov [#allocation4]  }
0x13f9   : > { %v8675_v54 = vpop.permute.xlu1 %8674 }
0x13fa   : > { %v8677_v13 = vunpack.i.h.bf16 %v8675_v54  ;;  %v8676_v37 = vunpack.i.l.bf16 %v8675_v54 }
0x13fc   : > { %v7613_v28 = vsel %vm534_vm0, %v8677_v13, %v14573_v27  ;;  %v7612_v15 = vsel %vm534_vm0, %v8676_v37, %v14575_v50 }
0x13fd   : > { %v7637_v0 = vpack.c.bf16 %v7613_v28, %v7612_v15 }
0x1412   : > { %v8680_v38 = vpop.permute.xlu1 %8679 }
0x1413   : > { %v8682_v60 = vunpack.i.h.bf16 %v8680_v38  ;;  %v8681_v49 = vunpack.i.l.bf16 %v8680_v38 }
0x1415   : > { %v7626_v35 = vsel %vm534_vm0, %v8681_v49, %v14602_v47  ;;  %v7627_v42 = vsel %vm534_vm0, %v8682_v60, %v14600_v3 }
0x1416   : > { %v8690_v9 = vpop.permute.xlu1 %8689  ;;  %v7644_v5 = vpack.c.bf16 %v7627_v42, %v7626_v35 }
0x1417   : > { %v8692_v8 = vunpack.i.h.bf16 %v8690_v9  ;;  %v8691_v32 = vunpack.i.l.bf16 %v8690_v9 }
0x1419   : > { %v7624_v34 = vsel %vm534_vm0, %v8691_v32, %v14598_v18 }
0x141a   : > { %v8700_v2 = vpop.permute.xlu1 %8699 }
0x141b   : > { %v8701_v30 = vunpack.i.l.bf16 %v8700_v2 }
0x141c   : > { %v8670_v21 = vpop.permute.xlu0 %8669 }
0x141d   : > { %v8672_v61 = vunpack.i.h.bf16 %v8670_v21  ;;  %v8671_v16 = vunpack.i.l.bf16 %v8670_v21 }
0x141f   : > { %v7628_v6 = vsel %vm534_vm0, %v8671_v16, %v14618_v7  ;;  %v7629_v43 = vsel %vm534_vm0, %v8672_v61, %v14625_v51  ;;  %v7625_v7 = vsel %vm534_vm0, %v8692_v8, %v14595_v59  ;;  %v8702_v51 = vunpack.i.h.bf16 %v8700_v2 }
0x1420   : > { %v8685_v56 = vpop.permute.xlu0 %8684  ;;  %v7645_v27 = vpack.c.bf16 %v7629_v43, %v7628_v6  ;;  %v7643_v55 = vpack.c.bf16 %v7625_v7, %v7624_v34 }
0x1421   : > { %v8687_v57 = vunpack.i.h.bf16 %v8685_v56  ;;  %v8686_v50 = vunpack.i.l.bf16 %v8685_v56 }
0x1422   : > { %8587 = vmatprep.subr.bf16.mxu0 %v7645_v27 }
0x1423   : > { %v8710_v24 = vpop.permute.xlu1 %8709  ;;  %v7611_v47 = vsel %vm534_vm0, %v8687_v57, %v14615_v4  ;;  %v7610_v3 = vsel %vm534_vm0, %v8686_v50, %v14582_v10  ;;  %8588 = vmatpush3.bf16.msra.mxu0 %v7637_v0  ;;  %v7622_v4 = vsel %vm534_vm0, %v8701_v30, %v14611_v46  ;;  %v7623_v10 = vsel %vm534_vm0, %v8702_v51, %v14592_v62 }
0x1424   : > { %v7636_v33 = vpack.c.bf16 %v7611_v47, %v7610_v3  ;;  %v8695_v29 = vpop.permute.xlu0 %8694  ;;  %8589 = vmatprep.subr.bf16.mxu0 %v7644_v5  ;;  %v8712_v26 = vunpack.i.h.bf16 %v8710_v24  ;;  %v8711_v18 = vunpack.i.l.bf16 %v8710_v24  ;;  %v7642_v49 = vpack.c.bf16 %v7623_v10, %v7622_v4 }
0x1425   : > { %v8697_v14 = vunpack.i.h.bf16 %v8695_v29  ;;  %v8696_v12 = vunpack.i.l.bf16 %v8695_v29 }
0x1427   : > { %v7609_v59 = vsel %vm534_vm0, %v8697_v14, %v14586_v23  ;;  %v7608_v54 = vsel %vm534_vm0, %v8696_v12, %v14567_v41  ;;  %8590 = vmatpush3.bf16.msra.mxu0 %v7636_v33  ;;  %v7620_v23 = vsel %vm534_vm0, %v8711_v18, %v14639_v45  ;;  %v7621_v41 = vsel %vm534_vm0, %v8712_v26, %v14631_v44  ;;  %v8820_v26 = vld [vmem:[%s14715_s26] ss:$8 sps:$4 sm:$0xff]  }
0x1428   : > { %v7635_v38 = vpack.c.bf16 %v7609_v59, %v7608_v54  ;;  %v8705_v9 = vpop.permute.xlu0 %8704  ;;  %8591 = vmatprep.subr.bf16.mxu0 %v7643_v55  ;;  %v7641_v32 = vpack.c.bf16 %v7621_v41, %v7620_v23  ;;  %v7723_v41 = vstv %s7722_s18  ;;  %s9925_s18 = sshll.u32 %s9987_s12, 4  ;;  %s9926_s18 = int_to_ptr.vmem [resolvable:$false] %s9925_s18 }
0x1429   : > { %v8720_v13 = vpop.permute.xlu1 %8719  ;;  %v8707_v37 = vunpack.i.h.bf16 %v8705_v9  ;;  %v8706_v60 = vunpack.i.l.bf16 %v8705_v9  ;;  %s9927_s8 = scalar_lea.vmem %s9926_s18, 256 }
0x142a   : > { %v8722_v21 = vunpack.i.h.bf16 %v8720_v13  ;;  %v8721_v61 = vunpack.i.l.bf16 %v8720_v13 }
0x142b   : > { %v7607_v46 = vsel %vm534_vm0, %v8707_v37, %v14569_v19  ;;  %v7606_v62 = vsel %vm534_vm0, %v8706_v60, %v14565_v63  ;;  %8592 = vmatpush3.bf16.msra.mxu0 %v7635_v38  ;;  %v8130_v37 = vld [vmem:[%s14847_s9] ss:$0 sm:$0xff] }
0x142c   : > { %v7634_v16 = vpack.c.bf16 %v7607_v46, %v7606_v62  ;;  %v8715_v28 = vpop.permute.xlu0 %8714  ;;  %8593 = vmatprep.subr.bf16.mxu0 %v7642_v49  ;;  %v7618_v19 = vsel %vm534_vm0, %v8721_v61, %v14657_v25  ;;  %v7619_v63 = vsel %vm534_vm0, %v8722_v21, %v14650_v36 }
0x142d   : > { %v8717_v15 = vunpack.i.h.bf16 %v8715_v28  ;;  %v8716_v8 = vunpack.i.l.bf16 %v8715_v28  ;;  %v7640_v6 = vpack.c.bf16 %v7619_v63, %v7618_v19 }
0x142f   : > { %v7605_v45 = vsel %vm534_vm0, %v8717_v15, %v14662_v53  ;;  %v7604_v44 = vsel %vm534_vm0, %v8716_v8, %v14652_v39  ;;  %8594 = vmatpush3.bf16.msra.mxu0 %v7634_v16 }
0x1430   : > { %v7633_v2 = vpack.c.bf16 %v7605_v45, %v7604_v44  ;;  %8595 = vmatprep.subr.bf16.mxu0 %v7641_v32 }
0x1433   : > { %8596 = vmatpush3.bf16.msra.mxu0 %v7633_v2 }
0x1434   : > { %8597 = vmatprep.subr.bf16.mxu0 %v7640_v6 }
0x143d   : > { %v8725_v43 = vpop.permute.xlu0 %8724 }
0x143e   : > { %v8727_v35 = vunpack.i.h.bf16 %v8725_v43  ;;  %v8726_v42 = vunpack.i.l.bf16 %v8725_v43 }
0x1440   : > { %v8730_v56 = vpop.permute.xlu1 %8729  ;;  %v7603_v53 = vsel %vm534_vm0, %v8727_v35, %v14675_v20  ;;  %v7602_v39 = vsel %vm534_vm0, %v8726_v42, %v14677_v17 }
0x1441   : > { %v8732_v27 = vunpack.i.h.bf16 %v8730_v56  ;;  %v8731_v25 = vunpack.i.l.bf16 %v8730_v56  ;;  %v7632_v0 = vpack.c.bf16 %v7603_v53, %v7602_v39 }
0x1442   : > { %v8735_v57 = vpop.permute.xlu0 %8734 }
0x1443   : > { %v8737_v36 = vunpack.i.h.bf16 %v8735_v57  ;;  %v8736_v50 = vunpack.i.l.bf16 %v8735_v57  ;;  %8598 = vmatpush3.bf16.msra.mxu0 %v7632_v0  ;;  %v7616_v5 = vsel %vm534_vm0, %v8731_v25, %v14687_v22  ;;  %v7617_v34 = vsel %vm534_vm0, %v8732_v27, %v14679_v1 }
0x1444   : > { %v8740_v7 = vpop.permute.xlu1 %8739  ;;  %v7639_v51 = vpack.c.bf16 %v7617_v34, %v7616_v5 }
0x1445   : > { %v7601_v20 = vsel %vm534_vm0, %v8737_v36, %v14685_v11  ;;  %v7600_v17 = vsel %vm534_vm0, %v8736_v50, %v14695_v40  ;;  %v8742_v30 = vunpack.i.h.bf16 %v8740_v7  ;;  %v8741_v24 = vunpack.i.l.bf16 %v8740_v7 }
0x1446   : > { %v7631_v47 = vpack.c.bf16 %v7601_v20, %v7600_v17  ;;  %8599 = vmatprep.subr.bf16.mxu0 %v7639_v51 }
0x1447   : > { %v7614_v3 = vsel %vm534_vm0, %v8741_v24, %v14702_v48  ;;  %v7615_v22 = vsel %vm534_vm0, %v8742_v30, %v14689_v52 }
0x1448   : > { %8600 = vmatpush3.bf16.msra.mxu0 %v7631_v47  ;;  %v8745_v1 = vpop.permute.xlu0 %8744  ;;  %v7638_v33 = vpack.c.bf16 %v7615_v22, %v7614_v3 }
0x1449   : > { %v8747_v29 = vunpack.i.h.bf16 %v8745_v1  ;;  %v8746_v14 = vunpack.i.l.bf16 %v8745_v1 }
0x144a   : > { %8601 = vmatprep.subr.bf16.mxu0 %v7638_v33 }
0x144b   : > { %v7599_v11 = vsel %vm534_vm0, %v8747_v29, %v14710_v31  ;;  %v7598_v40 = vsel %vm534_vm0, %v8746_v14, %v14718_v58 }
0x144c   : > { %v7630_v12 = vpack.c.bf16 %v7599_v11, %v7598_v40 }
0x144e   : > { %8602 = vmatpush3.bf16.msra.mxu0 %v7630_v12 }
0x1451   : > { %7689 = vmatmul.mubr.bf16.vlgmr.msra.gmra.mxu0 %v8820_v26 }
0x1511   : > { %v8603_v48 = vpop.f32.mrf.mxu0 }
0x1513   : > { %v8604_v18 = vpop.f32.mrf.mxu0 }
0x1514   : > { %v8605_v55 = vadd.f32 %v8604_v18, %v8603_v48 }
0x1515   : > { %v8606_v52 = vpop.f32.mrf.mxu0 }
0x1516   : > { %9783 = vrcp.f32 %v8605_v55 }
0x1517   : > { %v8607_v59 = vpop.f32.mrf.mxu0 }
0x1518   : > { %v8608_v54 = vadd.f32 %v8607_v59, %v8606_v52 }
0x151a   : > { %9785 = vrcp.f32 %v8608_v54 }
0x1523   : > { %v9784_v4 = vpop.eup %9783 }
0x1524   : > { %7701 = vrot.lane.b32.xlu1 %v9784_v4, %s9986_s17 }
0x1527   : > { %v9786_v10 = vpop.eup %9785 }
0x1528   : > { %7703 = vrot.lane.b32.xlu0 %v9786_v10, %s9986_s17  ;;  %s409_s17 = sand.u32 1, %s9973_s22  }
0x1529   : > { %s7833_s27 = sshll.u32 %s409_s17, 3  ;;  %s7733_s26 = scalar_lea.sflag [#allocation5], %s409_s17 }
0x152a   : > { %s411_s16 = scalar_lea.vmem [#allocation4], %s7833_s27 }
0x152b   : > { %s7746_s13 = sshll.u32 %s411_s16, 4  ;;  %s7747_s13 = int_to_ptr.vmem [resolvable:$true] %s7746_s13 }
0x152c   : > { %s9921_s20 = scalar_lea.vmem %s7747_s13, 128  ;;  %p9928_p0 = scmp.lt.s32.totalorder %s7747_s13, %s9926_s18 }
0x152d   : > { %p9922_p11 = scmp.ne.s32.totalorder %s7747_s13, %s9921_s20  ;;  %p9929_p1 = scmp.lt.s32.totalorder %s9927_s8, %s9921_s20 }
0x152f   : > { %p9923_p12 = pnand %p9922_p11, %p10092_p5  ;;  %p9930_p2 = por %p9929_p1, %p9928_p0 }
0x1531   : > { %p9924_p13 = pneg %p9923_p12 }
0x1533   : > { %p9931_p3 = pnand %p9930_p2, %p9924_p13 }
0x1596   : > { %v7702_v31 = vpop.permute.xlu1 %7701 }
0x1597   : > { %v7707_v38 = vmul.f32 %v8605_v55, %v7702_v31 }
0x159a   : > { %v7704_v58 = vpop.permute.xlu0 %7703 }
0x159b   : > { %v7708_v9 = vmul.f32 %v8608_v54, %v7704_v58 }
0x159d   : > { %v7709_v13 = vsub.f32 %v7707_v38, %v7708_v9 }
0x159f   : > { %v7710_v60 = vand.u32 2147483647, %v7709_v13 }
0x15a1   : > { %v7718_v49 = vmul.f32 %v8130_v37, %v7710_v60 }
0x15a3   : > { %v7719_v23 = vsel %vm534_vm0, %v7718_v49, 0.0 }
0x15a4   : > { %7720 = vadd.xlane.f32.xlu1 %v7719_v23 }
0x162d   : > { %v7721_v21 = vpop.xlane.xlu1 %7720 }
0x162e   : > { %v7724_v61 = vadd.f32 %v7723_v41, %v7721_v21 }
0x1630   : > { %v8131_v46 = vmul.f32 -1.442695, %v7724_v61 }
0x1632   : > { %9787 = vpow2.f32 %v8131_v46 }
0x163f   : > { %v9788_v62 = vpop.eup %9787 }
0x1640   : > { %v7728_v16 = vadd.f32 1.0, %v9788_v62 }
0x1642   : > { %9789 = vrcp.f32 %v7728_v16 }
0x164f   : > { %v9790_v28 = vpop.eup %9789 }
0x1650   : > { %7731 = vst [vmem:[%s411_s16] sm:$0xff] %v9790_v28 }
0x1651   : > { %9934 = shalt.err (!%p9931_p3)
}
0x1652   : > { %s9935_s27 = scalar_lea.hbm %s14803_s15, 128  ;;  %s9939_s16 = scalar_lea.hbm %s14849_s11, 1024 }
0x1653   : > { %p9936_p4 = scmp.ne.s32.totalorder %s14803_s15, %s9935_s27  ;;  %p9940_p9 = scmp.lt.s32.totalorder %s14803_s15, %s14849_s11 }
0x1654   : > { %p9941_p10 = scmp.lt.s32.totalorder %s9939_s16, %s9935_s27 }
0x1655   : > { %p9937_p7 = pnand %p9936_p4, %p10092_p5 }
0x1656   : > { %p9942_p11 = por %p9941_p10, %p9940_p9 }
0x1657   : > { %p9938_p8 = pneg %p9937_p7 }
0x1659   : > { %p9943_p12 = pnand %p9942_p11, %p9938_p8 }
0x165b   : > { %9946 = shalt.err (!%p9943_p12)
}
0x165c   : > { %8625 = dma.vmem_to_hbm [thread:$0]  (%p10092_p5), %s7747_s13, 128, %s14803_s15, %s7733_s26  }
0x165d PF: > { %p8631_p13 = scmp.ge.s32.totalorder %s9981_s24, 2  ;;  %s7758_s20 = sand.u32 1, %s9969_s21  }
0x165e   : > { %s7759_s12 = scalar_lea.sflag [#allocation5], %s7758_s20 }
0x165f   : > { %p8628_p0 = pnand %p8631_p13, %p10096_p6 }
0x1661   : > { %p8629_p1 = pneg %p8628_p0 }
0x1663   : > { %9964 = dma.done.wait (%p8629_p1), %s7759_s12, 128  }
0x1664   : > { %9966 = vsyncadd (%p8629_p1), %s7759_s12, 4294967168  ;;  %p23_p2 = scmp.ge.s32.totalorder %s10079_s25, 10   ;;  %s15445_s21 = smov %s9973_s22 }
0x1665   : > { %s15446_s22 = smov %s9977_s23  ;;  %s15447_s23 = smov %s10090_s28 }
0x1666   : > { %s15448_s24 = smov %s10079_s25  ;;  %25 = sbr.rel (!%p23_p2) target bundleno = 6 (0x6), region = 108 }
0x166b   :  { %7764 = vsyncpa [#allocation5], 1 }
0x166c   :  { %7766 = vsyncpa [#allocation5 + $0x1], 1 }

</bundles_post_ra>
